<compile_context>
chip_gen: v7x
topology: tpu7x:2x2x1
jax: 0.10.0
libtpu: 0.0.40
codegen_flags: <defaults>
</compile_context>

<pallas_src>
import functools
import math

import jax
import jax.numpy as jnp
from jax.experimental import pallas as pl
from jax.experimental.pallas import tpu as pltpu


D_IN = 784          # 28 * 28
D_PAD = 896         # 7 * 128  (lane-dense padding of the feature dim)
HID = 128
TILE_B_MAX = 256    # fills MXU M-dim on v6e/v7x, VMEM-safe on v7x (64 MiB)


def _round_up(x, m):
    return (x + m - 1) // m * m


def ae2_kernel(x_ref, w1_ref, b1_ref, w2_ref, b2_ref,
               w3_ref, b3_ref, w4_ref, b4_ref,
               sse_ref, *, batch_size, tile_b, needs_row_mask):
    """One batch tile: AE2 forward + partial sum of squared reconstruction error."""
    x = x_ref[...].astype(jnp.float32)                       # (tile_b, D_PAD)

    # encoder: Linear(784,128) + ReLU, Linear(128,128) + ReLU
    h = jnp.dot(x.astype(jnp.bfloat16), w1_ref[...],
                preferred_element_type=jnp.float32) + b1_ref[...]
    h = jnp.maximum(h, 0.0)
    h = jnp.dot(h.astype(jnp.bfloat16), w2_ref[...],
                preferred_element_type=jnp.float32) + b2_ref[...]
    h = jnp.maximum(h, 0.0)

    # decoder: Linear(128,128) + ReLU, Linear(128,784->896) + Tanh
    h = jnp.dot(h.astype(jnp.bfloat16), w3_ref[...],
                preferred_element_type=jnp.float32) + b3_ref[...]
    h = jnp.maximum(h, 0.0)
    xr = jnp.dot(h.astype(jnp.bfloat16), w4_ref[...],
                 preferred_element_type=jnp.float32) + b4_ref[...]
    xr = jnp.tanh(xr)

    # padded feature columns contribute 0: x_pad = 0 and tanh(0 + 0) = 0.
    diff = x - xr
    sq = diff * diff
    if needs_row_mask:
        row = pl.program_id(0) * tile_b + jax.lax.broadcasted_iota(
            jnp.int32, (tile_b, 1), 0)
        sq = jnp.where(row < batch_size, sq, 0.0)

    # one partial sum-of-squares per grid step (reduced in the wrapper)
    sse_ref[...] = jnp.sum(sq, keepdims=True).reshape(1, 1, 1)


def _linear_init(key, fan_in, fan_out):
    """torch.nn.Linear default init: U[-1/sqrt(fan_in), 1/sqrt(fan_in)]."""
    kw, kb = jax.random.split(key)
    bound = 1.0 / math.sqrt(fan_in)
    w = jax.random.uniform(kw, (fan_in, fan_out), jnp.float32, -bound, bound)
    b = jax.random.uniform(kb, (1, fan_out), jnp.float32, -bound, bound)
    return w, b


def make_ae2_params(key):
    k1, k2, k3, k4 = jax.random.split(key, 4)
    w1, b1 = _linear_init(k1, D_IN, HID)   # encoder[0]
    w2, b2 = _linear_init(k2, HID, HID)    # encoder[2]
    w3, b3 = _linear_init(k3, HID, HID)    # decoder[0]
    w4, b4 = _linear_init(k4, HID, D_IN)   # decoder[2]
    return (w1, b1, w2, b2, w3, b3, w4, b4)


def _prepare_params(params):
    """Pad the 784 dims to 896 with zeros; weights -> bf16, biases stay f32."""
    w1, b1, w2, b2, w3, b3, w4, b4 = params
    w1p = jnp.pad(w1, ((0, D_PAD - D_IN), (0, 0))).astype(jnp.bfloat16)
    w4p = jnp.pad(w4, ((0, 0), (0, D_PAD - D_IN))).astype(jnp.bfloat16)
    b4p = jnp.pad(b4, ((0, 0), (0, D_PAD - D_IN)))
    return (w1p, b1,
            w2.astype(jnp.bfloat16), b2,
            w3.astype(jnp.bfloat16), b3,
            w4p, b4p)


def ae2_forward(x_img, params):
    """x_img: [B, C, H, W] with C*H*W == 784 (NCHW), or already [B, 784]."""
    x = x_img.reshape(x_img.shape[0], -1) if x_img.ndim == 4 else x_img
    B, D = x.shape
    assert D == D_IN

    tile_b = min(TILE_B_MAX, _round_up(B, 8))
    grid = pl.cdiv(B, tile_b)
    b_pad = grid * tile_b

    # zero-pad batch rows (masked in kernel) and feature columns (contribute 0)
    xp = jnp.pad(x, ((0, b_pad - B), (0, D_PAD - D_IN)))

    w1, b1, w2, b2, w3, b3, w4, b4 = _prepare_params(params)

    kernel = functools.partial(
        ae2_kernel, batch_size=B, tile_b=tile_b, needs_row_mask=(b_pad != B))

    def pinned(shape):
        return pl.BlockSpec(shape, lambda i: (0, 0))

    sse = pl.pallas_call(
        kernel,
        out_shape=jax.ShapeDtypeStruct((grid, 1, 1), jnp.float32),
        grid_spec=pltpu.PrefetchScalarGridSpec(
            num_scalar_prefetch=0,
            grid=(grid,),
            in_specs=[
                pl.BlockSpec((tile_b, D_PAD), lambda i: (i, 0)),   # x tile (streamed)
                pinned((D_PAD, HID)), pinned((1, HID)),            # w1, b1 (resident)
                pinned((HID, HID)),   pinned((1, HID)),            # w2, b2
                pinned((HID, HID)),   pinned((1, HID)),            # w3, b3
                pinned((HID, D_PAD)), pinned((1, D_PAD)),          # w4, b4
            ],
            out_specs=pl.BlockSpec((1, 1, 1), lambda i: (i, 0, 0)),
        ),
        compiler_params=pltpu.CompilerParams(
            dimension_semantics=("parallel",)),
    )(xp, w1, b1, w2, b2, w3, b3, w4, b4)

    reconst_error = jnp.sum(sse) / jnp.float32(B * D_IN)
    return reconst_error, {"reconstruction_error": reconst_error}


def _ae2_ref(x_img, params):
    """Pure-JAX f32 reference (for a loose sanity check vs the bf16-weight kernel)."""
    x = x_img.reshape(x_img.shape[0], -1)
    w1, b1, w2, b2, w3, b3, w4, b4 = params
    h = jnp.maximum(x @ w1 + b1, 0.0)
    h = jnp.maximum(h @ w2 + b2, 0.0)
    h = jnp.maximum(h @ w3 + b3, 0.0)
    xr = jnp.tanh(h @ w4 + b4)
    return jnp.mean((x - xr) ** 2)


if __name__ == "__main__":
    key = jax.random.PRNGKey(0)
    k_params, k_x = jax.random.split(key)

    params = make_ae2_params(k_params)
    # MNIST-like NCHW batch. B=300 exercises a 2-tile grid (TILE_B=256) plus
    # the masked ragged final tile.
    x = jax.random.uniform(k_x, (300, 1, 28, 28), jnp.float32, -1.0, 1.0)

    err, extras = ae2_forward(x, params)
    jax.block_until_ready(err)
    jax.block_until_ready(extras["reconstruction_error"])

    assert err.shape == ()
    assert bool(jnp.isfinite(err))

    # loose check vs f32 reference (kernel uses bf16 weights on the MXU)
    ref = _ae2_ref(x, params)
    assert bool(jnp.abs(err - ref) <= 0.1 * jnp.abs(ref) + 1e-3), (err, ref)

    print("KERNEL_OK")
</pallas_src>

<mosaic_0001>
module attributes {stable_mosaic.version = 11 : i64} {
  func.func @ae2_kernel(%arg0: i32, %arg1: memref<256x896xf32, #tpu.memory_space<vmem>>, %arg2: memref<896x128xbf16, #tpu.memory_space<vmem>>, %arg3: memref<1x128xf32, #tpu.memory_space<vmem>>, %arg4: memref<128x128xbf16, #tpu.memory_space<vmem>>, %arg5: memref<1x128xf32, #tpu.memory_space<vmem>>, %arg6: memref<128x128xbf16, #tpu.memory_space<vmem>>, %arg7: memref<1x128xf32, #tpu.memory_space<vmem>>, %arg8: memref<128x896xbf16, #tpu.memory_space<vmem>>, %arg9: memref<1x896xf32, #tpu.memory_space<vmem>>, %arg10: memref<1x1x1xf32, #tpu.memory_space<vmem>>) attributes {dimension_semantics = [#tpu.dimension_semantics<parallel>], iteration_bounds = array<i64: 2>, scalar_prefetch = 0 : i64, scratch_operands = 0 : i64, tpu.core_type = #tpu.core_type<tc>, window_params = [{transform_indices = @transform_0, window_bounds = array<i64: 256, 896>}, {pipeline_mode = #tpu.pipeline_mode<synchronous>, transform_indices = @transform_1, window_bounds = array<i64: 896, 128>}, {pipeline_mode = #tpu.pipeline_mode<synchronous>, transform_indices = @transform_2, window_bounds = array<i64: 1, 128>}, {pipeline_mode = #tpu.pipeline_mode<synchronous>, transform_indices = @transform_3, window_bounds = array<i64: 128, 128>}, {pipeline_mode = #tpu.pipeline_mode<synchronous>, transform_indices = @transform_4, window_bounds = array<i64: 1, 128>}, {pipeline_mode = #tpu.pipeline_mode<synchronous>, transform_indices = @transform_5, window_bounds = array<i64: 128, 128>}, {pipeline_mode = #tpu.pipeline_mode<synchronous>, transform_indices = @transform_6, window_bounds = array<i64: 1, 128>}, {pipeline_mode = #tpu.pipeline_mode<synchronous>, transform_indices = @transform_7, window_bounds = array<i64: 128, 896>}, {pipeline_mode = #tpu.pipeline_mode<synchronous>, transform_indices = @transform_8, window_bounds = array<i64: 1, 896>}, {transform_indices = @transform_9, window_bounds = array<i64: 1, 1, 1>}]} {
    %c0 = arith.constant 0 : index
    %c0_0 = arith.constant 0 : index
    %0 = vector.load %arg1[%c0, %c0_0] : memref<256x896xf32, #tpu.memory_space<vmem>>, vector<256x896xf32>
    %1 = arith.truncf %0 : vector<256x896xf32> to vector<256x896xbf16>
    %c0_1 = arith.constant 0 : index
    %c0_2 = arith.constant 0 : index
    %2 = vector.load %arg2[%c0_1, %c0_2] : memref<896x128xbf16, #tpu.memory_space<vmem>>, vector<896x128xbf16>
    %cst = arith.constant dense<0.000000e+00> : vector<256x128xf32>
    %3 = tpu.matmul %1, %2, %cst {dimension_numbers = #tpu.dot_dimension_numbers<[1], [0], [0], [1], [0, 0, 1, 1], [], []>} : vector<256x896xbf16>, vector<896x128xbf16>, vector<256x128xf32> -> vector<256x128xf32>
    %c0_3 = arith.constant 0 : index
    %c0_4 = arith.constant 0 : index
    %4 = vector.load %arg3[%c0_3, %c0_4] : memref<1x128xf32, #tpu.memory_space<vmem>>, vector<1x128xf32>
    %5 = vector.broadcast %4 : vector<1x128xf32> to vector<256x128xf32>
    %6 = arith.addf %3, %5 : vector<256x128xf32>
    %cst_5 = arith.constant 0.000000e+00 : f32
    %7 = vector.broadcast %cst_5 : f32 to vector<256x128xf32>
    %8 = arith.maximumf %6, %7 : vector<256x128xf32>
    %9 = arith.truncf %8 : vector<256x128xf32> to vector<256x128xbf16>
    %c0_6 = arith.constant 0 : index
    %c0_7 = arith.constant 0 : index
    %10 = vector.load %arg4[%c0_6, %c0_7] : memref<128x128xbf16, #tpu.memory_space<vmem>>, vector<128x128xbf16>
    %cst_8 = arith.constant dense<0.000000e+00> : vector<256x128xf32>
    %11 = tpu.matmul %9, %10, %cst_8 {dimension_numbers = #tpu.dot_dimension_numbers<[1], [0], [0], [1], [0, 0, 1, 1], [], []>} : vector<256x128xbf16>, vector<128x128xbf16>, vector<256x128xf32> -> vector<256x128xf32>
    %c0_9 = arith.constant 0 : index
    %c0_10 = arith.constant 0 : index
    %12 = vector.load %arg5[%c0_9, %c0_10] : memref<1x128xf32, #tpu.memory_space<vmem>>, vector<1x128xf32>
    %13 = vector.broadcast %12 : vector<1x128xf32> to vector<256x128xf32>
    %14 = arith.addf %11, %13 : vector<256x128xf32>
    %cst_11 = arith.constant 0.000000e+00 : f32
    %15 = vector.broadcast %cst_11 : f32 to vector<256x128xf32>
    %16 = arith.maximumf %14, %15 : vector<256x128xf32>
    %17 = arith.truncf %16 : vector<256x128xf32> to vector<256x128xbf16>
    %c0_12 = arith.constant 0 : index
    %c0_13 = arith.constant 0 : index
    %18 = vector.load %arg6[%c0_12, %c0_13] : memref<128x128xbf16, #tpu.memory_space<vmem>>, vector<128x128xbf16>
    %cst_14 = arith.constant dense<0.000000e+00> : vector<256x128xf32>
    %19 = tpu.matmul %17, %18, %cst_14 {dimension_numbers = #tpu.dot_dimension_numbers<[1], [0], [0], [1], [0, 0, 1, 1], [], []>} : vector<256x128xbf16>, vector<128x128xbf16>, vector<256x128xf32> -> vector<256x128xf32>
    %c0_15 = arith.constant 0 : index
    %c0_16 = arith.constant 0 : index
    %20 = vector.load %arg7[%c0_15, %c0_16] : memref<1x128xf32, #tpu.memory_space<vmem>>, vector<1x128xf32>
    %21 = vector.broadcast %20 : vector<1x128xf32> to vector<256x128xf32>
    %22 = arith.addf %19, %21 : vector<256x128xf32>
    %cst_17 = arith.constant 0.000000e+00 : f32
    %23 = vector.broadcast %cst_17 : f32 to vector<256x128xf32>
    %24 = arith.maximumf %22, %23 : vector<256x128xf32>
    %25 = arith.truncf %24 : vector<256x128xf32> to vector<256x128xbf16>
    %c0_18 = arith.constant 0 : index
    %c0_19 = arith.constant 0 : index
    %26 = vector.load %arg8[%c0_18, %c0_19] : memref<128x896xbf16, #tpu.memory_space<vmem>>, vector<128x896xbf16>
    %cst_20 = arith.constant dense<0.000000e+00> : vector<256x896xf32>
    %27 = tpu.matmul %25, %26, %cst_20 {dimension_numbers = #tpu.dot_dimension_numbers<[1], [0], [0], [1], [0, 0, 1, 1], [], []>} : vector<256x128xbf16>, vector<128x896xbf16>, vector<256x896xf32> -> vector<256x896xf32>
    %c0_21 = arith.constant 0 : index
    %c0_22 = arith.constant 0 : index
    %28 = vector.load %arg9[%c0_21, %c0_22] : memref<1x896xf32, #tpu.memory_space<vmem>>, vector<1x896xf32>
    %29 = vector.broadcast %28 : vector<1x896xf32> to vector<256x896xf32>
    %30 = arith.addf %27, %29 : vector<256x896xf32>
    %31 = math.tanh %30 : vector<256x896xf32>
    %32 = arith.subf %0, %31 : vector<256x896xf32>
    %33 = arith.mulf %32, %32 : vector<256x896xf32>
    %c256_i32 = arith.constant 256 : i32
    %34 = arith.muli %arg0, %c256_i32 : i32
    %35 = tpu.iota {dimensions = array<i32: 0>} : vector<256x1xi32>
    %36 = vector.broadcast %34 : i32 to vector<256x1xi32>
    %37 = arith.addi %36, %35 : vector<256x1xi32>
    %c300_i32 = arith.constant 300 : i32
    %38 = vector.broadcast %c300_i32 : i32 to vector<256x1xi32>
    %39 = arith.cmpi slt, %37, %38 : vector<256x1xi32>
    %cst_23 = arith.constant 0.000000e+00 : f32
    %40 = vector.shape_cast %39 : vector<256x1xi1> to vector<256x1xi1>
    %41 = vector.broadcast %40 : vector<256x1xi1> to vector<256x896xi1>
    %42 = vector.broadcast %cst_23 : f32 to vector<256x896xf32>
    %43 = arith.select %41, %33, %42 : vector<256x896xi1>, vector<256x896xf32>
    %44 = vector.shape_cast %43 : vector<256x896xf32> to vector<1x256x896xf32>
    %cst_24 = arith.constant dense<0.000000e+00> : vector<1xf32>
    %45 = vector.multi_reduction <add>, %44, %cst_24 [1, 2] : vector<1x256x896xf32> to vector<1xf32>
    %46 = vector.shape_cast %45 : vector<1xf32> to vector<1x1x1xf32>
    %47 = vector.extract %46[0, 0, 0] : f32 from vector<1x1x1xf32>
    %48 = vector.broadcast %47 : f32 to vector<1x1xf32>
    %49 = vector.shape_cast %48 : vector<1x1xf32> to vector<1x1x1xf32>
    %c0_25 = arith.constant 0 : index
    %c0_26 = arith.constant 0 : index
    %c0_27 = arith.constant 0 : index
    %50 = vector.load %arg10[%c0_25, %c0_26, %c0_27] : memref<1x1x1xf32, #tpu.memory_space<vmem>>, vector<1x1x1xf32>
    tpu.vector_store %arg10[%c0_25, %c0_26, %c0_27], %49 {strides = array<i32>} : memref<1x1x1xf32, #tpu.memory_space<vmem>>, vector<1x1x1xf32>,
    return
  }
  func.func @transform_0(%arg0: i32) -> (i32, i32) {
    %c0_i32 = arith.constant 0 : i32
    %c0_i32_0 = arith.constant 0 : i32
    return %arg0, %c0_i32 : i32, i32
  }
  func.func @transform_1(%arg0: i32) -> (i32, i32) {
    %c0_i32 = arith.constant 0 : i32
    %c0_i32_0 = arith.constant 0 : i32
    %c0_i32_1 = arith.constant 0 : i32
    return %c0_i32, %c0_i32_0 : i32, i32
  }
  func.func @transform_2(%arg0: i32) -> (i32, i32) {
    %c0_i32 = arith.constant 0 : i32
    %c0_i32_0 = arith.constant 0 : i32
    %c0_i32_1 = arith.constant 0 : i32
    return %c0_i32, %c0_i32_0 : i32, i32
  }
  func.func @transform_3(%arg0: i32) -> (i32, i32) {
    %c0_i32 = arith.constant 0 : i32
    %c0_i32_0 = arith.constant 0 : i32
    %c0_i32_1 = arith.constant 0 : i32
    return %c0_i32, %c0_i32_0 : i32, i32
  }
  func.func @transform_4(%arg0: i32) -> (i32, i32) {
    %c0_i32 = arith.constant 0 : i32
    %c0_i32_0 = arith.constant 0 : i32
    %c0_i32_1 = arith.constant 0 : i32
    return %c0_i32, %c0_i32_0 : i32, i32
  }
  func.func @transform_5(%arg0: i32) -> (i32, i32) {
    %c0_i32 = arith.constant 0 : i32
    %c0_i32_0 = arith.constant 0 : i32
    %c0_i32_1 = arith.constant 0 : i32
    return %c0_i32, %c0_i32_0 : i32, i32
  }
  func.func @transform_6(%arg0: i32) -> (i32, i32) {
    %c0_i32 = arith.constant 0 : i32
    %c0_i32_0 = arith.constant 0 : i32
    %c0_i32_1 = arith.constant 0 : i32
    return %c0_i32, %c0_i32_0 : i32, i32
  }
  func.func @transform_7(%arg0: i32) -> (i32, i32) {
    %c0_i32 = arith.constant 0 : i32
    %c0_i32_0 = arith.constant 0 : i32
    %c0_i32_1 = arith.constant 0 : i32
    return %c0_i32, %c0_i32_0 : i32, i32
  }
  func.func @transform_8(%arg0: i32) -> (i32, i32) {
    %c0_i32 = arith.constant 0 : i32
    %c0_i32_0 = arith.constant 0 : i32
    %c0_i32_1 = arith.constant 0 : i32
    return %c0_i32, %c0_i32_0 : i32, i32
  }
  func.func @transform_9(%arg0: i32) -> (i32, i32, i32) {
    %c0_i32 = arith.constant 0 : i32
    %c0_i32_0 = arith.constant 0 : i32
    %c0_i32_1 = arith.constant 0 : i32
    return %arg0, %c0_i32, %c0_i32_0 : i32, i32, i32
  }
}

</mosaic_0001>

<bundles_post_ra>
// kernel: tpu_custom_call.1
= control target key start
LH: loop header
LB: loop body
LE: loop exit
PB: predicated region body
PF: predicated region fallthrough
CT: control target
= control target key end

     0   :  { %s9927_s0 = inlined_call_operand.hbm [shape: f32[512,896], index: 0, kind: input, shape index: {}]   ;;  %s9928_s1 = inlined_call_operand.hbm [shape: bf16[896,128], index: 1, kind: input, shape index: {}]   ;;  %s9929_s2 = inlined_call_operand.hbm [shape: f32[1,128], index: 2, kind: input, shape index: {}]   ;;  %s9930_s3 = inlined_call_operand.hbm [shape: bf16[128,128], index: 3, kind: input, shape index: {}]   ;;  %s9931_s4 = inlined_call_operand.hbm [shape: f32[1,128], index: 4, kind: input, shape index: {}]   ;;  %s9932_s5 = inlined_call_operand.hbm [shape: bf16[128,128], index: 5, kind: input, shape index: {}]   ;;  %s9933_s6 = inlined_call_operand.hbm [shape: f32[1,128], index: 6, kind: input, shape index: {}]   ;;  %s9934_s7 = inlined_call_operand.hbm [shape: bf16[128,896], index: 7, kind: input, shape index: {}]   ;;  %s9935_s8 = inlined_call_operand.hbm [shape: f32[1,896], index: 8, kind: input, shape index: {}]   ;;  %s9936_s9 = inlined_call_operand.vmem [shape: f32[2,1,1], index: 9, kind: output, shape index: {}]  }
   0x1   :  { %9939 = sst [smem:[#allocation169_spill]] %s9936_s9 }
   0x2   :  { %14 = vsyncpa [#allocation3], 0 }
   0x3   :  { %16 = vsyncpa [#allocation3 + $0x1], 0 }
   0x4   :  { %17 = vsyncpa [#allocation5], 0 }
   0x5   :  { %18 = vsyncpa [#allocation8], 0 }
   0x6   :  { %19 = vsyncpa [#allocation11], 0 }
   0x7   :  { %20 = vsyncpa [#allocation14], 0  ;;  %s7170_s30 = smov 0   ;;  %s7172_s10 = smov 0  }
   0x8   :  { %s7174_s11 = smov 0   ;;  %s7176_s12 = smov 0  }
   0x9 LB: > { %s7104_s13 = smov [#allocation4]   ;;  %s7191_s15 = sadd.s32 4294967295, %s7102_s12   ;;  %s7102_s12 = sphi %s7176_s12, %s10279_s12   ;;  %s7098_s11 = sphi %s7174_s11, %s10278_s11   ;;  %s7094_s10 = sphi %s7172_s10, %s10277_s10   ;;  %s7090_s30 = sphi %s7170_s30, %s10276_s30  }
   0xa   : > { %s263_s14 = sshll.u32 %s7104_s13, 4  ;;  %p5062_p0 = scmp.ge.s32.totalorder %s7102_s12, 1  ;;  %s7196_s14 = int_to_ptr.vmem [resolvable:$true] %s263_s14 }
   0xb   : > { %p9937_p1 = scmp.eq.s32.totalorder %s7191_s15, 0  ;;  %p251_p2 = scmp.lt.s32.totalorder %s7102_s12, 3 }
   0xc   : > { %s7105_s17 = smov [#allocation7]   ;;  %s7106_s20 = smov [#allocation10]  }
   0xd   : > { %p7198_p3 = pnand %p5062_p0, %p251_p2  ;;  %s287_s18 = sshll.u32 %s7105_s17, 4  ;;  %s7210_s18 = int_to_ptr.vmem [resolvable:$true] %s287_s18 }
   0xe   : > { %s311_s21 = sshll.u32 %s7106_s20, 4  ;;  %s6798_s24 = scalar_lea.hbm %s9928_s1, 7168  ;;  %s7212_s21 = int_to_ptr.vmem [resolvable:$true] %s311_s21 }
   0xf   : > { %s9940_s16 = scalar_select %p7198_p3, 1, 0 }
  0x10   : > { %p5881_p4 = pneg %p7198_p3  ;;  %p6799_p6 = scmp.ne.s32.totalorder %s9928_s1, %s6798_s24 }
  0x11   : > { %p6805_p10 = scmp.lt.u32.totalorder %s6798_s24, %s9928_s1 }
  0x12   : > { %p7206_p5 = pnand %p5881_p4, %p9937_p1 }
  0x14   : > { %p7222_p7 = pneg %p7206_p5 }
  0x16   : > { %p6801_p8 = pnand %p7222_p7, %p6799_p6 }
  0x18   : > { %p6802_p9 = pneg %p6801_p8 }
  0x1a   : > { %p6807_p11 = pnand %p6805_p10, %p6802_p9 }
  0x1c   : > { %6810 = shalt.err (!%p6807_p11)
}
  0x1d   : > { %s6811_s13 = scalar_lea.vmem %s7196_s14, 7168  ;;  %p6819_p2 = scmp.lt.s32.totalorder %s7196_s14, %s7196_s14 }
  0x1e   : > { %p6812_p12 = scmp.ne.s32.totalorder %s7196_s14, %s6811_s13  ;;  %p6820_p4 = scmp.lt.s32.totalorder %s6811_s13, %s6811_s13 }
  0x20   : > { %p6814_p13 = pnand %p6812_p12, %p7222_p7  ;;  %p6821_p6 = por %p6820_p4, %p6819_p2 }
  0x22   : > { %p6815_p0 = pneg %p6814_p13 }
  0x24   : > { %p6822_p8 = pnand %p6821_p6, %p6815_p0 }
  0x26   : > { %6825 = shalt.err (!%p6822_p8)
}
  0x27   : > { %s7107_s17 = smov 64   ;;  %s7108_s20 = smov 4  }
  0x28   : > { %5884 = dma.hbm_to_vmem [thread:$0]  (!%p7206_p5), %s9928_s1, 7168, %s7196_s14, [#allocation5], %s7107_s17, %s7107_s17, %s7108_s20  }
  0x29   : > { %s6826_s26 = scalar_lea.hbm %s9930_s3, 1024 }
  0x2a   : > { %p6827_p9 = scmp.ne.s32.totalorder %s9930_s3, %s6826_s26  ;;  %p6833_p12 = scmp.lt.u32.totalorder %s6826_s26, %s9930_s3 }
  0x2c   : > { %p6829_p10 = pnand %p6827_p9, %p7222_p7 }
  0x2e   : > { %p6830_p11 = pneg %p6829_p10 }
  0x30   : > { %p6835_p13 = pnand %p6833_p12, %p6830_p11 }
  0x32   : > { %6838 = shalt.err (!%p6835_p13)
}
  0x33   : > { %s6839_s14 = scalar_lea.vmem %s7210_s18, 1024  ;;  %p6847_p6 = scmp.lt.s32.totalorder %s7210_s18, %s7210_s18 }
  0x34   : > { %p6840_p0 = scmp.ne.s32.totalorder %s7210_s18, %s6839_s14  ;;  %p6848_p8 = scmp.lt.s32.totalorder %s6839_s14, %s6839_s14 }
  0x36   : > { %p6842_p2 = pnand %p6840_p0, %p7222_p7  ;;  %p6849_p9 = por %p6848_p8, %p6847_p6 }
  0x38   : > { %p6843_p4 = pneg %p6842_p2 }
  0x3a   : > { %p6850_p10 = pnand %p6849_p9, %p6843_p4 }
  0x3c   : > { %6853 = shalt.err (!%p6850_p10)
}
  0x3d   : > { %5890 = dma.hbm_to_vmem [thread:$0]  (!%p7206_p5), %s9930_s3, 1024, %s7210_s18, [#allocation8], %s7107_s17, %s7107_s17, %s7108_s20  }
  0x3e   : > { %s6854_s25 = scalar_lea.hbm %s9932_s5, 1024 }
  0x3f   : > { %p6855_p11 = scmp.ne.s32.totalorder %s9932_s5, %s6854_s25  ;;  %p6861_p0 = scmp.lt.u32.totalorder %s6854_s25, %s9932_s5 }
  0x41   : > { %p6857_p12 = pnand %p6855_p11, %p7222_p7 }
  0x43   : > { %p6858_p13 = pneg %p6857_p12 }
  0x45   : > { %p6863_p2 = pnand %p6861_p0, %p6858_p13 }
  0x47   : > { %6866 = shalt.err (!%p6863_p2)
}
  0x48   : > { %s6867_s18 = scalar_lea.vmem %s7212_s21, 1024  ;;  %p6875_p9 = scmp.lt.s32.totalorder %s7212_s21, %s7212_s21 }
  0x49   : > { %p6868_p4 = scmp.ne.s32.totalorder %s7212_s21, %s6867_s18  ;;  %p6876_p10 = scmp.lt.s32.totalorder %s6867_s18, %s6867_s18 }
  0x4b   : > { %p6870_p6 = pnand %p6868_p4, %p7222_p7  ;;  %p6877_p11 = por %p6876_p10, %p6875_p9 }
  0x4d   : > { %p6871_p8 = pneg %p6870_p6 }
  0x4f   : > { %p6878_p12 = pnand %p6877_p11, %p6871_p8 }
  0x51   : > { %6881 = shalt.err (!%p6878_p12)
}
  0x52   : > { %5896 = dma.hbm_to_vmem [thread:$0]  (!%p7206_p5), %s9932_s5, 1024, %s7212_s21, [#allocation11], %s7107_s17, %s7107_s17, %s7108_s20  }
  0x53   : > { %s7109_s22 = smov [#allocation13]   ;;  %s6882_s26 = scalar_lea.hbm %s9934_s7, 7168 }
  0x54   : > { %s335_s23 = sshll.u32 %s7109_s22, 4  ;;  %p6883_p13 = scmp.ne.s32.totalorder %s9934_s7, %s6882_s26  ;;  %s336_s23 = int_to_ptr.vmem [resolvable:$true] %s335_s23 }
  0x55   : > { %p6889_p4 = scmp.lt.u32.totalorder %s6882_s26, %s9934_s7 }
  0x56   : > { %p6885_p0 = pnand %p6883_p13, %p7222_p7 }
  0x58   : > { %p6886_p2 = pneg %p6885_p0 }
  0x5a   : > { %p6891_p6 = pnand %p6889_p4, %p6886_p2 }
  0x5c   : > { %6894 = shalt.err (!%p6891_p6)
}
  0x5d   : > { %s6895_s21 = scalar_lea.vmem %s336_s23, 7168  ;;  %p6903_p11 = scmp.lt.s32.totalorder %s336_s23, %s336_s23 }
  0x5e   : > { %p6896_p8 = scmp.ne.s32.totalorder %s336_s23, %s6895_s21  ;;  %p6904_p12 = scmp.lt.s32.totalorder %s6895_s21, %s6895_s21 }
  0x60   : > { %p6898_p9 = pnand %p6896_p8, %p7222_p7  ;;  %p6905_p1 = por %p6904_p12, %p6903_p11 }
  0x62   : > { %p6899_p10 = pneg %p6898_p9 }
  0x64   : > { %p6906_p3 = pnand %p6905_p1, %p6899_p10 }
  0x66   : > { %6909 = shalt.err (!%p6906_p3)
}
  0x67   : > { %s7110_s17 = smov 448   ;;  %s7111_s20 = smov 28  }
  0x68   : > { %5902 = dma.hbm_to_vmem [thread:$0]  (!%p7206_p5), %s9934_s7, 7168, %s336_s23, [#allocation14], %s7110_s17, %s7110_s17, %s7111_s20  }
  0x69   : > { %s7112_s22 = smov [#allocation6]   ;;  %s7113_s25 = smov [#allocation9]  }
  0x6a   : > { %s277_s24 = sshll.u32 %s7112_s22, 4  ;;  %s301_s26 = sshll.u32 %s7113_s25, 4  ;;  %s278_s24 = int_to_ptr.vmem [resolvable:$true] %s277_s24  ;;  %s7316_s26 = int_to_ptr.vmem [resolvable:$true] %s301_s26 }
  0x6b   : > { %s6910_s13 = scalar_lea.hbm %s9929_s2, 16 }
  0x6c   : > { %p6911_p1 = scmp.ne.s32.totalorder %s9929_s2, %s6910_s13  ;;  %p6917_p0 = scmp.lt.u32.totalorder %s6910_s13, %s9929_s2 }
  0x6e   : > { %p6913_p3 = pnand %p6911_p1, %p7222_p7 }
  0x70   : > { %p6914_p13 = pneg %p6913_p3 }
  0x72   : > { %p6919_p2 = pnand %p6917_p0, %p6914_p13 }
  0x74   : > { %6922 = shalt.err (!%p6919_p2)
}
  0x75   : > { %s6923_s17 = scalar_lea.vmem %s278_s24, 16  ;;  %s6930_s20 = scalar_lea.vmem %s278_s24, 32 }
  0x76   : > { %p6924_p4 = scmp.ne.s32.totalorder %s278_s24, %s6923_s17  ;;  %p6931_p9 = scmp.lt.s32.totalorder %s278_s24, %s278_s24 }
  0x77   : > { %p6932_p10 = scmp.lt.s32.totalorder %s6930_s20, %s6923_s17 }
  0x78   : > { %p6926_p6 = pnand %p6924_p4, %p7222_p7 }
  0x79   : > { %p6933_p11 = por %p6932_p10, %p6931_p9 }
  0x7a   : > { %p6927_p8 = pneg %p6926_p6 }
  0x7c   : > { %p6934_p12 = pnand %p6933_p11, %p6927_p8 }
  0x7e   : > { %6937 = shalt.err (!%p6934_p12)
}
  0x7f   : > { %5887 = dma.hbm_to_vmem [thread:$0]  (!%p7206_p5), %s9929_s2, 16, %s278_s24, [#allocation5]  }
  0x80   : > { %s6938_s29 = scalar_lea.hbm %s9931_s4, 16 }
  0x81   : > { %p6939_p1 = scmp.ne.s32.totalorder %s9931_s4, %s6938_s29  ;;  %p6945_p0 = scmp.lt.u32.totalorder %s6938_s29, %s9931_s4 }
  0x83   : > { %p6941_p3 = pnand %p6939_p1, %p7222_p7 }
  0x85   : > { %p6942_p13 = pneg %p6941_p3 }
  0x87   : > { %p6947_p2 = pnand %p6945_p0, %p6942_p13 }
  0x89   : > { %6950 = shalt.err (!%p6947_p2)
}
  0x8a   : > { %s6951_s24 = scalar_lea.vmem %s7316_s26, 16  ;;  %s6958_s23 = scalar_lea.vmem %s7316_s26, 32 }
  0x8b   : > { %p6952_p4 = scmp.ne.s32.totalorder %s7316_s26, %s6951_s24  ;;  %p6959_p9 = scmp.lt.s32.totalorder %s7316_s26, %s7316_s26 }
  0x8c   : > { %p6960_p10 = scmp.lt.s32.totalorder %s6958_s23, %s6951_s24 }
  0x8d   : > { %p6954_p6 = pnand %p6952_p4, %p7222_p7 }
  0x8e   : > { %p6961_p11 = por %p6960_p10, %p6959_p9 }
  0x8f   : > { %p6955_p8 = pneg %p6954_p6 }
  0x91   : > { %p6962_p12 = pnand %p6961_p11, %p6955_p8 }
  0x93   : > { %6965 = shalt.err (!%p6962_p12)
}
  0x94   : > { %5893 = dma.hbm_to_vmem [thread:$0]  (!%p7206_p5), %s9931_s4, 16, %s7316_s26, [#allocation8]  }
  0x95   : > { %s7114_s9 = smov [#allocation12]   ;;  %s7115_s25 = smov [#allocation15]  }
  0x96   : > { %s325_s22 = sshll.u32 %s7114_s9, 4  ;;  %s349_s28 = sshll.u32 %s7115_s25, 4  ;;  %s326_s22 = int_to_ptr.vmem [resolvable:$true] %s325_s22  ;;  %s7360_s28 = int_to_ptr.vmem [resolvable:$true] %s349_s28 }
  0x97   : > { %s6966_s18 = scalar_lea.hbm %s9933_s6, 16 }
  0x98   : > { %p6967_p1 = scmp.ne.s32.totalorder %s9933_s6, %s6966_s18  ;;  %p6973_p0 = scmp.lt.u32.totalorder %s6966_s18, %s9933_s6 }
  0x9a   : > { %p6969_p3 = pnand %p6967_p1, %p7222_p7 }
  0x9c   : > { %p6970_p13 = pneg %p6969_p3 }
  0x9e   : > { %p6975_p2 = pnand %p6973_p0, %p6970_p13 }
  0xa0   : > { %6978 = shalt.err (!%p6975_p2)
}
  0xa1   : > { %s6979_s23 = scalar_lea.vmem %s326_s22, 16  ;;  %s6986_s17 = scalar_lea.vmem %s326_s22, 32 }
  0xa2   : > { %p6980_p4 = scmp.ne.s32.totalorder %s326_s22, %s6979_s23  ;;  %p6987_p9 = scmp.lt.s32.totalorder %s326_s22, %s326_s22 }
  0xa3   : > { %p6988_p10 = scmp.lt.s32.totalorder %s6986_s17, %s6979_s23 }
  0xa4   : > { %p6982_p6 = pnand %p6980_p4, %p7222_p7 }
  0xa5   : > { %p6989_p11 = por %p6988_p10, %p6987_p9 }
  0xa6   : > { %p6983_p8 = pneg %p6982_p6 }
  0xa8   : > { %p6990_p12 = pnand %p6989_p11, %p6983_p8 }
  0xaa   : > { %6993 = shalt.err (!%p6990_p12)
}
  0xab   : > { %5899 = dma.hbm_to_vmem [thread:$0]  (!%p7206_p5), %s9933_s6, 16, %s326_s22, [#allocation11]  }
  0xac   : > { %s6994_s13 = scalar_lea.hbm %s9935_s8, 112 }
  0xad   : > { %p6995_p1 = scmp.ne.s32.totalorder %s9935_s8, %s6994_s13  ;;  %p7001_p0 = scmp.lt.u32.totalorder %s6994_s13, %s9935_s8 }
  0xaf   : > { %p6997_p3 = pnand %p6995_p1, %p7222_p7 }
  0xb1   : > { %p6998_p13 = pneg %p6997_p3 }
  0xb3   : > { %p7003_p2 = pnand %p7001_p0, %p6998_p13 }
  0xb5   : > { %7006 = shalt.err (!%p7003_p2)
}
  0xb6   : > { %s7007_s22 = scalar_lea.vmem %s7360_s28, 112  ;;  %s7014_s26 = scalar_lea.vmem %s7360_s28, 128 }
  0xb7   : > { %p7008_p4 = scmp.ne.s32.totalorder %s7360_s28, %s7007_s22  ;;  %p7015_p9 = scmp.lt.s32.totalorder %s7360_s28, %s7360_s28 }
  0xb8   : > { %p7016_p10 = scmp.lt.s32.totalorder %s7014_s26, %s7007_s22 }
  0xb9   : > { %p7010_p6 = pnand %p7008_p4, %p7222_p7 }
  0xba   : > { %p7017_p11 = por %p7016_p10, %p7015_p9 }
  0xbb   : > { %p7011_p8 = pneg %p7010_p6 }
  0xbd   : > { %p7018_p12 = pnand %p7017_p11, %p7011_p8 }
  0xbf   : > { %7021 = shalt.err (!%p7018_p12)
}
  0xc0   : > { %5905 = dma.hbm_to_vmem [thread:$0]  (!%p7206_p5), %s9935_s8, 112, %s7360_s28, [#allocation14]  }
  0xc1   : > { %s7405_s27 = sadd.s32 1, %s7102_s12   ;;  %s33_s19 = sadd.s32 1, %s7098_s11 }
  0xc2   : > { %s30_s20 = ssub.s32 %s7102_s12, %s7405_s27  ;;  %p40_p7 = scmp.ne.s32.totalorder %s7098_s11, %s7094_s10 }
  0xc3   : > { %p31_p1 = scmp.eq.s32.totalorder %s30_s20, 0  ;;  %p41_p3 = scmp.eq.s32.totalorder %s7102_s12, 0 }
  0xc4   : > { %p46_p13 = scmp.ne.s32.totalorder %s7094_s10, %s7090_s30  ;;  %p5918_p0 = scmp.lt.s32.totalorder %s7102_s12, 2 }
  0xc5   : > { %s7417_s9 = scalar_select %p31_p1, %s7098_s11, %s33_s19  }
  0xc6   : > { %p42_p2 = por %p41_p3, %p40_p7  ;;  %p9943_p4 = scmp.eq.s32.totalorder %s7191_s15, 0 }
  0xc7   : > { %s360_s29 = sand.u32 1, %s7098_s11   ;;  %s5843_s28 = smul.u32 28672, %s7102_s12 }
  0xc8   : > { %p7421_p6 = por %p9943_p4, %p46_p13  ;;  %s5842_s13 = smul.u32 1792, %s360_s29 }
  0xc9   : > { %s7430_s14 = scalar_lea.hbm %s9927_s0, %s5843_s28  ;;  %p7432_p5 = pnand %p5918_p0, %p42_p2 }
  0xca   : > { %s364_s24 = scalar_lea.vmem [#allocation2], %s5842_s13  ;;  %s7438_s12 = scalar_lea.sflag [#allocation3], %s360_s29 }
  0xcb   : > { %s372_s22 = sshll.u32 %s364_s24, 4  ;;  %s7022_s26 = scalar_lea.hbm %s7430_s14, 28672  ;;  %s7436_s22 = int_to_ptr.vmem [resolvable:$true] %s372_s22 }
  0xcc   : > { %p7023_p8 = scmp.ne.s32.totalorder %s7430_s14, %s7022_s26  ;;  %p7024_p9 = pneg %p7432_p5 }
  0xcd   : > { %s7027_s19 = scalar_lea.hbm %s9927_s0, 57344  ;;  %p7028_p12 = scmp.lt.u32.totalorder %s7430_s14, %s9927_s0 }
  0xce   : > { %p7025_p10 = pnand %p7024_p9, %p7023_p8  ;;  %p7029_p7 = scmp.lt.u32.totalorder %s7027_s19, %s7022_s26 }
  0xcf   : > { %p7031_p3 = scmp.lt.u32.totalorder %s7022_s26, %s7430_s14 }
  0xd0   : > { %p7026_p11 = pneg %p7025_p10  ;;  %p7030_p1 = por %p7029_p7, %p7028_p12 }
  0xd2   : > { %p7032_p13 = por %p7031_p3, %p7030_p1 }
  0xd4   : > { %p7033_p0 = pnand %p7032_p13, %p7026_p11 }
  0xd6   : > { %7036 = shalt.err (!%p7033_p0)
}
  0xd7   : > { %s7037_s29 = scalar_lea.vmem %s7436_s22, 28672  ;;  %s7116_s13 = smov [#allocation2]  }
  0xd8   : > { %p7038_p2 = scmp.ne.s32.totalorder %s7436_s22, %s7037_s29  ;;  %s7042_s18 = sshll.u32 %s7116_s13, 4  ;;  %s7043_s18 = int_to_ptr.vmem [resolvable:$false] %s7042_s18 }
  0xd9   : > { %s7044_s21 = scalar_lea.vmem %s7043_s18, 57344  ;;  %p7045_p10 = scmp.lt.s32.totalorder %s7436_s22, %s7043_s18 }
  0xda   : > { %p7040_p4 = pnand %p7038_p2, %p7024_p9  ;;  %p7046_p12 = scmp.lt.s32.totalorder %s7044_s21, %s7037_s29 }
  0xdc   : > { %p7041_p8 = pneg %p7040_p4  ;;  %p7047_p7 = por %p7046_p12, %p7045_p10 }
  0xde   : > { %p7048_p1 = pnand %p7047_p7, %p7041_p8 }
  0xe0   : > { %7051 = shalt.err (!%p7048_p1)
}
  0xe1   : > { %s7117_s24 = smov 896   ;;  %s7118_s26 = smov 56  }
  0xe2   : > { %5909 = dma.hbm_to_vmem [thread:$0]  (!%p7432_p5), %s7430_s14, 28672, %s7436_s22, %s7438_s12, %s7117_s24, %s7117_s24, %s7118_s26  }
  0xe3   : > { %p9946_p9 = scmp.ne.s32.totalorder %s9940_s16, 0 }
  0xe5   : > { %384 = sbr.rel (%p9946_p9) target bundleno = 2135 (0x857), region = 56 }
  0xec   : > { %s386_s23 = sand.u32 1, %s7094_s10  }
  0xed   : > { %s5844_s17 = smul.u32 1792, %s386_s23  ;;  %s387_s19 = scalar_lea.sflag [#allocation3], %s386_s23 }
  0xef   : > { %s7469_s20 = scalar_lea.vmem [#allocation2], %s5844_s17 }
  0xf0   : > { %7069 = dma.done.wait (%p7421_p6), %s387_s19, 28672  }
  0xf1   : > { %7071 = vsyncadd (%p7421_p6), %s387_s19, 4294938624  ;;  %p9947_p11 = scmp.eq.s32.totalorder %s7191_s15, 0 }
  0xf3   : > { %7073 = dma.done.wait (%p9947_p11), [#allocation5], 7184   ;;  %p9948_p5 = pmov %p9947_p11 }
  0xf5   : > { %7075 = vsyncadd (%p9948_p5), [#allocation5], 4294960112  ;;  %p9949_p3 = pmov %p9948_p5 }
  0xf7   : > { %7077 = dma.done.wait (%p9949_p3), [#allocation8], 1040   ;;  %p9950_p13 = pmov %p9949_p3 }
  0xf8   : > { %p9951_p0 = pmov %p9949_p3 }
  0xf9   : > { %7079 = vsyncadd (%p9950_p13), [#allocation8], 4294966256 }
  0xfa   : > { %7081 = dma.done.wait (%p9951_p0), [#allocation11], 1040   ;;  %p9952_p2 = pmov %p9951_p0 }
  0xfb   : > { %p9953_p6 = pmov %p9951_p0 }
  0xfc   : > { %7083 = vsyncadd (%p9952_p2), [#allocation11], 4294966256 }
  0xfd   : > { %7085 = dma.done.wait (%p9953_p6), [#allocation14], 7280   ;;  %p9954_p4 = pmov %p9951_p0 }
  0xfe   : > { %v5974_v0 = vld [vmem:[#allocation4 + $0x40] sm:$0xff]   ;;  %v5978_v4 = vld [vmem:[#allocation4 + $0x48] sm:$0xff]   ;;  %v5982_v8 = vld [vmem:[#allocation4 + $0x50] sm:$0xff]   ;;  %s5215_s16 = sshll.u32 %s7191_s15, 8  ;;  %p456_p8 = scmp.lt.s32.totalorder %s7191_s15, 1 }
  0xff   : > { %7087 = vsyncadd (%p9954_p4), [#allocation14], 4294960016  ;;  %v5975_v1 = vld [vmem:[#allocation4] sm:$0xff]   ;;  %5218 = vmatprep.subr.bf16.mxu0 %v5974_v0  ;;  %v5979_v5 = vld [vmem:[#allocation4 + $0x8] sm:$0xff]   ;;  %s10275_s30 = sld [smem:[#allocation169_spill]] }
 0x100   : > { %v5976_v2 = vld [vmem:[#allocation4 + $0xc0] sm:$0xff]   ;;  %5219 = vmatpush3.bf16.msra.mxu0 %v5975_v1  ;;  %v5980_v6 = vld [vmem:[#allocation4 + $0xc8] sm:$0xff]   ;;  %v5983_v9 = vld [vmem:[#allocation4 + $0x10] sm:$0xff]   ;;  %s10281_s15 = smov (!%p456_p8, %s7191_s15), 1 }
 0x101   : > { %v5977_v3 = vld [vmem:[#allocation4 + $0x80] sm:$0xff]   ;;  %5330 = vmatprep.subr.bf16.mxu1 %v5976_v2  ;;  %5220 = vmatprep.subr.bf16.mxu0 %v5978_v4  ;;  %v5981_v7 = vld [vmem:[#allocation4 + $0x88] sm:$0xff]   ;;  %v5984_v10 = vld [vmem:[#allocation4 + $0xd0] sm:$0xff]  }
 0x102   : > { %5331 = vmatpush3.bf16.msra.mxu1 %v5977_v3  ;;  %v5985_v11 = vld [vmem:[#allocation4 + $0x90] sm:$0xff]   ;;  %v5986_v12 = vld [vmem:[#allocation4 + $0x58] sm:$0xff]   ;;  %v5990_v16 = vld [vmem:[#allocation4 + $0x60] sm:$0xff]  }
 0x103   : > { %5332 = vmatprep.subr.bf16.mxu1 %v5980_v6  ;;  %v5987_v13 = vld [vmem:[#allocation4 + $0x18] sm:$0xff]   ;;  %v5991_v17 = vld [vmem:[#allocation4 + $0x20] sm:$0xff]   ;;  %v5994_v20 = vld [vmem:[#allocation4 + $0x68] sm:$0xff]  }
 0x104   : > { %5221 = vmatpush3.bf16.msra.mxu0 %v5979_v5  ;;  %v5988_v14 = vld [vmem:[#allocation4 + $0xd8] sm:$0xff]   ;;  %v5992_v18 = vld [vmem:[#allocation4 + $0xe0] sm:$0xff]   ;;  %v5995_v21 = vld [vmem:[#allocation4 + $0x28] sm:$0xff]  }
 0x105   : > { %5222 = vmatprep.subr.bf16.mxu0 %v5982_v8  ;;  %v5989_v15 = vld [vmem:[#allocation4 + $0x98] sm:$0xff]   ;;  %v5993_v19 = vld [vmem:[#allocation4 + $0xa0] sm:$0xff]   ;;  %v5996_v22 = vld [vmem:[#allocation4 + $0xe8] sm:$0xff]   ;;  %s458_s22 = scalar_lea.vmem %s10275_s30, %s10281_s15 }
 0x106   : > { %5333 = vmatpush3.bf16.msra.mxu1 %v5981_v7  ;;  %v5997_v23 = vld [vmem:[#allocation4 + $0xa8] sm:$0xff]   ;;  %v5998_v24 = vld [vmem:[#allocation4 + $0x70] sm:$0xff]   ;;  %v6002_v28 = vld [vmem:[#allocation4 + $0x78] sm:$0xff]  }
 0x107   : > { %5334 = vmatprep.subr.bf16.mxu1 %v5984_v10  ;;  %v5999_v25 = vld [vmem:[#allocation4 + $0x30] sm:$0xff]   ;;  %v6003_v29 = vld [vmem:[#allocation4 + $0x38] sm:$0xff]   ;;  %v461_v31 = vld [vmem:[%s7469_s20 + $0x8] sm:$0xff] }
 0x108   : > { %5223 = vmatpush3.bf16.msra.mxu0 %v5983_v9  ;;  %v6000_v26 = vld [vmem:[#allocation4 + $0xf0] sm:$0xff]   ;;  %v6004_v30 = vld [vmem:[#allocation4 + $0xf8] sm:$0xff]   ;;  %v468_v32 = vld [vmem:[%s7469_s20 + $0x40] sm:$0xff] }
 0x109   : > { %5224 = vmatprep.subr.bf16.mxu0 %v5986_v12  ;;  %v6001_v27 = vld [vmem:[#allocation4 + $0xb0] sm:$0xff]   ;;  %v685_v33 = vpack.c.bf16 %v468_v32, %v461_v31  ;;  %v6005_v34 = vld [vmem:[#allocation4 + $0xb8] sm:$0xff]   ;;  %v460_v35 = vld [vmem:[%s7469_s20] sm:$0xff] }
 0x10a   : > { %5335 = vmatpush3.bf16.msra.mxu1 %v5985_v11  ;;  %v467_v36 = vld [vmem:[%s7469_s20 + $0x38] sm:$0xff]  ;;  %v6006_v38 = vld [vmem:[#allocation4 + $0x140] sm:$0xff]   ;;  %v470_v40 = vld [vmem:[%s7469_s20 + $0x50] sm:$0xff] }
 0x10b   : > { %5336 = vmatprep.subr.bf16.mxu1 %v5988_v14  ;;  %1283 = vmatprep.mubr.bf16.mxu0 %v685_v33  ;;  %v684_v37 = vpack.c.bf16 %v467_v36, %v460_v35  ;;  %v463_v39 = vld [vmem:[%s7469_s20 + $0x18] sm:$0xff]  ;;  %v6007_v42 = vld [vmem:[#allocation4 + $0x100] sm:$0xff]   ;;  %v462_v43 = vld [vmem:[%s7469_s20 + $0x10] sm:$0xff] }
 0x10c   : > { %5225 = vmatpush3.bf16.msra.mxu0 %v5987_v13  ;;  %v687_v41 = vpack.c.bf16 %v470_v40, %v463_v39  ;;  %v469_v44 = vld [vmem:[%s7469_s20 + $0x48] sm:$0xff]  ;;  %v475_v45 = vld [vmem:[%s7469_s20 + $0x78] sm:$0xff]  ;;  %v482_v47 = vld [vmem:[%s7469_s20 + $0xb0] sm:$0xff] }
 0x10d   : > { %5226 = vmatprep.subr.bf16.mxu0 %v5990_v16  ;;  %v686_v46 = vpack.c.bf16 %v469_v44, %v462_v43  ;;  %v474_v48 = vld [vmem:[%s7469_s20 + $0x70] sm:$0xff]  ;;  %v481_v49 = vld [vmem:[%s7469_s20 + $0xa8] sm:$0xff]  ;;  %v692_v50 = vpack.c.bf16 %v482_v47, %v475_v45  ;;  %v484_v52 = vld [vmem:[%s7469_s20 + $0xc0] sm:$0xff] }
 0x10e   : > { %5337 = vmatpush3.bf16.msra.mxu1 %v5989_v15  ;;  %1444 = vmatprep.mubr.bf16.mxu1 %v687_v41  ;;  %v477_v51 = vld [vmem:[%s7469_s20 + $0x88] sm:$0xff]  ;;  %v476_v53 = vld [vmem:[%s7469_s20 + $0x80] sm:$0xff]  ;;  %v483_v55 = vld [vmem:[%s7469_s20 + $0xb8] sm:$0xff]  ;;  %v691_v56 = vpack.c.bf16 %v481_v49, %v474_v48 }
 0x10f   : > { %5338 = vmatprep.subr.bf16.mxu1 %v5992_v18  ;;  %v694_v54 = vpack.c.bf16 %v484_v52, %v477_v51  ;;  %v6008_v57 = vld [vmem:[#allocation4 + $0x180] sm:$0xff]   ;;  %v489_v58 = vld [vmem:[%s7469_s20 + $0xe8] sm:$0xff]  ;;  %v491_v62 = vld [vmem:[%s7469_s20 + $0xf8] sm:$0xff]  ;;  %v693_v63 = vpack.c.bf16 %v483_v55, %v476_v53 }
 0x110   : > { %5227 = vmatpush3.bf16.msra.mxu0 %v5991_v17  ;;  %v496_v59 = vld [vmem:[%s7469_s20 + $0x120] sm:$0xff]  ;;  %v6009_v61 = vld [vmem:[#allocation4 + $0x148] sm:$0xff]   ;;  %v498_v0 = vld [vmem:[%s7469_s20 + $0x130] sm:$0xff] }
 0x111   : > { %5228 = vmatprep.subr.bf16.mxu0 %v5994_v20  ;;  %v699_v60 = vpack.c.bf16 %v496_v59, %v489_v58  ;;  %v701_v1 = vpack.c.bf16 %v498_v0, %v491_v62  ;;  %v6010_v2 = vld [vmem:[#allocation4 + $0x108] sm:$0xff]   ;;  %v488_v3 = vld [vmem:[%s7469_s20 + $0xe0] sm:$0xff]  ;;  %v495_v4 = vld [vmem:[%s7469_s20 + $0x118] sm:$0xff] }
 0x112   : > { %5339 = vmatpush3.bf16.msra.mxu1 %v5993_v19  ;;  %v503_v5 = vld [vmem:[%s7469_s20 + $0x158] sm:$0xff]  ;;  %v510_v6 = vld [vmem:[%s7469_s20 + $0x190] sm:$0xff]  ;;  %v698_v8 = vpack.c.bf16 %v495_v4, %v488_v3  ;;  %v497_v9 = vld [vmem:[%s7469_s20 + $0x128] sm:$0xff] }
 0x113   : > { %5340 = vmatprep.subr.bf16.mxu1 %v5996_v22  ;;  %v490_v7 = vld [vmem:[%s7469_s20 + $0xf0] sm:$0xff]  ;;  %v6011_v10 = vld [vmem:[#allocation4 + $0x188] sm:$0xff]   ;;  %v706_v11 = vpack.c.bf16 %v510_v6, %v503_v5  ;;  %v512_v13 = vld [vmem:[%s7469_s20 + $0x1a0] sm:$0xff] }
 0x114   : > { %5229 = vmatpush3.bf16.msra.mxu0 %v5995_v21  ;;  %v505_v12 = vld [vmem:[%s7469_s20 + $0x168] sm:$0xff]  ;;  %v6012_v14 = vld [vmem:[#allocation4 + $0x150] sm:$0xff]   ;;  %v700_v15 = vpack.c.bf16 %v497_v9, %v490_v7  ;;  %v524_v21 = vld [vmem:[%s7469_s20 + $0x200] sm:$0xff] }
 0x115   : > { %5230 = vmatprep.subr.bf16.mxu0 %v5998_v24  ;;  %v708_v16 = vpack.c.bf16 %v512_v13, %v505_v12  ;;  %v6013_v17 = vld [vmem:[#allocation4 + $0x110] sm:$0xff]   ;;  %v509_v19 = vld [vmem:[%s7469_s20 + $0x188] sm:$0xff]  ;;  %v504_v22 = vld [vmem:[%s7469_s20 + $0x160] sm:$0xff] }
 0x116   : > { %5341 = vmatpush3.bf16.msra.mxu1 %v5997_v23  ;;  %v502_v18 = vld [vmem:[%s7469_s20 + $0x150] sm:$0xff]  ;;  %v517_v20 = vld [vmem:[%s7469_s20 + $0x1c8] sm:$0xff]  ;;  %v511_v23 = vld [vmem:[%s7469_s20 + $0x198] sm:$0xff] }
 0x117   : > { %5342 = vmatprep.subr.bf16.mxu1 %v6000_v26  ;;  %v705_v24 = vpack.c.bf16 %v509_v19, %v502_v18  ;;  %v713_v26 = vpack.c.bf16 %v524_v21, %v517_v20  ;;  %v6016_v32 = vld [vmem:[#allocation4 + $0x118] sm:$0xff]   ;;  %v516_v33 = vld [vmem:[%s7469_s20 + $0x1c0] sm:$0xff]  ;;  %v538_v36 = vld [vmem:[%s7469_s20 + $0x270] sm:$0xff] }
 0x118   : > { %5231 = vmatpush3.bf16.msra.mxu0 %v5999_v25  ;;  %v6014_v25 = vld [vmem:[#allocation4 + $0x190] sm:$0xff]   ;;  %v531_v35 = vld [vmem:[%s7469_s20 + $0x238] sm:$0xff]  ;;  %v525_v39 = vld [vmem:[%s7469_s20 + $0x208] sm:$0xff] }
 0x119   : > { %5232 = vmatprep.subr.bf16.mxu0 %v6002_v28  ;;  %v526_v28 = vld [vmem:[%s7469_s20 + $0x210] sm:$0xff]  ;;  %v720_v40 = vpack.c.bf16 %v538_v36, %v531_v35  ;;  %v533_v41 = vld [vmem:[%s7469_s20 + $0x248] sm:$0xff]  ;;  %v6017_v43 = vld [vmem:[#allocation4 + $0x198] sm:$0xff]  }
 0x11a   : > { %5343 = vmatpush3.bf16.msra.mxu1 %v6001_v27  ;;  %v519_v27 = vld [vmem:[%s7469_s20 + $0x1d8] sm:$0xff]  ;;  %v6018_v45 = vld [vmem:[#allocation4 + $0x160] sm:$0xff]   ;;  %v530_v47 = vld [vmem:[%s7469_s20 + $0x230] sm:$0xff] }
 0x11b   : > { %5344 = vmatprep.subr.bf16.mxu1 %v6004_v30  ;;  %v6015_v30 = vld [vmem:[#allocation4 + $0x158] sm:$0xff]   ;;  %v715_v31 = vpack.c.bf16 %v526_v28, %v519_v27  ;;  %v537_v48 = vld [vmem:[%s7469_s20 + $0x268] sm:$0xff]  ;;  %v6019_v49 = vld [vmem:[#allocation4 + $0x120] sm:$0xff]  }
 0x11c   : > { %5233 = vmatpush3.bf16.msra.mxu0 %v6003_v29  ;;  %v707_v29 = vpack.c.bf16 %v511_v23, %v504_v22  ;;  %v552_v51 = vld [vmem:[%s7469_s20 + $0x2e0] sm:$0xff]  ;;  %v719_v53 = vpack.c.bf16 %v537_v48, %v530_v47  ;;  %v547_v55 = vld [vmem:[%s7469_s20 + $0x2b8] sm:$0xff]  ;;  %v6022_v0 = vld [vmem:[#allocation4 + $0x128] sm:$0xff]  }
 0x11d   : > { %5442 = vmatprep.subr.bf16.mxu0 %v6006_v38  ;;  %v532_v52 = vld [vmem:[%s7469_s20 + $0x240] sm:$0xff]  ;;  %v546_v3 = vld [vmem:[%s7469_s20 + $0x2b0] sm:$0xff]  ;;  %v553_v5 = vld [vmem:[%s7469_s20 + $0x2e8] sm:$0xff] }
 0x11e   : > { %5345 = vmatpush3.bf16.msra.mxu1 %v6005_v34  ;;  %v523_v34 = vld [vmem:[%s7469_s20 + $0x1f8] sm:$0xff]  ;;  %v6020_v58 = vld [vmem:[#allocation4 + $0x1a0] sm:$0xff]   ;;  %v561_v6 = vld [vmem:[%s7469_s20 + $0x328] sm:$0xff] }
 0x11f   : > { %1284 = vmatmul.mubr.bf16.vlgmr.msra.gmra.mrb[0].mxu0 %v684_v37  ;;  %5650 = vmatprep.subr.bf16.mxu1 %v6008_v57  ;;  %v518_v37 = vld [vmem:[%s7469_s20 + $0x1d0] sm:$0xff]  ;;  %v712_v38 = vpack.c.bf16 %v523_v34, %v516_v33  ;;  %v568_v7 = vld [vmem:[%s7469_s20 + $0x360] sm:$0xff]  ;;  %v6023_v9 = vld [vmem:[#allocation4 + $0x1a8] sm:$0xff]  }
 0x120   : > { %5443 = vmatpush3.bf16.msra.mxu0 %v6007_v42  ;;  %1291 = vmatprep.mubr.bf16.mxu0 %v692_v50  ;;  %v540_v42 = vld [vmem:[%s7469_s20 + $0x280] sm:$0xff]  ;;  %v714_v44 = vpack.c.bf16 %v525_v39, %v518_v37  ;;  %v545_v50 = vld [vmem:[%s7469_s20 + $0x2a8] sm:$0xff]  ;;  %v736_v13 = vpack.c.bf16 %v568_v7, %v561_v6  ;;  %v567_v20 = vld [vmem:[%s7469_s20 + $0x358] sm:$0xff] }
 0x121   : > { %1445 = vmatmul.mubr.bf16.vlgmr.msra.gmra.mrb[0].mxu1 %v686_v46  ;;  %5444 = vmatprep.subr.bf16.mxu0 %v6009_v61  ;;  %v722_v46 = vpack.c.bf16 %v540_v42, %v533_v41  ;;  %v544_v61 = vld [vmem:[%s7469_s20 + $0x2a0] sm:$0xff]  ;;  %v565_v12 = vld [vmem:[%s7469_s20 + $0x348] sm:$0xff]  ;;  %v575_v21 = vld [vmem:[%s7469_s20 + $0x398] sm:$0xff] }
 0x122   : > { %1452 = vmatprep.mubr.bf16.mxu1 %v694_v54  ;;  %5651 = vmatpush3.bf16.msra.mxu1 %v6008_v57  ;;  %v539_v54 = vld [vmem:[%s7469_s20 + $0x278] sm:$0xff]  ;;  %v554_v57 = vld [vmem:[%s7469_s20 + $0x2f0] sm:$0xff]  ;;  %v560_v19 = vld [vmem:[%s7469_s20 + $0x320] sm:$0xff] }
 0x123   : > { %5652 = vmatprep.subr.bf16.mxu1 %v6011_v10  ;;  %v721_v59 = vpack.c.bf16 %v539_v54, %v532_v52  ;;  %v729_v62 = vpack.c.bf16 %v554_v57, %v547_v55  ;;  %v582_v23 = vld [vmem:[%s7469_s20 + $0x3d0] sm:$0xff]  ;;  %v6027_v28 = vld [vmem:[#allocation4 + $0x178] sm:$0xff]   ;;  %v581_v35 = vld [vmem:[%s7469_s20 + $0x3c8] sm:$0xff] }
 0x124   : > { %5445 = vmatpush3.bf16.msra.mxu0 %v6010_v2  ;;  %v566_v2 = vld [vmem:[%s7469_s20 + $0x350] sm:$0xff]  ;;  %v743_v27 = vpack.c.bf16 %v582_v23, %v575_v21  ;;  %v589_v37 = vld [vmem:[%s7469_s20 + $0x408] sm:$0xff]  ;;  %v6029_v39 = vld [vmem:[#allocation4 + $0x1b8] sm:$0xff]  }
 0x125   : > { %5446 = vmatprep.subr.bf16.mxu0 %v6012_v14  ;;  %v6024_v14 = vld [vmem:[#allocation4 + $0x170] sm:$0xff]   ;;  %v588_v47 = vld [vmem:[%s7469_s20 + $0x400] sm:$0xff]  ;;  %v595_v48 = vld [vmem:[%s7469_s20 + $0x438] sm:$0xff] }
 0x126   : > { %5653 = vmatpush3.bf16.msra.mxu1 %v6011_v10  ;;  %v728_v10 = vpack.c.bf16 %v553_v5, %v546_v3  ;;  %v574_v34 = vld [vmem:[%s7469_s20 + $0x390] sm:$0xff]  ;;  %v749_v52 = vpack.c.bf16 %v595_v48, %v588_v47  ;;  %v600_v54 = vld [vmem:[%s7469_s20 + $0x460] sm:$0xff]  ;;  %v607_v55 = vld [vmem:[%s7469_s20 + $0x498] sm:$0xff] }
 0x127   : > { %1292 = vmatmul.mubr.bf16.gmra.mrb[4].mxu0 %v691_v56  ;;  %5654 = vmatprep.subr.bf16.mxu1 %v6014_v25  ;;  %v727_v56 = vpack.c.bf16 %v552_v51, %v545_v50  ;;  %v586_v42 = vld [vmem:[%s7469_s20 + $0x3f0] sm:$0xff]  ;;  %v603_v50 = vld [vmem:[%s7469_s20 + $0x478] sm:$0xff]  ;;  %v621_v3 = vld [vmem:[%s7469_s20 + $0x508] sm:$0xff] }
 0x128   : > { %1299 = vmatprep.mubr.bf16.mxu0 %v699_v60  ;;  %5447 = vmatpush3.bf16.msra.mxu0 %v6013_v17  ;;  %v6021_v60 = vld [vmem:[#allocation4 + $0x168] sm:$0xff]   ;;  %v580_v17 = vld [vmem:[%s7469_s20 + $0x3c0] sm:$0xff]  ;;  %v610_v51 = vld [vmem:[%s7469_s20 + $0x4b0] sm:$0xff] }
 0x129   : > { %1453 = vmatmul.mubr.bf16.gmra.mrb[4].mxu1 %v693_v63  ;;  %5448 = vmatprep.subr.bf16.mxu0 %v6015_v30  ;;  %v551_v63 = vld [vmem:[%s7469_s20 + $0x2d8] sm:$0xff]  ;;  %v622_v57 = vld [vmem:[%s7469_s20 + $0x510] sm:$0xff]  ;;  %v636_v5 = vld [vmem:[%s7469_s20 + $0x580] sm:$0xff] }
 0x12a   : > { %1460 = vmatprep.mubr.bf16.mxu1 %v701_v1  ;;  %5655 = vmatpush3.bf16.msra.mxu1 %v6014_v25  ;;  %v559_v1 = vld [vmem:[%s7469_s20 + $0x318] sm:$0xff]  ;;  %v726_v4 = vpack.c.bf16 %v551_v63, %v544_v61  ;;  %v735_v25 = vpack.c.bf16 %v567_v20, %v560_v19  ;;  %v624_v63 = vld [vmem:[%s7469_s20 + $0x520] sm:$0xff]  ;;  %v637_v19 = vld [vmem:[%s7469_s20 + $0x588] sm:$0xff] }
 0x12b   : > { %5656 = vmatprep.subr.bf16.mxu1 %v6017_v43  ;;  %v587_v30 = vld [vmem:[%s7469_s20 + $0x3f8] sm:$0xff]  ;;  %v616_v7 = vld [vmem:[%s7469_s20 + $0x4e0] sm:$0xff] }
 0x12c   : > { %5449 = vmatpush3.bf16.msra.mxu0 %v6016_v32  ;;  %v6028_v32 = vld [vmem:[#allocation4 + $0x138] sm:$0xff]   ;;  %v652_v23 = vld [vmem:[%s7469_s20 + $0x600] sm:$0xff] }
 0x12d   : > { %5450 = vmatprep.subr.bf16.mxu0 %v6018_v45  ;;  %v608_v45 = vld [vmem:[%s7469_s20 + $0x4a0] sm:$0xff] }
 0x12e   : > { %5657 = vmatpush3.bf16.msra.mxu1 %v6017_v43  ;;  %v593_v43 = vld [vmem:[%s7469_s20 + $0x428] sm:$0xff]  ;;  %v680_v47 = vld [vmem:[%s7469_s20 + $0x6e0] sm:$0xff] }
 0x12f   : > { %1300 = vmatmul.mubr.bf16.gmra.mrb[8].mxu0 %v698_v8  ;;  %5658 = vmatprep.subr.bf16.mxu1 %v6020_v58  ;;  %v734_v8 = vpack.c.bf16 %v566_v2, %v559_v1  ;;  %v614_v2 = vld [vmem:[%s7469_s20 + $0x4d0] sm:$0xff] }
 0x130   : > { %1307 = vmatprep.mubr.bf16.mxu0 %v706_v11  ;;  %5451 = vmatpush3.bf16.msra.mxu0 %v6019_v49  ;;  %v558_v11 = vld [vmem:[%s7469_s20 + $0x310] sm:$0xff]  ;;  %v761_v6 = vpack.c.bf16 %v621_v3, %v614_v2  ;;  %v480_v2 = vld [vmem:[%s7469_s20 + $0xa0] sm:$0xff]  ;;  %v487_v3 = vld [vmem:[%s7469_s20 + $0xd8] sm:$0xff] }
 0x131   : > { %1461 = vmatmul.mubr.bf16.gmra.mrb[8].mxu1 %v700_v15  ;;  %5452 = vmatprep.subr.bf16.mxu0 %v6021_v60  ;;  %v6025_v15 = vld [vmem:[#allocation4 + $0x130] sm:$0xff]   ;;  %v733_v18 = vpack.c.bf16 %v565_v12, %v558_v11  ;;  %v609_v60 = vld [vmem:[%s7469_s20 + $0x4a8] sm:$0xff] }
 0x132   : > { %1468 = vmatprep.mubr.bf16.mxu1 %v708_v16  ;;  %5659 = vmatpush3.bf16.msra.mxu1 %v6020_v58  ;;  %v573_v16 = vld [vmem:[%s7469_s20 + $0x388] sm:$0xff]  ;;  %v754_v58 = vpack.c.bf16 %v607_v55, %v600_v54  ;;  %v638_v11 = vld [vmem:[%s7469_s20 + $0x590] sm:$0xff]  ;;  %v472_v55 = vld [vmem:[%s7469_s20 + $0x60] sm:$0xff] }
 0x133   : > { %5660 = vmatprep.subr.bf16.mxu1 %v6023_v9  ;;  %v741_v22 = vpack.c.bf16 %v580_v17, %v573_v16  ;;  %v643_v16 = vld [vmem:[%s7469_s20 + $0x5b8] sm:$0xff]  ;;  %v650_v17 = vld [vmem:[%s7469_s20 + $0x5f0] sm:$0xff]  ;;  %v465_v54 = vld [vmem:[%s7469_s20 + $0x28] sm:$0xff] }
 0x134   : > { %5453 = vmatpush3.bf16.msra.mxu0 %v6022_v0  ;;  %v776_v21 = vpack.c.bf16 %v650_v17, %v643_v16  ;;  %v515_v16 = vld [vmem:[%s7469_s20 + $0x1b8] sm:$0xff] }
 0x135   : > { %5454 = vmatprep.subr.bf16.mxu0 %v6024_v14  ;;  %v635_v14 = vld [vmem:[%s7469_s20 + $0x578] sm:$0xff] }
 0x136   : > { %5661 = vmatpush3.bf16.msra.mxu1 %v6023_v9 }
 0x137   : > { %1308 = vmatmul.mubr.bf16.gmra.mrb[12].mxu0 %v705_v24  ;;  %v6026_v24 = vld [vmem:[#allocation4 + $0x1b0] sm:$0xff]  }
 0x138   : > { %1315 = vmatprep.mubr.bf16.mxu0 %v713_v26  ;;  %5455 = vmatpush3.bf16.msra.mxu0 %v6025_v15  ;;  %v572_v26 = vld [vmem:[%s7469_s20 + $0x380] sm:$0xff] }
 0x139   : > { %1469 = vmatmul.mubr.bf16.gmra.mrb[12].mxu1 %v707_v29  ;;  %5662 = vmatprep.subr.bf16.mxu1 %v6026_v24  ;;  %v579_v29 = vld [vmem:[%s7469_s20 + $0x3b8] sm:$0xff] }
 0x13a   : > { %1476 = vmatprep.mubr.bf16.mxu1 %v715_v31  ;;  %5663 = vmatpush3.bf16.msra.mxu1 %v6026_v24  ;;  %v594_v31 = vld [vmem:[%s7469_s20 + $0x430] sm:$0xff]  ;;  %v740_v33 = vpack.c.bf16 %v579_v29, %v572_v26  ;;  %v651_v29 = vld [vmem:[%s7469_s20 + $0x5f8] sm:$0xff] }
 0x13b   : > { %5456 = vmatprep.subr.bf16.mxu0 %v6027_v28  ;;  %v748_v36 = vpack.c.bf16 %v594_v31, %v587_v30  ;;  %5664 = vmatprep.subr.bf16.mxu1 %v6029_v39  ;;  %v642_v26 = vld [vmem:[%s7469_s20 + $0x5b0] sm:$0xff]  ;;  %v644_v28 = vld [vmem:[%s7469_s20 + $0x5c0] sm:$0xff]  ;;  %v657_v30 = vld [vmem:[%s7469_s20 + $0x628] sm:$0xff] }
 0x13c   : > { %5457 = vmatpush3.bf16.msra.mxu0 %v6028_v32  ;;  %v664_v31 = vld [vmem:[%s7469_s20 + $0x660] sm:$0xff] }
 0x13e   : > { %5665 = vmatpush3.bf16.msra.mxu1 %v6029_v39 }
 0x13f   : > { %1316 = vmatmul.mubr.bf16.gmra.mrb[16].mxu0 %v712_v38  ;;  %v596_v38 = vld [vmem:[%s7469_s20 + $0x440] sm:$0xff] }
 0x140   : > { %1323 = vmatprep.mubr.bf16.mxu0 %v720_v40  ;;  %v742_v40 = vpack.c.bf16 %v581_v35, %v574_v34  ;;  %v750_v41 = vpack.c.bf16 %v596_v38, %v589_v37  ;;  %v659_v34 = vld [vmem:[%s7469_s20 + $0x638] sm:$0xff]  ;;  %v666_v35 = vld [vmem:[%s7469_s20 + $0x670] sm:$0xff]  ;;  %v656_v37 = vld [vmem:[%s7469_s20 + $0x620] sm:$0xff] }
 0x141   : > { %1477 = vmatmul.mubr.bf16.gmra.mrb[16].mxu1 %v714_v44  ;;  %v601_v44 = vld [vmem:[%s7469_s20 + $0x468] sm:$0xff]  ;;  %v663_v38 = vld [vmem:[%s7469_s20 + $0x658] sm:$0xff]  ;;  %v785_v39 = vpack.c.bf16 %v666_v35, %v659_v34  ;;  %v506_v34 = vld [vmem:[%s7469_s20 + $0x170] sm:$0xff] }
 0x142   : > { %1484 = vmatprep.mubr.bf16.mxu1 %v722_v46  ;;  %v747_v46 = vpack.c.bf16 %v593_v43, %v586_v42  ;;  %v755_v49 = vpack.c.bf16 %v608_v45, %v601_v44  ;;  %v658_v42 = vld [vmem:[%s7469_s20 + $0x630] sm:$0xff]  ;;  %v665_v43 = vld [vmem:[%s7469_s20 + $0x668] sm:$0xff]  ;;  %v782_v44 = vpack.c.bf16 %v663_v38, %v656_v37  ;;  %v528_v37 = vld [vmem:[%s7469_s20 + $0x220] sm:$0xff] }
 0x143   : > { %v784_v48 = vpack.c.bf16 %v665_v43, %v658_v42  ;;  %v513_v35 = vld [vmem:[%s7469_s20 + $0x1a8] sm:$0xff]  ;;  %v578_v42 = vld [vmem:[%s7469_s20 + $0x3b0] sm:$0xff] }
 0x144   : > { %v709_v38 = vpack.c.bf16 %v513_v35, %v506_v34  ;;  %v585_v43 = vld [vmem:[%s7469_s20 + $0x3e8] sm:$0xff]  ;;  %v6032_v34 = vld [vmem:[#allocation7 + $0x10] sm:$0xff]  }
 0x147   : > { %1324 = vmatmul.mubr.bf16.gmra.mrb[20].mxu0 %v719_v53  ;;  %v757_v53 = vpack.c.bf16 %v610_v51, %v603_v50  ;;  %v670_v50 = vld [vmem:[%s7469_s20 + $0x690] sm:$0xff]  ;;  %v677_v51 = vld [vmem:[%s7469_s20 + $0x6c8] sm:$0xff] }
 0x148   : > { %1331 = vmatprep.mubr.bf16.mxu0 %v727_v56  ;;  %v615_v56 = vld [vmem:[%s7469_s20 + $0x4d8] sm:$0xff] }
 0x149   : > { %1485 = vmatmul.mubr.bf16.gmra.mrb[20].mxu1 %v721_v59  ;;  %v602_v59 = vld [vmem:[%s7469_s20 + $0x470] sm:$0xff]  ;;  %v762_v61 = vpack.c.bf16 %v622_v57, %v615_v56  ;;  %v789_v56 = vpack.c.bf16 %v677_v51, %v670_v50  ;;  %v689_v57 = vpack.c.bf16 %v472_v55, %v465_v54  ;;  %v592_v51 = vld [vmem:[%s7469_s20 + $0x420] sm:$0xff]  ;;  %v613_v55 = vld [vmem:[%s7469_s20 + $0x4c8] sm:$0xff] }
 0x14a   : > { %1492 = vmatprep.mubr.bf16.mxu1 %v729_v62  ;;  %v617_v62 = vld [vmem:[%s7469_s20 + $0x4e8] sm:$0xff]  ;;  %v756_v0 = vpack.c.bf16 %v609_v60, %v602_v59  ;;  %v606_v54 = vld [vmem:[%s7469_s20 + $0x490] sm:$0xff] }
 0x14b   : > { %v764_v1 = vpack.c.bf16 %v624_v63, %v617_v62  ;;  %v473_v59 = vld [vmem:[%s7469_s20 + $0x68] sm:$0xff]  ;;  %v471_v62 = vld [vmem:[%s7469_s20 + $0x58] sm:$0xff] }
 0x14f   : > { %1332 = vmatmul.mubr.bf16.gmra.mrb[24].mxu0 %v726_v4  ;;  %v629_v4 = vld [vmem:[%s7469_s20 + $0x548] sm:$0xff] }
 0x150   : > { %1339 = vmatprep.mubr.bf16.mxu0 %v734_v8  ;;  %v623_v8 = vld [vmem:[%s7469_s20 + $0x518] sm:$0xff]  ;;  %v769_v9 = vpack.c.bf16 %v636_v5, %v629_v4  ;;  %v494_v4 = vld [vmem:[%s7469_s20 + $0x110] sm:$0xff]  ;;  %v501_v5 = vld [vmem:[%s7469_s20 + $0x148] sm:$0xff] }
 0x151   : > { %1493 = vmatmul.mubr.bf16.gmra.mrb[24].mxu1 %v728_v10  ;;  %v631_v10 = vld [vmem:[%s7469_s20 + $0x558] sm:$0xff]  ;;  %v763_v12 = vpack.c.bf16 %v623_v8, %v616_v7  ;;  %v697_v8 = vpack.c.bf16 %v487_v3, %v480_v2  ;;  %v634_v2 = vld [vmem:[%s7469_s20 + $0x570] sm:$0xff]  ;;  %v641_v3 = vld [vmem:[%s7469_s20 + $0x5a8] sm:$0xff] }
 0x152   : > { %1500 = vmatprep.mubr.bf16.mxu1 %v736_v13  ;;  %v628_v13 = vld [vmem:[%s7469_s20 + $0x540] sm:$0xff]  ;;  %v771_v15 = vpack.c.bf16 %v638_v11, %v631_v10  ;;  %v478_v10 = vld [vmem:[%s7469_s20 + $0x90] sm:$0xff]  ;;  %v485_v11 = vld [vmem:[%s7469_s20 + $0xc8] sm:$0xff] }
 0x153   : > { %v768_v20 = vpack.c.bf16 %v635_v14, %v628_v13  ;;  %v500_v13 = vld [vmem:[%s7469_s20 + $0x140] sm:$0xff]  ;;  %v695_v14 = vpack.c.bf16 %v485_v11, %v478_v10 }
 0x154   : > { %v648_v11 = vld [vmem:[%s7469_s20 + $0x5e0] sm:$0xff] }
 0x157   : > { %1340 = vmatmul.mubr.bf16.gmra.mrb[28].mxu0 %v733_v18  ;;  %v630_v18 = vld [vmem:[%s7469_s20 + $0x550] sm:$0xff] }
 0x158   : > { %1347 = vmatprep.mubr.bf16.mxu0 %v741_v22  ;;  %v645_v22 = vld [vmem:[%s7469_s20 + $0x5c8] sm:$0xff]  ;;  %v770_v24 = vpack.c.bf16 %v637_v19, %v630_v18  ;;  %v522_v18 = vld [vmem:[%s7469_s20 + $0x1f0] sm:$0xff] }
 0x159   : > { %1501 = vmatmul.mubr.bf16.gmra.mrb[28].mxu1 %v735_v25  ;;  %v778_v25 = vpack.c.bf16 %v652_v23, %v645_v22  ;;  %v529_v19 = vld [vmem:[%s7469_s20 + $0x228] sm:$0xff]  ;;  %v492_v22 = vld [vmem:[%s7469_s20 + $0x100] sm:$0xff]  ;;  %v499_v23 = vld [vmem:[%s7469_s20 + $0x138] sm:$0xff] }
 0x15a   : > { %1508 = vmatprep.mubr.bf16.mxu1 %v743_v27  ;;  %v649_v27 = vld [vmem:[%s7469_s20 + $0x5e8] sm:$0xff] }
 0x15b   : > { %v775_v32 = vpack.c.bf16 %v649_v27, %v642_v26  ;;  %v702_v26 = vpack.c.bf16 %v499_v23, %v492_v22  ;;  %v536_v27 = vld [vmem:[%s7469_s20 + $0x260] sm:$0xff] }
 0x15c   : > { %v584_v22 = vld [vmem:[%s7469_s20 + $0x3e0] sm:$0xff] }
 0x15f   : > { %1348 = vmatmul.mubr.bf16.gmra.mrb[32].mxu0 %v740_v33  ;;  %v783_v33 = vpack.c.bf16 %v664_v31, %v657_v30  ;;  %v550_v30 = vld [vmem:[%s7469_s20 + $0x2d0] sm:$0xff]  ;;  %v557_v31 = vld [vmem:[%s7469_s20 + $0x308] sm:$0xff] }
 0x160   : > { %1355 = vmatprep.mubr.bf16.mxu0 %v748_v36  ;;  %v777_v36 = vpack.c.bf16 %v651_v29, %v644_v28  ;;  %v543_v28 = vld [vmem:[%s7469_s20 + $0x298] sm:$0xff] }
 0x161   : > { %1509 = vmatmul.mubr.bf16.gmra.mrb[32].mxu1 %v742_v40  ;;  %v671_v40 = vld [vmem:[%s7469_s20 + $0x698] sm:$0xff] }
 0x162   : > { %1516 = vmatprep.mubr.bf16.mxu1 %v750_v41  ;;  %v678_v41 = vld [vmem:[%s7469_s20 + $0x6d0] sm:$0xff] }
 0x163   : > { %v790_v45 = vpack.c.bf16 %v678_v41, %v671_v40  ;;  %v571_v40 = vld [vmem:[%s7469_s20 + $0x378] sm:$0xff] }
 0x167   : > { %1356 = vmatmul.mubr.bf16.gmra.mrb[36].mxu0 %v747_v46  ;;  %v673_v46 = vld [vmem:[%s7469_s20 + $0x6a8] sm:$0xff] }
 0x168   : > { %1363 = vmatprep.mubr.bf16.mxu0 %v755_v49  ;;  %v792_v49 = vpack.c.bf16 %v680_v47, %v673_v46  ;;  %v520_v46 = vld [vmem:[%s7469_s20 + $0x1e0] sm:$0xff]  ;;  %v527_v47 = vld [vmem:[%s7469_s20 + $0x218] sm:$0xff] }
 0x169   : > { %1517 = vmatmul.mubr.bf16.gmra.mrb[36].mxu1 %v749_v52  ;;  %v672_v52 = vld [vmem:[%s7469_s20 + $0x6a0] sm:$0xff]  ;;  %v716_v50 = vpack.c.bf16 %v527_v47, %v520_v46  ;;  %v626_v46 = vld [vmem:[%s7469_s20 + $0x530] sm:$0xff] }
 0x16a   : > { %1524 = vmatprep.mubr.bf16.mxu1 %v757_v53  ;;  %v679_v53 = vld [vmem:[%s7469_s20 + $0x6d8] sm:$0xff] }
 0x16b   : > { %v791_v60 = vpack.c.bf16 %v679_v53, %v672_v52  ;;  %v599_v52 = vld [vmem:[%s7469_s20 + $0x458] sm:$0xff] }
 0x16f   : > { %1364 = vmatmul.mubr.bf16.gmra.mrb[40].mxu0 %v754_v58  ;;  %v466_v58 = vld [vmem:[%s7469_s20 + $0x30] sm:$0xff] }
 0x170   : > { %1371 = vmatprep.mubr.bf16.mxu0 %v762_v61  ;;  %v464_v61 = vld [vmem:[%s7469_s20 + $0x20] sm:$0xff]  ;;  %v690_v63 = vpack.c.bf16 %v473_v59, %v466_v58  ;;  %v534_v58 = vld [vmem:[%s7469_s20 + $0x250] sm:$0xff]  ;;  %v541_v59 = vld [vmem:[%s7469_s20 + $0x288] sm:$0xff] }
 0x171   : > { %1525 = vmatmul.mubr.bf16.gmra.mrb[40].mxu1 %v756_v0  ;;  %v479_v0 = vld [vmem:[%s7469_s20 + $0x98] sm:$0xff] }
 0x172   : > { %1532 = vmatprep.mubr.bf16.mxu1 %v764_v1  ;;  %v486_v1 = vld [vmem:[%s7469_s20 + $0xd0] sm:$0xff] }
 0x173   : > { %v696_v7 = vpack.c.bf16 %v486_v1, %v479_v0  ;;  %v627_v0 = vld [vmem:[%s7469_s20 + $0x538] sm:$0xff] }
 0x177   : > { %1372 = vmatmul.mubr.bf16.gmra.mrb[44].mxu0 %v761_v6  ;;  %v688_v6 = vpack.c.bf16 %v471_v62, %v464_v61  ;;  %v556_v61 = vld [vmem:[%s7469_s20 + $0x300] sm:$0xff]  ;;  %v723_v62 = vpack.c.bf16 %v541_v59, %v534_v58  ;;  %v6035_v58 = vld [vmem:[#allocation7 + $0x28] sm:$0xff]  }
 0x178   : > { %1379 = vmatprep.mubr.bf16.mxu0 %v769_v9  ;;  %v704_v9 = vpack.c.bf16 %v501_v5, %v494_v4  ;;  %v774_v5 = vpack.c.bf16 %v641_v3, %v634_v2 }
 0x179   : > { %1533 = vmatmul.mubr.bf16.gmra.mrb[44].mxu1 %v763_v12  ;;  %v493_v12 = vld [vmem:[%s7469_s20 + $0x108] sm:$0xff] }
 0x17a   : > { %1540 = vmatprep.mubr.bf16.mxu1 %v771_v15  ;;  %v508_v15 = vld [vmem:[%s7469_s20 + $0x180] sm:$0xff]  ;;  %v703_v17 = vpack.c.bf16 %v500_v13, %v493_v12  ;;  %v655_v12 = vld [vmem:[%s7469_s20 + $0x618] sm:$0xff] }
 0x17b   : > { %v6030_v13 = vld [vmem:[#allocation7] sm:$0xff]  }
 0x17c   : > { %5698 = vmatprep.subr.bf16.mxu1 %v6030_v13 }
 0x17f   : > { %1380 = vmatmul.mubr.bf16.gmra.mrb[48].mxu0 %v768_v20  ;;  %v711_v20 = vpack.c.bf16 %v515_v16, %v508_v15  ;;  %v662_v15 = vld [vmem:[%s7469_s20 + $0x650] sm:$0xff]  ;;  %v669_v16 = vld [vmem:[%s7469_s20 + $0x688] sm:$0xff] }
 0x180   : > { %1387 = vmatprep.mubr.bf16.mxu0 %v776_v21  ;;  %v718_v21 = vpack.c.bf16 %v529_v19, %v522_v18  ;;  %v788_v18 = vpack.c.bf16 %v669_v16, %v662_v15  ;;  %v562_v19 = vld [vmem:[%s7469_s20 + $0x330] sm:$0xff] }
 0x181   : > { %1541 = vmatmul.mubr.bf16.gmra.mrb[48].mxu1 %v770_v24  ;;  %v507_v24 = vld [vmem:[%s7469_s20 + $0x178] sm:$0xff] }
 0x182   : > { %1548 = vmatprep.mubr.bf16.mxu1 %v778_v25  ;;  %v514_v25 = vld [vmem:[%s7469_s20 + $0x1b0] sm:$0xff] }
 0x183   : > { %v710_v29 = vpack.c.bf16 %v514_v25, %v507_v24  ;;  %v676_v24 = vld [vmem:[%s7469_s20 + $0x6c0] sm:$0xff]  ;;  %v683_v25 = vld [vmem:[%s7469_s20 + $0x6f8] sm:$0xff] }
 0x187   : > { %1388 = vmatmul.mubr.bf16.gmra.mrb[52].mxu0 %v775_v32  ;;  %v725_v32 = vpack.c.bf16 %v543_v28, %v536_v27  ;;  %v795_v28 = vpack.c.bf16 %v683_v25, %v676_v24 }
 0x188   : > { %1395 = vmatprep.mubr.bf16.mxu0 %v783_v33  ;;  %v732_v33 = vpack.c.bf16 %v557_v31, %v550_v30  ;;  %v583_v30 = vld [vmem:[%s7469_s20 + $0x3d8] sm:$0xff] }
 0x189   : > { %1549 = vmatmul.mubr.bf16.gmra.mrb[52].mxu1 %v777_v36  ;;  %v521_v36 = vld [vmem:[%s7469_s20 + $0x1e8] sm:$0xff]  ;;  %v591_v31 = vld [vmem:[%s7469_s20 + $0x418] sm:$0xff] }
 0x18a   : > { %1556 = vmatprep.mubr.bf16.mxu1 %v785_v39  ;;  %v564_v39 = vld [vmem:[%s7469_s20 + $0x340] sm:$0xff]  ;;  %v717_v41 = vpack.c.bf16 %v528_v37, %v521_v36  ;;  %v590_v36 = vld [vmem:[%s7469_s20 + $0x410] sm:$0xff]  ;;  %v597_v37 = vld [vmem:[%s7469_s20 + $0x448] sm:$0xff] }
 0x18f   : > { %1396 = vmatmul.mubr.bf16.gmra.mrb[56].mxu0 %v782_v44  ;;  %v739_v44 = vpack.c.bf16 %v571_v40, %v564_v39  ;;  %v612_v39 = vld [vmem:[%s7469_s20 + $0x4c0] sm:$0xff]  ;;  %v751_v40 = vpack.c.bf16 %v597_v37, %v590_v36 }
 0x190   : > { %1403 = vmatprep.mubr.bf16.mxu0 %v790_v45  ;;  %v746_v45 = vpack.c.bf16 %v585_v43, %v578_v42  ;;  %v604_v43 = vld [vmem:[%s7469_s20 + $0x480] sm:$0xff] }
 0x191   : > { %1557 = vmatmul.mubr.bf16.gmra.mrb[56].mxu1 %v784_v48  ;;  %v535_v48 = vld [vmem:[%s7469_s20 + $0x258] sm:$0xff] }
 0x192   : > { %1564 = vmatprep.mubr.bf16.mxu1 %v792_v49  ;;  %v542_v49 = vld [vmem:[%s7469_s20 + $0x290] sm:$0xff] }
 0x193   : > { %v724_v53 = vpack.c.bf16 %v542_v49, %v535_v48  ;;  %v6034_v48 = vld [vmem:[#allocation7 + $0x20] sm:$0xff]  }
 0x197   : > { %1404 = vmatmul.mubr.bf16.gmra.mrb[60].mxu0 %v789_v56  ;;  %v753_v56 = vpack.c.bf16 %v599_v52, %v592_v51  ;;  %v625_v51 = vld [vmem:[%s7469_s20 + $0x528] sm:$0xff] }
 0x198   : > { %1605 = vmatprep.mubr.bf16.mxu0 %v689_v57  ;;  %v760_v57 = vpack.c.bf16 %v613_v55, %v606_v54  ;;  %v633_v52 = vld [vmem:[%s7469_s20 + $0x568] sm:$0xff]  ;;  %v7701_v55 = vld [vmem:[#allocation6] ss:$0 sm:$0xff] }
 0x199   : > { %1565 = vmatmul.mubr.bf16.gmra.mrb[60].mxu1 %v791_v60  ;;  %v549_v60 = vld [vmem:[%s7469_s20 + $0x2c8] sm:$0xff] }
 0x19a   : > { %5666 = vmatprep.mubr.bf16.mxu1 %v690_v63  ;;  %v620_v63 = vld [vmem:[%s7469_s20 + $0x500] sm:$0xff]  ;;  %v731_v1 = vpack.c.bf16 %v556_v61, %v549_v60 }
 0x19b   : > { %v767_v4 = vpack.c.bf16 %v627_v0, %v620_v63 }
 0x19f   : > { %1606 = vmatmul.mubr.bf16.vlgmr.msra.gmra.mrb[64].mxu0 %v688_v6  ;;  %v548_v6 = vld [vmem:[%s7469_s20 + $0x2c0] sm:$0xff] }
 0x1a0   : > { %1613 = vmatprep.mubr.bf16.mxu0 %v696_v7  ;;  %v555_v7 = vld [vmem:[%s7469_s20 + $0x2f8] sm:$0xff] }
 0x1a1   : > { %5667 = vmatmul.mubr.bf16.vlgmr.msra.gmra.mrb[64].mxu1 %v697_v8  ;;  %v563_v8 = vld [vmem:[%s7469_s20 + $0x338] sm:$0xff]  ;;  %v730_v10 = vpack.c.bf16 %v555_v7, %v548_v6  ;;  %v632_v7 = vld [vmem:[%s7469_s20 + $0x560] sm:$0xff] }
 0x1a2   : > { %5670 = vmatprep.mubr.bf16.mxu1 %v704_v9  ;;  %v570_v9 = vld [vmem:[%s7469_s20 + $0x370] sm:$0xff]  ;;  %5699 = vmatpush3.bf16.msra.mxu1 %v6030_v13 }
 0x1a7   : > { %1614 = vmatmul.mubr.bf16.gmra.mrb[68].mxu0 %v695_v14  ;;  %v738_v14 = vpack.c.bf16 %v570_v9, %v563_v8  ;;  %v639_v8 = vld [vmem:[%s7469_s20 + $0x598] sm:$0xff] }
 0x1a8   : > { %1621 = vmatprep.mubr.bf16.mxu0 %v703_v17  ;;  %v781_v17 = vpack.c.bf16 %v655_v12, %v648_v11  ;;  %v647_v11 = vld [vmem:[%s7469_s20 + $0x5d8] sm:$0xff]  ;;  %v654_v12 = vld [vmem:[%s7469_s20 + $0x610] sm:$0xff] }
 0x1a9   : > { %5671 = vmatmul.mubr.bf16.gmra.mrb[68].mxu1 %v711_v20  ;;  %v569_v20 = vld [vmem:[%s7469_s20 + $0x368] sm:$0xff] }
 0x1aa   : > { %5674 = vmatprep.mubr.bf16.mxu1 %v718_v21  ;;  %v577_v21 = vld [vmem:[%s7469_s20 + $0x3a8] sm:$0xff]  ;;  %v737_v23 = vpack.c.bf16 %v569_v20, %v562_v19  ;;  %v780_v20 = vpack.c.bf16 %v654_v12, %v647_v11 }
 0x1ab   : > { %v745_v27 = vpack.c.bf16 %v584_v22, %v577_v21 }
 0x1af   : > { %1622 = vmatmul.mubr.bf16.gmra.mrb[72].mxu0 %v702_v26  ;;  %v6031_v26 = vld [vmem:[#allocation7 + $0x8] sm:$0xff]  }
 0x1b0   : > { %1629 = vmatprep.mubr.bf16.mxu0 %v710_v29  ;;  %5700 = vmatprep.subr.bf16.mxu1 %v6031_v26  ;;  %v576_v29 = vld [vmem:[%s7469_s20 + $0x3a0] sm:$0xff] }
 0x1b1   : > { %5675 = vmatmul.mubr.bf16.gmra.mrb[72].mxu1 %v725_v32  ;;  %v598_v32 = vld [vmem:[%s7469_s20 + $0x450] sm:$0xff] }
 0x1b2   : > { %5678 = vmatprep.mubr.bf16.mxu1 %v732_v33  ;;  %5701 = vmatpush3.bf16.msra.mxu1 %v6031_v26  ;;  %v744_v33 = vpack.c.bf16 %v583_v30, %v576_v29  ;;  %v752_v35 = vpack.c.bf16 %v598_v32, %v591_v31  ;;  %v646_v30 = vld [vmem:[%s7469_s20 + $0x5d0] sm:$0xff]  ;;  %v653_v31 = vld [vmem:[%s7469_s20 + $0x608] sm:$0xff] }
 0x1b3   : > { %5702 = vmatprep.subr.bf16.mxu1 %v6032_v34 }
 0x1b6   : > { %5703 = vmatpush3.bf16.msra.mxu1 %v6032_v34  ;;  %v661_v34 = vld [vmem:[%s7469_s20 + $0x648] sm:$0xff] }
 0x1b7   : > { %1630 = vmatmul.mubr.bf16.gmra.mrb[76].mxu0 %v709_v38  ;;  %v605_v38 = vld [vmem:[%s7469_s20 + $0x488] sm:$0xff] }
 0x1b8   : > { %1637 = vmatprep.mubr.bf16.mxu0 %v717_v41  ;;  %v6033_v41 = vld [vmem:[#allocation7 + $0x18] sm:$0xff]   ;;  %v759_v42 = vpack.c.bf16 %v612_v39, %v605_v38  ;;  %v779_v39 = vpack.c.bf16 %v653_v31, %v646_v30 }
 0x1b9   : > { %5679 = vmatmul.mubr.bf16.gmra.mrb[76].mxu1 %v739_v44  ;;  %5704 = vmatprep.subr.bf16.mxu1 %v6033_v41  ;;  %v611_v44 = vld [vmem:[%s7469_s20 + $0x4b8] sm:$0xff] }
 0x1ba   : > { %5682 = vmatprep.mubr.bf16.mxu1 %v746_v45  ;;  %5705 = vmatpush3.bf16.msra.mxu1 %v6033_v41  ;;  %v619_v45 = vld [vmem:[%s7469_s20 + $0x4f8] sm:$0xff]  ;;  %v758_v47 = vpack.c.bf16 %v611_v44, %v604_v43 }
 0x1bb   : > { %v766_v49 = vpack.c.bf16 %v626_v46, %v619_v45  ;;  %5706 = vmatprep.subr.bf16.mxu1 %v6034_v48 }
 0x1be   : > { %5707 = vmatpush3.bf16.msra.mxu1 %v6034_v48 }
 0x1bf   : > { %1638 = vmatmul.mubr.bf16.gmra.mrb[80].mxu0 %v716_v50  ;;  %v618_v50 = vld [vmem:[%s7469_s20 + $0x4f0] sm:$0xff]  ;;  %5708 = vmatprep.subr.bf16.mxu1 %v6035_v58 }
 0x1c0   : > { %1645 = vmatprep.mubr.bf16.mxu0 %v724_v53  ;;  %v640_v53 = vld [vmem:[%s7469_s20 + $0x5a0] sm:$0xff] }
 0x1c1   : > { %5683 = vmatmul.mubr.bf16.gmra.mrb[80].mxu1 %v753_v56  ;;  %v773_v61 = vpack.c.bf16 %v640_v53, %v633_v52  ;;  %v660_v53 = vld [vmem:[%s7469_s20 + $0x640] sm:$0xff] }
 0x1c2   : > { %5686 = vmatprep.mubr.bf16.mxu1 %v760_v57  ;;  %v765_v57 = vpack.c.bf16 %v625_v51, %v618_v50  ;;  %5709 = vmatpush3.bf16.msra.mxu1 %v6035_v58  ;;  %v675_v58 = vld [vmem:[%s7469_s20 + $0x6b8] sm:$0xff] }
 0x1c7   : > { %1646 = vmatmul.mubr.bf16.gmra.mrb[84].mxu0 %v723_v62 }
 0x1c8   : > { %1653 = vmatprep.mubr.bf16.mxu0 %v731_v1 }
 0x1c9   : > { %5687 = vmatmul.mubr.bf16.gmra.mrb[84].mxu1 %v767_v4 }
 0x1ca   : > { %5690 = vmatprep.mubr.bf16.mxu1 %v774_v5 }
 0x1cf   : > { %1654 = vmatmul.mubr.bf16.gmra.mrb[88].mxu0 %v730_v10 }
 0x1d0   : > { %1661 = vmatprep.mubr.bf16.mxu0 %v738_v14  ;;  %v6036_v14 = vld [vmem:[#allocation7 + $0x30] sm:$0xff]  }
 0x1d1   : > { %5691 = vmatmul.mubr.bf16.gmra.mrb[88].mxu1 %v781_v17  ;;  %v772_v17 = vpack.c.bf16 %v639_v8, %v632_v7  ;;  %5710 = vmatprep.subr.bf16.mxu1 %v6036_v14 }
 0x1d2   : > { %5694 = vmatprep.mubr.bf16.mxu1 %v788_v18  ;;  %5711 = vmatpush3.bf16.msra.mxu1 %v6036_v14  ;;  %v681_v14 = vld [vmem:[%s7469_s20 + $0x6e8] sm:$0xff] }
 0x1d7   : > { %1662 = vmatmul.mubr.bf16.gmra.mrb[92].mxu0 %v737_v23 }
 0x1d8   : > { %1669 = vmatprep.mubr.bf16.mxu0 %v745_v27 }
 0x1d9   : > { %5695 = vmatmul.mubr.bf16.gmra.mrb[92].mxu1 %v795_v28 }
 0x1df   : > { %1670 = vmatmul.mubr.bf16.gmra.mrb[96].mxu0 %v744_v33 }
 0x1e0   : > { %1677 = vmatprep.mubr.bf16.mxu0 %v752_v35  ;;  %v668_v35 = vld [vmem:[%s7469_s20 + $0x680] sm:$0xff] }
 0x1e1   : > { %v787_v43 = vpack.c.bf16 %v668_v35, %v661_v34 }
 0x1e7   : > { %1678 = vmatmul.mubr.bf16.gmra.mrb[100].mxu0 %v751_v40  ;;  %v6037_v40 = vld [vmem:[#allocation7 + $0x38] sm:$0xff]  }
 0x1e8   : > { %1685 = vmatprep.mubr.bf16.mxu0 %v759_v42  ;;  %5712 = vmatprep.subr.bf16.mxu1 %v6037_v40 }
 0x1e9   : > { %5713 = vmatpush3.bf16.msra.mxu1 %v6037_v40 }
 0x1ef   : > { %1686 = vmatmul.mubr.bf16.gmra.mrb[104].mxu0 %v758_v47 }
 0x1f0   : > { %1693 = vmatprep.mubr.bf16.mxu0 %v766_v49 }
 0x1f2   : > { %v5234_v54 = vpop.f32.mrb[0].mxu0 }
 0x1f3   : > { %v5235_v56 = vpop.f32.mrb[1].mxu0 }
 0x1f4   : > { %v5236_v59 = vadd.f32 %v5235_v56, %v5234_v54  ;;  %v5237_v60 = vpop.f32.mrb[2].mxu0  ;;  %v5346_v62 = vpop.f32.mrb[0].mxu1  ;;  %v667_v54 = vld [vmem:[%s7469_s20 + $0x678] sm:$0xff] }
 0x1f5   : > { %v5238_v63 = vpop.f32.mrb[3].mxu0  ;;  %v5347_v2 = vpop.f32.mrb[1].mxu1 }
 0x1f6   : > { %v1286_v0 = vadd.f32 %v5236_v59, %v7701_v55  ;;  %v5239_v1 = vadd.f32 %v5238_v63, %v5237_v60  ;;  %v5348_v3 = vadd.f32 %v5347_v2, %v5346_v62  ;;  %v5349_v4 = vpop.f32.mrb[2].mxu1  ;;  %v682_v59 = vld [vmem:[%s7469_s20 + $0x6f0] sm:$0xff]  ;;  %v786_v63 = vpack.c.bf16 %v667_v54, %v660_v53 }
 0x1f7   : > { %1694 = vmatmul.mubr.bf16.gmra.mrb[108].mxu0 %v765_v57  ;;  %v5350_v6 = vpop.f32.mrb[3].mxu1  ;;  %v794_v2 = vpack.c.bf16 %v682_v59, %v675_v58 }
 0x1f8   : > { %v1289_v5 = vadd.f32 %v5239_v1, %v7701_v55  ;;  %1701 = vmatprep.mubr.bf16.mxu0 %v773_v61  ;;  %v7707_v9 = vadd.f32 %v5348_v3, %v1286_v0  ;;  %v5351_v10 = vadd.f32 %v5350_v6, %v5349_v4 }
 0x1fa   : > { %v5240_v13 = vpop.f32.mrb[4].mxu0  ;;  %v7711_v15 = vadd.f32 %v5351_v10, %v1289_v5 }
 0x1fb   : > { %v5241_v16 = vpop.f32.mrb[5].mxu0 }
 0x1fc   : > { %v5242_v18 = vadd.f32 %v5241_v16, %v5240_v13  ;;  %v5243_v19 = vpop.f32.mrb[6].mxu0  ;;  %v5352_v21 = vpop.f32.mrb[4].mxu1  ;;  %v674_v13 = vld [vmem:[%s7469_s20 + $0x6b0] sm:$0xff] }
 0x1fd   : > { %v5244_v22 = vpop.f32.mrb[7].mxu0  ;;  %v5353_v25 = vpop.f32.mrb[5].mxu1 }
 0x1fe   : > { %v1294_v23 = vadd.f32 %v5242_v18, %v7701_v55  ;;  %v5245_v24 = vadd.f32 %v5244_v22, %v5243_v19  ;;  %v5354_v26 = vadd.f32 %v5353_v25, %v5352_v21  ;;  %v5355_v27 = vpop.f32.mrb[6].mxu1  ;;  %v793_v21 = vpack.c.bf16 %v681_v14, %v674_v13 }
 0x1ff   : > { %1702 = vmatmul.mubr.bf16.gmra.mrb[112].mxu0 %v772_v17  ;;  %v5356_v29 = vpop.f32.mrb[7].mxu1 }
 0x200   : > { %v1297_v28 = vadd.f32 %v5245_v24, %v7701_v55  ;;  %1709 = vmatprep.mubr.bf16.mxu0 %v780_v20  ;;  %v7717_v32 = vadd.f32 %v5354_v26, %v1294_v23  ;;  %v5357_v33 = vadd.f32 %v5356_v29, %v5355_v27 }
 0x202   : > { %v5246_v36 = vpop.f32.mrb[8].mxu0  ;;  %v7721_v37 = vadd.f32 %v5357_v33, %v1297_v28 }
 0x203   : > { %v5247_v38 = vpop.f32.mrb[9].mxu0 }
 0x204   : > { %v5248_v41 = vadd.f32 %v5247_v38, %v5246_v36  ;;  %v5249_v42 = vpop.f32.mrb[10].mxu0  ;;  %v5358_v44 = vpop.f32.mrb[8].mxu1 }
 0x205   : > { %v5250_v45 = vpop.f32.mrb[11].mxu0  ;;  %v5359_v48 = vpop.f32.mrb[9].mxu1 }
 0x206   : > { %v1302_v46 = vadd.f32 %v5248_v41, %v7701_v55  ;;  %v5251_v47 = vadd.f32 %v5250_v45, %v5249_v42  ;;  %v5360_v49 = vadd.f32 %v5359_v48, %v5358_v44  ;;  %v5361_v50 = vpop.f32.mrb[10].mxu1 }
 0x207   : > { %1710 = vmatmul.mubr.bf16.gmra.mrb[116].mxu0 %v779_v39  ;;  %v5362_v52 = vpop.f32.mrb[11].mxu1 }
 0x208   : > { %v1305_v51 = vadd.f32 %v5251_v47, %v7701_v55  ;;  %1717 = vmatprep.mubr.bf16.mxu0 %v787_v43  ;;  %v7727_v56 = vadd.f32 %v5360_v49, %v1302_v46  ;;  %v5363_v57 = vadd.f32 %v5362_v52, %v5361_v50 }
 0x20a   : > { %v5252_v60 = vpop.f32.mrb[12].mxu0  ;;  %v7731_v61 = vadd.f32 %v5363_v57, %v1305_v51 }
 0x20b   : > { %v5253_v62 = vpop.f32.mrb[13].mxu0 }
 0x20c   : > { %v5254_v0 = vadd.f32 %v5253_v62, %v5252_v60  ;;  %v5255_v1 = vpop.f32.mrb[14].mxu0  ;;  %v5364_v3 = vpop.f32.mrb[12].mxu1 }
 0x20d   : > { %v5256_v4 = vpop.f32.mrb[15].mxu0  ;;  %v5365_v7 = vpop.f32.mrb[13].mxu1 }
 0x20e   : > { %v1310_v5 = vadd.f32 %v5254_v0, %v7701_v55  ;;  %v5257_v6 = vadd.f32 %v5256_v4, %v5255_v1  ;;  %v5366_v8 = vadd.f32 %v5365_v7, %v5364_v3  ;;  %v5367_v10 = vpop.f32.mrb[14].mxu1 }
 0x20f   : > { %1718 = vmatmul.mubr.bf16.gmra.mrb[120].mxu0 %v786_v63  ;;  %v5368_v12 = vpop.f32.mrb[15].mxu1 }
 0x210   : > { %v1313_v11 = vadd.f32 %v5257_v6, %v7701_v55  ;;  %1725 = vmatprep.mubr.bf16.mxu0 %v794_v2  ;;  %v7737_v16 = vadd.f32 %v5366_v8, %v1310_v5  ;;  %v5369_v17 = vadd.f32 %v5368_v12, %v5367_v10 }
 0x212   : > { %v5258_v18 = vpop.f32.mrb[16].mxu0  ;;  %v7739_v19 = vadd.f32 %v5369_v17, %v1313_v11 }
 0x213   : > { %v5259_v20 = vpop.f32.mrb[17].mxu0 }
 0x214   : > { %v5260_v22 = vadd.f32 %v5259_v20, %v5258_v18  ;;  %v5261_v23 = vpop.f32.mrb[18].mxu0  ;;  %v5370_v24 = vpop.f32.mrb[16].mxu1 }
 0x215   : > { %v5262_v25 = vpop.f32.mrb[19].mxu0  ;;  %v5371_v28 = vpop.f32.mrb[17].mxu1 }
 0x216   : > { %v1318_v26 = vadd.f32 %v5260_v22, %v7701_v55  ;;  %v5263_v27 = vadd.f32 %v5262_v25, %v5261_v23  ;;  %v5372_v29 = vadd.f32 %v5371_v28, %v5370_v24  ;;  %v5373_v30 = vpop.f32.mrb[18].mxu1 }
 0x217   : > { %1726 = vmatmul.mubr.bf16.gmra.mrb[124].mxu0 %v793_v21  ;;  %v5374_v33 = vpop.f32.mrb[19].mxu1 }
 0x218   : > { %v1321_v31 = vadd.f32 %v5263_v27, %v7701_v55  ;;  %v7743_v34 = vadd.f32 %v5372_v29, %v1318_v26  ;;  %v5375_v35 = vadd.f32 %v5374_v33, %v5373_v30 }
 0x21a   : > { %v5264_v36 = vpop.f32.mrb[20].mxu0  ;;  %v7745_v38 = vadd.f32 %v5375_v35, %v1321_v31 }
 0x21b   : > { %v5265_v39 = vpop.f32.mrb[21].mxu0 }
 0x21c   : > { %v5266_v40 = vadd.f32 %v5265_v39, %v5264_v36  ;;  %v5267_v41 = vpop.f32.mrb[22].mxu0  ;;  %v5376_v42 = vpop.f32.mrb[20].mxu1 }
 0x21d   : > { %v5268_v43 = vpop.f32.mrb[23].mxu0  ;;  %v5377_v46 = vpop.f32.mrb[21].mxu1 }
 0x21e   : > { %v1326_v44 = vadd.f32 %v5266_v40, %v7701_v55  ;;  %v5269_v45 = vadd.f32 %v5268_v43, %v5267_v41  ;;  %v5378_v47 = vadd.f32 %v5377_v46, %v5376_v42  ;;  %v5379_v48 = vpop.f32.mrb[22].mxu1 }
 0x21f   : > { %v5380_v50 = vpop.f32.mrb[23].mxu1 }
 0x220   : > { %v1329_v49 = vadd.f32 %v5269_v45, %v7701_v55  ;;  %v7749_v51 = vadd.f32 %v5378_v47, %v1326_v44  ;;  %v5381_v52 = vadd.f32 %v5380_v50, %v5379_v48 }
 0x222   : > { %v5270_v53 = vpop.f32.mrb[24].mxu0  ;;  %v7751_v54 = vadd.f32 %v5381_v52, %v1329_v49 }
 0x223   : > { %v5271_v57 = vpop.f32.mrb[25].mxu0 }
 0x224   : > { %v5272_v58 = vadd.f32 %v5271_v57, %v5270_v53  ;;  %v5273_v59 = vpop.f32.mrb[26].mxu0  ;;  %v5382_v60 = vpop.f32.mrb[24].mxu1 }
 0x225   : > { %v5274_v62 = vpop.f32.mrb[27].mxu0  ;;  %v5383_v1 = vpop.f32.mrb[25].mxu1 }
 0x226   : > { %v1334_v63 = vadd.f32 %v5272_v58, %v7701_v55  ;;  %v5275_v0 = vadd.f32 %v5274_v62, %v5273_v59  ;;  %v5384_v2 = vadd.f32 %v5383_v1, %v5382_v60  ;;  %v5385_v3 = vpop.f32.mrb[26].mxu1 }
 0x227   : > { %v5386_v5 = vpop.f32.mrb[27].mxu1 }
 0x228   : > { %v1337_v4 = vadd.f32 %v5275_v0, %v7701_v55  ;;  %v7755_v6 = vadd.f32 %v5384_v2, %v1334_v63  ;;  %v5387_v7 = vadd.f32 %v5386_v5, %v5385_v3 }
 0x22a   : > { %v5276_v8 = vpop.f32.mrb[28].mxu0  ;;  %v7757_v10 = vadd.f32 %v5387_v7, %v1337_v4 }
 0x22b   : > { %v5277_v11 = vpop.f32.mrb[29].mxu0 }
 0x22c   : > { %v5278_v12 = vadd.f32 %v5277_v11, %v5276_v8  ;;  %v5279_v13 = vpop.f32.mrb[30].mxu0  ;;  %v5388_v14 = vpop.f32.mrb[28].mxu1 }
 0x22d   : > { %v5280_v17 = vpop.f32.mrb[31].mxu0  ;;  %v5389_v21 = vpop.f32.mrb[29].mxu1 }
 0x22e   : > { %v1342_v18 = vadd.f32 %v5278_v12, %v7701_v55  ;;  %v5281_v20 = vadd.f32 %v5280_v17, %v5279_v13  ;;  %v5390_v22 = vadd.f32 %v5389_v21, %v5388_v14  ;;  %v5391_v23 = vpop.f32.mrb[30].mxu1 }
 0x22f   : > { %v5392_v25 = vpop.f32.mrb[31].mxu1 }
 0x230   : > { %v1345_v24 = vadd.f32 %v5281_v20, %v7701_v55  ;;  %v7761_v26 = vadd.f32 %v5390_v22, %v1342_v18  ;;  %v5393_v27 = vadd.f32 %v5392_v25, %v5391_v23 }
 0x232   : > { %v5282_v28 = vpop.f32.mrb[32].mxu0  ;;  %v7763_v29 = vadd.f32 %v5393_v27, %v1345_v24 }
 0x233   : > { %v5283_v30 = vpop.f32.mrb[33].mxu0 }
 0x234   : > { %v5284_v31 = vadd.f32 %v5283_v30, %v5282_v28  ;;  %v5285_v33 = vpop.f32.mrb[34].mxu0  ;;  %v5394_v35 = vpop.f32.mrb[32].mxu1 }
 0x235   : > { %v5286_v36 = vpop.f32.mrb[35].mxu0  ;;  %v5395_v41 = vpop.f32.mrb[33].mxu1 }
 0x236   : > { %v1350_v39 = vadd.f32 %v5284_v31, %v7701_v55  ;;  %v5287_v40 = vadd.f32 %v5286_v36, %v5285_v33  ;;  %v5396_v42 = vadd.f32 %v5395_v41, %v5394_v35  ;;  %v5397_v43 = vpop.f32.mrb[34].mxu1 }
 0x237   : > { %v5398_v45 = vpop.f32.mrb[35].mxu1 }
 0x238   : > { %v1353_v44 = vadd.f32 %v5287_v40, %v7701_v55  ;;  %v7767_v46 = vadd.f32 %v5396_v42, %v1350_v39  ;;  %v5399_v47 = vadd.f32 %v5398_v45, %v5397_v43 }
 0x23a   : > { %v5288_v48 = vpop.f32.mrb[36].mxu0  ;;  %v7769_v49 = vadd.f32 %v5399_v47, %v1353_v44 }
 0x23b   : > { %v5289_v50 = vpop.f32.mrb[37].mxu0 }
 0x23c   : > { %v5290_v52 = vadd.f32 %v5289_v50, %v5288_v48  ;;  %v5291_v53 = vpop.f32.mrb[38].mxu0  ;;  %v5400_v57 = vpop.f32.mrb[36].mxu1 }
 0x23d   : > { %v5292_v58 = vpop.f32.mrb[39].mxu0  ;;  %v5401_v62 = vpop.f32.mrb[37].mxu1 }
 0x23e   : > { %v1358_v59 = vadd.f32 %v5290_v52, %v7701_v55  ;;  %v5293_v60 = vadd.f32 %v5292_v58, %v5291_v53  ;;  %v5402_v63 = vadd.f32 %v5401_v62, %v5400_v57  ;;  %v5403_v0 = vpop.f32.mrb[38].mxu1 }
 0x23f   : > { %v5404_v2 = vpop.f32.mrb[39].mxu1 }
 0x240   : > { %v1361_v1 = vadd.f32 %v5293_v60, %v7701_v55  ;;  %v7773_v3 = vadd.f32 %v5402_v63, %v1358_v59  ;;  %v5405_v4 = vadd.f32 %v5404_v2, %v5403_v0 }
 0x242   : > { %v5294_v5 = vpop.f32.mrb[40].mxu0  ;;  %v7775_v7 = vadd.f32 %v5405_v4, %v1361_v1 }
 0x243   : > { %v5295_v8 = vpop.f32.mrb[41].mxu0 }
 0x244   : > { %v5296_v11 = vadd.f32 %v5295_v8, %v5294_v5  ;;  %v5297_v12 = vpop.f32.mrb[42].mxu0  ;;  %v5406_v13 = vpop.f32.mrb[40].mxu1 }
 0x245   : > { %v5298_v14 = vpop.f32.mrb[43].mxu0  ;;  %v5407_v20 = vpop.f32.mrb[41].mxu1 }
 0x246   : > { %v1366_v17 = vadd.f32 %v5296_v11, %v7701_v55  ;;  %v5299_v18 = vadd.f32 %v5298_v14, %v5297_v12  ;;  %v5408_v21 = vadd.f32 %v5407_v20, %v5406_v13  ;;  %v5409_v22 = vpop.f32.mrb[42].mxu1 }
 0x247   : > { %v5410_v24 = vpop.f32.mrb[43].mxu1 }
 0x248   : > { %v1369_v23 = vadd.f32 %v5299_v18, %v7701_v55  ;;  %v7779_v25 = vadd.f32 %v5408_v21, %v1366_v17  ;;  %v5411_v27 = vadd.f32 %v5410_v24, %v5409_v22 }
 0x24a   : > { %v5300_v28 = vpop.f32.mrb[44].mxu0  ;;  %v7781_v30 = vadd.f32 %v5411_v27, %v1369_v23 }
 0x24b   : > { %v5301_v31 = vpop.f32.mrb[45].mxu0 }
 0x24c   : > { %v5302_v33 = vadd.f32 %v5301_v31, %v5300_v28  ;;  %v5303_v35 = vpop.f32.mrb[46].mxu0  ;;  %v5412_v36 = vpop.f32.mrb[44].mxu1 }
 0x24d   : > { %v5304_v39 = vpop.f32.mrb[47].mxu0  ;;  %v5413_v42 = vpop.f32.mrb[45].mxu1 }
 0x24e   : > { %v1374_v40 = vadd.f32 %v5302_v33, %v7701_v55  ;;  %v5305_v41 = vadd.f32 %v5304_v39, %v5303_v35  ;;  %v5414_v43 = vadd.f32 %v5413_v42, %v5412_v36  ;;  %v5415_v44 = vpop.f32.mrb[46].mxu1 }
 0x24f   : > { %v5416_v47 = vpop.f32.mrb[47].mxu1 }
 0x250   : > { %v1377_v45 = vadd.f32 %v5305_v41, %v7701_v55  ;;  %v7785_v48 = vadd.f32 %v5414_v43, %v1374_v40  ;;  %v5417_v50 = vadd.f32 %v5416_v47, %v5415_v44 }
 0x252   : > { %v5306_v52 = vpop.f32.mrb[48].mxu0  ;;  %v7787_v53 = vadd.f32 %v5417_v50, %v1377_v45 }
 0x253   : > { %v5307_v57 = vpop.f32.mrb[49].mxu0 }
 0x254   : > { %v5308_v58 = vadd.f32 %v5307_v57, %v5306_v52  ;;  %v5309_v59 = vpop.f32.mrb[50].mxu0  ;;  %v5418_v60 = vpop.f32.mrb[48].mxu1 }
 0x255   : > { %v5310_v62 = vpop.f32.mrb[51].mxu0  ;;  %v5419_v1 = vpop.f32.mrb[49].mxu1 }
 0x256   : > { %v1382_v63 = vadd.f32 %v5308_v58, %v7701_v55  ;;  %v5311_v0 = vadd.f32 %v5310_v62, %v5309_v59  ;;  %v5420_v2 = vadd.f32 %v5419_v1, %v5418_v60  ;;  %v5421_v4 = vpop.f32.mrb[50].mxu1  ;;  %v6038_v58 = vld [vmem:[#allocation10] sm:$0xff]  }
 0x257   : > { %v5422_v8 = vpop.f32.mrb[51].mxu1  ;;  %5746 = vmatprep.subr.bf16.mxu0 %v6038_v58 }
 0x258   : > { %v1385_v5 = vadd.f32 %v5311_v0, %v7701_v55  ;;  %v7791_v11 = vadd.f32 %v5420_v2, %v1382_v63  ;;  %v5423_v12 = vadd.f32 %v5422_v8, %v5421_v4  ;;  %5747 = vmatpush3.bf16.msra.mxu0 %v6038_v58 }
 0x25a   : > { %v5312_v13 = vpop.f32.mrb[52].mxu0  ;;  %v7793_v14 = vadd.f32 %v5423_v12, %v1385_v5 }
 0x25b   : > { %v5313_v17 = vpop.f32.mrb[53].mxu0 }
 0x25c   : > { %v5314_v18 = vadd.f32 %v5313_v17, %v5312_v13  ;;  %v5315_v20 = vpop.f32.mrb[54].mxu0  ;;  %v5424_v21 = vpop.f32.mrb[52].mxu1 }
 0x25d   : > { %v5316_v22 = vpop.f32.mrb[55].mxu0  ;;  %v5425_v27 = vpop.f32.mrb[53].mxu1 }
 0x25e   : > { %v1390_v23 = vadd.f32 %v5314_v18, %v7701_v55  ;;  %v5317_v24 = vadd.f32 %v5316_v22, %v5315_v20  ;;  %v5426_v28 = vadd.f32 %v5425_v27, %v5424_v21  ;;  %v5427_v31 = vpop.f32.mrb[54].mxu1 }
 0x25f   : > { %v5428_v35 = vpop.f32.mrb[55].mxu1 }
 0x260   : > { %v1393_v33 = vadd.f32 %v5317_v24, %v7701_v55  ;;  %v7797_v36 = vadd.f32 %v5426_v28, %v1390_v23  ;;  %v5429_v39 = vadd.f32 %v5428_v35, %v5427_v31 }
 0x262   : > { %v5318_v40 = vpop.f32.mrb[56].mxu0  ;;  %v7799_v41 = vadd.f32 %v5429_v39, %v1393_v33 }
 0x263   : > { %v5319_v42 = vpop.f32.mrb[57].mxu0 }
 0x264   : > { %v5320_v43 = vadd.f32 %v5319_v42, %v5318_v40  ;;  %v5321_v44 = vpop.f32.mrb[58].mxu0  ;;  %v5430_v45 = vpop.f32.mrb[56].mxu1 }
 0x265   : > { %v5322_v47 = vpop.f32.mrb[59].mxu0  ;;  %v5431_v57 = vpop.f32.mrb[57].mxu1 }
 0x266   : > { %v1398_v50 = vadd.f32 %v5320_v43, %v7701_v55  ;;  %v5323_v52 = vadd.f32 %v5322_v47, %v5321_v44  ;;  %v5432_v59 = vadd.f32 %v5431_v57, %v5430_v45  ;;  %v5433_v60 = vpop.f32.mrb[58].mxu1  ;;  %v6039_v43 = vld [vmem:[#allocation10 + $0x8] sm:$0xff]  }
 0x267   : > { %v5434_v63 = vpop.f32.mrb[59].mxu1  ;;  %5748 = vmatprep.subr.bf16.mxu0 %v6039_v43 }
 0x268   : > { %v1401_v62 = vadd.f32 %v5323_v52, %v7701_v55  ;;  %v7803_v0 = vadd.f32 %v5432_v59, %v1398_v50  ;;  %v5435_v1 = vadd.f32 %v5434_v63, %v5433_v60  ;;  %5749 = vmatpush3.bf16.msra.mxu0 %v6039_v43  ;;  %v6040_v60 = vld [vmem:[#allocation10 + $0x10] sm:$0xff]  }
 0x269   : > { %5750 = vmatprep.subr.bf16.mxu0 %v6040_v60 }
 0x26a   : > { %v5324_v2 = vpop.f32.mrb[60].mxu0  ;;  %v7805_v4 = vadd.f32 %v5435_v1, %v1401_v62  ;;  %v6041_v62 = vld [vmem:[#allocation10 + $0x18] sm:$0xff]  }
 0x26b   : > { %v5325_v5 = vpop.f32.mrb[61].mxu0 }
 0x26c   : > { %v5326_v8 = vadd.f32 %v5325_v5, %v5324_v2  ;;  %v5327_v12 = vpop.f32.mrb[62].mxu0  ;;  %v5436_v13 = vpop.f32.mrb[60].mxu1  ;;  %5751 = vmatpush3.bf16.msra.mxu0 %v6040_v60 }
 0x26d   : > { %v5328_v17 = vpop.f32.mrb[63].mxu0  ;;  %v5437_v21 = vpop.f32.mrb[61].mxu1  ;;  %5752 = vmatprep.subr.bf16.mxu0 %v6041_v62 }
 0x26e   : > { %v1406_v18 = vadd.f32 %v5326_v8, %v7701_v55  ;;  %v5329_v20 = vadd.f32 %v5328_v17, %v5327_v12  ;;  %v5438_v22 = vadd.f32 %v5437_v21, %v5436_v13  ;;  %v5439_v23 = vpop.f32.mrb[62].mxu1 }
 0x26f   : > { %v5440_v27 = vpop.f32.mrb[63].mxu1 }
 0x270   : > { %v1409_v24 = vadd.f32 %v5329_v20, %v7701_v55  ;;  %v7809_v28 = vadd.f32 %v5438_v22, %v1406_v18  ;;  %v5441_v31 = vadd.f32 %v5440_v27, %v5439_v23  ;;  %5753 = vmatpush3.bf16.msra.mxu0 %v6041_v62 }
 0x272   : > { %v5458_v33 = vpop.f32.mrb[64].mxu0  ;;  %v7811_v35 = vadd.f32 %v5441_v31, %v1409_v24 }
 0x273   : > { %v5459_v39 = vpop.f32.mrb[65].mxu0 }
 0x274   : > { %v5460_v40 = vadd.f32 %v5459_v39, %v5458_v33  ;;  %v5461_v42 = vpop.f32.mrb[66].mxu0  ;;  %v5668_v45 = vpop.f32.mrb[64].mxu1  ;;  %v6043_v33 = vld [vmem:[#allocation10 + $0x28] sm:$0xff]  }
 0x275   : > { %v5462_v44 = vpop.f32.mrb[67].mxu0  ;;  %v1768_v52 = vpop.f32.mrb[65].mxu1 }
 0x276   : > { %v5463_v47 = vadd.f32 %v5462_v44, %v5461_v42  ;;  %v1608_v50 = vadd.f32 %v5460_v40, %v7707_v9  ;;  %v5669_v57 = vpop.f32.mrb[66].mxu1  ;;  %v6042_v9 = vld [vmem:[#allocation10 + $0x20] sm:$0xff]  }
 0x277   : > { %v1771_v59 = vpop.f32.mrb[67].mxu1  ;;  %5754 = vmatprep.subr.bf16.mxu0 %v6042_v9 }
 0x278   : > { %v1769_v55 = vadd.f32 %v1768_v52, %v1608_v50  ;;  %v1611_v58 = vadd.f32 %v5463_v47, %v7711_v15  ;;  %5755 = vmatpush3.bf16.msra.mxu0 %v6042_v9 }
 0x279   : > { %5756 = vmatprep.subr.bf16.mxu0 %v6043_v33 }
 0x27a   : > { %v1772_v63 = vadd.f32 %v1771_v59, %v1611_v58  ;;  %v5464_v1 = vpop.f32.mrb[68].mxu0  ;;  %v1895_v5 = vmax.f32 %v1769_v55, 0.0 }
 0x27b   : > { %v5465_v2 = vpop.f32.mrb[69].mxu0 }
 0x27c   : > { %v1896_v8 = vmax.f32 %v1772_v63, 0.0  ;;  %v5466_v12 = vadd.f32 %v5465_v2, %v5464_v1  ;;  %v5467_v13 = vpop.f32.mrb[70].mxu0  ;;  %v5672_v18 = vpop.f32.mrb[68].mxu1  ;;  %5757 = vmatpush3.bf16.msra.mxu0 %v6043_v33  ;;  %v6045_v1 = vld [vmem:[#allocation10 + $0x38] sm:$0xff]  }
 0x27d   : > { %v5468_v17 = vpop.f32.mrb[71].mxu0  ;;  %v1784_v22 = vpop.f32.mrb[69].mxu1 }
 0x27e   : > { %v1927_v20 = vpack.c.bf16 %v1896_v8, %v1895_v5  ;;  %v1616_v21 = vadd.f32 %v5466_v12, %v7717_v32  ;;  %v5469_v15 = vadd.f32 %v5468_v17, %v5467_v13  ;;  %v5673_v23 = vpop.f32.mrb[70].mxu1  ;;  %v6044_v32 = vld [vmem:[#allocation10 + $0x30] sm:$0xff]  }
 0x27f   : > { %v1787_v31 = vpop.f32.mrb[71].mxu1  ;;  %5758 = vmatprep.subr.bf16.mxu0 %v6044_v32 }
 0x280   : > { %v1777_v24 = vadd.f32 %v5668_v45, %v1616_v21  ;;  %v1619_v27 = vadd.f32 %v5469_v15, %v7721_v37  ;;  %5714 = vmatprep.mubr.bf16.mxu1 %v1927_v20  ;;  %5759 = vmatpush3.bf16.msra.mxu0 %v6044_v32 }
 0x281   : > { %5760 = vmatprep.subr.bf16.mxu0 %v6045_v1 }
 0x282   : > { %v1780_v39 = vadd.f32 %v5669_v57, %v1619_v27  ;;  %v5470_v40 = vpop.f32.mrb[72].mxu0  ;;  %v1897_v43 = vmax.f32 %v1777_v24, 0.0 }
 0x283   : > { %v5471_v42 = vpop.f32.mrb[73].mxu0 }
 0x284   : > { %v1898_v44 = vmax.f32 %v1780_v39, 0.0  ;;  %v5472_v47 = vadd.f32 %v5471_v42, %v5470_v40  ;;  %v5473_v50 = vpop.f32.mrb[74].mxu0  ;;  %v7817_v55 = vpop.f32.mrb[72].mxu1  ;;  %5761 = vmatpush3.bf16.msra.mxu0 %v6045_v1 }
 0x285   : > { %v5474_v52 = vpop.f32.mrb[75].mxu0  ;;  %v1800_v59 = vpop.f32.mrb[73].mxu1 }
 0x286   : > { %v1928_v45 = vpack.c.bf16 %v1898_v44, %v1897_v43  ;;  %v5475_v58 = vadd.f32 %v5474_v52, %v5473_v50  ;;  %v1624_v37 = vadd.f32 %v5472_v47, %v7727_v56  ;;  %v7820_v60 = vpop.f32.mrb[74].mxu1 }
 0x287   : > { %v1803_v63 = vpop.f32.mrb[75].mxu1 }
 0x288   : > { %v1785_v57 = vadd.f32 %v1784_v22, %v1624_v37  ;;  %5715 = vmatmul.mubr.bf16.vlgmr.msra.gmra.mrb[96].mxu1 %v1928_v45  ;;  %v1627_v62 = vadd.f32 %v5475_v58, %v7731_v61 }
 0x28a   : > { %v1788_v2 = vadd.f32 %v1787_v31, %v1627_v62  ;;  %v5476_v5 = vpop.f32.mrb[76].mxu0  ;;  %v1899_v12 = vmax.f32 %v1785_v57, 0.0 }
 0x28b   : > { %v5477_v8 = vpop.f32.mrb[77].mxu0 }
 0x28c   : > { %v1900_v13 = vmax.f32 %v1788_v2, 0.0  ;;  %v5478_v9 = vadd.f32 %v5477_v8, %v5476_v5  ;;  %v5479_v17 = vpop.f32.mrb[78].mxu0  ;;  %v7823_v20 = vpop.f32.mrb[76].mxu1 }
 0x28d   : > { %v5480_v56 = vpop.f32.mrb[79].mxu0  ;;  %v1816_v61 = vpop.f32.mrb[77].mxu1 }
 0x28e   : > { %v1929_v21 = vpack.c.bf16 %v1900_v13, %v1899_v12  ;;  %v1632_v15 = vadd.f32 %v5478_v9, %v7737_v16  ;;  %v5481_v22 = vadd.f32 %v5480_v56, %v5479_v17  ;;  %v7826_v24 = vpop.f32.mrb[78].mxu1 }
 0x28f   : > { %v1819_v33 = vpop.f32.mrb[79].mxu1 }
 0x290   : > { %v1793_v27 = vadd.f32 %v5672_v18, %v1632_v15  ;;  %v1635_v31 = vadd.f32 %v5481_v22, %v7739_v19  ;;  %5718 = vmatprep.mubr.bf16.mxu1 %v1929_v21 }
 0x292   : > { %v1796_v39 = vadd.f32 %v5673_v23, %v1635_v31  ;;  %v5482_v40 = vpop.f32.mrb[80].mxu0  ;;  %v1901_v43 = vmax.f32 %v1793_v27, 0.0 }
 0x293   : > { %v5483_v42 = vpop.f32.mrb[81].mxu0 }
 0x294   : > { %v1902_v44 = vmax.f32 %v1796_v39, 0.0  ;;  %v5484_v47 = vadd.f32 %v5483_v42, %v5482_v40  ;;  %v5485_v50 = vpop.f32.mrb[82].mxu0  ;;  %v7829_v52 = vpop.f32.mrb[80].mxu1 }
 0x295   : > { %v5486_v32 = vpop.f32.mrb[83].mxu0  ;;  %v7832_v37 = vpop.f32.mrb[81].mxu1 }
 0x296   : > { %v5487_v16 = vadd.f32 %v5486_v32, %v5485_v50  ;;  %v1640_v45 = vadd.f32 %v5484_v47, %v7743_v34  ;;  %v1930_v58 = vpack.c.bf16 %v1902_v44, %v1901_v43  ;;  %v7834_v18 = vpop.f32.mrb[82].mxu1 }
 0x297   : > { %v7837_v57 = vpop.f32.mrb[83].mxu1 }
 0x298   : > { %v1801_v19 = vadd.f32 %v1800_v59, %v1640_v45  ;;  %5719 = vmatmul.mubr.bf16.gmra.mrb[100].mxu1 %v1930_v58  ;;  %v1643_v23 = vadd.f32 %v5487_v16, %v7745_v38 }
 0x29a   : > { %v1804_v62 = vadd.f32 %v1803_v63, %v1643_v23  ;;  %v5488_v1 = vpop.f32.mrb[84].mxu0  ;;  %v1903_v5 = vmax.f32 %v1801_v19, 0.0 }
 0x29b   : > { %v5489_v2 = vpop.f32.mrb[85].mxu0 }
 0x29c   : > { %v1904_v8 = vmax.f32 %v1804_v62, 0.0  ;;  %v5490_v12 = vadd.f32 %v5489_v2, %v5488_v1  ;;  %v5491_v13 = vpop.f32.mrb[86].mxu0  ;;  %v7839_v34 = vpop.f32.mrb[84].mxu1 }
 0x29d   : > { %v5492_v9 = vpop.f32.mrb[87].mxu0  ;;  %v7842_v59 = vpop.f32.mrb[85].mxu1 }
 0x29e   : > { %v1931_v17 = vpack.c.bf16 %v1904_v8, %v1903_v5  ;;  %v1648_v56 = vadd.f32 %v5490_v12, %v7749_v51  ;;  %v5493_v21 = vadd.f32 %v5492_v9, %v5491_v13  ;;  %v7844_v15 = vpop.f32.mrb[86].mxu1 }
 0x29f   : > { %v7848_v22 = vpop.f32.mrb[87].mxu1 }
 0x2a0   : > { %v1809_v38 = vadd.f32 %v7817_v55, %v1648_v56  ;;  %v1651_v63 = vadd.f32 %v5493_v21, %v7751_v54  ;;  %5722 = vmatprep.mubr.bf16.mxu1 %v1931_v17 }
 0x2a2   : > { %v1812_v27 = vadd.f32 %v7820_v60, %v1651_v63  ;;  %v5494_v31 = vpop.f32.mrb[88].mxu0  ;;  %v1905_v40 = vmax.f32 %v1809_v38, 0.0 }
 0x2a3   : > { %v5495_v39 = vpop.f32.mrb[89].mxu0 }
 0x2a4   : > { %v1906_v42 = vmax.f32 %v1812_v27, 0.0  ;;  %v5496_v43 = vadd.f32 %v5495_v39, %v5494_v31  ;;  %v5497_v51 = vpop.f32.mrb[90].mxu0  ;;  %v7851_v47 = vpop.f32.mrb[88].mxu1 }
 0x2a5   : > { %v5498_v44 = vpop.f32.mrb[91].mxu0  ;;  %v7854_v16 = vpop.f32.mrb[89].mxu1 }
 0x2a6   : > { %v5499_v50 = vadd.f32 %v5498_v44, %v5497_v51  ;;  %v1656_v32 = vadd.f32 %v5496_v43, %v7755_v6  ;;  %v1932_v55 = vpack.c.bf16 %v1906_v42, %v1905_v40  ;;  %v7856_v54 = vpop.f32.mrb[90].mxu1 }
 0x2a7   : > { %v7859_v58 = vpop.f32.mrb[91].mxu1 }
 0x2a8   : > { %v1817_v45 = vadd.f32 %v1816_v61, %v1656_v32  ;;  %5723 = vmatmul.mubr.bf16.gmra.mrb[104].mxu1 %v1932_v55  ;;  %v1659_v60 = vadd.f32 %v5499_v50, %v7757_v10 }
 0x2aa   : > { %v1820_v19 = vadd.f32 %v1819_v33, %v1659_v60  ;;  %v5500_v23 = vpop.f32.mrb[92].mxu0  ;;  %v1907_v1 = vmax.f32 %v1817_v45, 0.0 }
 0x2ab   : > { %v5501_v62 = vpop.f32.mrb[93].mxu0 }
 0x2ac   : > { %v1908_v2 = vmax.f32 %v1820_v19, 0.0  ;;  %v5502_v5 = vadd.f32 %v5501_v62, %v5500_v23  ;;  %v5503_v8 = vpop.f32.mrb[94].mxu0  ;;  %v7861_v6 = vpop.f32.mrb[92].mxu1 }
 0x2ad   : > { %v5504_v12 = vpop.f32.mrb[95].mxu0  ;;  %v7864_v61 = vpop.f32.mrb[93].mxu1 }
 0x2ae   : > { %v1933_v13 = vpack.c.bf16 %v1908_v2, %v1907_v1  ;;  %v1664_v9 = vadd.f32 %v5502_v5, %v7761_v26  ;;  %v5505_v17 = vadd.f32 %v5504_v12, %v5503_v8  ;;  %v7866_v56 = vpop.f32.mrb[94].mxu1 }
 0x2af   : > { %v7870_v21 = vpop.f32.mrb[95].mxu1 }
 0x2b0   : > { %v1825_v10 = vadd.f32 %v7823_v20, %v1664_v9  ;;  %v1667_v33 = vadd.f32 %v5505_v17, %v7763_v29  ;;  %5726 = vmatprep.mubr.bf16.mxu1 %v1933_v13 }
 0x2b2   : > { %v1828_v38 = vadd.f32 %v7826_v24, %v1667_v33  ;;  %v5506_v63 = vpop.f32.mrb[96].mxu0  ;;  %v1909_v31 = vmax.f32 %v1825_v10, 0.0 }
 0x2b3   : > { %v5507_v27 = vpop.f32.mrb[97].mxu0 }
 0x2b4   : > { %v1910_v39 = vmax.f32 %v1828_v38, 0.0  ;;  %v5508_v40 = vadd.f32 %v5507_v27, %v5506_v63  ;;  %v5509_v26 = vpop.f32.mrb[98].mxu0 }
 0x2b5   : > { %v5510_v42 = vpop.f32.mrb[99].mxu0 }
 0x2b6   : > { %v5511_v43 = vadd.f32 %v5510_v42, %v5509_v26  ;;  %v1672_v51 = vadd.f32 %v5508_v40, %v7767_v46  ;;  %v1934_v44 = vpack.c.bf16 %v1910_v39, %v1909_v31 }
 0x2b8   : > { %v1833_v20 = vadd.f32 %v7832_v37, %v1672_v51  ;;  %5727 = vmatmul.mubr.bf16.gmra.mrb[108].mxu1 %v1934_v44  ;;  %v1675_v29 = vadd.f32 %v5511_v43, %v7769_v49 }
 0x2ba   : > { %v1836_v50 = vadd.f32 %v7837_v57, %v1675_v29  ;;  %v5512_v32 = vpop.f32.mrb[100].mxu0  ;;  %v1911_v55 = vmax.f32 %v1833_v20, 0.0 }
 0x2bb   : > { %v5513_v24 = vpop.f32.mrb[101].mxu0 }
 0x2bc   : > { %v1912_v45 = vmax.f32 %v1836_v50, 0.0  ;;  %v5514_v60 = vadd.f32 %v5513_v24, %v5512_v32  ;;  %v5515_v19 = vpop.f32.mrb[102].mxu0 }
 0x2bd   : > { %v5516_v23 = vpop.f32.mrb[103].mxu0 }
 0x2be   : > { %v1935_v62 = vpack.c.bf16 %v1912_v45, %v1911_v55  ;;  %v1680_v1 = vadd.f32 %v5514_v60, %v7773_v3  ;;  %v5517_v2 = vadd.f32 %v5516_v23, %v5515_v19 }
 0x2c0   : > { %v1841_v46 = vadd.f32 %v7829_v52, %v1680_v1  ;;  %v1683_v37 = vadd.f32 %v5517_v2, %v7775_v7  ;;  %5730 = vmatprep.mubr.bf16.mxu1 %v1935_v62 }
 0x2c2   : > { %v1844_v49 = vadd.f32 %v7834_v18, %v1683_v37  ;;  %v5518_v5 = vpop.f32.mrb[104].mxu0  ;;  %v1913_v8 = vmax.f32 %v1841_v46, 0.0 }
 0x2c3   : > { %v5519_v57 = vpop.f32.mrb[105].mxu0 }
 0x2c4   : > { %v1914_v12 = vmax.f32 %v1844_v49, 0.0  ;;  %v5520_v13 = vadd.f32 %v5519_v57, %v5518_v5  ;;  %v5521_v9 = vpop.f32.mrb[106].mxu0 }
 0x2c5   : > { %v5522_v17 = vpop.f32.mrb[107].mxu0 }
 0x2c6   : > { %v5523_v10 = vadd.f32 %v5522_v17, %v5521_v9  ;;  %v1688_v33 = vadd.f32 %v5520_v13, %v7779_v25  ;;  %v1936_v38 = vpack.c.bf16 %v1914_v12, %v1913_v8 }
 0x2c8   : > { %v1849_v3 = vadd.f32 %v7842_v59, %v1688_v33  ;;  %5731 = vmatmul.mubr.bf16.gmra.mrb[112].mxu1 %v1936_v38  ;;  %v1691_v52 = vadd.f32 %v5523_v10, %v7781_v30 }
 0x2ca   : > { %v1852_v7 = vadd.f32 %v7848_v22, %v1691_v52  ;;  %v5524_v63 = vpop.f32.mrb[108].mxu0  ;;  %v1915_v27 = vmax.f32 %v1849_v3, 0.0 }
 0x2cb   : > { %v5525_v18 = vpop.f32.mrb[109].mxu0 }
 0x2cc   : > { %v1916_v31 = vmax.f32 %v1852_v7, 0.0  ;;  %v5526_v39 = vadd.f32 %v5525_v18, %v5524_v63  ;;  %v5527_v40 = vpop.f32.mrb[110].mxu0 }
 0x2cd   : > { %v5528_v26 = vpop.f32.mrb[111].mxu0 }
 0x2ce   : > { %v1937_v42 = vpack.c.bf16 %v1916_v31, %v1915_v27  ;;  %v1696_v43 = vadd.f32 %v5526_v39, %v7785_v48  ;;  %v5529_v51 = vadd.f32 %v5528_v26, %v5527_v40 }
 0x2d0   : > { %v1857_v25 = vadd.f32 %v7839_v34, %v1696_v43  ;;  %v1699_v59 = vadd.f32 %v5529_v51, %v7787_v53  ;;  %5734 = vmatprep.mubr.bf16.mxu1 %v1937_v42  ;;  %v6046_v43 = vld [vmem:[#allocation13] ss:$28 sps:$4 sm:$0xff]  }
 0x2d1   : > { %v6048_v51 = vld [vmem:[#allocation13 + $0x4] ss:$28 sps:$4 sm:$0xff]  }
 0x2d2   : > { %v1860_v30 = vadd.f32 %v7844_v15, %v1699_v59  ;;  %v5530_v44 = vpop.f32.mrb[112].mxu0  ;;  %v1917_v20 = vmax.f32 %v1857_v25, 0.0  ;;  %v6051_v25 = vld [vmem:[#allocation13 + $0xc] ss:$28 sps:$4 sm:$0xff]   ;;  %v6054_v59 = vld [vmem:[#allocation13 + $0x3c] ss:$28 sps:$4 sm:$0xff]   ;;  %2892 = vmatprep.subr.bf16.mxu1 %v6048_v51 }
 0x2d3   : > { %v5531_v22 = vpop.f32.mrb[113].mxu0  ;;  %2893 = vmatpush1.bf16.msra.mxu1 %v6046_v43  ;;  %3085 = vmatprep.subr.bf16.mxu0 %v6051_v25 }
 0x2d4   : > { %v1918_v29 = vmax.f32 %v1860_v30, 0.0  ;;  %v5532_v50 = vadd.f32 %v5531_v22, %v5530_v44  ;;  %v5533_v32 = vpop.f32.mrb[114].mxu0  ;;  %v7905_v30 = vld [vmem:[#allocation9] ss:$0 sm:$0xff]  ;;  %2894 = vmatprep.subr.bf16.mxu1 %v6054_v59 }
 0x2d5   : > { %v5534_v24 = vpop.f32.mrb[115].mxu0 }
 0x2d6   : > { %v5535_v55 = vadd.f32 %v5534_v24, %v5533_v32  ;;  %v1704_v45 = vadd.f32 %v5532_v50, %v7791_v11  ;;  %v1938_v60 = vpack.c.bf16 %v1918_v29, %v1917_v20  ;;  %v6058_v29 = vld [vmem:[#allocation13 + $0x70] ss:$28 sps:$4 sm:$0xff]  }
 0x2d7   : > { %v6066_v24 = vld [vmem:[#allocation13 + $0xac] ss:$28 sps:$4 sm:$0xff]  }
 0x2d8   : > { %v1865_v48 = vadd.f32 %v7854_v16, %v1704_v45  ;;  %5735 = vmatmul.mubr.bf16.gmra.mrb[116].mxu1 %v1938_v60  ;;  %v1707_v34 = vadd.f32 %v5535_v55, %v7793_v14 }
 0x2da   : > { %v1868_v53 = vadd.f32 %v7859_v58, %v1707_v34  ;;  %v5536_v19 = vpop.f32.mrb[116].mxu0  ;;  %v1919_v23 = vmax.f32 %v1865_v48, 0.0 }
 0x2db   : > { %v5537_v15 = vpop.f32.mrb[117].mxu0 }
 0x2dc   : > { %v1920_v62 = vmax.f32 %v1868_v53, 0.0  ;;  %v5538_v1 = vadd.f32 %v5537_v15, %v5536_v19  ;;  %v5539_v2 = vpop.f32.mrb[118].mxu0  ;;  %v6064_v53 = vld [vmem:[#allocation13 + $0xa8] ss:$28 sps:$4 sm:$0xff]  }
 0x2dd   : > { %v5540_v46 = vpop.f32.mrb[119].mxu0  ;;  %v6072_v15 = vld [vmem:[#allocation13 + $0xe4] ss:$28 sps:$4 sm:$0xff]  }
 0x2de   : > { %v1939_v37 = vpack.c.bf16 %v1920_v62, %v1919_v23  ;;  %v1712_v49 = vadd.f32 %v5538_v1, %v7797_v36  ;;  %v5541_v5 = vadd.f32 %v5540_v46, %v5539_v2  ;;  %v6049_v62 = vld [vmem:[#allocation13 + $0x8] ss:$28 sps:$4 sm:$0xff]   ;;  %v6070_v2 = vld [vmem:[#allocation13 + $0xe0] ss:$28 sps:$4 sm:$0xff]  }
 0x2df   : > { %v6057_v1 = vld [vmem:[#allocation13 + $0x44] ss:$28 sps:$4 sm:$0xff]   ;;  %v6078_v46 = vld [vmem:[#allocation13 + $0x11c] ss:$28 sps:$4 sm:$0xff]  }
 0x2e0   : > { %v1873_v11 = vadd.f32 %v7851_v47, %v1712_v49  ;;  %v1715_v16 = vadd.f32 %v5541_v5, %v7799_v41  ;;  %5738 = vmatprep.mubr.bf16.mxu1 %v1939_v37  ;;  %v6055_v37 = vld [vmem:[#allocation13 + $0x40] ss:$28 sps:$4 sm:$0xff]   ;;  %v6076_v5 = vld [vmem:[#allocation13 + $0x118] ss:$28 sps:$4 sm:$0xff]  }
 0x2e1   : > { %v6063_v49 = vld [vmem:[#allocation13 + $0x7c] ss:$28 sps:$4 sm:$0xff]  }
 0x2e2   : > { %v1876_v14 = vadd.f32 %v7856_v54, %v1715_v16  ;;  %v5542_v57 = vpop.f32.mrb[120].mxu0  ;;  %v1921_v8 = vmax.f32 %v1873_v11, 0.0  ;;  %v6084_v11 = vld [vmem:[#allocation13 + $0x154] ss:$28 sps:$4 sm:$0xff]  }
 0x2e3   : > { %v5543_v58 = vpop.f32.mrb[121].mxu0 }
 0x2e4   : > { %v1922_v12 = vmax.f32 %v1876_v14, 0.0  ;;  %v5544_v13 = vadd.f32 %v5543_v58, %v5542_v57  ;;  %v5545_v9 = vpop.f32.mrb[122].mxu0  ;;  %v6061_v14 = vld [vmem:[#allocation13 + $0x78] ss:$28 sps:$4 sm:$0xff]  }
 0x2e5   : > { %v5546_v17 = vpop.f32.mrb[123].mxu0 }
 0x2e6   : > { %v5547_v10 = vadd.f32 %v5546_v17, %v5545_v9  ;;  %v1720_v33 = vadd.f32 %v5544_v13, %v7803_v0  ;;  %v1940_v38 = vpack.c.bf16 %v1922_v12, %v1921_v8  ;;  %v6069_v8 = vld [vmem:[#allocation13 + $0xb4] ss:$28 sps:$4 sm:$0xff]  }
 0x2e7   : > { %v6082_v9 = vld [vmem:[#allocation13 + $0x150] ss:$28 sps:$4 sm:$0xff]  }
 0x2e8   : > { %v1881_v36 = vadd.f32 %v7864_v61, %v1720_v33  ;;  %5739 = vmatmul.mubr.bf16.gmra.mrb[120].mxu1 %v1940_v38  ;;  %v1723_v47 = vadd.f32 %v5547_v10, %v7805_v4  ;;  %v6067_v38 = vld [vmem:[#allocation13 + $0xb0] ss:$28 sps:$4 sm:$0xff]  }
 0x2ea   : > { %v1884_v41 = vadd.f32 %v7870_v21, %v1723_v47  ;;  %v5548_v3 = vpop.f32.mrb[124].mxu0  ;;  %v1923_v52 = vmax.f32 %v1881_v36, 0.0 }
 0x2eb   : > { %v5549_v54 = vpop.f32.mrb[125].mxu0 }
 0x2ec   : > { %v1924_v7 = vmax.f32 %v1884_v41, 0.0  ;;  %v5550_v63 = vadd.f32 %v5549_v54, %v5548_v3  ;;  %v5551_v18 = vpop.f32.mrb[126].mxu0  ;;  %v6075_v41 = vld [vmem:[#allocation13 + $0xec] ss:$28 sps:$4 sm:$0xff]  }
 0x2ed   : > { %v5552_v27 = vpop.f32.mrb[127].mxu0 }
 0x2ee   : > { %v1941_v31 = vpack.c.bf16 %v1924_v7, %v1923_v52  ;;  %v1728_v39 = vadd.f32 %v5550_v63, %v7809_v28  ;;  %v5553_v40 = vadd.f32 %v5552_v27, %v5551_v18  ;;  %v6052_v28 = vld [vmem:[#allocation13 + $0x38] ss:$28 sps:$4 sm:$0xff]   ;;  %v6073_v63 = vld [vmem:[#allocation13 + $0xe8] ss:$28 sps:$4 sm:$0xff]   ;;  %v6079_v27 = vld [vmem:[#allocation13 + $0x120] ss:$28 sps:$4 sm:$0xff]  }
 0x2ef   : > { %2895 = vmatpush1.bf16.msra.mxu1 %v6052_v28  ;;  %v6081_v18 = vld [vmem:[#allocation13 + $0x124] ss:$28 sps:$4 sm:$0xff]  }
 0x2f0   : > { %v1889_v0 = vadd.f32 %v7861_v6, %v1728_v39  ;;  %v1731_v61 = vadd.f32 %v5553_v40, %v7811_v35  ;;  %5742 = vmatprep.mubr.bf16.mxu1 %v1941_v31  ;;  %v6060_v6 = vld [vmem:[#allocation13 + $0x74] ss:$28 sps:$4 sm:$0xff]   ;;  %v6087_v31 = vld [vmem:[#allocation13 + $0x15c] ss:$28 sps:$4 sm:$0xff]  }
 0x2f1   : > { %2896 = vmatprep.subr.bf16.mxu1 %v6060_v6  ;;  %v6085_v40 = vld [vmem:[#allocation13 + $0x158] ss:$28 sps:$4 sm:$0xff]  }
 0x2f2   : > { %v1892_v4 = vadd.f32 %v7866_v56, %v1731_v61  ;;  %v1925_v26 = vmax.f32 %v1889_v0, 0.0 }
 0x2f3   : > { %2897 = vmatpush1.bf16.msra.mxu1 %v6058_v29 }
 0x2f4   : > { %v1926_v21 = vmax.f32 %v1892_v4, 0.0  ;;  %2898 = vmatprep.subr.bf16.mxu1 %v6066_v24 }
 0x2f6   : > { %v1942_v42 = vpack.c.bf16 %v1926_v21, %v1925_v26 }
 0x2f7   : > { %2899 = vmatpush1.bf16.msra.mxu1 %v6064_v53 }
 0x2f8   : > { %5743 = vmatmul.mubr.bf16.gmra.mrb[124].mxu1 %v1942_v42  ;;  %2900 = vmatprep.subr.bf16.mxu1 %v6072_v15 }
 0x2fb   : > { %2901 = vmatpush1.bf16.msra.mxu1 %v6070_v2 }
 0x2fc   : > { %2902 = vmatprep.subr.bf16.mxu1 %v6078_v46 }
 0x2ff   : > { %2903 = vmatpush1.bf16.msra.mxu1 %v6076_v5 }
 0x300   : > { %2904 = vmatprep.subr.bf16.mxu1 %v6084_v11 }
 0x303   : > { %2905 = vmatpush1.bf16.msra.mxu1 %v6082_v9 }
 0x35b   : > { %v5716_v35 = vpop.f32.mrb[96].mxu1 }
 0x35c   : > { %v2057_v44 = vadd.f32 %v5716_v35, %v7905_v30  ;;  %v2048_v56 = vpop.f32.mrb[97].mxu1 }
 0x35d   : > { %v2049_v22 = vadd.f32 %v7905_v30, %v2048_v56  ;;  %v5717_v20 = vpop.f32.mrb[98].mxu1 }
 0x35e   : > { %v2060_v50 = vadd.f32 %v5717_v20, %v7905_v30  ;;  %v2051_v32 = vpop.f32.mrb[99].mxu1  ;;  %v2177_v45 = vmax.f32 %v2057_v44, 0.0 }
 0x35f   : > { %v2052_v55 = vadd.f32 %v7905_v30, %v2051_v32  ;;  %v2175_v48 = vmax.f32 %v2049_v22, 0.0 }
 0x360   : > { %v2178_v60 = vmax.f32 %v2060_v50, 0.0 }
 0x361   : > { %v2176_v34 = vmax.f32 %v2052_v55, 0.0 }
 0x362   : > { %v2208_v19 = vpack.c.bf16 %v2178_v60, %v2177_v45 }
 0x363   : > { %v2207_v23 = vpack.c.bf16 %v2176_v34, %v2175_v48 }
 0x365   : > { %5762 = vmatprep.mubr.bf16.mxu0 %v2207_v23 }
 0x366   : > { %5763 = vmatmul.mubr.bf16.vlgmr.msra.gmra.mrb[128].mxu0 %v2208_v19 }
 0x367   : > { %3086 = vmatpush1.bf16.msra.mxu0 %v6049_v62 }
 0x368   : > { %3087 = vmatprep.subr.bf16.mxu0 %v6057_v1 }
 0x36b   : > { %v5720_v16 = vpop.f32.mrb[100].mxu1  ;;  %3088 = vmatpush1.bf16.msra.mxu0 %v6055_v37 }
 0x36c   : > { %v2073_v57 = vadd.f32 %v5720_v16, %v7905_v30  ;;  %v2064_v58 = vpop.f32.mrb[101].mxu1  ;;  %3089 = vmatprep.subr.bf16.mxu0 %v6063_v49 }
 0x36d   : > { %v2065_v12 = vadd.f32 %v7905_v30, %v2064_v58  ;;  %v5721_v13 = vpop.f32.mrb[102].mxu1 }
 0x36e   : > { %v2076_v17 = vadd.f32 %v5721_v13, %v7905_v30  ;;  %v2067_v10 = vpop.f32.mrb[103].mxu1  ;;  %v2181_v36 = vmax.f32 %v2073_v57, 0.0 }
 0x36f   : > { %v2068_v33 = vadd.f32 %v7905_v30, %v2067_v10  ;;  %3090 = vmatpush1.bf16.msra.mxu0 %v6061_v14  ;;  %v2179_v3 = vmax.f32 %v2065_v12, 0.0 }
 0x370   : > { %v2182_v47 = vmax.f32 %v2076_v17, 0.0  ;;  %3091 = vmatprep.subr.bf16.mxu0 %v6069_v8 }
 0x371   : > { %v2180_v54 = vmax.f32 %v2068_v33, 0.0 }
 0x372   : > { %v2210_v52 = vpack.c.bf16 %v2182_v47, %v2181_v36 }
 0x373   : > { %v2209_v7 = vpack.c.bf16 %v2180_v54, %v2179_v3  ;;  %3092 = vmatpush1.bf16.msra.mxu0 %v6067_v38 }
 0x374   : > { %3093 = vmatprep.subr.bf16.mxu0 %v6075_v41 }
 0x375   : > { %5766 = vmatprep.mubr.bf16.mxu0 %v2209_v7 }
 0x376   : > { %5767 = vmatmul.mubr.bf16.gmra.mrb[132].mxu0 %v2210_v52 }
 0x377   : > { %3094 = vmatpush1.bf16.msra.mxu0 %v6073_v63 }
 0x378   : > { %3095 = vmatprep.subr.bf16.mxu0 %v6081_v18 }
 0x37b   : > { %v5724_v39 = vpop.f32.mrb[104].mxu1  ;;  %3096 = vmatpush1.bf16.msra.mxu0 %v6079_v27 }
 0x37c   : > { %v2089_v0 = vadd.f32 %v5724_v39, %v7905_v30  ;;  %v2080_v61 = vpop.f32.mrb[105].mxu1  ;;  %3097 = vmatprep.subr.bf16.mxu0 %v6087_v31 }
 0x37d   : > { %v2081_v4 = vadd.f32 %v7905_v30, %v2080_v61  ;;  %v5725_v26 = vpop.f32.mrb[106].mxu1 }
 0x37e   : > { %v2092_v21 = vadd.f32 %v5725_v26, %v7905_v30  ;;  %v2083_v42 = vpop.f32.mrb[107].mxu1  ;;  %v2185_v51 = vmax.f32 %v2089_v0, 0.0  ;;  %v6093_v0 = vld [vmem:[#allocation13 + $0x194] ss:$28 sps:$4 sm:$0xff]  }
 0x37f   : > { %v2084_v43 = vadd.f32 %v7905_v30, %v2083_v42  ;;  %3098 = vmatpush1.bf16.msra.mxu0 %v6085_v40  ;;  %v2183_v59 = vmax.f32 %v2081_v4, 0.0  ;;  %v6090_v40 = vld [vmem:[#allocation13 + $0x18c] ss:$28 sps:$4 sm:$0xff]  }
 0x380   : > { %v2186_v25 = vmax.f32 %v2092_v21, 0.0  ;;  %v6088_v4 = vld [vmem:[#allocation13 + $0x188] ss:$28 sps:$4 sm:$0xff]   ;;  %v6091_v26 = vld [vmem:[#allocation13 + $0x190] ss:$28 sps:$4 sm:$0xff]   ;;  %2906 = vmatprep.subr.bf16.mxu1 %v6090_v40  ;;  %3099 = vmatprep.subr.bf16.mxu0 %v6093_v0 }
 0x381   : > { %v2184_v28 = vmax.f32 %v2084_v43, 0.0  ;;  %2907 = vmatpush1.bf16.msra.mxu1 %v6088_v4  ;;  %v6113_v40 = vld [vmem:[#allocation13 + $0xf8] ss:$28 sps:$4 sm:$0xff]  }
 0x382   : > { %v2212_v6 = vpack.c.bf16 %v2186_v25, %v2185_v51 }
 0x383   : > { %v2211_v35 = vpack.c.bf16 %v2184_v28, %v2183_v59  ;;  %3100 = vmatpush1.bf16.msra.mxu0 %v6091_v26  ;;  %v7119_v59 = vmov 0  }
 0x384   : > { %2924 = vmatprep.mubr.bf16.mxu1 %v7119_v59 }
 0x385   : > { %5770 = vmatprep.mubr.bf16.mxu0 %v2211_v35  ;;  %v6097_v35 = vld [vmem:[#allocation13 + $0x18] ss:$28 sps:$4 sm:$0xff]  }
 0x386   : > { %5771 = vmatmul.mubr.bf16.gmra.mrb[136].mxu0 %v2212_v6  ;;  %v6096_v6 = vld [vmem:[#allocation13 + $0x14] ss:$28 sps:$4 sm:$0xff]   ;;  %5794 = vmatprep.subr.bf16.mxu0 %v6097_v35 }
 0x387   : > { %3278 = vmatprep.subr.bf16.mxu1 %v6096_v6 }
 0x38b   : > { %v5728_v44 = vpop.f32.mrb[108].mxu1 }
 0x38c   : > { %v2105_v56 = vadd.f32 %v5728_v44, %v7905_v30  ;;  %v2096_v22 = vpop.f32.mrb[109].mxu1 }
 0x38d   : > { %v2097_v20 = vadd.f32 %v7905_v30, %v2096_v22  ;;  %v5729_v29 = vpop.f32.mrb[110].mxu1 }
 0x38e   : > { %v2108_v50 = vadd.f32 %v5729_v29, %v7905_v30  ;;  %v2099_v32 = vpop.f32.mrb[111].mxu1  ;;  %v2189_v55 = vmax.f32 %v2105_v56, 0.0 }
 0x38f   : > { %v2100_v24 = vadd.f32 %v7905_v30, %v2099_v32  ;;  %v2187_v60 = vmax.f32 %v2097_v20, 0.0 }
 0x390   : > { %v2190_v45 = vmax.f32 %v2108_v50, 0.0 }
 0x391   : > { %v2188_v48 = vmax.f32 %v2100_v24, 0.0 }
 0x392   : > { %v2214_v34 = vpack.c.bf16 %v2190_v45, %v2189_v55 }
 0x393   : > { %v2213_v53 = vpack.c.bf16 %v2188_v48, %v2187_v60 }
 0x395   : > { %5774 = vmatprep.mubr.bf16.mxu0 %v2213_v53 }
 0x396   : > { %5775 = vmatmul.mubr.bf16.gmra.mrb[140].mxu0 %v2214_v34 }
 0x39b   : > { %v5732_v19 = vpop.f32.mrb[112].mxu1 }
 0x39c   : > { %v2121_v15 = vadd.f32 %v5732_v19, %v7905_v30  ;;  %v2112_v23 = vpop.f32.mrb[113].mxu1  ;;  %v7941_v19 = vld [vmem:[#allocation12] ss:$0 sm:$0xff] }
 0x39d   : > { %v2113_v62 = vadd.f32 %v7905_v30, %v2112_v23  ;;  %v5733_v1 = vpop.f32.mrb[114].mxu1 }
 0x39e   : > { %v2124_v2 = vadd.f32 %v5733_v1, %v7905_v30  ;;  %v2115_v46 = vpop.f32.mrb[115].mxu1  ;;  %v2193_v49 = vmax.f32 %v2121_v15, 0.0 }
 0x39f   : > { %v2116_v37 = vadd.f32 %v7905_v30, %v2115_v46  ;;  %v2191_v11 = vmax.f32 %v2113_v62, 0.0 }
 0x3a0   : > { %v2194_v5 = vmax.f32 %v2124_v2, 0.0 }
 0x3a1   : > { %v2192_v16 = vmax.f32 %v2116_v37, 0.0 }
 0x3a2   : > { %v2216_v14 = vpack.c.bf16 %v2194_v5, %v2193_v49 }
 0x3a3   : > { %v2215_v57 = vpack.c.bf16 %v2192_v16, %v2191_v11 }
 0x3a5   : > { %5778 = vmatprep.mubr.bf16.mxu0 %v2215_v57  ;;  %v6094_v57 = vld [vmem:[#allocation13 + $0x10] ss:$28 sps:$4 sm:$0xff]  }
 0x3a6   : > { %5779 = vmatmul.mubr.bf16.gmra.mrb[144].mxu0 %v2216_v14 }
 0x3ab   : > { %v5736_v58 = vpop.f32.mrb[116].mxu1 }
 0x3ac   : > { %v2137_v8 = vadd.f32 %v5736_v58, %v7905_v30  ;;  %v2128_v12 = vpop.f32.mrb[117].mxu1 }
 0x3ad   : > { %v2129_v13 = vadd.f32 %v7905_v30, %v2128_v12  ;;  %v5737_v9 = vpop.f32.mrb[118].mxu1  ;;  %v6101_v12 = vld [vmem:[#allocation13 + $0x50] ss:$28 sps:$4 sm:$0xff]  }
 0x3ae   : > { %v2140_v17 = vadd.f32 %v5737_v9, %v7905_v30  ;;  %v2131_v10 = vpop.f32.mrb[119].mxu1  ;;  %v2197_v38 = vmax.f32 %v2137_v8, 0.0  ;;  %v6100_v8 = vld [vmem:[#allocation13 + $0x4c] ss:$28 sps:$4 sm:$0xff]   ;;  %v6104_v9 = vld [vmem:[#allocation13 + $0x84] ss:$28 sps:$4 sm:$0xff]  }
 0x3af   : > { %v2132_v33 = vadd.f32 %v7905_v30, %v2131_v10  ;;  %v2195_v47 = vmax.f32 %v2129_v13, 0.0  ;;  %v6098_v13 = vld [vmem:[#allocation13 + $0x48] ss:$28 sps:$4 sm:$0xff]  }
 0x3b0   : > { %v2198_v36 = vmax.f32 %v2140_v17, 0.0  ;;  %v6105_v17 = vld [vmem:[#allocation13 + $0x88] ss:$28 sps:$4 sm:$0xff]  }
 0x3b1   : > { %v2196_v41 = vmax.f32 %v2132_v33, 0.0  ;;  %v6102_v33 = vld [vmem:[#allocation13 + $0x80] ss:$28 sps:$4 sm:$0xff]  }
 0x3b2   : > { %v2218_v3 = vpack.c.bf16 %v2198_v36, %v2197_v38 }
 0x3b3   : > { %v2217_v54 = vpack.c.bf16 %v2196_v41, %v2195_v47  ;;  %v6108_v47 = vld [vmem:[#allocation13 + $0xbc] ss:$28 sps:$4 sm:$0xff]  }
 0x3b4   : > { %v6109_v41 = vld [vmem:[#allocation13 + $0xc0] ss:$28 sps:$4 sm:$0xff]  }
 0x3b5   : > { %5782 = vmatprep.mubr.bf16.mxu0 %v2217_v54 }
 0x3b6   : > { %5783 = vmatmul.mubr.bf16.gmra.mrb[148].mxu0 %v2218_v3 }
 0x3bb   : > { %v5740_v52 = vpop.f32.mrb[120].mxu1 }
 0x3bc   : > { %v2153_v7 = vadd.f32 %v5740_v52, %v7905_v30  ;;  %v2144_v63 = vpop.f32.mrb[121].mxu1 }
 0x3bd   : > { %v2145_v18 = vadd.f32 %v7905_v30, %v2144_v63  ;;  %v5741_v27 = vpop.f32.mrb[122].mxu1 }
 0x3be   : > { %v2156_v31 = vadd.f32 %v5741_v27, %v7905_v30  ;;  %v2147_v39 = vpop.f32.mrb[123].mxu1  ;;  %v2201_v21 = vmax.f32 %v2153_v7, 0.0 }
 0x3bf   : > { %v2148_v61 = vadd.f32 %v7905_v30, %v2147_v39  ;;  %v2199_v43 = vmax.f32 %v2145_v18, 0.0  ;;  %v6106_v18 = vld [vmem:[#allocation13 + $0xb8] ss:$28 sps:$4 sm:$0xff]  }
 0x3c0   : > { %v2202_v42 = vmax.f32 %v2156_v31, 0.0  ;;  %v6112_v39 = vld [vmem:[#allocation13 + $0xf4] ss:$28 sps:$4 sm:$0xff]  }
 0x3c1   : > { %v2200_v51 = vmax.f32 %v2148_v61, 0.0 }
 0x3c2   : > { %v2220_v25 = vpack.c.bf16 %v2202_v42, %v2201_v21  ;;  %v6110_v21 = vld [vmem:[#allocation13 + $0xf0] ss:$28 sps:$4 sm:$0xff]  }
 0x3c3   : > { %v2219_v28 = vpack.c.bf16 %v2200_v51, %v2199_v43  ;;  %v6116_v42 = vld [vmem:[#allocation13 + $0x12c] ss:$28 sps:$4 sm:$0xff]  }
 0x3c4   : > { %v6117_v43 = vld [vmem:[#allocation13 + $0x130] ss:$28 sps:$4 sm:$0xff]   ;;  %v6114_v51 = vld [vmem:[#allocation13 + $0x128] ss:$28 sps:$4 sm:$0xff]  }
 0x3c5   : > { %5786 = vmatprep.mubr.bf16.mxu0 %v2219_v28  ;;  %v6121_v28 = vld [vmem:[#allocation13 + $0x168] ss:$28 sps:$4 sm:$0xff]  }
 0x3c6   : > { %5787 = vmatmul.mubr.bf16.gmra.mrb[152].mxu0 %v2220_v25  ;;  %v6120_v25 = vld [vmem:[#allocation13 + $0x164] ss:$28 sps:$4 sm:$0xff]  }
 0x3cb   : > { %v5744_v44 = vpop.f32.mrb[124].mxu1 }
 0x3cc   : > { %v2169_v56 = vadd.f32 %v5744_v44, %v7905_v30  ;;  %v2160_v22 = vpop.f32.mrb[125].mxu1 }
 0x3cd   : > { %v2161_v20 = vadd.f32 %v7905_v30, %v2160_v22  ;;  %v5745_v29 = vpop.f32.mrb[126].mxu1  ;;  %v6124_v22 = vld [vmem:[#allocation13 + $0x19c] ss:$28 sps:$4 sm:$0xff]  }
 0x3ce   : > { %v2172_v50 = vadd.f32 %v5745_v29, %v7905_v30  ;;  %v2163_v32 = vpop.f32.mrb[127].mxu1  ;;  %v2205_v55 = vmax.f32 %v2169_v56, 0.0 }
 0x3cf   : > { %v2164_v24 = vadd.f32 %v7905_v30, %v2163_v32  ;;  %v2203_v60 = vmax.f32 %v2161_v20, 0.0  ;;  %v6125_v20 = vld [vmem:[#allocation13 + $0x1a0] ss:$28 sps:$4 sm:$0xff]  }
 0x3d0   : > { %v2206_v45 = vmax.f32 %v2172_v50, 0.0 }
 0x3d1   : > { %v2204_v48 = vmax.f32 %v2164_v24, 0.0 }
 0x3d2   : > { %v2222_v34 = vpack.c.bf16 %v2206_v45, %v2205_v55  ;;  %v6122_v45 = vld [vmem:[#allocation13 + $0x198] ss:$28 sps:$4 sm:$0xff]  }
 0x3d3   : > { %v2221_v53 = vpack.c.bf16 %v2204_v48, %v2203_v60 }
 0x3d5   : > { %5790 = vmatprep.mubr.bf16.mxu0 %v2221_v53 }
 0x3d6   : > { %5791 = vmatmul.mubr.bf16.gmra.mrb[156].mxu0 %v2222_v34 }
 0x3d7   : > { %3117 = vmatprep.mubr.bf16.mxu0 %v7119_v59 }
 0x439   : > { %v5764_v15 = vpop.f32.mrb[128].mxu0 }
 0x43a   : > { %v2337_v23 = vadd.f32 %v5764_v15, %v7941_v19  ;;  %v2328_v62 = vpop.f32.mrb[129].mxu0 }
 0x43b   : > { %v2329_v1 = vadd.f32 %v7941_v19, %v2328_v62  ;;  %v5765_v2 = vpop.f32.mrb[130].mxu0 }
 0x43c   : > { %v2340_v30 = vadd.f32 %v5765_v2, %v7941_v19  ;;  %v2331_v46 = vpop.f32.mrb[131].mxu0  ;;  %v2457_v49 = vmax.f32 %v2337_v23, 0.0 }
 0x43d   : > { %v2332_v37 = vadd.f32 %v7941_v19, %v2331_v46  ;;  %v2455_v11 = vmax.f32 %v2329_v1, 0.0 }
 0x43e   : > { %v2458_v5 = vmax.f32 %v2340_v30, 0.0 }
 0x43f   : > { %v2456_v16 = vmax.f32 %v2332_v37, 0.0 }
 0x440   : > { %v7947_v14 = vpack.c.bf16 %v2458_v5, %v2457_v49 }
 0x441   : > { %v7949_v58 = vpack.c.bf16 %v2456_v16, %v2455_v11 }
 0x443   : > { %2925 = vmatmul.mubr.bf16.vlgmr.msra.gmra.mrb[128].mxu1 %v7949_v58  ;;  %3118 = vmatmul.mubr.bf16.vlgmr.msra.gmra.mrb[160].mxu0 %v7949_v58 }
 0x444   : > { %3279 = vmatpush1.bf16.msra.mxu1 %v6094_v57  ;;  %5795 = vmatpush3.bf16.msra.mxu0 %v6097_v35  ;;  %v6118_v35 = vld [vmem:[#allocation13 + $0x160] ss:$28 sps:$4 sm:$0xff]  }
 0x445   : > { %2934 = vmatprep.mubr.bf16.mxu1 %v7119_v59  ;;  %3127 = vmatprep.mubr.bf16.mxu0 %v7119_v59 }
 0x446   : > { %3280 = vmatprep.subr.bf16.mxu1 %v6100_v8  ;;  %5796 = vmatprep.subr.bf16.mxu0 %v6101_v12 }
 0x448   : > { %3281 = vmatpush1.bf16.msra.mxu1 %v6098_v13  ;;  %5797 = vmatpush3.bf16.msra.mxu0 %v6101_v12 }
 0x449   : > { %v5768_v10 = vpop.f32.mrb[132].mxu0  ;;  %3282 = vmatprep.subr.bf16.mxu1 %v6104_v9  ;;  %5798 = vmatprep.subr.bf16.mxu0 %v6105_v17 }
 0x44a   : > { %v2353_v38 = vadd.f32 %v5768_v10, %v7941_v19  ;;  %v2344_v36 = vpop.f32.mrb[133].mxu0 }
 0x44b   : > { %v2345_v3 = vadd.f32 %v7941_v19, %v2344_v36  ;;  %v5769_v54 = vpop.f32.mrb[134].mxu0  ;;  %2935 = vmatmul.mubr.bf16.gmra.mrb[132].mxu1 %v7947_v14  ;;  %3128 = vmatmul.mubr.bf16.gmra.mrb[164].mxu0 %v7947_v14 }
 0x44c   : > { %v2356_v52 = vadd.f32 %v5769_v54, %v7941_v19  ;;  %v2347_v7 = vpop.f32.mrb[135].mxu0  ;;  %2944 = vmatprep.mubr.bf16.mxu1 %v7119_v59  ;;  %3137 = vmatprep.mubr.bf16.mxu0 %v7119_v59  ;;  %v2461_v27 = vmax.f32 %v2353_v38, 0.0 }
 0x44d   : > { %v2348_v63 = vadd.f32 %v7941_v19, %v2347_v7  ;;  %3283 = vmatpush1.bf16.msra.mxu1 %v6102_v33  ;;  %5799 = vmatpush3.bf16.msra.mxu0 %v6105_v17  ;;  %v2459_v0 = vmax.f32 %v2345_v3, 0.0 }
 0x44e   : > { %v2462_v31 = vmax.f32 %v2356_v52, 0.0  ;;  %3284 = vmatprep.subr.bf16.mxu1 %v6108_v47  ;;  %5800 = vmatprep.subr.bf16.mxu0 %v6109_v41 }
 0x44f   : > { %v2460_v61 = vmax.f32 %v2348_v63, 0.0 }
 0x450   : > { %v7963_v4 = vpack.c.bf16 %v2462_v31, %v2461_v27 }
 0x451   : > { %v7965_v26 = vpack.c.bf16 %v2460_v61, %v2459_v0  ;;  %3285 = vmatpush1.bf16.msra.mxu1 %v6106_v18  ;;  %5801 = vmatpush3.bf16.msra.mxu0 %v6109_v41 }
 0x452   : > { %3286 = vmatprep.subr.bf16.mxu1 %v6112_v39  ;;  %5802 = vmatprep.subr.bf16.mxu0 %v6113_v40 }
 0x453   : > { %2945 = vmatmul.mubr.bf16.gmra.mrb[136].mxu1 %v7965_v26  ;;  %3138 = vmatmul.mubr.bf16.gmra.mrb[168].mxu0 %v7965_v26 }
 0x454   : > { %2954 = vmatprep.mubr.bf16.mxu1 %v7119_v59  ;;  %3147 = vmatprep.mubr.bf16.mxu0 %v7119_v59 }
 0x455   : > { %3287 = vmatpush1.bf16.msra.mxu1 %v6110_v21  ;;  %5803 = vmatpush3.bf16.msra.mxu0 %v6113_v40 }
 0x456   : > { %3288 = vmatprep.subr.bf16.mxu1 %v6116_v42  ;;  %5804 = vmatprep.subr.bf16.mxu0 %v6117_v43 }
 0x459   : > { %v5772_v6 = vpop.f32.mrb[136].mxu0  ;;  %3289 = vmatpush1.bf16.msra.mxu1 %v6114_v51  ;;  %5805 = vmatpush3.bf16.msra.mxu0 %v6117_v43 }
 0x45a   : > { %v2369_v44 = vadd.f32 %v5772_v6, %v7941_v19  ;;  %v2360_v56 = vpop.f32.mrb[137].mxu0  ;;  %3290 = vmatprep.subr.bf16.mxu1 %v6120_v25  ;;  %5806 = vmatprep.subr.bf16.mxu0 %v6121_v28 }
 0x45b   : > { %v2361_v29 = vadd.f32 %v7941_v19, %v2360_v56  ;;  %v5773_v50 = vpop.f32.mrb[138].mxu0  ;;  %2955 = vmatmul.mubr.bf16.gmra.mrb[140].mxu1 %v7963_v4  ;;  %3148 = vmatmul.mubr.bf16.gmra.mrb[172].mxu0 %v7963_v4 }
 0x45c   : > { %v2372_v32 = vadd.f32 %v5773_v50, %v7941_v19  ;;  %v2363_v24 = vpop.f32.mrb[139].mxu0  ;;  %2964 = vmatprep.mubr.bf16.mxu1 %v7119_v59  ;;  %3157 = vmatprep.mubr.bf16.mxu0 %v7119_v59  ;;  %v2465_v60 = vmax.f32 %v2369_v44, 0.0 }
 0x45d   : > { %v2364_v55 = vadd.f32 %v7941_v19, %v2363_v24  ;;  %3291 = vmatpush1.bf16.msra.mxu1 %v6118_v35  ;;  %5807 = vmatpush3.bf16.msra.mxu0 %v6121_v28  ;;  %v2463_v34 = vmax.f32 %v2361_v29, 0.0 }
 0x45e   : > { %v2466_v48 = vmax.f32 %v2372_v32, 0.0  ;;  %3292 = vmatprep.subr.bf16.mxu1 %v6124_v22  ;;  %5808 = vmatprep.subr.bf16.mxu0 %v6125_v20 }
 0x45f   : > { %v2464_v53 = vmax.f32 %v2364_v55, 0.0 }
 0x460   : > { %v7979_v15 = vpack.c.bf16 %v2466_v48, %v2465_v60 }
 0x461   : > { %v7981_v23 = vpack.c.bf16 %v2464_v53, %v2463_v34  ;;  %3293 = vmatpush1.bf16.msra.mxu1 %v6122_v45  ;;  %5809 = vmatpush3.bf16.msra.mxu0 %v6125_v20 }
 0x463   : > { %2965 = vmatmul.mubr.bf16.gmra.mrb[144].mxu1 %v7981_v23  ;;  %3158 = vmatmul.mubr.bf16.gmra.mrb[176].mxu0 %v7981_v23 }
 0x464   : > { %2974 = vmatprep.mubr.bf16.mxu1 %v7119_v59  ;;  %3167 = vmatprep.mubr.bf16.mxu0 %v7119_v59 }
 0x469   : > { %v5776_v62 = vpop.f32.mrb[140].mxu0 }
 0x46a   : > { %v2385_v1 = vadd.f32 %v5776_v62, %v7941_v19  ;;  %v2376_v2 = vpop.f32.mrb[141].mxu0 }
 0x46b   : > { %v2377_v30 = vadd.f32 %v7941_v19, %v2376_v2  ;;  %v5777_v46 = vpop.f32.mrb[142].mxu0  ;;  %2975 = vmatmul.mubr.bf16.gmra.mrb[148].mxu1 %v7979_v15  ;;  %3168 = vmatmul.mubr.bf16.gmra.mrb[180].mxu0 %v7979_v15 }
 0x46c   : > { %v2388_v37 = vadd.f32 %v5777_v46, %v7941_v19  ;;  %v2379_v49 = vpop.f32.mrb[143].mxu0  ;;  %2984 = vmatprep.mubr.bf16.mxu1 %v7119_v59  ;;  %3177 = vmatprep.mubr.bf16.mxu0 %v7119_v59  ;;  %v2469_v11 = vmax.f32 %v2385_v1, 0.0 }
 0x46d   : > { %v2380_v5 = vadd.f32 %v7941_v19, %v2379_v49  ;;  %v2467_v57 = vmax.f32 %v2377_v30, 0.0 }
 0x46e   : > { %v2470_v16 = vmax.f32 %v2388_v37, 0.0 }
 0x46f   : > { %v2468_v8 = vmax.f32 %v2380_v5, 0.0 }
 0x470   : > { %v7995_v12 = vpack.c.bf16 %v2470_v16, %v2469_v11 }
 0x471   : > { %v7997_v13 = vpack.c.bf16 %v2468_v8, %v2467_v57 }
 0x473   : > { %2985 = vmatmul.mubr.bf16.gmra.mrb[152].mxu1 %v7997_v13  ;;  %3178 = vmatmul.mubr.bf16.gmra.mrb[184].mxu0 %v7997_v13 }
 0x474   : > { %2994 = vmatprep.mubr.bf16.mxu1 %v7119_v59  ;;  %3187 = vmatprep.mubr.bf16.mxu0 %v7119_v59 }
 0x479   : > { %v5780_v9 = vpop.f32.mrb[144].mxu0 }
 0x47a   : > { %v2401_v17 = vadd.f32 %v5780_v9, %v7941_v19  ;;  %v2392_v10 = vpop.f32.mrb[145].mxu0 }
 0x47b   : > { %v2393_v33 = vadd.f32 %v7941_v19, %v2392_v10  ;;  %v5781_v38 = vpop.f32.mrb[146].mxu0  ;;  %2995 = vmatmul.mubr.bf16.gmra.mrb[156].mxu1 %v7995_v12  ;;  %3188 = vmatmul.mubr.bf16.gmra.mrb[188].mxu0 %v7995_v12 }
 0x47c   : > { %v2404_v36 = vadd.f32 %v5781_v38, %v7941_v19  ;;  %v2395_v47 = vpop.f32.mrb[147].mxu0  ;;  %3004 = vmatprep.mubr.bf16.mxu1 %v7119_v59  ;;  %3197 = vmatprep.mubr.bf16.mxu0 %v7119_v59  ;;  %v2473_v3 = vmax.f32 %v2401_v17, 0.0 }
 0x47d   : > { %v2396_v41 = vadd.f32 %v7941_v19, %v2395_v47  ;;  %v2471_v52 = vmax.f32 %v2393_v33, 0.0 }
 0x47e   : > { %v2474_v54 = vmax.f32 %v2404_v36, 0.0 }
 0x47f   : > { %v2472_v7 = vmax.f32 %v2396_v41, 0.0 }
 0x480   : > { %v8011_v63 = vpack.c.bf16 %v2474_v54, %v2473_v3 }
 0x481   : > { %v8013_v18 = vpack.c.bf16 %v2472_v7, %v2471_v52 }
 0x483   : > { %3005 = vmatmul.mubr.bf16.gmra.mrb[160].mxu1 %v8013_v18  ;;  %3198 = vmatmul.mubr.bf16.gmra.mrb[192].mxu0 %v8013_v18 }
 0x484   : > { %3014 = vmatprep.mubr.bf16.mxu1 %v7119_v59  ;;  %3207 = vmatprep.mubr.bf16.mxu0 %v7119_v59 }
 0x489   : > { %v5784_v27 = vpop.f32.mrb[148].mxu0 }
 0x48a   : > { %v2417_v31 = vadd.f32 %v5784_v27, %v7941_v19  ;;  %v2408_v39 = vpop.f32.mrb[149].mxu0 }
 0x48b   : > { %v2409_v40 = vadd.f32 %v7941_v19, %v2408_v39  ;;  %v5785_v0 = vpop.f32.mrb[150].mxu0  ;;  %3015 = vmatmul.mubr.bf16.gmra.mrb[164].mxu1 %v8011_v63  ;;  %3208 = vmatmul.mubr.bf16.gmra.mrb[196].mxu0 %v8011_v63  ;;  %v8143_v39 = vstv %s5215_s16 }
 0x48c   : > { %v2420_v61 = vadd.f32 %v5785_v0, %v7941_v19  ;;  %v2411_v21 = vpop.f32.mrb[151].mxu0  ;;  %3024 = vmatprep.mubr.bf16.mxu1 %v7119_v59  ;;  %3217 = vmatprep.mubr.bf16.mxu0 %v7119_v59  ;;  %v2477_v43 = vmax.f32 %v2417_v31, 0.0 }
 0x48d   : > { %v2412_v42 = vadd.f32 %v7941_v19, %v2411_v21  ;;  %v2475_v25 = vmax.f32 %v2409_v40, 0.0 }
 0x48e   : > { %v2478_v51 = vmax.f32 %v2420_v61, 0.0 }
 0x48f   : > { %v2476_v28 = vmax.f32 %v2412_v42, 0.0 }
 0x490   : > { %v8027_v6 = vpack.c.bf16 %v2478_v51, %v2477_v43 }
 0x491   : > { %v8029_v35 = vpack.c.bf16 %v2476_v28, %v2475_v25 }
 0x493   : > { %3025 = vmatmul.mubr.bf16.gmra.mrb[168].mxu1 %v8029_v35  ;;  %3218 = vmatmul.mubr.bf16.gmra.mrb[200].mxu0 %v8029_v35 }
 0x494   : > { %3034 = vmatprep.mubr.bf16.mxu1 %v7119_v59  ;;  %3227 = vmatprep.mubr.bf16.mxu0 %v7119_v59 }
 0x499   : > { %v5788_v44 = vpop.f32.mrb[152].mxu0 }
 0x49a   : > { %v2433_v56 = vadd.f32 %v5788_v44, %v7941_v19  ;;  %v2424_v22 = vpop.f32.mrb[153].mxu0  ;;  %v6574_v44 = vld [vmem:[%s7469_s20] sm:$0xff] }
 0x49b   : > { %v2425_v20 = vadd.f32 %v7941_v19, %v2424_v22  ;;  %v5789_v29 = vpop.f32.mrb[154].mxu0  ;;  %3035 = vmatmul.mubr.bf16.gmra.mrb[172].mxu1 %v8027_v6  ;;  %3228 = vmatmul.mubr.bf16.gmra.mrb[204].mxu0 %v8027_v6 }
 0x49c   : > { %v2436_v50 = vadd.f32 %v5789_v29, %v7941_v19  ;;  %v2427_v32 = vpop.f32.mrb[155].mxu0  ;;  %3044 = vmatprep.mubr.bf16.mxu1 %v7119_v59  ;;  %3237 = vmatprep.mubr.bf16.mxu0 %v7119_v59  ;;  %v2481_v55 = vmax.f32 %v2433_v56, 0.0 }
 0x49d   : > { %v2428_v24 = vadd.f32 %v7941_v19, %v2427_v32  ;;  %v2479_v60 = vmax.f32 %v2425_v20, 0.0  ;;  %v6575_v20 = vld [vmem:[%s7469_s20 + $0x10] sm:$0xff] }
 0x49e   : > { %v2482_v45 = vmax.f32 %v2436_v50, 0.0 }
 0x49f   : > { %v2480_v48 = vmax.f32 %v2428_v24, 0.0  ;;  %v6576_v24 = vld [vmem:[%s7469_s20 + $0x8] sm:$0xff] }
 0x4a0   : > { %v8043_v34 = vpack.c.bf16 %v2482_v45, %v2481_v55 }
 0x4a1   : > { %v8045_v53 = vpack.c.bf16 %v2480_v48, %v2479_v60  ;;  %v6577_v48 = vld [vmem:[%s7469_s20 + $0x18] sm:$0xff] }
 0x4a3   : > { %3045 = vmatmul.mubr.bf16.gmra.mrb[176].mxu1 %v8045_v53  ;;  %3238 = vmatmul.mubr.bf16.gmra.mrb[208].mxu0 %v8045_v53 }
 0x4a4   : > { %3054 = vmatprep.mubr.bf16.mxu1 %v7119_v59  ;;  %3247 = vmatprep.mubr.bf16.mxu0 %v7119_v59 }
 0x4a9   : > { %v5792_v62 = vpop.f32.mrb[156].mxu0 }
 0x4aa   : > { %v2449_v1 = vadd.f32 %v5792_v62, %v7941_v19  ;;  %v2440_v2 = vpop.f32.mrb[157].mxu0 }
 0x4ab   : > { %v2441_v30 = vadd.f32 %v7941_v19, %v2440_v2  ;;  %v5793_v46 = vpop.f32.mrb[158].mxu0  ;;  %3055 = vmatmul.mubr.bf16.gmra.mrb[180].mxu1 %v8043_v34  ;;  %3248 = vmatmul.mubr.bf16.gmra.mrb[212].mxu0 %v8043_v34 }
 0x4ac   : > { %v2452_v37 = vadd.f32 %v5793_v46, %v7941_v19  ;;  %v2443_v49 = vpop.f32.mrb[159].mxu0  ;;  %3064 = vmatprep.mubr.bf16.mxu1 %v7119_v59  ;;  %3257 = vmatprep.mubr.bf16.mxu0 %v7119_v59  ;;  %v2485_v11 = vmax.f32 %v2449_v1, 0.0 }
 0x4ad   : > { %v2444_v5 = vadd.f32 %v7941_v19, %v2443_v49  ;;  %v2483_v57 = vmax.f32 %v2441_v30, 0.0  ;;  %v2569_v19 = vlaneseq }
 0x4ae   : > { %v2486_v16 = vmax.f32 %v2452_v37, 0.0 }
 0x4af   : > { %v2484_v8 = vmax.f32 %v2444_v5, 0.0 }
 0x4b0   : > { %v8059_v9 = vpack.c.bf16 %v2486_v16, %v2485_v11 }
 0x4b1   : > { %v8061_v17 = vpack.c.bf16 %v2484_v8, %v2483_v57 }
 0x4b3   : > { %3065 = vmatmul.mubr.bf16.gmra.mrb[184].mxu1 %v8061_v17  ;;  %3258 = vmatmul.mubr.bf16.gmra.mrb[216].mxu0 %v8061_v17 }
 0x4b4   : > { %3074 = vmatprep.mubr.bf16.mxu1 %v7119_v59  ;;  %3267 = vmatprep.mubr.bf16.mxu0 %v7119_v59 }
 0x4bb   : > { %3075 = vmatmul.mubr.bf16.gmra.mrb[188].mxu1 %v8059_v9  ;;  %3268 = vmatmul.mubr.bf16.gmra.mrb[220].mxu0 %v8059_v9 }
 0x4bc   : > { %5810 = vmatprep.mubr.bf16.mxu0 %v7949_v58  ;;  %3310 = vmatprep.mubr.bf16.mxu1 %v7119_v59 }
 0x4c3   : > { %3311 = vmatmul.mubr.bf16.vlgmr.msra.gmra.mrb[192].mxu1 %v7949_v58  ;;  %5811 = vmatmul.mubr.bf16.vlgmr.msra.gmra.mrb[224].mxu0 %v7947_v14 }
 0x4c4   : > { %5814 = vmatprep.mubr.bf16.mxu0 %v7965_v26  ;;  %3320 = vmatprep.mubr.bf16.mxu1 %v7119_v59 }
 0x4cb   : > { %3321 = vmatmul.mubr.bf16.gmra.mrb[196].mxu1 %v7947_v14  ;;  %5815 = vmatmul.mubr.bf16.gmra.mrb[228].mxu0 %v7963_v4  ;;  %v8105_v14 = vshrl.u32 %v2569_v19, 7 }
 0x4cc   : > { %5818 = vmatprep.mubr.bf16.mxu0 %v7981_v23  ;;  %3330 = vmatprep.mubr.bf16.mxu1 %v7119_v59 }
 0x4cd   : > { %v2571_v58 = vsub.s32 0, %v8105_v14  ;;  %v8159_v51 = vadd.s32 %v8143_v39, %v8105_v14 }
 0x4cf   : > { %vm4371_vm0 = vcmp.lt.s32.totalorder %v8159_v51, 300 }
 0x4d3   : > { %3331 = vmatmul.mubr.bf16.gmra.mrb[200].mxu1 %v7965_v26  ;;  %5819 = vmatmul.mubr.bf16.gmra.mrb[232].mxu0 %v7979_v15  ;;  %v8110_v26 = vld [vmem:[#allocation15] sm:$0xff] }
 0x4d4   : > { %5822 = vmatprep.mubr.bf16.mxu0 %v7997_v13  ;;  %3340 = vmatprep.mubr.bf16.mxu1 %v7119_v59 }
 0x4db   : > { %3341 = vmatmul.mubr.bf16.gmra.mrb[204].mxu1 %v7963_v4  ;;  %5823 = vmatmul.mubr.bf16.gmra.mrb[236].mxu0 %v7995_v12  ;;  %v2579_v4 = vsub.s32 2, %v8105_v14 }
 0x4dc   : > { %5826 = vmatprep.mubr.bf16.mxu0 %v8013_v18  ;;  %3350 = vmatprep.mubr.bf16.mxu1 %v7119_v59 }
 0x4e3   : > { %3351 = vmatmul.mubr.bf16.gmra.mrb[208].mxu1 %v7981_v23  ;;  %5827 = vmatmul.mubr.bf16.gmra.mrb[240].mxu0 %v8011_v63  ;;  %v2583_v23 = vsub.s32 3, %v8105_v14 }
 0x4e4   : > { %5830 = vmatprep.mubr.bf16.mxu0 %v8029_v35  ;;  %3360 = vmatprep.mubr.bf16.mxu1 %v7119_v59 }
 0x4e5   : > { %v8125_v33 = vrot.slane %v8110_v26, %v2583_v23 }
 0x4eb   : > { %3361 = vmatmul.mubr.bf16.gmra.mrb[212].mxu1 %v7979_v15  ;;  %5831 = vmatmul.mubr.bf16.gmra.mrb[244].mxu0 %v8027_v6  ;;  %v2575_v15 = vsub.s32 1, %v8105_v14 }
 0x4ec   : > { %5834 = vmatprep.mubr.bf16.mxu0 %v8045_v53  ;;  %3370 = vmatprep.mubr.bf16.mxu1 %v7119_v59 }
 0x4ed   : > { %v8122_v10 = vrot.slane %v8110_v26, %v2575_v15 }
 0x4f3   : > { %3371 = vmatmul.mubr.bf16.gmra.mrb[216].mxu1 %v7997_v13  ;;  %5835 = vmatmul.mubr.bf16.gmra.mrb[248].mxu0 %v8043_v34  ;;  %v8119_v13 = vrot.slane %v8110_v26, %v2579_v4 }
 0x4f4   : > { %5838 = vmatprep.mubr.bf16.mxu0 %v8061_v17  ;;  %3380 = vmatprep.mubr.bf16.mxu1 %v7119_v59 }
 0x4fb   : > { %3381 = vmatmul.mubr.bf16.gmra.mrb[220].mxu1 %v7995_v12  ;;  %5839 = vmatmul.mubr.bf16.gmra.mrb[252].mxu0 %v8059_v9  ;;  %v8116_v12 = vrot.slane %v8110_v26, %v2571_v58 }
 0x4fc   : > { %3390 = vmatprep.mubr.bf16.mxu1 %v7119_v59 }
 0x503   : > { %3391 = vmatmul.mubr.bf16.gmra.mrb[224].mxu1 %v8013_v18 }
 0x504   : > { %3400 = vmatprep.mubr.bf16.mxu1 %v7119_v59 }
 0x50b   : > { %3401 = vmatmul.mubr.bf16.gmra.mrb[228].mxu1 %v8011_v63 }
 0x50c   : > { %3410 = vmatprep.mubr.bf16.mxu1 %v7119_v59 }
 0x513   : > { %3411 = vmatmul.mubr.bf16.gmra.mrb[232].mxu1 %v8029_v35 }
 0x514   : > { %3420 = vmatprep.mubr.bf16.mxu1 %v7119_v59 }
 0x516   : > { %v2926_v38 = vpop.f32.mrb[128].mxu1  ;;  %v3119_v36 = vpop.f32.mrb[160].mxu0 }
 0x517   : > { %v2927_v47 = vadd.f32 %v2926_v38, %v8116_v12  ;;  %v3120_v41 = vadd.f32 %v3119_v36, %v8119_v13  ;;  %v2928_v3 = vpop.f32.mrb[129].mxu1  ;;  %v3121_v54 = vpop.f32.mrb[161].mxu0 }
 0x518   : > { %v2929_v52 = vadd.f32 %v2928_v3, %v8122_v10  ;;  %v3122_v7 = vadd.f32 %v3121_v54, %v8125_v33  ;;  %v8132_v63 = vpop.f32.mrb[130].mxu1  ;;  %v8134_v18 = vpop.f32.mrb[162].mxu0 }
 0x519   : > { %6126 = vtanh.f32 %v2927_v47  ;;  %v8136_v27 = vpop.f32.mrb[131].mxu1  ;;  %v8138_v31 = vpop.f32.mrb[163].mxu0 }
 0x51a   : > { %6128 = vtanh.f32 %v3120_v41 }
 0x51b   : > { %6130 = vtanh.f32 %v2929_v52  ;;  %3421 = vmatmul.mubr.bf16.gmra.mrb[236].mxu1 %v8027_v6 }
 0x51c   : > { %6132 = vtanh.f32 %v3122_v7  ;;  %3430 = vmatprep.mubr.bf16.mxu1 %v7119_v59 }
 0x51e   : > { %v8145_v40 = vpop.f32.mrb[132].mxu1  ;;  %v8147_v0 = vpop.f32.mrb[164].mxu0 }
 0x51f   : > { %v8149_v61 = vpop.f32.mrb[133].mxu1  ;;  %v8151_v21 = vpop.f32.mrb[165].mxu0 }
 0x520   : > { %v8153_v42 = vpop.f32.mrb[134].mxu1  ;;  %v8155_v43 = vpop.f32.mrb[166].mxu0 }
 0x521   : > { %v8161_v25 = vpop.f32.mrb[135].mxu1  ;;  %v8163_v28 = vpop.f32.mrb[167].mxu0 }
 0x523   : > { %v6127_v6 = vpop.eup %6126  ;;  %3431 = vmatmul.mubr.bf16.gmra.mrb[240].mxu1 %v8045_v53 }
 0x524   : > { %v6129_v35 = vpop.eup %6128  ;;  %v3856_v56 = vsub.f32 %v6574_v44, %v6127_v6  ;;  %3440 = vmatprep.mubr.bf16.mxu1 %v7119_v59 }
 0x525   : > { %v6131_v22 = vpop.eup %6130  ;;  %v3858_v29 = vsub.f32 %v6575_v20, %v6129_v35 }
 0x526   : > { %v6133_v50 = vpop.eup %6132  ;;  %v4080_v32 = vmul.f32 %v3856_v56, %v3856_v56  ;;  %v3857_v55 = vsub.f32 %v6576_v24, %v6131_v22  ;;  %v8171_v45 = vpop.f32.mrb[136].mxu1 }
 0x527   : > { %v8173_v60 = vpop.f32.mrb[168].mxu0  ;;  %v3859_v53 = vsub.f32 %v6577_v48, %v6133_v50  ;;  %v8176_v62 = vpop.f32.mrb[137].mxu1  ;;  %v4082_v30 = vmul.f32 %v3858_v29, %v3858_v29 }
 0x528   : > { %v8178_v1 = vpop.f32.mrb[169].mxu0  ;;  %v4467_v2 = vsel %vm4371_vm0, %v4080_v32, 0.0  ;;  %v4081_v46 = vmul.f32 %v3857_v55, %v3857_v55  ;;  %v8182_v37 = vpop.f32.mrb[138].mxu1 }
 0x529   : > { %9955 = vst [vmem:[#allocation21_spill] sm:$0xff] %v8178_v1  ;;  %9956 = vst [vmem:[#allocation22_spill] sm:$0xff] %v8182_v37  ;;  %v8184_v49 = vpop.f32.mrb[170].mxu0  ;;  %v8186_v5 = vpop.f32.mrb[139].mxu1  ;;  %v4083_v57 = vmul.f32 %v3859_v53, %v3859_v53  ;;  %v4469_v19 = vsel %vm4371_vm0, %v4082_v30, 0.0 }
 0x52a   : > { %9957 = vst [vmem:[#allocation23_spill] sm:$0xff] %v8184_v49  ;;  %9958 = vst [vmem:[#allocation24_spill] sm:$0xff] %v8186_v5  ;;  %v8188_v11 = vpop.f32.mrb[171].mxu0  ;;  %v4468_v16 = vsel %vm4371_vm0, %v4081_v46, 0.0  ;;  %v2591_v49 = vsub.s32 5, %v8105_v14 }
 0x52b   : > { %9959 = vst [vmem:[#allocation25_spill] sm:$0xff] %v8188_v11  ;;  %v4691_v8 = vadd.f32 %v4468_v16, %v4467_v2  ;;  %3441 = vmatmul.mubr.bf16.gmra.mrb[244].mxu1 %v8043_v34  ;;  %v4470_v4 = vsel %vm4371_vm0, %v4083_v57, 0.0  ;;  %v2595_v11 = vsub.s32 6, %v8105_v14 }
 0x52c   : > { %3450 = vmatprep.mubr.bf16.mxu1 %v7119_v59 }
 0x52d   : > { %v4692_v58 = vadd.f32 %v4691_v8, %v4469_v19  ;;  %v8479_v5 = vrot.slane %v8110_v26, %v2595_v11 }
 0x52e   : > { %v8198_v15 = vpop.f32.mrb[140].mxu1  ;;  %v8200_v23 = vpop.f32.mrb[172].mxu0 }
 0x52f   : > { %9960 = vst [vmem:[#allocation26_spill] sm:$0xff] %v8198_v15  ;;  %9961 = vst [vmem:[#allocation27_spill] sm:$0xff] %v8200_v23  ;;  %v8202_v38 = vadd.f32 %v4692_v58, %v4470_v4  ;;  %v8204_v36 = vpop.f32.mrb[141].mxu1  ;;  %v8206_v47 = vpop.f32.mrb[173].mxu0 }
 0x530   : > { %9962 = vst [vmem:[#allocation28_spill] sm:$0xff] %v8204_v36  ;;  %9963 = vst [vmem:[#allocation29_spill] sm:$0xff] %v8206_v47  ;;  %v8208_v34 = vpop.f32.mrb[142].mxu1  ;;  %v8210_v41 = vpop.f32.mrb[174].mxu0 }
 0x531   : > { %9964 = vst [vmem:[#allocation30_spill] sm:$0xff] %v8208_v34  ;;  %9965 = vst [vmem:[#allocation31_spill] sm:$0xff] %v8210_v41  ;;  %v8212_v3 = vpop.f32.mrb[143].mxu1  ;;  %v8214_v54 = vpop.f32.mrb[175].mxu0 }
 0x532   : > { %9966 = vst [vmem:[#allocation32_spill] sm:$0xff] %v8212_v3  ;;  %9967 = vst [vmem:[#allocation33_spill] sm:$0xff] %v8214_v54 }
 0x533   : > { %3451 = vmatmul.mubr.bf16.gmra.mrb[248].mxu1 %v8061_v17 }
 0x534   : > { %3460 = vmatprep.mubr.bf16.mxu1 %v7119_v59 }
 0x536   : > { %v8218_v52 = vpop.f32.mrb[144].mxu1  ;;  %v8220_v7 = vpop.f32.mrb[176].mxu0 }
 0x537   : > { %9968 = vst [vmem:[#allocation34_spill] sm:$0xff] %v8218_v52  ;;  %9969 = vst [vmem:[#allocation35_spill] sm:$0xff] %v8220_v7  ;;  %v8222_v6 = vpop.f32.mrb[145].mxu1  ;;  %v8224_v35 = vpop.f32.mrb[177].mxu0 }
 0x538   : > { %9970 = vst [vmem:[#allocation36_spill] sm:$0xff] %v8222_v6  ;;  %9971 = vst [vmem:[#allocation37_spill] sm:$0xff] %v8224_v35  ;;  %v8226_v44 = vpop.f32.mrb[146].mxu1  ;;  %v8228_v56 = vpop.f32.mrb[178].mxu0 }
 0x539   : > { %9972 = vst [vmem:[#allocation38_spill] sm:$0xff] %v8226_v44  ;;  %9973 = vst [vmem:[#allocation39_spill] sm:$0xff] %v8228_v56  ;;  %v8230_v22 = vpop.f32.mrb[147].mxu1  ;;  %v8232_v20 = vpop.f32.mrb[179].mxu0 }
 0x53a   : > { %9974 = vst [vmem:[#allocation40_spill] sm:$0xff] %v8230_v22  ;;  %9975 = vst [vmem:[#allocation41_spill] sm:$0xff] %v8232_v20 }
 0x53b   : > { %3461 = vmatmul.mubr.bf16.gmra.mrb[252].mxu1 %v8059_v9 }
 0x53e   : > { %v8235_v17 = vpop.f32.mrb[148].mxu1  ;;  %v8237_v59 = vpop.f32.mrb[180].mxu0 }
 0x53f   : > { %9976 = vst [vmem:[#allocation42_spill] sm:$0xff] %v8235_v17  ;;  %9977 = vst [vmem:[#allocation43_spill] sm:$0xff] %v8237_v59  ;;  %v8239_v29 = vpop.f32.mrb[149].mxu1  ;;  %v8241_v50 = vpop.f32.mrb[181].mxu0 }
 0x540   : > { %9978 = vst [vmem:[#allocation44_spill] sm:$0xff] %v8239_v29  ;;  %9979 = vst [vmem:[#allocation45_spill] sm:$0xff] %v8241_v50  ;;  %v8243_v32 = vpop.f32.mrb[150].mxu1  ;;  %v8245_v24 = vpop.f32.mrb[182].mxu0 }
 0x541   : > { %9980 = vst [vmem:[#allocation46_spill] sm:$0xff] %v8243_v32  ;;  %9981 = vst [vmem:[#allocation47_spill] sm:$0xff] %v8245_v24  ;;  %v8247_v55 = vpop.f32.mrb[151].mxu1  ;;  %v8249_v48 = vpop.f32.mrb[183].mxu0 }
 0x542   : > { %9982 = vst [vmem:[#allocation48_spill] sm:$0xff] %v8247_v55  ;;  %9983 = vst [vmem:[#allocation49_spill] sm:$0xff] %v8249_v48 }
 0x546   : > { %v8251_v53 = vpop.f32.mrb[152].mxu1  ;;  %v8253_v2 = vpop.f32.mrb[184].mxu0 }
 0x547   : > { %9984 = vst [vmem:[#allocation50_spill] sm:$0xff] %v8251_v53  ;;  %9985 = vst [vmem:[#allocation51_spill] sm:$0xff] %v8253_v2  ;;  %v8255_v9 = vpop.f32.mrb[153].mxu1  ;;  %v8257_v30 = vpop.f32.mrb[185].mxu0 }
 0x548   : > { %9986 = vst [vmem:[#allocation52_spill] sm:$0xff] %v8255_v9  ;;  %9987 = vst [vmem:[#allocation53_spill] sm:$0xff] %v8257_v30  ;;  %v8259_v46 = vpop.f32.mrb[154].mxu1  ;;  %v8261_v16 = vpop.f32.mrb[186].mxu0 }
 0x549   : > { %9988 = vst [vmem:[#allocation54_spill] sm:$0xff] %v8259_v46  ;;  %9989 = vst [vmem:[#allocation55_spill] sm:$0xff] %v8261_v16  ;;  %v8263_v57 = vpop.f32.mrb[155].mxu1  ;;  %v8265_v8 = vpop.f32.mrb[187].mxu0 }
 0x54a   : > { %9990 = vst [vmem:[#allocation56_spill] sm:$0xff] %v8263_v57  ;;  %9991 = vst [vmem:[#allocation57_spill] sm:$0xff] %v8265_v8 }
 0x54e   : > { %v8267_v19 = vpop.f32.mrb[156].mxu1  ;;  %v8269_v58 = vpop.f32.mrb[188].mxu0 }
 0x54f   : > { %9992 = vst [vmem:[#allocation58_spill] sm:$0xff] %v8267_v19  ;;  %9993 = vst [vmem:[#allocation59_spill] sm:$0xff] %v8269_v58  ;;  %v8271_v4 = vpop.f32.mrb[157].mxu1  ;;  %v8273_v53 = vpop.f32.mrb[189].mxu0 }
 0x550   : > { %9994 = vst [vmem:[#allocation60_spill] sm:$0xff] %v8271_v4  ;;  %9995 = vst [vmem:[#allocation61_spill] sm:$0xff] %v8273_v53  ;;  %v8275_v2 = vpop.f32.mrb[158].mxu1  ;;  %v8277_v9 = vpop.f32.mrb[190].mxu0 }
 0x551   : > { %9996 = vst [vmem:[#allocation62_spill] sm:$0xff] %v8275_v2  ;;  %9997 = vst [vmem:[#allocation63_spill] sm:$0xff] %v8277_v9  ;;  %v8279_v30 = vpop.f32.mrb[159].mxu1  ;;  %v8281_v46 = vpop.f32.mrb[191].mxu0 }
 0x552   : > { %9998 = vst [vmem:[#allocation64_spill] sm:$0xff] %v8279_v30  ;;  %9999 = vst [vmem:[#allocation65_spill] sm:$0xff] %v8281_v46 }
 0x556   : > { %v8283_v16 = vpop.f32.mrb[160].mxu1  ;;  %v8285_v57 = vpop.f32.mrb[192].mxu0 }
 0x557   : > { %10000 = vst [vmem:[#allocation66_spill] sm:$0xff] %v8283_v16  ;;  %10001 = vst [vmem:[#allocation67_spill] sm:$0xff] %v8285_v57  ;;  %v8287_v8 = vpop.f32.mrb[161].mxu1  ;;  %v8289_v19 = vpop.f32.mrb[193].mxu0 }
 0x558   : > { %10002 = vst [vmem:[#allocation68_spill] sm:$0xff] %v8287_v8  ;;  %10003 = vst [vmem:[#allocation69_spill] sm:$0xff] %v8289_v19  ;;  %v8291_v58 = vpop.f32.mrb[162].mxu1  ;;  %v8293_v4 = vpop.f32.mrb[194].mxu0 }
 0x559   : > { %10004 = vst [vmem:[#allocation70_spill] sm:$0xff] %v8291_v58  ;;  %10005 = vst [vmem:[#allocation71_spill] sm:$0xff] %v8293_v4  ;;  %v8295_v53 = vpop.f32.mrb[163].mxu1  ;;  %v8297_v2 = vpop.f32.mrb[195].mxu0 }
 0x55a   : > { %10006 = vst [vmem:[#allocation72_spill] sm:$0xff] %v8295_v53  ;;  %10007 = vst [vmem:[#allocation73_spill] sm:$0xff] %v8297_v2 }
 0x55e   : > { %v8299_v9 = vpop.f32.mrb[164].mxu1  ;;  %v8301_v30 = vpop.f32.mrb[196].mxu0 }
 0x55f   : > { %10008 = vst [vmem:[#allocation74_spill] sm:$0xff] %v8299_v9  ;;  %10009 = vst [vmem:[#allocation75_spill] sm:$0xff] %v8301_v30  ;;  %v8303_v46 = vpop.f32.mrb[165].mxu1  ;;  %v8305_v16 = vpop.f32.mrb[197].mxu0 }
 0x560   : > { %10010 = vst [vmem:[#allocation76_spill] sm:$0xff] %v8303_v46  ;;  %10011 = vst [vmem:[#allocation77_spill] sm:$0xff] %v8305_v16  ;;  %v8307_v57 = vpop.f32.mrb[166].mxu1  ;;  %v8309_v8 = vpop.f32.mrb[198].mxu0 }
 0x561   : > { %10012 = vst [vmem:[#allocation78_spill] sm:$0xff] %v8307_v57  ;;  %10013 = vst [vmem:[#allocation79_spill] sm:$0xff] %v8309_v8  ;;  %v8311_v19 = vpop.f32.mrb[167].mxu1  ;;  %v8313_v58 = vpop.f32.mrb[199].mxu0 }
 0x562   : > { %10014 = vst [vmem:[#allocation80_spill] sm:$0xff] %v8311_v19  ;;  %10015 = vst [vmem:[#allocation81_spill] sm:$0xff] %v8313_v58 }
 0x566   : > { %v8315_v4 = vpop.f32.mrb[168].mxu1  ;;  %v8317_v53 = vpop.f32.mrb[200].mxu0 }
 0x567   : > { %10016 = vst [vmem:[#allocation82_spill] sm:$0xff] %v8315_v4  ;;  %10017 = vst [vmem:[#allocation83_spill] sm:$0xff] %v8317_v53  ;;  %v8319_v2 = vpop.f32.mrb[169].mxu1  ;;  %v8321_v9 = vpop.f32.mrb[201].mxu0 }
 0x568   : > { %10018 = vst [vmem:[#allocation84_spill] sm:$0xff] %v8319_v2  ;;  %10019 = vst [vmem:[#allocation85_spill] sm:$0xff] %v8321_v9  ;;  %v8323_v30 = vpop.f32.mrb[170].mxu1  ;;  %v8325_v46 = vpop.f32.mrb[202].mxu0 }
 0x569   : > { %10020 = vst [vmem:[#allocation86_spill] sm:$0xff] %v8323_v30  ;;  %10021 = vst [vmem:[#allocation87_spill] sm:$0xff] %v8325_v46  ;;  %v8327_v16 = vpop.f32.mrb[171].mxu1  ;;  %v8329_v57 = vpop.f32.mrb[203].mxu0 }
 0x56a   : > { %10022 = vst [vmem:[#allocation88_spill] sm:$0xff] %v8327_v16  ;;  %10023 = vst [vmem:[#allocation89_spill] sm:$0xff] %v8329_v57 }
 0x56e   : > { %v8331_v8 = vpop.f32.mrb[172].mxu1  ;;  %v8333_v19 = vpop.f32.mrb[204].mxu0 }
 0x56f   : > { %10024 = vst [vmem:[#allocation90_spill] sm:$0xff] %v8331_v8  ;;  %10025 = vst [vmem:[#allocation91_spill] sm:$0xff] %v8333_v19  ;;  %v8335_v58 = vpop.f32.mrb[173].mxu1  ;;  %v8337_v4 = vpop.f32.mrb[205].mxu0 }
 0x570   : > { %10026 = vst [vmem:[#allocation92_spill] sm:$0xff] %v8335_v58  ;;  %10027 = vst [vmem:[#allocation93_spill] sm:$0xff] %v8337_v4  ;;  %v8339_v53 = vpop.f32.mrb[174].mxu1  ;;  %v8341_v2 = vpop.f32.mrb[206].mxu0 }
 0x571   : > { %10028 = vst [vmem:[#allocation94_spill] sm:$0xff] %v8339_v53  ;;  %10029 = vst [vmem:[#allocation95_spill] sm:$0xff] %v8341_v2  ;;  %v8343_v9 = vpop.f32.mrb[175].mxu1  ;;  %v8345_v30 = vpop.f32.mrb[207].mxu0 }
 0x572   : > { %10030 = vst [vmem:[#allocation96_spill] sm:$0xff] %v8343_v9  ;;  %10031 = vst [vmem:[#allocation97_spill] sm:$0xff] %v8345_v30 }
 0x576   : > { %v8347_v46 = vpop.f32.mrb[176].mxu1  ;;  %v8349_v16 = vpop.f32.mrb[208].mxu0 }
 0x577   : > { %10032 = vst [vmem:[#allocation98_spill] sm:$0xff] %v8347_v46  ;;  %10033 = vst [vmem:[#allocation99_spill] sm:$0xff] %v8349_v16  ;;  %v8351_v57 = vpop.f32.mrb[177].mxu1  ;;  %v8353_v8 = vpop.f32.mrb[209].mxu0 }
 0x578   : > { %10034 = vst [vmem:[#allocation100_spill] sm:$0xff] %v8351_v57  ;;  %10035 = vst [vmem:[#allocation101_spill] sm:$0xff] %v8353_v8  ;;  %v8355_v19 = vpop.f32.mrb[178].mxu1  ;;  %v8357_v58 = vpop.f32.mrb[210].mxu0 }
 0x579   : > { %10036 = vst [vmem:[#allocation102_spill] sm:$0xff] %v8355_v19  ;;  %10037 = vst [vmem:[#allocation103_spill] sm:$0xff] %v8357_v58  ;;  %v8359_v4 = vpop.f32.mrb[179].mxu1  ;;  %v8361_v53 = vpop.f32.mrb[211].mxu0 }
 0x57a   : > { %10038 = vst [vmem:[#allocation104_spill] sm:$0xff] %v8359_v4  ;;  %10039 = vst [vmem:[#allocation105_spill] sm:$0xff] %v8361_v53 }
 0x57e   : > { %v8363_v2 = vpop.f32.mrb[180].mxu1  ;;  %v8365_v9 = vpop.f32.mrb[212].mxu0 }
 0x57f   : > { %10040 = vst [vmem:[#allocation106_spill] sm:$0xff] %v8363_v2  ;;  %10041 = vst [vmem:[#allocation107_spill] sm:$0xff] %v8365_v9  ;;  %v8367_v30 = vpop.f32.mrb[181].mxu1  ;;  %v8369_v46 = vpop.f32.mrb[213].mxu0 }
 0x580   : > { %10042 = vst [vmem:[#allocation108_spill] sm:$0xff] %v8367_v30  ;;  %10043 = vst [vmem:[#allocation109_spill] sm:$0xff] %v8369_v46  ;;  %v8371_v16 = vpop.f32.mrb[182].mxu1  ;;  %v8373_v57 = vpop.f32.mrb[214].mxu0 }
 0x581   : > { %10044 = vst [vmem:[#allocation110_spill] sm:$0xff] %v8371_v16  ;;  %10045 = vst [vmem:[#allocation111_spill] sm:$0xff] %v8373_v57  ;;  %v8375_v8 = vpop.f32.mrb[183].mxu1  ;;  %v8377_v19 = vpop.f32.mrb[215].mxu0 }
 0x582   : > { %10046 = vst [vmem:[#allocation112_spill] sm:$0xff] %v8375_v8  ;;  %10047 = vst [vmem:[#allocation113_spill] sm:$0xff] %v8377_v19 }
 0x586   : > { %v8379_v58 = vpop.f32.mrb[184].mxu1  ;;  %v8381_v4 = vpop.f32.mrb[216].mxu0 }
 0x587   : > { %10048 = vst [vmem:[#allocation114_spill] sm:$0xff] %v8379_v58  ;;  %10049 = vst [vmem:[#allocation115_spill] sm:$0xff] %v8381_v4  ;;  %v8383_v53 = vpop.f32.mrb[185].mxu1  ;;  %v8385_v2 = vpop.f32.mrb[217].mxu0 }
 0x588   : > { %10050 = vst [vmem:[#allocation116_spill] sm:$0xff] %v8383_v53  ;;  %10051 = vst [vmem:[#allocation117_spill] sm:$0xff] %v8385_v2  ;;  %v8387_v9 = vpop.f32.mrb[186].mxu1  ;;  %v8389_v30 = vpop.f32.mrb[218].mxu0 }
 0x589   : > { %10052 = vst [vmem:[#allocation118_spill] sm:$0xff] %v8387_v9  ;;  %10053 = vst [vmem:[#allocation119_spill] sm:$0xff] %v8389_v30  ;;  %v8391_v46 = vpop.f32.mrb[187].mxu1  ;;  %v8393_v16 = vpop.f32.mrb[219].mxu0 }
 0x58a   : > { %10054 = vst [vmem:[#allocation120_spill] sm:$0xff] %v8391_v46  ;;  %10055 = vst [vmem:[#allocation121_spill] sm:$0xff] %v8393_v16 }
 0x58e   : > { %v8395_v57 = vpop.f32.mrb[188].mxu1  ;;  %v8397_v8 = vpop.f32.mrb[220].mxu0 }
 0x58f   : > { %10056 = vst [vmem:[#allocation122_spill] sm:$0xff] %v8395_v57  ;;  %10057 = vst [vmem:[#allocation123_spill] sm:$0xff] %v8397_v8  ;;  %v8399_v19 = vpop.f32.mrb[189].mxu1  ;;  %v8401_v58 = vpop.f32.mrb[221].mxu0 }
 0x590   : > { %10058 = vst [vmem:[#allocation124_spill] sm:$0xff] %v8399_v19  ;;  %10059 = vst [vmem:[#allocation125_spill] sm:$0xff] %v8401_v58  ;;  %v8403_v4 = vpop.f32.mrb[190].mxu1  ;;  %v8405_v53 = vpop.f32.mrb[222].mxu0 }
 0x591   : > { %10060 = vst [vmem:[#allocation126_spill] sm:$0xff] %v8403_v4  ;;  %10061 = vst [vmem:[#allocation127_spill] sm:$0xff] %v8405_v53  ;;  %v8407_v2 = vpop.f32.mrb[191].mxu1  ;;  %v8409_v9 = vpop.f32.mrb[223].mxu0 }
 0x592   : > { %10062 = vst [vmem:[#allocation128_spill] sm:$0xff] %v8407_v2  ;;  %10063 = vst [vmem:[#allocation129_spill] sm:$0xff] %v8409_v9 }
 0x596   : > { %v3312_v30 = vpop.f32.mrb[192].mxu1  ;;  %v8411_v46 = vpop.f32.mrb[224].mxu0 }
 0x597   : > { %v3314_v16 = vpop.f32.mrb[193].mxu1  ;;  %v3505_v48 = vpop.f32.mrb[225].mxu0 }
 0x598   : > { %v8413_v57 = vpop.f32.mrb[194].mxu1  ;;  %v8415_v8 = vpop.f32.mrb[226].mxu0  ;;  %v3506_v1 = vadd.f32 %v3505_v48, %v8479_v5 }
 0x599   : > { %v8417_v19 = vpop.f32.mrb[195].mxu1  ;;  %v8419_v58 = vpop.f32.mrb[227].mxu0 }
 0x59e   : > { %v8421_v4 = vpop.f32.mrb[196].mxu1  ;;  %v5816_v53 = vpop.f32.mrb[228].mxu0 }
 0x59f   : > { %v8423_v24 = vpop.f32.mrb[197].mxu1  ;;  %v8425_v2 = vpop.f32.mrb[229].mxu0 }
 0x5a0   : > { %10064 = vst [vmem:[#allocation130_spill] sm:$0xff] %v8425_v2  ;;  %v8427_v9 = vpop.f32.mrb[198].mxu1  ;;  %v5817_v55 = vpop.f32.mrb[230].mxu0  ;;  %v2933_v2 = vadd.f32 %v8136_v27, %v8122_v10  ;;  %v3124_v27 = vadd.f32 %v8134_v18, %v8119_v13 }
 0x5a1   : > { %v8429_v32 = vpop.f32.mrb[199].mxu1  ;;  %v3524_v50 = vpop.f32.mrb[231].mxu0 }
 0x5a6   : > { %v8431_v59 = vpop.f32.mrb[200].mxu1  ;;  %v5820_v29 = vpop.f32.mrb[232].mxu0 }
 0x5a7   : > { %10065 = vst [vmem:[#allocation131_spill] sm:$0xff] %v8431_v59  ;;  %v8433_v17 = vpop.f32.mrb[201].mxu1  ;;  %v3537_v20 = vpop.f32.mrb[233].mxu0 }
 0x5a8   : > { %10066 = vst [vmem:[#allocation132_spill] sm:$0xff] %v8433_v17  ;;  %v8435_v56 = vpop.f32.mrb[202].mxu1  ;;  %v5821_v22 = vpop.f32.mrb[234].mxu0 }
 0x5a9   : > { %10067 = vst [vmem:[#allocation133_spill] sm:$0xff] %v8435_v56  ;;  %v8437_v44 = vpop.f32.mrb[203].mxu1  ;;  %v3540_v35 = vpop.f32.mrb[235].mxu0 }
 0x5aa   : > { %10068 = vst [vmem:[#allocation134_spill] sm:$0xff] %v8437_v44 }
 0x5ae   : > { %v8439_v7 = vpop.f32.mrb[204].mxu1  ;;  %v5824_v6 = vpop.f32.mrb[236].mxu0 }
 0x5af   : > { %10069 = vst [vmem:[#allocation135_spill] sm:$0xff] %v8439_v7  ;;  %v8441_v52 = vpop.f32.mrb[205].mxu1  ;;  %v8443_v54 = vpop.f32.mrb[237].mxu0 }
 0x5b0   : > { %10070 = vst [vmem:[#allocation136_spill] sm:$0xff] %v8441_v52  ;;  %v8445_v41 = vpop.f32.mrb[206].mxu1  ;;  %v8447_v3 = vpop.f32.mrb[238].mxu0 }
 0x5b1   : > { %10071 = vst [vmem:[#allocation137_spill] sm:$0xff] %v8445_v41  ;;  %v8449_v34 = vpop.f32.mrb[207].mxu1  ;;  %v8451_v47 = vpop.f32.mrb[239].mxu0 }
 0x5b2   : > { %10072 = vst [vmem:[#allocation138_spill] sm:$0xff] %v8449_v34  ;;  %v2587_v34 = vsub.s32 4, %v8105_v14 }
 0x5b6   : > { %v8453_v23 = vpop.f32.mrb[208].mxu1  ;;  %v8455_v36 = vpop.f32.mrb[240].mxu0 }
 0x5b7   : > { %10073 = vst [vmem:[#allocation139_spill] sm:$0xff] %v8453_v23  ;;  %v8457_v15 = vpop.f32.mrb[209].mxu1  ;;  %v8459_v7 = vpop.f32.mrb[241].mxu0  ;;  %v8472_v23 = vrot.slane %v8110_v26, %v2587_v34 }
 0x5b8   : > { %10074 = vst [vmem:[#allocation140_spill] sm:$0xff] %v8457_v15  ;;  %v8461_v44 = vpop.f32.mrb[210].mxu1  ;;  %v8463_v52 = vpop.f32.mrb[242].mxu0  ;;  %v2931_v15 = vadd.f32 %v8132_v63, %v8116_v12 }
 0x5b9   : > { %10075 = vst [vmem:[#allocation141_spill] sm:$0xff] %v8461_v44  ;;  %v8465_v56 = vpop.f32.mrb[211].mxu1  ;;  %v8467_v41 = vpop.f32.mrb[243].mxu0  ;;  %v3313_v44 = vadd.f32 %v3312_v30, %v8472_v23  ;;  %v8496_v30 = vrot.slane %v8110_v26, %v2591_v49  ;;  %v8509_v26 = vadd.f32 %v5816_v53, %v8479_v5  ;;  %v8512_v49 = vadd.f32 %v5817_v55, %v8479_v5 }
 0x5ba   : > { %10076 = vst [vmem:[#allocation142_spill] sm:$0xff] %v8465_v56  ;;  %v3317_v18 = vadd.f32 %v8413_v57, %v8472_v23  ;;  %v8528_v53 = vadd.f32 %v5820_v29, %v8479_v5  ;;  %v8531_v55 = vadd.f32 %v3537_v20, %v8479_v5  ;;  %v8550_v20 = vadd.f32 %v5824_v6, %v8479_v5 }
 0x5bb   : > { %6134 = vtanh.f32 %v3313_v44  ;;  %v3315_v44 = vadd.f32 %v3314_v16, %v8496_v30  ;;  %v3319_v57 = vadd.f32 %v8417_v19, %v8496_v30 }
 0x5bc   : > { %6136 = vtanh.f32 %v2931_v15  ;;  %10083 = vst [vmem:[#allocation149_spill] sm:$0xff] %v8528_v53  ;;  %10087 = vst [vmem:[#allocation153_spill] sm:$0xff] %v8550_v20  ;;  %v6581_v53 = vld [vmem:[%s7469_s20 + $0x28] sm:$0xff] }
 0x5bd   : > { %6138 = vtanh.f32 %v2933_v2 }
 0x5be   : > { %v8481_v56 = vpop.f32.mrb[212].mxu1  ;;  %v8483_v37 = vpop.f32.mrb[244].mxu0  ;;  %6140 = vtanh.f32 %v3506_v1  ;;  %v8521_v1 = vadd.f32 %v3524_v50, %v8479_v5  ;;  %v8540_v50 = vadd.f32 %v5821_v22, %v8479_v5  ;;  %v8557_v22 = vadd.f32 %v8443_v54, %v8479_v5 }
 0x5bf   : > { %10077 = vst [vmem:[#allocation143_spill] sm:$0xff] %v8481_v56  ;;  %v8487_v17 = vpop.f32.mrb[213].mxu1  ;;  %v8489_v34 = vpop.f32.mrb[245].mxu0  ;;  %6142 = vtanh.f32 %v3315_v44 }
 0x5c0   : > { %10078 = vst [vmem:[#allocation144_spill] sm:$0xff] %v8487_v17  ;;  %v8491_v59 = vpop.f32.mrb[214].mxu1  ;;  %v8493_v63 = vpop.f32.mrb[246].mxu0  ;;  %6144 = vtanh.f32 %v3124_v27  ;;  %10085 = vst [vmem:[#allocation151_spill] sm:$0xff] %v8540_v50 }
 0x5c1   : > { %10079 = vst [vmem:[#allocation145_spill] sm:$0xff] %v8491_v59  ;;  %v8498_v11 = vpop.f32.mrb[215].mxu1  ;;  %v8500_v56 = vpop.f32.mrb[247].mxu0  ;;  %v3126_v59 = vadd.f32 %v8138_v31, %v8125_v33  ;;  %10088 = vst [vmem:[#allocation154_spill] sm:$0xff] %v8557_v22 }
 0x5c2   : > { %10080 = vst [vmem:[#allocation146_spill] sm:$0xff] %v8498_v11 }
 0x5c3   : > { %6146 = vtanh.f32 %v3126_v59  ;;  %v3509_v59 = vadd.f32 %v8419_v58, %v8479_v5  ;;  %v8568_v58 = vadd.f32 %v8451_v47, %v8479_v5 }
 0x5c4   : > { %6148 = vtanh.f32 %v3317_v18 }
 0x5c5   : > { %v6135_v29 = vpop.eup %6134  ;;  %6150 = vtanh.f32 %v3319_v57  ;;  %10090 = vst [vmem:[#allocation156_spill] sm:$0xff] %v8568_v58  ;;  %v6579_v57 = vld [vmem:[%s7469_s20 + $0x30] sm:$0xff] }
 0x5c6   : > { %v8514_v15 = vpop.f32.mrb[216].mxu1  ;;  %v8516_v48 = vpop.f32.mrb[248].mxu0  ;;  %6152 = vtanh.f32 %v3509_v59 }
 0x5c7   : > { %10081 = vst [vmem:[#allocation147_spill] sm:$0xff] %v8514_v15  ;;  %v8523_v31 = vpop.f32.mrb[217].mxu1  ;;  %v8525_v2 = vpop.f32.mrb[249].mxu0  ;;  %v8547_v15 = vadd.f32 %v3540_v35, %v8479_v5  ;;  %v8562_v35 = vadd.f32 %v8447_v3, %v8479_v5 }
 0x5c8   : > { %10082 = vst [vmem:[#allocation148_spill] sm:$0xff] %v8523_v31  ;;  %v8533_v16 = vpop.f32.mrb[218].mxu1  ;;  %v8535_v27 = vpop.f32.mrb[250].mxu0 }
 0x5c9   : > { %10084 = vst [vmem:[#allocation150_spill] sm:$0xff] %v8533_v16  ;;  %v8542_v44 = vpop.f32.mrb[219].mxu1  ;;  %v8544_v31 = vpop.f32.mrb[251].mxu0  ;;  %v6578_v16 = vld [vmem:[%s7469_s20 + $0x20] sm:$0xff]  ;;  %10089 = vst [vmem:[#allocation155_spill] sm:$0xff] %v8562_v35 }
 0x5ca   : > { %10086 = vst [vmem:[#allocation152_spill] sm:$0xff] %v8542_v44  ;;  %v3860_v11 = vsub.f32 %v6578_v16, %v6135_v29  ;;  %v6137_v19 = vpop.eup %6136  ;;  %v4307_v44 = vadd.s32 8, %v8105_v14  ;;  %v2937_v16 = vadd.f32 %v8145_v40, %v8116_v12  ;;  %v8572_v29 = vadd.f32 %v8455_v36, %v8479_v5  ;;  %v6580_v36 = vld [vmem:[%s7469_s20 + $0x38] sm:$0xff] }
 0x5cb   : > { %v6139_v6 = vpop.eup %6138  ;;  %v2939_v40 = vadd.f32 %v8149_v61, %v8122_v10 }
 0x5cc   : > { %v4084_v18 = vmul.f32 %v3860_v11, %v3860_v11  ;;  %v6141_v54 = vpop.eup %6140  ;;  %10091 = vst [vmem:[#allocation157_spill] sm:$0xff] %v8572_v29  ;;  %v3863_v29 = vsub.f32 %v6580_v36, %v6137_v19  ;;  %6154 = vtanh.f32 %v2937_v16  ;;  %v8601_v19 = vadd.f32 %v8459_v7, %v8479_v5  ;;  %v6583_v16 = vld [vmem:[%s7469_s20 + $0x48] sm:$0xff] }
 0x5cd   : > { %v6143_v35 = vpop.eup %6142  ;;  %v3862_v47 = vsub.f32 %v6579_v57, %v6141_v54  ;;  %v8597_v54 = vadd.s32 %v8143_v39, %v4307_v44  ;;  %6156 = vtanh.f32 %v2939_v40  ;;  %v3132_v44 = vadd.f32 %v8151_v21, %v8125_v33  ;;  %v6584_v40 = vld [vmem:[%s7469_s20 + $0x50] sm:$0xff] }
 0x5ce   : > { %v8574_v20 = vpop.f32.mrb[220].mxu1  ;;  %v8576_v3 = vpop.f32.mrb[252].mxu0  ;;  %v4471_v11 = vsel %vm4371_vm0, %v4084_v18, 0.0  ;;  %v3861_v61 = vsub.f32 %v6581_v53, %v6143_v35  ;;  %10095 = vst [vmem:[#allocation161_spill] sm:$0xff] %v8601_v19 }
 0x5cf   : > { %10092 = vst [vmem:[#allocation158_spill] sm:$0xff] %v8574_v20  ;;  %v8583_v58 = vpop.f32.mrb[221].mxu1  ;;  %v8585_v22 = vpop.f32.mrb[253].mxu0  ;;  %v3130_v20 = vadd.f32 %v8147_v0, %v8119_v13  ;;  %v4694_v50 = vadd.f32 %v8202_v38, %v4471_v11  ;;  %v6582_v38 = vld [vmem:[%s7469_s20 + $0x40] sm:$0xff]  ;;  %v4086_v11 = vmul.f32 %v3862_v47, %v3862_v47  ;;  %vm4372_vm1 = vcmp.lt.s32.totalorder %v8597_v54, 300 }
 0x5d0   : > { %10093 = vst [vmem:[#allocation159_spill] sm:$0xff] %v8583_v58  ;;  %v8592_v17 = vpop.f32.mrb[222].mxu1  ;;  %v8594_v18 = vpop.f32.mrb[254].mxu0  ;;  %v3864_v53 = vsub.f32 %v6582_v38, %v6139_v6  ;;  %v4085_v35 = vmul.f32 %v3861_v61, %v3861_v61  ;;  %v3323_v47 = vadd.f32 %v8421_v4, %v8472_v23  ;;  %v8694_v54 = vadd.f32 %v8489_v34, %v8479_v5 }
 0x5d1   : > { %10094 = vst [vmem:[#allocation160_spill] sm:$0xff] %v8592_v17  ;;  %v6145_v59 = vpop.eup %6144  ;;  %v8603_v57 = vpop.f32.mrb[223].mxu1  ;;  %v4087_v17 = vmul.f32 %v3863_v29, %v3863_v29  ;;  %6158 = vtanh.f32 %v3130_v20  ;;  %v4473_v21 = vsel %vm4371_vm0, %v4086_v11, 0.0  ;;  %v3514_v11 = vadd.f32 %v8411_v46, %v8479_v5 }
 0x5d2   : > { %v8605_v0 = vpop.f32.mrb[255].mxu0  ;;  %v6147_v36 = vpop.eup %6146  ;;  %v3865_v58 = vsub.f32 %v6583_v16, %v6145_v59  ;;  %v4472_v7 = vsel %vm4371_vm0, %v4085_v35, 0.0  ;;  %v4088_v61 = vmul.f32 %v3864_v53, %v3864_v53  ;;  %6160 = vtanh.f32 %v3132_v44  ;;  %v6585_v53 = vld [vmem:[%s7469_s20 + $0x58] sm:$0xff] }
 0x5d3   : > { %v6149_v19 = vpop.eup %6148  ;;  %v4695_v6 = vadd.f32 %v4694_v50, %v4472_v7  ;;  %v3866_v38 = vsub.f32 %v6584_v40, %v6147_v36  ;;  %v3325_v35 = vadd.f32 %v8423_v24, %v8496_v30  ;;  %v4474_v4 = vsel %vm4372_vm1, %v4087_v17, 0.0 }
 0x5d4   : > { %v6151_v20 = vpop.eup %6150  ;;  %v4089_v50 = vmul.f32 %v3865_v58, %v3865_v58  ;;  %v3867_v36 = vsub.f32 %v6585_v53, %v6149_v19  ;;  %6162 = vtanh.f32 %v3323_v47  ;;  %v4475_v24 = vsel %vm4372_vm1, %v4088_v61, 0.0  ;;  %v6586_v58 = vld [vmem:[%s7469_s20 + $0x60] sm:$0xff]  ;;  %v6587_v61 = vld [vmem:[%s7469_s20 + $0x68] sm:$0xff] }
 0x5d5   : > { %v4696_v59 = vadd.f32 %v4695_v6, %v4473_v21  ;;  %v6153_v51 = vpop.eup %6152  ;;  %v4090_v40 = vmul.f32 %v3866_v38, %v3866_v38  ;;  %v2941_v17 = vadd.f32 %v8153_v42, %v8116_v12  ;;  %v3868_v19 = vsub.f32 %v6586_v58, %v6151_v20 }
 0x5d6   : > { %v8619_v29 = vpop.f32.mrb[224].mxu1  ;;  %v6155_v21 = vpop.eup %6154  ;;  %v4308_v53 = vadd.s32 16, %v8105_v14  ;;  %v2943_v46 = vadd.f32 %v8161_v25, %v8122_v10  ;;  %6164 = vtanh.f32 %v3325_v35  ;;  %v4476_v47 = vsel %vm4372_vm1, %v4089_v50, 0.0  ;;  %v6588_v25 = vld [vmem:[%s7469_s20 + $0x70] sm:$0xff] }
 0x5d7   : > { %v8623_v16 = vpop.f32.mrb[225].mxu1  ;;  %v4697_v44 = vadd.f32 %v4696_v59, %v4474_v4  ;;  %v4091_v4 = vmul.f32 %v3867_v36, %v3867_v36  ;;  %v3869_v38 = vsub.f32 %v6587_v61, %v6153_v51  ;;  %v3134_v42 = vadd.f32 %v8155_v43, %v8119_v13 }
 0x5d8   : > { %v8628_v7 = vpop.f32.mrb[226].mxu1  ;;  %6166 = vtanh.f32 %v3514_v11  ;;  %v4092_v35 = vmul.f32 %v3868_v19, %v3868_v19  ;;  %v8653_v36 = vadd.s32 %v8143_v39, %v4308_v53  ;;  %v3136_v43 = vadd.f32 %v8163_v28, %v8125_v33 }
 0x5d9   : > { %10096 = vst [vmem:[#allocation162_spill] sm:$0xff] %v8628_v7  ;;  %v8632_v6 = vpop.f32.mrb[227].mxu1  ;;  %v4698_v59 = vadd.f32 %v4697_v44, %v4475_v24  ;;  %v4477_v7 = vsel %vm4372_vm1, %v4090_v40, 0.0  ;;  %v3870_v44 = vsub.f32 %v6588_v25, %v6155_v21  ;;  %6168 = vtanh.f32 %v2941_v17  ;;  %v6589_v24 = vld [vmem:[%s7469_s20 + $0x78] sm:$0xff]  ;;  %v6591_v25 = vld [vmem:[%s7469_s20 + $0x88] sm:$0xff] }
 0x5da   : > { %10097 = vst [vmem:[#allocation163_spill] sm:$0xff] %v8632_v6  ;;  %v6157_v6 = vpop.eup %6156  ;;  %6170 = vtanh.f32 %v2943_v46  ;;  %v4478_v40 = vsel %vm4372_vm1, %v4091_v4, 0.0  ;;  %v4093_v21 = vmul.f32 %v3869_v38, %v3869_v38  ;;  %v8664_v17 = vadd.f32 %v8463_v52, %v8479_v5  ;;  %v6590_v46 = vld [vmem:[%s7469_s20 + $0x80] sm:$0xff] }
 0x5db   : > { %v4699_v20 = vadd.f32 %v4698_v59, %v4476_v47  ;;  %v6159_v58 = vpop.eup %6158  ;;  %v3871_v59 = vsub.f32 %v6589_v24, %v6157_v6  ;;  %v4094_v61 = vmul.f32 %v3870_v44, %v3870_v44  ;;  %6172 = vtanh.f32 %v3134_v42 }
 0x5dc   : > { %v6161_v53 = vpop.eup %6160  ;;  %v3872_v47 = vsub.f32 %v6590_v46, %v6159_v58  ;;  %v4479_v6 = vsel %vm4372_vm1, %v4092_v35, 0.0  ;;  %v8675_v4 = vadd.f32 %v8467_v41, %v8479_v5  ;;  %vm4373_vm2 = vcmp.lt.s32.totalorder %v8653_v36, 300 }
 0x5dd   : > { %v4700_v51 = vadd.f32 %v4699_v20, %v4477_v7  ;;  %6174 = vtanh.f32 %v3136_v43  ;;  %v3327_v20 = vadd.f32 %v8427_v9, %v8472_v23  ;;  %v4095_v58 = vmul.f32 %v3871_v59, %v3871_v59  ;;  %v6592_v59 = vld [vmem:[%s7469_s20 + $0x90] sm:$0xff] }
 0x5de   : > { %v8650_v50 = vpop.f32.mrb[228].mxu1  ;;  %v6163_v52 = vpop.eup %6162  ;;  %v3873_v44 = vsub.f32 %v6591_v25, %v6161_v53  ;;  %v4480_v42 = vsel %vm4372_vm1, %v4093_v21, 0.0  ;;  %v8685_v35 = vadd.f32 %v8483_v37, %v8479_v5  ;;  %v3329_v43 = vadd.f32 %v8429_v32, %v8496_v30 }
 0x5df   : > { %v8657_v11 = vpop.f32.mrb[229].mxu1  ;;  %v4701_v28 = vadd.f32 %v4700_v51, %v4478_v40  ;;  %v4096_v51 = vmul.f32 %v3872_v47, %v3872_v47  ;;  %v4481_v9 = vsel %vm4373_vm2, %v4094_v61, 0.0  ;;  %v3874_v40 = vsub.f32 %v6592_v59, %v6163_v52 }
 0x5e0   : > { %v8666_v19 = vpop.f32.mrb[230].mxu1  ;;  %v6165_v41 = vpop.eup %6164  ;;  %v8698_v37 = vadd.f32 %v8493_v63, %v8479_v5  ;;  %v4309_v46 = vadd.s32 24, %v8105_v14  ;;  %v3517_v32 = vadd.f32 %v8415_v8, %v8479_v5  ;;  %6176 = vtanh.f32 %v3327_v20  ;;  %v6593_v63 = vld [vmem:[%s7469_s20 + $0x98] sm:$0xff] }
 0x5e1   : > { %v8669_v7 = vpop.f32.mrb[231].mxu1  ;;  %v4702_v38 = vadd.f32 %v4701_v28, %v4479_v6  ;;  %v4482_v34 = vsel %vm4373_vm2, %v4095_v58, 0.0  ;;  %v4097_v6 = vmul.f32 %v3873_v44, %v3873_v44  ;;  %v3875_v52 = vsub.f32 %v6593_v63, %v6165_v41  ;;  %v6594_v44 = vld [vmem:[%s7469_s20 + $0xa0] sm:$0xff] }
 0x5e2   : > { %v6167_v53 = vpop.eup %6166  ;;  %v4483_v8 = vsel %vm4373_vm2, %v4096_v51, 0.0  ;;  %v2947_v20 = vadd.f32 %v8171_v45, %v8116_v12  ;;  %6178 = vtanh.f32 %v3329_v43  ;;  %v8729_v59 = vadd.f32 %v8525_v2, %v8479_v5 }
 0x5e3   : > { %v4703_v24 = vadd.f32 %v4702_v38, %v4480_v42  ;;  %v6169_v61 = vpop.eup %6168  ;;  %v8712_v38 = vadd.f32 %v8500_v56, %v8479_v5  ;;  %v3876_v41 = vsub.f32 %v6594_v44, %v6167_v53  ;;  %v8725_v56 = vadd.f32 %v8516_v48, %v8479_v5  ;;  %v6595_v53 = vld [vmem:[%s7469_s20 + $0xa8] sm:$0xff]  ;;  %v6596_v44 = vld [vmem:[%s7469_s20 + $0xb0] sm:$0xff] }
 0x5e4   : > { %v6171_v42 = vpop.eup %6170  ;;  %v8732_v51 = vadd.s32 %v8143_v39, %v4309_v46  ;;  %v2949_v45 = vadd.f32 %v8176_v62, %v8122_v10  ;;  %6180 = vtanh.f32 %v3517_v32  ;;  %v4099_v48 = vmul.f32 %v3875_v52, %v3875_v52 }
 0x5e5   : > { %v4704_v47 = vadd.f32 %v4703_v24, %v4481_v9  ;;  %v4098_v9 = vmul.f32 %v3874_v40, %v3874_v40  ;;  %10098 = vst [vmem:[#allocation164_spill] sm:$0xff] %v8725_v56  ;;  %v4484_v40 = vsel %vm4373_vm2, %v4097_v6, 0.0  ;;  %v8741_v63 = vadd.f32 %v8535_v27, %v8479_v5 }
 0x5e6   : > { %v8700_v21 = vpop.f32.mrb[232].mxu1  ;;  %v3878_v46 = vsub.f32 %v6596_v44, %v6171_v42  ;;  %6182 = vtanh.f32 %v2947_v20  ;;  %v3140_v62 = vadd.f32 %v8173_v60, %v8119_v13  ;;  %v8754_v27 = vadd.f32 %v8576_v3, %v8479_v5  ;;  %v10102_v60 = vld [vmem:[#allocation21_spill] sm:$0xff] }
 0x5e7   : > { %v8705_v28 = vpop.f32.mrb[233].mxu1  ;;  %v4705_v24 = vadd.f32 %v4704_v47, %v4482_v34  ;;  %v6173_v47 = vpop.eup %6172  ;;  %v3877_v34 = vsub.f32 %v6595_v53, %v6169_v61  ;;  %10099 = vst [vmem:[#allocation165_spill] sm:$0xff] %v8741_v63  ;;  %v4485_v6 = vsel %vm4373_vm2, %v4098_v9, 0.0  ;;  %v8750_v61 = vadd.f32 %v8544_v31, %v8479_v5  ;;  %v6597_v9 = vld [vmem:[%s7469_s20 + $0xb8] sm:$0xff] }
 0x5e8   : > { %v8714_v25 = vpop.f32.mrb[234].mxu1  ;;  %v6175_v2 = vpop.eup %6174  ;;  %10101 = vst [vmem:[#allocation167_spill] sm:$0xff] %v8754_v27  ;;  %vm4374_vm3 = vcmp.lt.s32.totalorder %v8732_v51, 300  ;;  %6184 = vtanh.f32 %v2949_v45  ;;  %v3142_v42 = vadd.f32 %v10102_v60, %v8125_v33  ;;  %v4486_v31 = vsel %vm4373_vm2, %v4099_v48, 0.0  ;;  %v6598_v45 = vld [vmem:[%s7469_s20 + $0xc0] sm:$0xff] }
 0x5e9   : > { %v8720_v58 = vpop.f32.mrb[235].mxu1  ;;  %v4706_v43 = vadd.f32 %v4705_v24, %v4483_v8  ;;  %v4100_v8 = vmul.f32 %v3876_v41, %v3876_v41  ;;  %10100 = vst [vmem:[#allocation166_spill] sm:$0xff] %v8750_v61  ;;  %v4101_v41 = vmul.f32 %v3877_v34, %v3877_v34  ;;  %v8768_v3 = vadd.f32 %v8585_v22, %v8479_v5  ;;  %v6604_v61 = vld [vmem:[%s7469_s20 + $0xf0] sm:$0xff] }
 0x5ea   : > { %v6177_v53 = vpop.eup %6176  ;;  %v3880_v44 = vsub.f32 %v6598_v45, %v6175_v2  ;;  %6186 = vtanh.f32 %v3140_v62  ;;  %v8781_v22 = vadd.f32 %v8594_v18, %v8479_v5 }
 0x5eb   : > { %v4707_v32 = vadd.f32 %v4706_v43, %v4484_v40  ;;  %v3879_v43 = vsub.f32 %v6597_v9, %v6173_v47  ;;  %10103 = vst [vmem:[#allocation21_spill] sm:$0xff] %v8768_v3  ;;  %v4102_v47 = vmul.f32 %v3878_v46, %v3878_v46  ;;  %v4487_v48 = vsel %vm4373_vm2, %v4100_v8, 0.0  ;;  %v6599_v8 = vld [vmem:[%s7469_s20 + $0xc8] sm:$0xff] }
 0x5ec   : > { %v8785_v9 = vadd.f32 %v8605_v0, %v8479_v5  ;;  %v6179_v2 = vpop.eup %6178  ;;  %6188 = vtanh.f32 %v3142_v42  ;;  %v4488_v46 = vsel %vm4374_vm3, %v4101_v41, 0.0  ;;  %v3881_v45 = vsub.f32 %v6599_v8, %v6177_v53  ;;  %v10110_v8 = vld [vmem:[#allocation24_spill] sm:$0xff] }
 0x5ed   : > { %v4708_v20 = vadd.f32 %v4707_v32, %v4485_v6  ;;  %v10104_v6 = vld [vmem:[#allocation131_spill] sm:$0xff]  ;;  %v4103_v36 = vmul.f32 %v3879_v43, %v3879_v43  ;;  %v4489_v0 = vsel %vm4374_vm3, %v4102_v47, 0.0  ;;  %v4104_v42 = vmul.f32 %v3880_v44, %v3880_v44  ;;  %v10109_v43 = vld [vmem:[#allocation22_spill] sm:$0xff] }
 0x5ee   : > { %v8756_v52 = vpop.f32.mrb[236].mxu1  ;;  %v3333_v34 = vadd.f32 %v10104_v6, %v8472_v23  ;;  %10105 = vst [vmem:[#allocation131_spill] sm:$0xff] %v8781_v22  ;;  %10106 = vst [vmem:[#allocation168_spill] sm:$0xff] %v8785_v9  ;;  %v6181_v6 = vpop.eup %6180  ;;  %v10108_v22 = vld [vmem:[#allocation130_spill] sm:$0xff]  ;;  %v4310_v41 = vadd.s32 32, %v8105_v14  ;;  %v2951_v53 = vadd.f32 %v10109_v43, %v8116_v12  ;;  %v4105_v47 = vmul.f32 %v3881_v45, %v3881_v45 }
 0x5ef   : > { %v8761_v24 = vpop.f32.mrb[237].mxu1  ;;  %v4709_v32 = vadd.f32 %v4708_v20, %v4486_v31  ;;  %v10107_v20 = vld [vmem:[#allocation132_spill] sm:$0xff]  ;;  %v3522_v27 = vadd.f32 %v10108_v22, %v8479_v5  ;;  %v4490_v5 = vsel %vm4374_vm3, %v4103_v36, 0.0 }
 0x5f0   : > { %v8770_v40 = vpop.f32.mrb[238].mxu1  ;;  %v3335_v31 = vadd.f32 %v10107_v20, %v8496_v30  ;;  %6190 = vtanh.f32 %v3333_v34  ;;  %v6183_v9 = vpop.eup %6182  ;;  %v6601_v34 = vld [vmem:[%s7469_s20 + $0xd8] sm:$0xff]  ;;  %v8817_v45 = vadd.s32 %v8143_v39, %v4310_v41  ;;  %v4492_v56 = vsel %vm4374_vm3, %v4105_v47, 0.0  ;;  %v10114_v47 = vld [vmem:[#allocation133_spill] sm:$0xff] }
 0x5f1   : > { %v8775_v60 = vpop.f32.mrb[239].mxu1  ;;  %v4710_v62 = vadd.f32 %v4709_v32, %v4487_v48  ;;  %v6600_v32 = vld [vmem:[%s7469_s20 + $0xd0] sm:$0xff]  ;;  %v3883_v44 = vsub.f32 %v6601_v34, %v6181_v6  ;;  %v10111_v34 = vld [vmem:[#allocation23_spill] sm:$0xff] }
 0x5f2   : > { %v3882_v48 = vsub.f32 %v6600_v32, %v6179_v2  ;;  %6192 = vtanh.f32 %v3335_v31  ;;  %v6185_v2 = vpop.eup %6184  ;;  %v2953_v32 = vadd.f32 %v10110_v8, %v8122_v10  ;;  %v4491_v31 = vsel %vm4374_vm3, %v4104_v42, 0.0 }
 0x5f3   : > { %v4711_v18 = vadd.f32 %v4710_v62, %v4488_v46  ;;  %6194 = vtanh.f32 %v3522_v27  ;;  %v3144_v63 = vadd.f32 %v10111_v34, %v8119_v13  ;;  %vm4375_vm4 = vcmp.lt.s32.totalorder %v8817_v45, 300 }
 0x5f4   : > { %v4106_v36 = vmul.f32 %v3882_v48, %v3882_v48  ;;  %v6187_v6 = vpop.eup %6186  ;;  %6196 = vtanh.f32 %v2951_v53 }
 0x5f5   : > { %v4712_v62 = vadd.f32 %v4711_v18, %v4489_v0  ;;  %v6602_v18 = vld [vmem:[%s7469_s20 + $0xe0] sm:$0xff]  ;;  %6198 = vtanh.f32 %v2953_v32  ;;  %v3886_v53 = vsub.f32 %v6604_v61, %v6187_v6  ;;  %v3337_v32 = vadd.f32 %v10114_v47, %v8472_v23 }
 0x5f6   : > { %v8797_v20 = vpop.f32.mrb[240].mxu1  ;;  %v3884_v0 = vsub.f32 %v6602_v18, %v6183_v9  ;;  %v6189_v42 = vpop.eup %6188  ;;  %v10112_v9 = vld [vmem:[#allocation25_spill] sm:$0xff]  ;;  %v4493_v34 = vsel %vm4374_vm3, %v4106_v36, 0.0  ;;  %6200 = vtanh.f32 %v3144_v63  ;;  %v10117_v63 = vld [vmem:[#allocation134_spill] sm:$0xff] }
 0x5f7   : > { %v8802_v46 = vpop.f32.mrb[241].mxu1  ;;  %v4713_v3 = vadd.f32 %v4712_v62, %v4490_v5  ;;  %v6603_v62 = vld [vmem:[%s7469_s20 + $0xe8] sm:$0xff]  ;;  %v4107_v5 = vmul.f32 %v3883_v44, %v3883_v44  ;;  %v3146_v48 = vadd.f32 %v10112_v9, %v8125_v33  ;;  %v3339_v9 = vadd.f32 %v10117_v63, %v8496_v30 }
 0x5f8   : > { %v8807_v22 = vpop.f32.mrb[242].mxu1  ;;  %v3885_v27 = vsub.f32 %v6603_v62, %v6185_v2  ;;  %v4108_v41 = vmul.f32 %v3884_v0, %v3884_v0  ;;  %v6605_v0 = vld [vmem:[%s7469_s20 + $0xf8] sm:$0xff]  ;;  %v4311_v63 = vadd.s32 40, %v8105_v14 }
 0x5f9   : > { %v8811_v43 = vpop.f32.mrb[243].mxu1  ;;  %v4714_v8 = vadd.f32 %v4713_v3, %v4491_v31  ;;  %v4494_v61 = vsel %vm4374_vm3, %v4107_v5, 0.0  ;;  %6202 = vtanh.f32 %v3146_v48 }
 0x5fa   : > { %v6191_v2 = vpop.eup %6190  ;;  %6204 = vtanh.f32 %v3337_v32 }
 0x5fb   : > { %v4715_v18 = vadd.f32 %v4714_v8, %v4492_v56  ;;  %v4109_v56 = vmul.f32 %v3885_v27, %v3885_v27  ;;  %v3887_v8 = vsub.f32 %v6605_v0, %v6189_v42  ;;  %v4110_v27 = vmul.f32 %v3886_v53, %v3886_v53  ;;  %v6606_v42 = vld [vmem:[%s7469_s20 + $0x100] sm:$0xff] }
 0x5fc   : > { %v6193_v6 = vpop.eup %6192  ;;  %v3888_v47 = vsub.f32 %v6606_v42, %v6191_v2  ;;  %6206 = vtanh.f32 %v3339_v9 }
 0x5fd   : > { %v4716_v44 = vadd.f32 %v4715_v18, %v4493_v34  ;;  %v4495_v34 = vsel %vm4375_vm4, %v4108_v41, 0.0  ;;  %v6195_v51 = vpop.eup %6194  ;;  %v4496_v0 = vsel %vm4375_vm4, %v4109_v56, 0.0  ;;  %v4111_v48 = vmul.f32 %v3887_v8, %v3887_v8  ;;  %v10121_v8 = vld [vmem:[#allocation28_spill] sm:$0xff] }
 0x5fe   : > { %v8829_v3 = vpop.f32.mrb[244].mxu1  ;;  %v4497_v2 = vsel %vm4375_vm4, %v4110_v27, 0.0  ;;  %6208 = vtanh.f32 %v8521_v1 }
 0x5ff   : > { %10113 = vst [vmem:[#allocation132_spill] sm:$0xff] %v8829_v3  ;;  %v8834_v31 = vpop.f32.mrb[245].mxu1  ;;  %v4717_v62 = vadd.f32 %v4716_v44, %v4494_v61  ;;  %v6607_v44 = vld [vmem:[%s7469_s20 + $0x108] sm:$0xff]  ;;  %v4498_v9 = vsel %vm4375_vm4, %v4111_v48, 0.0 }
 0x600   : > { %10115 = vst [vmem:[#allocation130_spill] sm:$0xff] %v8834_v31  ;;  %v8839_v36 = vpop.f32.mrb[246].mxu1  ;;  %v3889_v61 = vsub.f32 %v6607_v44, %v6193_v6  ;;  %v2959_v6 = vadd.f32 %v10121_v8, %v8122_v10  ;;  %v6610_v8 = vld [vmem:[%s7469_s20 + $0x120] sm:$0xff] }
 0x601   : > { %10116 = vst [vmem:[#allocation22_spill] sm:$0xff] %v8839_v36  ;;  %v8843_v18 = vpop.f32.mrb[247].mxu1  ;;  %v4718_v5 = vadd.f32 %v4717_v62, %v4495_v34  ;;  %v6197_v36 = vpop.eup %6196  ;;  %v6608_v62 = vld [vmem:[%s7469_s20 + $0x110] sm:$0xff]  ;;  %v4112_v34 = vmul.f32 %v3888_v47, %v3888_v47 }
 0x602   : > { %10118 = vst [vmem:[#allocation24_spill] sm:$0xff] %v8843_v18  ;;  %v10119_v18 = vld [vmem:[#allocation26_spill] sm:$0xff]  ;;  %v3890_v32 = vsub.f32 %v6608_v62, %v6195_v51  ;;  %v6199_v56 = vpop.eup %6198 }
 0x603   : > { %v2957_v41 = vadd.f32 %v10119_v18, %v8116_v12  ;;  %v4719_v53 = vadd.f32 %v4718_v5, %v4496_v0  ;;  %v6609_v18 = vld [vmem:[%s7469_s20 + $0x118] sm:$0xff]  ;;  %v4113_v5 = vmul.f32 %v3889_v61, %v3889_v61  ;;  %v6201_v47 = vpop.eup %6200  ;;  %v8870_v0 = vadd.s32 %v8143_v39, %v4311_v63 }
 0x604   : > { %v3891_v27 = vsub.f32 %v6609_v18, %v6197_v36  ;;  %v4114_v48 = vmul.f32 %v3890_v32, %v3890_v32  ;;  %v4499_v36 = vsel %vm4375_vm4, %v4112_v34, 0.0  ;;  %v6203_v61 = vpop.eup %6202  ;;  %v10125_v18 = vld [vmem:[#allocation29_spill] sm:$0xff]  ;;  %v10126_v34 = vld [vmem:[#allocation135_spill] sm:$0xff] }
 0x605   : > { %v4720_v44 = vadd.f32 %v4719_v53, %v4497_v2  ;;  %6210 = vtanh.f32 %v2957_v41  ;;  %v10124_v53 = vld [vmem:[#allocation27_spill] sm:$0xff]  ;;  %v3152_v63 = vadd.f32 %v10125_v18, %v8125_v33  ;;  %vm4376_vm5 = vcmp.lt.s32.totalorder %v8870_v0, 300 }
 0x606   : > { %v8857_v42 = vpop.f32.mrb[248].mxu1  ;;  %v3150_v2 = vadd.f32 %v10124_v53, %v8119_v13  ;;  %6212 = vtanh.f32 %v2959_v6  ;;  %v4115_v41 = vmul.f32 %v3891_v27, %v3891_v27  ;;  %v6612_v53 = vld [vmem:[%s7469_s20 + $0x130] sm:$0xff]  ;;  %v4501_v27 = vsel %vm4375_vm4, %v4114_v48, 0.0  ;;  %v6613_v18 = vld [vmem:[%s7469_s20 + $0x138] sm:$0xff] }
 0x607   : > { %10120 = vst [vmem:[#allocation23_spill] sm:$0xff] %v8857_v42  ;;  %v8862_v31 = vpop.f32.mrb[249].mxu1  ;;  %v4721_v1 = vadd.f32 %v4720_v44, %v4498_v9  ;;  %v6611_v42 = vld [vmem:[%s7469_s20 + $0x128] sm:$0xff]  ;;  %v4500_v44 = vsel %vm4375_vm4, %v4113_v5, 0.0  ;;  %v6205_v9 = vpop.eup %6204 }
 0x608   : > { %10122 = vst [vmem:[#allocation25_spill] sm:$0xff] %v8862_v31  ;;  %v8867_v51 = vpop.f32.mrb[250].mxu1  ;;  %v3892_v31 = vsub.f32 %v6610_v8, %v6199_v56  ;;  %v3893_v3 = vsub.f32 %v6611_v42, %v6201_v47  ;;  %6214 = vtanh.f32 %v3150_v2  ;;  %v3343_v56 = vadd.f32 %v10126_v34, %v8472_v23  ;;  %v6207_v42 = vpop.eup %6206  ;;  %v10127_v47 = vld [vmem:[#allocation136_spill] sm:$0xff] }
 0x609   : > { %10123 = vst [vmem:[#allocation133_spill] sm:$0xff] %v8867_v51  ;;  %v8874_v62 = vpop.f32.mrb[251].mxu1  ;;  %v4722_v51 = vadd.f32 %v4721_v1, %v4499_v36  ;;  %v3894_v8 = vsub.f32 %v6612_v53, %v6203_v61  ;;  %6216 = vtanh.f32 %v3152_v63  ;;  %v3345_v36 = vadd.f32 %v10127_v47, %v8496_v30  ;;  %v6209_v48 = vpop.eup %6208  ;;  %v6614_v53 = vld [vmem:[%s7469_s20 + $0x140] sm:$0xff] }
 0x60a   : > { %v4116_v6 = vmul.f32 %v3892_v31, %v3892_v31  ;;  %v4117_v31 = vmul.f32 %v3893_v3, %v3893_v3  ;;  %v3895_v61 = vsub.f32 %v6613_v18, %v6205_v9  ;;  %6218 = vtanh.f32 %v3343_v56 }
 0x60b   : > { %v4723_v32 = vadd.f32 %v4722_v51, %v4500_v44  ;;  %v4502_v51 = vsel %vm4376_vm5, %v4115_v41, 0.0  ;;  %v4312_v3 = vadd.s32 48, %v8105_v14  ;;  %v10131_v41 = vld [vmem:[#allocation30_spill] sm:$0xff]  ;;  %6220 = vtanh.f32 %v3345_v36 }
 0x60c   : > { %v4503_v63 = vsel %vm4376_vm5, %v4116_v6, 0.0  ;;  %v2961_v9 = vadd.f32 %v10131_v41, %v8116_v12  ;;  %v4504_v56 = vsel %vm4376_vm5, %v4117_v31, 0.0  ;;  %6222 = vtanh.f32 %v8509_v26  ;;  %v6616_v41 = vld [vmem:[%s7469_s20 + $0x150] sm:$0xff] }
 0x60d   : > { %v4724_v5 = vadd.f32 %v4723_v32, %v4501_v27  ;;  %v4118_v32 = vmul.f32 %v3894_v8, %v3894_v8  ;;  %v3896_v27 = vsub.f32 %v6614_v53, %v6207_v42  ;;  %v10132_v8 = vld [vmem:[#allocation32_spill] sm:$0xff]  ;;  %v8919_v31 = vadd.s32 %v8143_v39, %v4312_v3 }
 0x60e   : > { %v8890_v1 = vpop.f32.mrb[252].mxu1  ;;  %6224 = vtanh.f32 %v2961_v9 }
 0x60f   : > { %v8894_v2 = vpop.f32.mrb[253].mxu1  ;;  %v4725_v44 = vadd.f32 %v4724_v5, %v4502_v51  ;;  %v6211_v47 = vpop.eup %6210  ;;  %v6615_v5 = vld [vmem:[%s7469_s20 + $0x148] sm:$0xff]  ;;  %v4505_v53 = vsel %vm4376_vm5, %v4118_v32, 0.0  ;;  %v4120_v36 = vmul.f32 %v3896_v27, %v3896_v27  ;;  %vm4377_vm6 = vcmp.lt.s32.totalorder %v8919_v31, 300 }
 0x610   : > { %10128 = vst [vmem:[#allocation134_spill] sm:$0xff] %v8894_v2  ;;  %v8899_v45 = vpop.f32.mrb[254].mxu1  ;;  %v3897_v51 = vsub.f32 %v6615_v5, %v6209_v48  ;;  %v6213_v6 = vpop.eup %6212  ;;  %v10134_v27 = vld [vmem:[#allocation33_spill] sm:$0xff] }
 0x611   : > { %10129 = vst [vmem:[#allocation26_spill] sm:$0xff] %v8899_v45  ;;  %v8901_v34 = vpop.f32.mrb[255].mxu1  ;;  %v4726_v18 = vadd.f32 %v4725_v44, %v4503_v63  ;;  %v2963_v45 = vadd.f32 %v10132_v8, %v8122_v10  ;;  %v3898_v44 = vsub.f32 %v6616_v41, %v6211_v47  ;;  %v6617_v8 = vld [vmem:[%s7469_s20 + $0x158] sm:$0xff]  ;;  %v3156_v47 = vadd.f32 %v10134_v27, %v8125_v33  ;;  %v6618_v41 = vld [vmem:[%s7469_s20 + $0x160] sm:$0xff] }
 0x612   : > { %10130 = vst [vmem:[#allocation28_spill] sm:$0xff] %v8901_v34  ;;  %v4119_v34 = vmul.f32 %v3895_v61, %v3895_v61  ;;  %v6215_v63 = vpop.eup %6214  ;;  %v10133_v61 = vld [vmem:[#allocation31_spill] sm:$0xff]  ;;  %v3899_v2 = vsub.f32 %v6617_v8, %v6213_v6  ;;  %v4121_v26 = vmul.f32 %v3897_v51, %v3897_v51 }
 0x613   : > { %v4727_v42 = vadd.f32 %v4726_v18, %v4504_v56  ;;  %v3154_v48 = vadd.f32 %v10133_v61, %v8119_v13  ;;  %v6217_v18 = vpop.eup %6216  ;;  %6226 = vtanh.f32 %v2963_v45  ;;  %v4122_v3 = vmul.f32 %v3898_v44, %v3898_v44 }
 0x614   : > { %v4506_v32 = vsel %vm4376_vm5, %v4119_v34, 0.0  ;;  %v3900_v9 = vsub.f32 %v6618_v41, %v6215_v63  ;;  %v4507_v61 = vsel %vm4376_vm5, %v4120_v36, 0.0  ;;  %v10135_v34 = vld [vmem:[#allocation137_spill] sm:$0xff]  ;;  %v4123_v45 = vmul.f32 %v3899_v2, %v3899_v2  ;;  %v10136_v36 = vld [vmem:[#allocation138_spill] sm:$0xff] }
 0x615   : > { %v4728_v5 = vadd.f32 %v4727_v42, %v4505_v53  ;;  %v6219_v42 = vpop.eup %6218  ;;  %6228 = vtanh.f32 %v3154_v48  ;;  %v3347_v6 = vadd.f32 %v10135_v34, %v8472_v23  ;;  %v6619_v53 = vld [vmem:[%s7469_s20 + $0x168] sm:$0xff]  ;;  %v4508_v44 = vsel %vm4376_vm5, %v4121_v26, 0.0 }
 0x616   : > { %v3901_v8 = vsub.f32 %v6619_v53, %v6217_v18  ;;  %v6221_v63 = vpop.eup %6220  ;;  %6230 = vtanh.f32 %v3156_v47  ;;  %v4509_v48 = vsel %vm4377_vm6, %v4122_v3, 0.0  ;;  %v4124_v27 = vmul.f32 %v3900_v9, %v3900_v9  ;;  %v6621_v18 = vld [vmem:[%s7469_s20 + $0x178] sm:$0xff] }
 0x617   : > { %v4729_v56 = vadd.f32 %v4728_v5, %v4506_v32  ;;  %v3349_v32 = vadd.f32 %v10136_v36, %v8496_v30  ;;  %v6223_v2 = vpop.eup %6222  ;;  %6232 = vtanh.f32 %v3347_v6  ;;  %v4510_v0 = vsel %vm4377_vm6, %v4123_v45, 0.0  ;;  %v10137_v53 = vld [vmem:[#allocation34_spill] sm:$0xff] }
 0x618   : > { %v4125_v26 = vmul.f32 %v3901_v8, %v3901_v8  ;;  %v3903_v47 = vsub.f32 %v6621_v18, %v6221_v63  ;;  %v4313_v34 = vadd.s32 56, %v8105_v14  ;;  %v2967_v3 = vadd.f32 %v10137_v53, %v8116_v12  ;;  %v10138_v8 = vld [vmem:[#allocation36_spill] sm:$0xff]  ;;  %v6624_v53 = vld [vmem:[%s7469_s20 + $0x190] sm:$0xff] }
 0x619   : > { %v4730_v51 = vadd.f32 %v4729_v56, %v4507_v61  ;;  %v6620_v56 = vld [vmem:[%s7469_s20 + $0x170] sm:$0xff]  ;;  %6234 = vtanh.f32 %v3349_v32  ;;  %v2969_v36 = vadd.f32 %v10138_v8, %v8122_v10  ;;  %v6625_v8 = vld [vmem:[%s7469_s20 + $0x198] sm:$0xff] }
 0x61a   : > { %v3902_v41 = vsub.f32 %v6620_v56, %v6219_v42  ;;  %v4511_v42 = vsel %vm4377_vm6, %v4124_v27, 0.0  ;;  %6236 = vtanh.f32 %v8512_v49  ;;  %v6623_v56 = vld [vmem:[%s7469_s20 + $0x188] sm:$0xff]  ;;  %v4127_v32 = vmul.f32 %v3903_v47, %v3903_v47 }
 0x61b   : > { %v4731_v5 = vadd.f32 %v4730_v51, %v4508_v44  ;;  %v6225_v51 = vpop.eup %6224  ;;  %v6622_v44 = vld [vmem:[%s7469_s20 + $0x180] sm:$0xff]  ;;  %v8958_v27 = vadd.s32 %v8143_v39, %v4313_v34  ;;  %6238 = vtanh.f32 %v2967_v3  ;;  %v10140_v47 = vld [vmem:[#allocation37_spill] sm:$0xff] }
 0x61c   : > { %v3904_v6 = vsub.f32 %v6622_v44, %v6223_v2  ;;  %6240 = vtanh.f32 %v2969_v36 }
 0x61d   : > { %v4732_v61 = vadd.f32 %v4731_v5, %v4509_v48  ;;  %v4126_v5 = vmul.f32 %v3902_v41, %v3902_v41  ;;  %v6227_v45 = vpop.eup %6226  ;;  %v4512_v48 = vsel %vm4377_vm6, %v4125_v26, 0.0  ;;  %v10139_v41 = vld [vmem:[#allocation35_spill] sm:$0xff]  ;;  %vm4378_vm7 = vcmp.lt.s32.totalorder %v8958_v27, 300 }
 0x61e   : > { %v3160_v2 = vadd.f32 %v10139_v41, %v8119_v13  ;;  %v3906_v44 = vsub.f32 %v6624_v53, %v6227_v45  ;;  %v4128_v49 = vmul.f32 %v3904_v6, %v3904_v6 }
 0x61f   : > { %v4733_v9 = vadd.f32 %v4732_v61, %v4510_v0  ;;  %v3905_v61 = vsub.f32 %v6623_v56, %v6225_v51  ;;  %v6229_v0 = vpop.eup %6228  ;;  %v4513_v26 = vsel %vm4377_vm6, %v4126_v5, 0.0  ;;  %v3162_v51 = vadd.f32 %v10140_v47, %v8125_v33  ;;  %v10141_v5 = vld [vmem:[#allocation139_spill] sm:$0xff]  ;;  %v6627_v47 = vld [vmem:[%s7469_s20 + $0x1a8] sm:$0xff] }
 0x620   : > { %v3907_v3 = vsub.f32 %v6625_v8, %v6229_v0  ;;  %v4514_v56 = vsel %vm4377_vm6, %v4127_v32, 0.0  ;;  %6242 = vtanh.f32 %v3160_v2  ;;  %v3353_v45 = vadd.f32 %v10141_v5, %v8472_v23  ;;  %v10142_v32 = vld [vmem:[#allocation140_spill] sm:$0xff]  ;;  %v10143_v5 = vld [vmem:[#allocation38_spill] sm:$0xff] }
 0x621   : > { %v4734_v63 = vadd.f32 %v4733_v9, %v4511_v42  ;;  %v6231_v9 = vpop.eup %6230  ;;  %v4129_v34 = vmul.f32 %v3905_v61, %v3905_v61  ;;  %v4130_v36 = vmul.f32 %v3906_v44, %v3906_v44  ;;  %v4515_v61 = vsel %vm4377_vm6, %v4128_v49, 0.0 }
 0x622   : > { %6244 = vtanh.f32 %v3162_v51  ;;  %v3355_v53 = vadd.f32 %v10142_v32, %v8496_v30 }
 0x623   : > { %v4735_v18 = vadd.f32 %v4734_v63, %v4512_v48  ;;  %v6233_v63 = vpop.eup %6232  ;;  %v6626_v48 = vld [vmem:[%s7469_s20 + $0x1a0] sm:$0xff]  ;;  %v4516_v2 = vsel %vm4378_vm7, %v4129_v34, 0.0  ;;  %6246 = vtanh.f32 %v3353_v45  ;;  %v4517_v31 = vsel %vm4378_vm7, %v4130_v36, 0.0 }
 0x624   : > { %v3908_v41 = vsub.f32 %v6626_v48, %v6231_v9  ;;  %v6235_v0 = vpop.eup %6234  ;;  %v6628_v9 = vld [vmem:[%s7469_s20 + $0x1b0] sm:$0xff]  ;;  %v2971_v34 = vadd.f32 %v10143_v5, %v8116_v12  ;;  %6248 = vtanh.f32 %v3355_v53  ;;  %v6629_v48 = vld [vmem:[%s7469_s20 + $0x1b8] sm:$0xff] }
 0x625   : > { %v4736_v42 = vadd.f32 %v4735_v18, %v4513_v26  ;;  %v4131_v26 = vmul.f32 %v3907_v3, %v3907_v3  ;;  %v6237_v44 = vpop.eup %6236  ;;  %v3910_v51 = vsub.f32 %v6628_v9, %v6235_v0  ;;  %6250 = vtanh.f32 %v8531_v55  ;;  %v6631_v9 = vld [vmem:[%s7469_s20 + $0x1c8] sm:$0xff] }
 0x626   : > { %v4132_v49 = vmul.f32 %v3908_v41, %v3908_v41  ;;  %v3911_v45 = vsub.f32 %v6629_v48, %v6237_v44  ;;  %v10144_v41 = vld [vmem:[#allocation40_spill] sm:$0xff]  ;;  %6252 = vtanh.f32 %v2971_v34  ;;  %v6632_v48 = vld [vmem:[%s7469_s20 + $0x1d0] sm:$0xff] }
 0x627   : > { %v4737_v6 = vadd.f32 %v4736_v42, %v4514_v56  ;;  %v3909_v42 = vsub.f32 %v6627_v47, %v6233_v63  ;;  %v6239_v56 = vpop.eup %6238  ;;  %v4518_v63 = vsel %vm4378_vm7, %v4131_v26, 0.0  ;;  %v4134_v53 = vmul.f32 %v3910_v51, %v3910_v51  ;;  %v10146_v51 = vld [vmem:[#allocation41_spill] sm:$0xff] }
 0x628   : > { %v6241_v36 = vpop.eup %6240  ;;  %v4519_v32 = vsel %vm4378_vm7, %v4132_v49, 0.0  ;;  %v4135_v55 = vmul.f32 %v3911_v45, %v3911_v45 }
 0x629   : > { %v4738_v18 = vadd.f32 %v4737_v6, %v4515_v61  ;;  %v4314_v6 = vadd.s32 64, %v8105_v14  ;;  %v4133_v61 = vmul.f32 %v3909_v42, %v3909_v42  ;;  %v10145_v42 = vld [vmem:[#allocation39_spill] sm:$0xff]  ;;  %v3913_v5 = vsub.f32 %v6631_v9, %v6241_v36 }
 0x62a   : > { %v3164_v44 = vadd.f32 %v10145_v42, %v8119_v13 }
 0x62b   : > { %v4739_v8 = vadd.f32 %v4738_v18, %v4516_v2  ;;  %v2973_v18 = vadd.f32 %v10144_v41, %v8122_v10  ;;  %v6630_v2 = vld [vmem:[%s7469_s20 + $0x1c0] sm:$0xff]  ;;  %v8997_v26 = vadd.s32 %v8143_v39, %v4314_v6  ;;  %v4520_v49 = vsel %vm4378_vm7, %v4133_v61, 0.0  ;;  %v10147_v61 = vld [vmem:[#allocation141_spill] sm:$0xff] }
 0x62c   : > { %v3912_v47 = vsub.f32 %v6630_v2, %v6239_v56  ;;  %v3166_v56 = vadd.f32 %v10146_v51, %v8125_v33  ;;  %v4521_v41 = vsel %vm4378_vm7, %v4134_v53, 0.0  ;;  %v3357_v36 = vadd.f32 %v10147_v61, %v8472_v23  ;;  %v10148_v53 = vld [vmem:[#allocation142_spill] sm:$0xff] }
 0x62d   : > { %v4740_v3 = vadd.f32 %v4739_v8, %v4517_v31  ;;  %v6243_v8 = vpop.eup %6242  ;;  %6254 = vtanh.f32 %v2973_v18  ;;  %vm4379_vm8 = vcmp.lt.s32.totalorder %v8997_v26, 300  ;;  %v4137_v18 = vmul.f32 %v3913_v5, %v3913_v5  ;;  %v6636_v61 = vld [vmem:[%s7469_s20 + $0x1f0] sm:$0xff] }
 0x62e   : > { %v4136_v6 = vmul.f32 %v3912_v47, %v3912_v47  ;;  %v3914_v34 = vsub.f32 %v6632_v48, %v6243_v8  ;;  %6256 = vtanh.f32 %v3164_v44  ;;  %v4522_v47 = vsel %vm4378_vm7, %v4135_v55, 0.0 }
 0x62f   : > { %v4741_v0 = vadd.f32 %v4740_v3, %v4518_v63  ;;  %v6245_v3 = vpop.eup %6244  ;;  %6258 = vtanh.f32 %v3166_v56  ;;  %v4524_v27 = vsel %vm4379_vm8, %v4137_v18, 0.0 }
 0x630   : > { %v4523_v44 = vsel %vm4379_vm8, %v4136_v6, 0.0  ;;  %v4138_v9 = vmul.f32 %v3914_v34, %v3914_v34  ;;  %6260 = vtanh.f32 %v3357_v36 }
 0x631   : > { %v4742_v31 = vadd.f32 %v4741_v0, %v4519_v32  ;;  %v6247_v0 = vpop.eup %6246  ;;  %v6633_v32 = vld [vmem:[%s7469_s20 + $0x1d8] sm:$0xff] }
 0x632   : > { %v3915_v2 = vsub.f32 %v6633_v32, %v6245_v3  ;;  %v6249_v8 = vpop.eup %6248  ;;  %v6635_v3 = vld [vmem:[%s7469_s20 + $0x1e8] sm:$0xff] }
 0x633   : > { %v4743_v63 = vadd.f32 %v4742_v31, %v4520_v49  ;;  %v3359_v31 = vadd.f32 %v10148_v53, %v8496_v30  ;;  %v6634_v49 = vld [vmem:[%s7469_s20 + $0x1e0] sm:$0xff]  ;;  %v6251_v5 = vpop.eup %6250  ;;  %v3917_v56 = vsub.f32 %v6635_v3, %v6249_v8  ;;  %v6637_v53 = vld [vmem:[%s7469_s20 + $0x1f8] sm:$0xff] }
 0x634   : > { %v3916_v51 = vsub.f32 %v6634_v49, %v6247_v0  ;;  %v4139_v55 = vmul.f32 %v3915_v2, %v3915_v2  ;;  %v6253_v48 = vpop.eup %6252  ;;  %v4525_v0 = vsel %vm4379_vm8, %v4138_v9, 0.0  ;;  %v3918_v36 = vsub.f32 %v6636_v61, %v6251_v5  ;;  %v10150_v2 = vld [vmem:[#allocation44_spill] sm:$0xff] }
 0x635   : > { %v4744_v45 = vadd.f32 %v4743_v63, %v4521_v41  ;;  %v4315_v41 = vadd.s32 72, %v8105_v14  ;;  %6262 = vtanh.f32 %v3359_v31  ;;  %v4141_v31 = vmul.f32 %v3917_v56, %v3917_v56  ;;  %v10152_v56 = vld [vmem:[#allocation45_spill] sm:$0xff] }
 0x636   : > { %v4140_v32 = vmul.f32 %v3916_v51, %v3916_v51  ;;  %6264 = vtanh.f32 %v8547_v15  ;;  %v10151_v51 = vld [vmem:[#allocation43_spill] sm:$0xff]  ;;  %v4142_v15 = vmul.f32 %v3918_v36, %v3918_v36 }
 0x637   : > { %v4745_v42 = vadd.f32 %v4744_v45, %v4522_v47  ;;  %v10149_v45 = vld [vmem:[#allocation42_spill] sm:$0xff]  ;;  %v6255_v18 = vpop.eup %6254  ;;  %v2979_v47 = vadd.f32 %v10150_v2, %v8122_v10  ;;  %v9036_v9 = vadd.s32 %v8143_v39, %v4315_v41  ;;  %v3170_v5 = vadd.f32 %v10151_v51, %v8119_v13 }
 0x638   : > { %v2977_v6 = vadd.f32 %v10149_v45, %v8116_v12  ;;  %v6257_v49 = vpop.eup %6256  ;;  %v4528_v61 = vsel %vm4379_vm8, %v4141_v31, 0.0  ;;  %v10154_v31 = vld [vmem:[#allocation144_spill] sm:$0xff] }
 0x639   : > { %v4746_v63 = vadd.f32 %v4745_v42, %v4523_v44  ;;  %v4526_v42 = vsel %vm4379_vm8, %v4139_v55, 0.0  ;;  %v3919_v44 = vsub.f32 %v6637_v53, %v6253_v48  ;;  %v4527_v55 = vsel %vm4379_vm8, %v4140_v32, 0.0  ;;  %v6259_v45 = vpop.eup %6258  ;;  %v10153_v32 = vld [vmem:[#allocation143_spill] sm:$0xff] }
 0x63a   : > { %6266 = vtanh.f32 %v2977_v6  ;;  %v3172_v48 = vadd.f32 %v10152_v56, %v8125_v33  ;;  %v6261_v2 = vpop.eup %6260  ;;  %vm4380_vm9 = vcmp.lt.s32.totalorder %v9036_v9, 300  ;;  %v4529_v53 = vsel %vm4379_vm8, %v4142_v15, 0.0 }
 0x63b   : > { %v4747_v34 = vadd.f32 %v4746_v63, %v4524_v27  ;;  %v6638_v27 = vld [vmem:[%s7469_s20 + $0x200] sm:$0xff]  ;;  %6268 = vtanh.f32 %v2979_v47  ;;  %v4143_v41 = vmul.f32 %v3919_v44, %v3919_v44  ;;  %v3365_v51 = vadd.f32 %v10154_v31, %v8496_v30  ;;  %v6644_v31 = vld [vmem:[%s7469_s20 + $0x230] sm:$0xff] }
 0x63c   : > { %v3920_v3 = vsub.f32 %v6638_v27, %v6255_v18  ;;  %6270 = vtanh.f32 %v3170_v5  ;;  %v3363_v18 = vadd.f32 %v10153_v32, %v8472_v23  ;;  %v6641_v27 = vld [vmem:[%s7469_s20 + $0x218] sm:$0xff] }
 0x63d   : > { %v4748_v8 = vadd.f32 %v4747_v34, %v4525_v0  ;;  %v6639_v0 = vld [vmem:[%s7469_s20 + $0x208] sm:$0xff]  ;;  %6272 = vtanh.f32 %v3172_v48  ;;  %v4530_v5 = vsel %vm4380_vm9, %v4143_v41, 0.0 }
 0x63e   : > { %v3921_v6 = vsub.f32 %v6639_v0, %v6257_v49  ;;  %v4144_v47 = vmul.f32 %v3920_v3, %v3920_v3  ;;  %6274 = vtanh.f32 %v3363_v18  ;;  %v4316_v0 = vadd.s32 80, %v8105_v14 }
 0x63f   : > { %v4749_v63 = vadd.f32 %v4748_v8, %v4526_v42  ;;  %v6640_v8 = vld [vmem:[%s7469_s20 + $0x210] sm:$0xff]  ;;  %v6263_v44 = vpop.eup %6262  ;;  %6276 = vtanh.f32 %v3365_v51 }
 0x640   : > { %v3922_v42 = vsub.f32 %v6640_v8, %v6259_v45  ;;  %v6265_v3 = vpop.eup %6264  ;;  %v4531_v26 = vsel %vm4380_vm9, %v4144_v47, 0.0  ;;  %v6642_v45 = vld [vmem:[%s7469_s20 + $0x220] sm:$0xff] }
 0x641   : > { %v4750_v34 = vadd.f32 %v4749_v63, %v4527_v55  ;;  %v4145_v63 = vmul.f32 %v3921_v6, %v3921_v6  ;;  %v3923_v55 = vsub.f32 %v6641_v27, %v6261_v2  ;;  %v3924_v48 = vsub.f32 %v6642_v45, %v6263_v44  ;;  %v10156_v8 = vld [vmem:[#allocation48_spill] sm:$0xff] }
 0x642   : > { %v4146_v15 = vmul.f32 %v3922_v42, %v3922_v42  ;;  %v2983_v42 = vadd.f32 %v10156_v8, %v8122_v10 }
 0x643   : > { %v4751_v36 = vadd.f32 %v4750_v34, %v4528_v61  ;;  %v10155_v61 = vld [vmem:[#allocation46_spill] sm:$0xff]  ;;  %v4532_v2 = vsel %vm4380_vm9, %v4145_v63, 0.0  ;;  %v4147_v18 = vmul.f32 %v3923_v55, %v3923_v55  ;;  %v4148_v51 = vmul.f32 %v3924_v48, %v3924_v48  ;;  %v10158_v55 = vld [vmem:[#allocation47_spill] sm:$0xff]  ;;  %v10159_v48 = vld [vmem:[#allocation49_spill] sm:$0xff] }
 0x644   : > { %v6267_v34 = vpop.eup %6266  ;;  %v2981_v41 = vadd.f32 %v10155_v61, %v8116_v12  ;;  %v9075_v63 = vadd.s32 %v8143_v39, %v4316_v0 }
 0x645   : > { %v4752_v49 = vadd.f32 %v4751_v36, %v4529_v53  ;;  %v6643_v36 = vld [vmem:[%s7469_s20 + $0x228] sm:$0xff]  ;;  %v6269_v47 = vpop.eup %6268  ;;  %v4535_v8 = vsel %vm4380_vm9, %v4148_v51, 0.0  ;;  %v10161_v51 = vld [vmem:[#allocation146_spill] sm:$0xff] }
 0x646   : > { %v3925_v32 = vsub.f32 %v6643_v36, %v6265_v3  ;;  %v10157_v53 = vld [vmem:[#allocation149_spill] sm:$0xff]  ;;  %v6271_v27 = vpop.eup %6270  ;;  %v3174_v3 = vadd.f32 %v10158_v55, %v8119_v13  ;;  %v6646_v36 = vld [vmem:[%s7469_s20 + $0x240] sm:$0xff]  ;;  %vm4381_vm10 = vcmp.lt.s32.totalorder %v9075_v63, 300  ;;  %v3369_v55 = vadd.f32 %v10161_v51, %v8496_v30 }
 0x647   : > { %v4753_v56 = vadd.f32 %v4752_v49, %v4530_v5  ;;  %6278 = vtanh.f32 %v10157_v53  ;;  %v4533_v49 = vsel %vm4380_vm9, %v4146_v15, 0.0  ;;  %v3926_v5 = vsub.f32 %v6644_v31, %v6267_v34  ;;  %v6651_v51 = vld [vmem:[%s7469_s20 + $0x268] sm:$0xff] }
 0x648   : > { %6280 = vtanh.f32 %v2981_v41  ;;  %v4149_v61 = vmul.f32 %v3925_v32, %v3925_v32  ;;  %v4534_v15 = vsel %vm4380_vm9, %v4147_v18, 0.0  ;;  %v3176_v34 = vadd.f32 %v10159_v48, %v8125_v33  ;;  %v10160_v18 = vld [vmem:[#allocation145_spill] sm:$0xff] }
 0x649   : > { %v4754_v6 = vadd.f32 %v4753_v56, %v4531_v26  ;;  %v6645_v26 = vld [vmem:[%s7469_s20 + $0x238] sm:$0xff]  ;;  %6282 = vtanh.f32 %v2983_v42  ;;  %v4150_v0 = vmul.f32 %v3926_v5, %v3926_v5  ;;  %v3928_v41 = vsub.f32 %v6646_v36, %v6271_v27 }
 0x64a   : > { %v3927_v45 = vsub.f32 %v6645_v26, %v6269_v47  ;;  %6284 = vtanh.f32 %v3174_v3  ;;  %v3367_v47 = vadd.f32 %v10160_v18, %v8472_v23  ;;  %v4536_v31 = vsel %vm4380_vm9, %v4149_v61, 0.0  ;;  %v6648_v26 = vld [vmem:[%s7469_s20 + $0x250] sm:$0xff] }
 0x64b   : > { %v4755_v44 = vadd.f32 %v4754_v6, %v4532_v2  ;;  %v6273_v6 = vpop.eup %6272  ;;  %6286 = vtanh.f32 %v3176_v34  ;;  %v4537_v3 = vsel %vm4381_vm10, %v4150_v0, 0.0  ;;  %v4317_v36 = vadd.s32 88, %v8105_v14 }
 0x64c   : > { %v6275_v53 = vpop.eup %6274  ;;  %v4151_v42 = vmul.f32 %v3927_v45, %v3927_v45  ;;  %6288 = vtanh.f32 %v3367_v47 }
 0x64d   : > { %v4756_v56 = vadd.f32 %v4755_v44, %v4533_v49  ;;  %v6647_v44 = vld [vmem:[%s7469_s20 + $0x248] sm:$0xff]  ;;  %v6277_v5 = vpop.eup %6276  ;;  %6290 = vtanh.f32 %v3369_v55 }
 0x64e   : > { %v3929_v49 = vsub.f32 %v6647_v44, %v6273_v6  ;;  %v4538_v9 = vsel %vm4381_vm10, %v4151_v42, 0.0  ;;  %v6649_v6 = vld [vmem:[%s7469_s20 + $0x258] sm:$0xff]  ;;  %v10163_v44 = vld [vmem:[#allocation52_spill] sm:$0xff] }
 0x64f   : > { %v4757_v2 = vadd.f32 %v4756_v56, %v4534_v15  ;;  %v4152_v56 = vmul.f32 %v3928_v41, %v3928_v41  ;;  %v3930_v15 = vsub.f32 %v6648_v26, %v6275_v53  ;;  %v3931_v34 = vsub.f32 %v6649_v6, %v6277_v5 }
 0x650   : > { %v4153_v61 = vmul.f32 %v3929_v49, %v3929_v49  ;;  %v2989_v49 = vadd.f32 %v10163_v44, %v8122_v10 }
 0x651   : > { %v4758_v32 = vadd.f32 %v4757_v2, %v4535_v8  ;;  %v6279_v45 = vpop.eup %6278  ;;  %v10162_v8 = vld [vmem:[#allocation50_spill] sm:$0xff]  ;;  %v4539_v53 = vsel %vm4381_vm10, %v4152_v56, 0.0  ;;  %v4154_v47 = vmul.f32 %v3930_v15, %v3930_v15  ;;  %v4155_v55 = vmul.f32 %v3931_v34, %v3931_v34  ;;  %v10165_v15 = vld [vmem:[#allocation51_spill] sm:$0xff]  ;;  %v10166_v34 = vld [vmem:[#allocation53_spill] sm:$0xff] }
 0x652   : > { %v6281_v2 = vpop.eup %6280  ;;  %v2987_v0 = vadd.f32 %v10162_v8, %v8116_v12  ;;  %v9114_v56 = vadd.s32 %v8143_v39, %v4317_v36 }
 0x653   : > { %v4759_v27 = vadd.f32 %v4758_v32, %v4536_v31  ;;  %v6650_v32 = vld [vmem:[%s7469_s20 + $0x260] sm:$0xff]  ;;  %v6283_v42 = vpop.eup %6282  ;;  %v4542_v44 = vsel %vm4381_vm10, %v4155_v55, 0.0 }
 0x654   : > { %v3932_v18 = vsub.f32 %v6650_v32, %v6279_v45  ;;  %v10164_v31 = vld [vmem:[#allocation151_spill] sm:$0xff]  ;;  %v6285_v26 = vpop.eup %6284  ;;  %v3180_v45 = vadd.f32 %v10165_v15, %v8119_v13  ;;  %vm4382_vm11 = vcmp.lt.s32.totalorder %v9114_v56, 300  ;;  %v10168_v55 = vld [vmem:[#allocation148_spill] sm:$0xff] }
 0x655   : > { %v4760_v48 = vadd.f32 %v4759_v27, %v4537_v3  ;;  %6292 = vtanh.f32 %v10164_v31  ;;  %v4540_v27 = vsel %vm4381_vm10, %v4153_v61, 0.0  ;;  %v3933_v3 = vsub.f32 %v6651_v51, %v6281_v2  ;;  %v6653_v32 = vld [vmem:[%s7469_s20 + $0x278] sm:$0xff] }
 0x656   : > { %6294 = vtanh.f32 %v2987_v0  ;;  %v4156_v8 = vmul.f32 %v3932_v18, %v3932_v18  ;;  %v4541_v61 = vsel %vm4381_vm10, %v4154_v47, 0.0  ;;  %v3182_v2 = vadd.f32 %v10166_v34, %v8125_v33  ;;  %v10167_v47 = vld [vmem:[#allocation147_spill] sm:$0xff] }
 0x657   : > { %v4761_v41 = vadd.f32 %v4760_v48, %v4538_v9  ;;  %v6652_v9 = vld [vmem:[%s7469_s20 + $0x270] sm:$0xff]  ;;  %6296 = vtanh.f32 %v2989_v49  ;;  %v4157_v36 = vmul.f32 %v3933_v3, %v3933_v3  ;;  %v3935_v0 = vsub.f32 %v6653_v32, %v6285_v26 }
 0x658   : > { %v3934_v6 = vsub.f32 %v6652_v9, %v6283_v42  ;;  %6298 = vtanh.f32 %v3180_v45  ;;  %v3373_v42 = vadd.f32 %v10167_v47, %v8472_v23  ;;  %v4543_v51 = vsel %vm4381_vm10, %v4156_v8, 0.0  ;;  %v6655_v9 = vld [vmem:[%s7469_s20 + $0x288] sm:$0xff] }
 0x659   : > { %v4762_v5 = vadd.f32 %v4761_v41, %v4539_v53  ;;  %v6287_v41 = vpop.eup %6286  ;;  %6300 = vtanh.f32 %v3182_v2  ;;  %v3375_v15 = vadd.f32 %v10168_v55, %v8496_v30  ;;  %v4544_v45 = vsel %vm4382_vm11, %v4157_v36, 0.0  ;;  %v6658_v55 = vld [vmem:[%s7469_s20 + $0x2a0] sm:$0xff] }
 0x65a   : > { %v6289_v31 = vpop.eup %6288  ;;  %v4158_v49 = vmul.f32 %v3934_v6, %v3934_v6  ;;  %6302 = vtanh.f32 %v3373_v42  ;;  %v4318_v32 = vadd.s32 96, %v8105_v14 }
 0x65b   : > { %v4763_v48 = vadd.f32 %v4762_v5, %v4540_v27  ;;  %v6654_v5 = vld [vmem:[%s7469_s20 + $0x280] sm:$0xff]  ;;  %v6291_v3 = vpop.eup %6290  ;;  %6304 = vtanh.f32 %v3375_v15 }
 0x65c   : > { %v3936_v27 = vsub.f32 %v6654_v5, %v6287_v41  ;;  %v4545_v63 = vsel %vm4382_vm11, %v4158_v49, 0.0  ;;  %v6656_v41 = vld [vmem:[%s7469_s20 + $0x290] sm:$0xff]  ;;  %v10170_v5 = vld [vmem:[#allocation56_spill] sm:$0xff] }
 0x65d   : > { %v4764_v53 = vadd.f32 %v4763_v48, %v4541_v61  ;;  %v4159_v48 = vmul.f32 %v3935_v0, %v3935_v0  ;;  %v3937_v61 = vsub.f32 %v6655_v9, %v6289_v31  ;;  %v3938_v2 = vsub.f32 %v6656_v41, %v6291_v3 }
 0x65e   : > { %v4160_v8 = vmul.f32 %v3936_v27, %v3936_v27  ;;  %v2993_v27 = vadd.f32 %v10170_v5, %v8122_v10 }
 0x65f   : > { %v4765_v18 = vadd.f32 %v4764_v53, %v4542_v44  ;;  %v6293_v6 = vpop.eup %6292  ;;  %v10169_v44 = vld [vmem:[#allocation54_spill] sm:$0xff]  ;;  %v4546_v31 = vsel %vm4382_vm11, %v4159_v48, 0.0  ;;  %v4161_v42 = vmul.f32 %v3937_v61, %v3937_v61  ;;  %v4162_v15 = vmul.f32 %v3938_v2, %v3938_v2  ;;  %v10172_v61 = vld [vmem:[#allocation55_spill] sm:$0xff]  ;;  %v10173_v2 = vld [vmem:[#allocation57_spill] sm:$0xff] }
 0x660   : > { %v6295_v53 = vpop.eup %6294  ;;  %v2991_v36 = vadd.f32 %v10169_v44, %v8116_v12  ;;  %v9153_v48 = vadd.s32 %v8143_v39, %v4318_v32 }
 0x661   : > { %v4766_v26 = vadd.f32 %v4765_v18, %v4543_v51  ;;  %v6657_v18 = vld [vmem:[%s7469_s20 + $0x298] sm:$0xff]  ;;  %v6297_v49 = vpop.eup %6296  ;;  %v4549_v5 = vsel %vm4382_vm11, %v4162_v15, 0.0  ;;  %v10175_v15 = vld [vmem:[#allocation152_spill] sm:$0xff] }
 0x662   : > { %v3939_v47 = vsub.f32 %v6657_v18, %v6293_v6  ;;  %v10171_v51 = vld [vmem:[#allocation154_spill] sm:$0xff]  ;;  %v6299_v9 = vpop.eup %6298  ;;  %v3184_v6 = vadd.f32 %v10172_v61, %v8119_v13  ;;  %vm4383_vm12 = vcmp.lt.s32.totalorder %v9153_v48, 300  ;;  %v3379_v61 = vadd.f32 %v10175_v15, %v8496_v30 }
 0x663   : > { %v4767_v34 = vadd.f32 %v4766_v26, %v4544_v45  ;;  %6306 = vtanh.f32 %v10171_v51  ;;  %v4547_v26 = vsel %vm4382_vm11, %v4160_v8, 0.0  ;;  %v3940_v45 = vsub.f32 %v6658_v55, %v6295_v53  ;;  %v6660_v18 = vld [vmem:[%s7469_s20 + $0x2b0] sm:$0xff]  ;;  %v6665_v15 = vld [vmem:[%s7469_s20 + $0x2d8] sm:$0xff] }
 0x664   : > { %6308 = vtanh.f32 %v2991_v36  ;;  %v4163_v44 = vmul.f32 %v3939_v47, %v3939_v47  ;;  %v4548_v8 = vsel %vm4382_vm11, %v4161_v42, 0.0  ;;  %v3186_v53 = vadd.f32 %v10173_v2, %v8125_v33  ;;  %v10174_v42 = vld [vmem:[#allocation150_spill] sm:$0xff] }
 0x665   : > { %v4768_v0 = vadd.f32 %v4767_v34, %v4545_v63  ;;  %v6659_v63 = vld [vmem:[%s7469_s20 + $0x2a8] sm:$0xff]  ;;  %6310 = vtanh.f32 %v2993_v27  ;;  %v4164_v32 = vmul.f32 %v3940_v45, %v3940_v45  ;;  %v3942_v36 = vsub.f32 %v6660_v18, %v6299_v9 }
 0x666   : > { %v3941_v41 = vsub.f32 %v6659_v63, %v6297_v49  ;;  %6312 = vtanh.f32 %v3184_v6  ;;  %v3377_v49 = vadd.f32 %v10174_v42, %v8472_v23  ;;  %v4550_v55 = vsel %vm4382_vm11, %v4163_v44, 0.0  ;;  %v6662_v63 = vld [vmem:[%s7469_s20 + $0x2c0] sm:$0xff] }
 0x667   : > { %v4769_v3 = vadd.f32 %v4768_v0, %v4546_v31  ;;  %v6301_v0 = vpop.eup %6300  ;;  %6314 = vtanh.f32 %v3186_v53  ;;  %v4551_v6 = vsel %vm4383_vm12, %v4164_v32, 0.0  ;;  %v4319_v18 = vadd.s32 104, %v8105_v14 }
 0x668   : > { %v6303_v51 = vpop.eup %6302  ;;  %v4165_v27 = vmul.f32 %v3941_v41, %v3941_v41  ;;  %6316 = vtanh.f32 %v3377_v49 }
 0x669   : > { %v4770_v34 = vadd.f32 %v4769_v3, %v4547_v26  ;;  %v6661_v3 = vld [vmem:[%s7469_s20 + $0x2b8] sm:$0xff]  ;;  %v6305_v45 = vpop.eup %6304  ;;  %6318 = vtanh.f32 %v3379_v61 }
 0x66a   : > { %v3943_v26 = vsub.f32 %v6661_v3, %v6301_v0  ;;  %v4552_v56 = vsel %vm4383_vm12, %v4165_v27, 0.0  ;;  %v6663_v0 = vld [vmem:[%s7469_s20 + $0x2c8] sm:$0xff] }
 0x66b   : > { %v4771_v31 = vadd.f32 %v4770_v34, %v4548_v8  ;;  %v4166_v34 = vmul.f32 %v3942_v36, %v3942_v36  ;;  %v3944_v8 = vsub.f32 %v6662_v63, %v6303_v51  ;;  %v3945_v53 = vsub.f32 %v6663_v0, %v6305_v45  ;;  %v10177_v3 = vld [vmem:[#allocation60_spill] sm:$0xff] }
 0x66c   : > { %v4167_v44 = vmul.f32 %v3943_v26, %v3943_v26  ;;  %v2999_v26 = vadd.f32 %v10177_v3, %v8122_v10 }
 0x66d   : > { %v4772_v47 = vadd.f32 %v4771_v31, %v4549_v5  ;;  %v6307_v41 = vpop.eup %6306  ;;  %v10176_v5 = vld [vmem:[#allocation58_spill] sm:$0xff]  ;;  %v4553_v51 = vsel %vm4383_vm12, %v4166_v34, 0.0  ;;  %v4168_v49 = vmul.f32 %v3944_v8, %v3944_v8  ;;  %v4169_v61 = vmul.f32 %v3945_v53, %v3945_v53  ;;  %v10179_v8 = vld [vmem:[#allocation59_spill] sm:$0xff]  ;;  %v10180_v53 = vld [vmem:[#allocation61_spill] sm:$0xff] }
 0x66e   : > { %v6309_v31 = vpop.eup %6308  ;;  %v2997_v32 = vadd.f32 %v10176_v5, %v8116_v12  ;;  %v9192_v34 = vadd.s32 %v8143_v39, %v4319_v18 }
 0x66f   : > { %v4773_v9 = vadd.f32 %v4772_v47, %v4550_v55  ;;  %v6664_v47 = vld [vmem:[%s7469_s20 + $0x2d0] sm:$0xff]  ;;  %v6311_v27 = vpop.eup %6310  ;;  %v10178_v55 = vld [vmem:[#allocation156_spill] sm:$0xff]  ;;  %v4556_v3 = vsel %vm4383_vm12, %v4169_v61, 0.0  ;;  %v10182_v61 = vld [vmem:[#allocation159_spill] sm:$0xff] }
 0x670   : > { %v3946_v42 = vsub.f32 %v6664_v47, %v6307_v41  ;;  %6320 = vtanh.f32 %v10178_v55  ;;  %v6313_v63 = vpop.eup %6312  ;;  %v3190_v41 = vadd.f32 %v10179_v8, %v8119_v13  ;;  %v6667_v47 = vld [vmem:[%s7469_s20 + $0x2e8] sm:$0xff]  ;;  %vm4384_vm13 = vcmp.lt.s32.totalorder %v9192_v34, 300 }
 0x671   : > { %v4774_v2 = vadd.f32 %v4773_v9, %v4551_v6  ;;  %v4554_v9 = vsel %vm4383_vm12, %v4167_v44, 0.0  ;;  %v3947_v6 = vsub.f32 %v6665_v15, %v6309_v31  ;;  %6322 = vtanh.f32 %v2997_v32 }
 0x672   : > { %v4170_v5 = vmul.f32 %v3946_v42, %v3946_v42  ;;  %v4555_v44 = vsel %vm4383_vm12, %v4168_v49, 0.0  ;;  %6324 = vtanh.f32 %v2999_v26  ;;  %v3192_v31 = vadd.f32 %v10180_v53, %v8125_v33  ;;  %v10181_v49 = vld [vmem:[#allocation158_spill] sm:$0xff] }
 0x673   : > { %v4775_v36 = vadd.f32 %v4774_v2, %v4552_v56  ;;  %v6666_v56 = vld [vmem:[%s7469_s20 + $0x2e0] sm:$0xff]  ;;  %v4171_v18 = vmul.f32 %v3947_v6, %v3947_v6  ;;  %v3949_v32 = vsub.f32 %v6667_v47, %v6313_v63  ;;  %6326 = vtanh.f32 %v3190_v41 }
 0x674   : > { %v3948_v0 = vsub.f32 %v6666_v56, %v6311_v27  ;;  %v3383_v27 = vadd.f32 %v10181_v49, %v8472_v23  ;;  %v4557_v15 = vsel %vm4383_vm12, %v4170_v5, 0.0  ;;  %6328 = vtanh.f32 %v3192_v31  ;;  %v6669_v56 = vld [vmem:[%s7469_s20 + $0x2f8] sm:$0xff] }
 0x675   : > { %v4776_v45 = vadd.f32 %v4775_v36, %v4553_v51  ;;  %v6315_v36 = vpop.eup %6314  ;;  %v3385_v8 = vadd.f32 %v10182_v61, %v8496_v30  ;;  %v4558_v41 = vsel %vm4384_vm13, %v4171_v18, 0.0  ;;  %v4320_v47 = vadd.s32 112, %v8105_v14  ;;  %v6672_v61 = vld [vmem:[%s7469_s20 + $0x310] sm:$0xff] }
 0x676   : > { %v6317_v55 = vpop.eup %6316  ;;  %v4172_v26 = vmul.f32 %v3948_v0, %v3948_v0  ;;  %6330 = vtanh.f32 %v3383_v27 }
 0x677   : > { %v4777_v2 = vadd.f32 %v4776_v45, %v4554_v9  ;;  %v6668_v45 = vld [vmem:[%s7469_s20 + $0x2f0] sm:$0xff]  ;;  %v6319_v6 = vpop.eup %6318  ;;  %6332 = vtanh.f32 %v3385_v8 }
 0x678   : > { %v3950_v9 = vsub.f32 %v6668_v45, %v6315_v36  ;;  %v4559_v48 = vsel %vm4384_vm13, %v4172_v26, 0.0  ;;  %v6670_v36 = vld [vmem:[%s7469_s20 + $0x300] sm:$0xff] }
 0x679   : > { %v4778_v51 = vadd.f32 %v4777_v2, %v4555_v44  ;;  %v4173_v2 = vmul.f32 %v3949_v32, %v3949_v32  ;;  %v3951_v44 = vsub.f32 %v6669_v56, %v6317_v55  ;;  %v3952_v31 = vsub.f32 %v6670_v36, %v6319_v6  ;;  %v10184_v45 = vld [vmem:[#allocation64_spill] sm:$0xff] }
 0x67a   : > { %v6321_v0 = vpop.eup %6320  ;;  %v4174_v5 = vmul.f32 %v3950_v9, %v3950_v9  ;;  %v3003_v9 = vadd.f32 %v10184_v45, %v8122_v10 }
 0x67b   : > { %v4779_v42 = vadd.f32 %v4778_v51, %v4556_v3  ;;  %v6323_v51 = vpop.eup %6322  ;;  %v10183_v3 = vld [vmem:[#allocation62_spill] sm:$0xff]  ;;  %v4560_v55 = vsel %vm4384_vm13, %v4173_v2, 0.0  ;;  %v4175_v27 = vmul.f32 %v3951_v44, %v3951_v44  ;;  %v4176_v8 = vmul.f32 %v3952_v31, %v3952_v31  ;;  %v10186_v44 = vld [vmem:[#allocation63_spill] sm:$0xff]  ;;  %v10187_v31 = vld [vmem:[#allocation65_spill] sm:$0xff] }
 0x67c   : > { %v3001_v18 = vadd.f32 %v10183_v3, %v8116_v12  ;;  %v6325_v26 = vpop.eup %6324  ;;  %v9231_v2 = vadd.s32 %v8143_v39, %v4320_v47 }
 0x67d   : > { %v4780_v63 = vadd.f32 %v4779_v42, %v4557_v15  ;;  %v6671_v42 = vld [vmem:[%s7469_s20 + $0x308] sm:$0xff]  ;;  %v6327_v56 = vpop.eup %6326  ;;  %v4563_v45 = vsel %vm4384_vm13, %v4176_v8, 0.0  ;;  %v3389_v8 = vadd.f32 %v8603_v57, %v8496_v30  ;;  %v4321_v57 = vadd.s32 120, %v8105_v14 }
 0x67e   : > { %v3953_v49 = vsub.f32 %v6671_v42, %v6321_v0  ;;  %v10185_v15 = vld [vmem:[#allocation153_spill] sm:$0xff]  ;;  %v3194_v0 = vadd.f32 %v10186_v44, %v8119_v13  ;;  %v6674_v42 = vld [vmem:[%s7469_s20 + $0x320] sm:$0xff]  ;;  %vm4385_vm14 = vcmp.lt.s32.totalorder %v9231_v2, 300 }
 0x67f   : > { %v4781_v53 = vadd.f32 %v4780_v63, %v4558_v41  ;;  %6334 = vtanh.f32 %v10185_v15  ;;  %v4561_v63 = vsel %vm4384_vm13, %v4174_v5, 0.0  ;;  %v3954_v41 = vsub.f32 %v6672_v61, %v6323_v51 }
 0x680   : > { %6336 = vtanh.f32 %v3001_v18  ;;  %v4177_v3 = vmul.f32 %v3953_v49, %v3953_v49  ;;  %v4562_v5 = vsel %vm4384_vm13, %v4175_v27, 0.0  ;;  %v3196_v51 = vadd.f32 %v10187_v31, %v8125_v33  ;;  %v10188_v27 = vld [vmem:[#allocation160_spill] sm:$0xff] }
 0x681   : > { %v4782_v32 = vadd.f32 %v4781_v53, %v4559_v48  ;;  %v6673_v48 = vld [vmem:[%s7469_s20 + $0x318] sm:$0xff]  ;;  %6338 = vtanh.f32 %v3003_v9  ;;  %v4178_v47 = vmul.f32 %v3954_v41, %v3954_v41  ;;  %v3956_v18 = vsub.f32 %v6674_v42, %v6327_v56 }
 0x682   : > { %v3955_v36 = vsub.f32 %v6673_v48, %v6325_v26  ;;  %6340 = vtanh.f32 %v3194_v0  ;;  %v3387_v26 = vadd.f32 %v10188_v27, %v8472_v23  ;;  %v4564_v61 = vsel %vm4384_vm13, %v4177_v3, 0.0 }
 0x683   : > { %v4783_v6 = vadd.f32 %v4782_v32, %v4560_v55  ;;  %v6329_v32 = vpop.eup %6328  ;;  %6342 = vtanh.f32 %v3196_v51  ;;  %v4565_v44 = vsel %vm4385_vm14, %v4178_v47, 0.0  ;;  %v4180_v0 = vmul.f32 %v3956_v18, %v3956_v18 }
 0x684   : > { %v6331_v15 = vpop.eup %6330  ;;  %v4179_v9 = vmul.f32 %v3955_v36, %v3955_v36  ;;  %6344 = vtanh.f32 %v3387_v26  ;;  %v10190_v26 = vld [vmem:[#allocation68_spill] sm:$0xff] }
 0x685   : > { %v4784_v53 = vadd.f32 %v4783_v6, %v4561_v63  ;;  %v6675_v6 = vld [vmem:[%s7469_s20 + $0x328] sm:$0xff]  ;;  %v6333_v41 = vpop.eup %6332  ;;  %6346 = vtanh.f32 %v3389_v8  ;;  %v4567_v18 = vsel %vm4385_vm14, %v4180_v0, 0.0  ;;  %v9270_v0 = vadd.s32 %v8143_v39, %v4321_v57 }
 0x686   : > { %v3957_v63 = vsub.f32 %v6675_v6, %v6329_v32  ;;  %v4566_v34 = vsel %vm4385_vm14, %v4179_v9, 0.0  ;;  %v6677_v32 = vld [vmem:[%s7469_s20 + $0x338] sm:$0xff]  ;;  %v3009_v9 = vadd.f32 %v10190_v26, %v8122_v10 }
 0x687   : > { %v4785_v55 = vadd.f32 %v4784_v53, %v4562_v5  ;;  %v6676_v53 = vld [vmem:[%s7469_s20 + $0x330] sm:$0xff]  ;;  %v3959_v31 = vsub.f32 %v6677_v32, %v6333_v41  ;;  %v10191_v6 = vld [vmem:[#allocation155_spill] sm:$0xff]  ;;  %v6679_v41 = vld [vmem:[%s7469_s20 + $0x348] sm:$0xff]  ;;  %vm4386_vm15 = vcmp.lt.s32.totalorder %v9270_v0, 300 }
 0x688   : > { %v3958_v48 = vsub.f32 %v6676_v53, %v6331_v15  ;;  %v4181_v3 = vmul.f32 %v3957_v63, %v3957_v63  ;;  %6348 = vtanh.f32 %v10191_v6  ;;  %v10192_v53 = vld [vmem:[#allocation67_spill] sm:$0xff] }
 0x689   : > { %v4786_v49 = vadd.f32 %v4785_v55, %v4563_v45  ;;  %v6335_v36 = vpop.eup %6334  ;;  %v10189_v55 = vld [vmem:[#allocation66_spill] sm:$0xff]  ;;  %v6678_v45 = vld [vmem:[%s7469_s20 + $0x340] sm:$0xff]  ;;  %v4183_v8 = vmul.f32 %v3959_v31, %v3959_v31  ;;  %v10193_v31 = vld [vmem:[#allocation69_spill] sm:$0xff] }
 0x68a   : > { %v6337_v51 = vpop.eup %6336  ;;  %v3007_v47 = vadd.f32 %v10189_v55, %v8116_v12  ;;  %v3960_v15 = vsub.f32 %v6678_v45, %v6335_v36 }
 0x68b   : > { %v4787_v56 = vadd.f32 %v4786_v49, %v4564_v61  ;;  %v4182_v49 = vmul.f32 %v3958_v48, %v3958_v48  ;;  %v6339_v27 = vpop.eup %6338  ;;  %v4568_v61 = vsel %vm4385_vm14, %v4181_v3, 0.0  ;;  %v3200_v48 = vadd.f32 %v10192_v53, %v8119_v13  ;;  %v6683_v53 = vld [vmem:[%s7469_s20 + $0x368] sm:$0xff] }
 0x68c   : > { %6350 = vtanh.f32 %v3007_v47  ;;  %v4184_v32 = vmul.f32 %v3960_v15, %v3960_v15  ;;  %v4570_v45 = vsel %vm4385_vm14, %v4183_v8, 0.0 }
 0x68d   : > { %v4788_v5 = vadd.f32 %v4787_v56, %v4565_v44  ;;  %v3961_v56 = vsub.f32 %v6679_v41, %v6337_v51  ;;  %v6341_v44 = vpop.eup %6340  ;;  %v4569_v3 = vsel %vm4385_vm14, %v4182_v49, 0.0  ;;  %6352 = vtanh.f32 %v3009_v9  ;;  %v6682_v9 = vld [vmem:[%s7469_s20 + $0x360] sm:$0xff] }
 0x68e   : > { %v6343_v55 = vpop.eup %6342  ;;  %v3202_v51 = vadd.f32 %v10193_v31, %v8125_v33  ;;  %6354 = vtanh.f32 %v3200_v48  ;;  %v3393_v49 = vadd.f32 %v8619_v29, %v8472_v23 }
 0x68f   : > { %v4789_v42 = vadd.f32 %v4788_v5, %v4566_v34  ;;  %v6680_v5 = vld [vmem:[%s7469_s20 + $0x350] sm:$0xff]  ;;  %v4185_v57 = vmul.f32 %v3961_v56, %v3961_v56  ;;  %v6345_v26 = vpop.eup %6344  ;;  %v3964_v6 = vsub.f32 %v6682_v9, %v6343_v55  ;;  %v3395_v56 = vadd.f32 %v8623_v16, %v8496_v30 }
 0x690   : > { %v3962_v34 = vsub.f32 %v6680_v5, %v6339_v27  ;;  %6356 = vtanh.f32 %v3202_v51  ;;  %v3965_v29 = vsub.f32 %v6683_v53, %v6345_v26  ;;  %v4322_v16 = vadd.s32 128, %v8105_v14  ;;  %v10194_v55 = vld [vmem:[#allocation70_spill] sm:$0xff]  ;;  %v10195_v26 = vld [vmem:[#allocation72_spill] sm:$0xff] }
 0x691   : > { %v4790_v63 = vadd.f32 %v4789_v42, %v4567_v18  ;;  %v6681_v18 = vld [vmem:[%s7469_s20 + $0x358] sm:$0xff]  ;;  %v4572_v8 = vsel %vm4386_vm15, %v4185_v57, 0.0  ;;  %6358 = vtanh.f32 %v3393_v49  ;;  %v4188_v5 = vmul.f32 %v3964_v6, %v3964_v6  ;;  %v10196_v49 = vld [vmem:[#allocation161_spill] sm:$0xff]  ;;  %v6686_v6 = vld [vmem:[%s7469_s20 + $0x380] sm:$0xff] }
 0x692   : > { %v3963_v47 = vsub.f32 %v6681_v18, %v6341_v44  ;;  %v4186_v27 = vmul.f32 %v3962_v34, %v3962_v34  ;;  %v6684_v34 = vld [vmem:[%s7469_s20 + $0x370] sm:$0xff]  ;;  %v3011_v31 = vadd.f32 %v10194_v55, %v8116_v12  ;;  %6360 = vtanh.f32 %v3395_v56  ;;  %v6685_v57 = vld [vmem:[%s7469_s20 + $0x378] sm:$0xff] }
 0x693   : > { %v4791_v36 = vadd.f32 %v4790_v63, %v4568_v61  ;;  %v4571_v63 = vsel %vm4385_vm14, %v4184_v32, 0.0  ;;  %v6347_v61 = vpop.eup %6346  ;;  %6362 = vtanh.f32 %v10196_v49  ;;  %v4575_v9 = vsel %vm4386_vm15, %v4188_v5, 0.0  ;;  %v6688_v55 = vld [vmem:[%s7469_s20 + $0x390] sm:$0xff] }
 0x694   : > { %v4187_v44 = vmul.f32 %v3963_v47, %v3963_v47  ;;  %v6349_v48 = vpop.eup %6348  ;;  %v4573_v2 = vsel %vm4386_vm15, %v4186_v27, 0.0  ;;  %v3966_v32 = vsub.f32 %v6684_v34, %v6347_v61  ;;  %v4189_v47 = vmul.f32 %v3965_v29, %v3965_v29  ;;  %v6687_v29 = vld [vmem:[%s7469_s20 + $0x388] sm:$0xff] }
 0x695   : > { %v4792_v42 = vadd.f32 %v4791_v36, %v4569_v3  ;;  %v3967_v18 = vsub.f32 %v6685_v57, %v6349_v48  ;;  %v9309_v56 = vadd.s32 %v8143_v39, %v4322_v16  ;;  %6364 = vtanh.f32 %v3011_v31  ;;  %v10198_v34 = vld [vmem:[#allocation73_spill] sm:$0xff] }
 0x696   : > { %v6351_v3 = vpop.eup %6350  ;;  %v4190_v61 = vmul.f32 %v3966_v32, %v3966_v32  ;;  %v3206_v32 = vadd.f32 %v10198_v34, %v8125_v33  ;;  %v4323_v34 = vadd.s32 136, %v8105_v14 }
 0x697   : > { %v4793_v15 = vadd.f32 %v4792_v42, %v4570_v45  ;;  %v4574_v42 = vsel %vm4386_vm15, %v4187_v44, 0.0  ;;  %v6353_v45 = vpop.eup %6352  ;;  %vm4387_vm0 = vcmp.lt.s32.totalorder %v9309_v56, 300 }
 0x698   : > { %v3969_v48 = vsub.f32 %v6687_v29, %v6353_v45 }
 0x699   : > { %v4794_v41 = vadd.f32 %v4793_v15, %v4571_v63  ;;  %v3013_v15 = vadd.f32 %v10195_v26, %v8122_v10  ;;  %v3968_v63 = vsub.f32 %v6686_v6, %v6351_v3  ;;  %v6689_v26 = vld [vmem:[%s7469_s20 + $0x398] sm:$0xff] }
 0x69a   : > { %v4193_v45 = vmul.f32 %v3969_v48, %v3969_v48  ;;  %v10200_v6 = vld [vmem:[#allocation163_spill] sm:$0xff] }
 0x69b   : > { %v4795_v36 = vadd.f32 %v4794_v41, %v4572_v8  ;;  %v6355_v41 = vpop.eup %6354  ;;  %v10197_v8 = vld [vmem:[#allocation71_spill] sm:$0xff]  ;;  %6366 = vtanh.f32 %v3013_v15  ;;  %v4192_v16 = vmul.f32 %v3968_v63, %v3968_v63  ;;  %v3399_v63 = vadd.f32 %v10200_v6, %v8496_v30 }
 0x69c   : > { %v3204_v44 = vadd.f32 %v10197_v8, %v8119_v13  ;;  %v6357_v5 = vpop.eup %6356  ;;  %v3970_v31 = vsub.f32 %v6688_v55, %v6355_v41  ;;  %v6690_v8 = vld [vmem:[%s7469_s20 + $0x3a0] sm:$0xff]  ;;  %v4580_v0 = vsel %vm4387_vm0, %v4193_v45, 0.0  ;;  %v9348_v6 = vadd.s32 %v8143_v39, %v4323_v34 }
 0x69d   : > { %v4796_v51 = vadd.f32 %v4795_v36, %v4573_v2  ;;  %v4191_v36 = vmul.f32 %v3967_v18, %v3967_v18  ;;  %v4576_v2 = vsel %vm4386_vm15, %v4189_v47, 0.0  ;;  %v10199_v18 = vld [vmem:[#allocation162_spill] sm:$0xff]  ;;  %v3971_v15 = vsub.f32 %v6689_v26, %v6357_v5 }
 0x69e   : > { %6368 = vtanh.f32 %v3204_v44  ;;  %v3397_v47 = vadd.f32 %v10199_v18, %v8472_v23  ;;  %v4194_v41 = vmul.f32 %v3970_v31, %v3970_v31  ;;  %v6692_v31 = vld [vmem:[%s7469_s20 + $0x3b0] sm:$0xff]  ;;  %v10202_v18 = vld [vmem:[#allocation76_spill] sm:$0xff]  ;;  %vm4388_vm1 = vcmp.lt.s32.totalorder %v9348_v6, 300 }
 0x69f   : > { %v4797_v27 = vadd.f32 %v4796_v51, %v4574_v42  ;;  %v4577_v51 = vsel %vm4386_vm15, %v4190_v61, 0.0  ;;  %v6359_v42 = vpop.eup %6358  ;;  %v4578_v49 = vsel %vm4386_vm15, %v4191_v36, 0.0  ;;  %6370 = vtanh.f32 %v3206_v32  ;;  %v6691_v36 = vld [vmem:[%s7469_s20 + $0x3a8] sm:$0xff]  ;;  %v10201_v32 = vld [vmem:[#allocation74_spill] sm:$0xff] }
 0x6a0   : > { %v4579_v61 = vsel %vm4387_vm0, %v4192_v16, 0.0  ;;  %v3972_v44 = vsub.f32 %v6690_v8, %v6359_v42  ;;  %6372 = vtanh.f32 %v3397_v47  ;;  %v4195_v48 = vmul.f32 %v3971_v15, %v3971_v15  ;;  %v6693_v15 = vld [vmem:[%s7469_s20 + $0x3b8] sm:$0xff]  ;;  %v6694_v8 = vld [vmem:[%s7469_s20 + $0x3c0] sm:$0xff] }
 0x6a1   : > { %v4798_v53 = vadd.f32 %v4797_v27, %v4575_v9  ;;  %v6361_v27 = vpop.eup %6360  ;;  %6374 = vtanh.f32 %v3399_v63  ;;  %v4581_v55 = vsel %vm4387_vm0, %v4194_v41, 0.0  ;;  %v3019_v47 = vadd.f32 %v10202_v18, %v8122_v10  ;;  %v10203_v63 = vld [vmem:[#allocation75_spill] sm:$0xff] }
 0x6a2   : > { %v4196_v42 = vmul.f32 %v3972_v44, %v3972_v44  ;;  %6376 = vtanh.f32 %v8675_v4  ;;  %v4582_v26 = vsel %vm4387_vm0, %v4195_v48, 0.0 }
 0x6a3   : > { %v4799_v3 = vadd.f32 %v4798_v53, %v4576_v2  ;;  %v6363_v53 = vpop.eup %6362  ;;  %v3973_v2 = vsub.f32 %v6691_v36, %v6361_v27 }
 0x6a4   : > { %v6365_v5 = vpop.eup %6364 }
 0x6a5   : > { %v4800_v57 = vadd.f32 %v4799_v3, %v4577_v51  ;;  %v3017_v3 = vadd.f32 %v10201_v32, %v8116_v12  ;;  %v3974_v51 = vsub.f32 %v6692_v31, %v6363_v53  ;;  %v4197_v27 = vmul.f32 %v3973_v2, %v3973_v2 }
 0x6a6   : > { %v4583_v53 = vsel %vm4387_vm0, %v4196_v42, 0.0 }
 0x6a7   : > { %v4801_v9 = vadd.f32 %v4800_v57, %v4578_v49  ;;  %v6367_v57 = vpop.eup %6366  ;;  %v3975_v49 = vsub.f32 %v6693_v15, %v6365_v5  ;;  %6378 = vtanh.f32 %v3017_v3  ;;  %v4198_v4 = vmul.f32 %v3974_v51, %v3974_v51  ;;  %v6695_v5 = vld [vmem:[%s7469_s20 + $0x3c8] sm:$0xff]  ;;  %v6696_v51 = vld [vmem:[%s7469_s20 + $0x3d0] sm:$0xff] }
 0x6a8   : > { %v3976_v44 = vsub.f32 %v6694_v8, %v6367_v57  ;;  %6380 = vtanh.f32 %v3019_v47  ;;  %v4584_v32 = vsel %vm4387_vm0, %v4197_v27, 0.0 }
 0x6a9   : > { %v4802_v29 = vadd.f32 %v4801_v9, %v4579_v61  ;;  %v6369_v9 = vpop.eup %6368  ;;  %v3210_v61 = vadd.f32 %v10203_v63, %v8119_v13  ;;  %v4199_v2 = vmul.f32 %v3975_v49, %v3975_v49  ;;  %v4585_v57 = vsel %vm4387_vm0, %v4198_v4, 0.0  ;;  %v6697_v49 = vld [vmem:[%s7469_s20 + $0x3d8] sm:$0xff] }
 0x6aa   : > { %v3977_v34 = vsub.f32 %v6695_v5, %v6369_v9  ;;  %v4200_v31 = vmul.f32 %v3976_v44, %v3976_v44  ;;  %v10205_v44 = vld [vmem:[#allocation78_spill] sm:$0xff]  ;;  %v10206_v5 = vld [vmem:[#allocation80_spill] sm:$0xff]  ;;  %vm4924_vm0 = vcmask 0  }
 0x6ab   : > { %v4803_v16 = vadd.f32 %v4802_v29, %v4580_v0  ;;  %v6371_v29 = vpop.eup %6370  ;;  %v10204_v0 = vld [vmem:[#allocation77_spill] sm:$0xff]  ;;  %6382 = vtanh.f32 %v3210_v61  ;;  %v6698_v61 = vld [vmem:[%s7469_s20 + $0x3e0] sm:$0xff]  ;;  %v3021_v4 = vadd.f32 %v10205_v44, %v8116_v12 }
 0x6ac   : > { %v3212_v48 = vadd.f32 %v10204_v0, %v8125_v33  ;;  %v6373_v3 = vpop.eup %6372  ;;  %v3978_v42 = vsub.f32 %v6696_v51, %v6371_v29  ;;  %v4201_v15 = vmul.f32 %v3977_v34, %v3977_v34  ;;  %v4587_v56 = vsel %vm4388_vm1, %v4200_v31, 0.0  ;;  %v6699_v0 = vld [vmem:[%s7469_s20 + $0x3e8] sm:$0xff] }
 0x6ad   : > { %v4804_v45 = vadd.f32 %v4803_v16, %v4581_v55  ;;  %v3403_v55 = vadd.f32 %v8650_v50, %v8472_v23  ;;  %v6375_v18 = vpop.eup %6374  ;;  %v3979_v50 = vsub.f32 %v6697_v49, %v6373_v3  ;;  %v3023_v34 = vadd.f32 %v10206_v5, %v8122_v10 }
 0x6ae   : > { %6384 = vtanh.f32 %v3212_v48  ;;  %v6377_v27 = vpop.eup %6376  ;;  %v4202_v63 = vmul.f32 %v3978_v42, %v3978_v42  ;;  %v4588_v29 = vsel %vm4388_vm1, %v4201_v15, 0.0 }
 0x6af   : > { %v4805_v41 = vadd.f32 %v4804_v45, %v4582_v26  ;;  %v3405_v45 = vadd.f32 %v8657_v11, %v8496_v30  ;;  %v4586_v26 = vsel %vm4388_vm1, %v4199_v2, 0.0  ;;  %6386 = vtanh.f32 %v3403_v55  ;;  %v6700_v55 = vld [vmem:[%s7469_s20 + $0x3f0] sm:$0xff] }
 0x6b0   : > { %v4324_v11 = vadd.s32 144, %v8105_v14  ;;  %v3981_v48 = vsub.f32 %v6699_v0, %v6377_v27  ;;  %v6703_v0 = vld [vmem:[%s7469_s20 + $0x408] sm:$0xff] }
 0x6b1   : > { %v4806_v36 = vadd.f32 %v4805_v41, %v4583_v53  ;;  %v3980_v41 = vsub.f32 %v6698_v61, %v6375_v18  ;;  %v6379_v8 = vpop.eup %6378  ;;  %6388 = vtanh.f32 %v3405_v45  ;;  %v10208_v18 = vld [vmem:[#allocation79_spill] sm:$0xff] }
 0x6b2   : > { %v6381_v2 = vpop.eup %6380  ;;  %v3982_v31 = vsub.f32 %v6700_v55, %v6379_v8  ;;  %v4205_v49 = vmul.f32 %v3981_v48, %v3981_v48 }
 0x6b3   : > { %v4807_v16 = vadd.f32 %v4806_v36, %v4584_v32  ;;  %v4203_v36 = vmul.f32 %v3979_v50, %v3979_v50  ;;  %v10207_v32 = vld [vmem:[#allocation157_spill] sm:$0xff]  ;;  %v4204_v51 = vmul.f32 %v3980_v41, %v3980_v41  ;;  %v6702_v41 = vld [vmem:[%s7469_s20 + $0x400] sm:$0xff] }
 0x6b4   : > { %6390 = vtanh.f32 %v10207_v32  ;;  %v4206_v61 = vmul.f32 %v3982_v31, %v3982_v31 }
 0x6b5   : > { %v4808_v47 = vadd.f32 %v4807_v16, %v4585_v57  ;;  %v4589_v16 = vsel %vm4388_vm1, %v4202_v63, 0.0  ;;  %v6383_v42 = vpop.eup %6382  ;;  %v9387_v57 = vadd.s32 %v8143_v39, %v4324_v11  ;;  %6392 = vtanh.f32 %v3021_v4 }
 0x6b6   : > { %v4590_v50 = vsel %vm4388_vm1, %v4203_v36, 0.0  ;;  %6394 = vtanh.f32 %v3023_v34  ;;  %v3984_v8 = vsub.f32 %v6702_v41, %v6383_v42  ;;  %v4591_v11 = vsel %vm4388_vm1, %v4204_v51, 0.0  ;;  %v6705_v42 = vld [vmem:[%s7469_s20 + $0x418] sm:$0xff] }
 0x6b7   : > { %v4809_v9 = vadd.f32 %v4808_v47, %v4586_v26  ;;  %v3214_v47 = vadd.f32 %v10208_v18, %v8119_v13  ;;  %v6701_v26 = vld [vmem:[%s7469_s20 + $0x3f8] sm:$0xff]  ;;  %vm4389_vm2 = vcmp.lt.s32.totalorder %v9387_v57, 300  ;;  %v4592_v36 = vsel %vm4388_vm1, %v4205_v49, 0.0 }
 0x6b8   : > { %v3983_v15 = vsub.f32 %v6701_v26, %v6381_v2  ;;  %v6385_v27 = vpop.eup %6384  ;;  %v3409_v34 = vadd.f32 %v8669_v7, %v8496_v30  ;;  %v4593_v32 = vsel %vm4389_vm2, %v4206_v61, 0.0  ;;  %v4325_v7 = vadd.s32 152, %v8105_v14 }
 0x6b9   : > { %v4810_v53 = vadd.f32 %v4809_v9, %v4587_v56  ;;  %v10209_v9 = vld [vmem:[#allocation81_spill] sm:$0xff]  ;;  %v6387_v44 = vpop.eup %6386  ;;  %6396 = vtanh.f32 %v3214_v47  ;;  %v3985_v48 = vsub.f32 %v6703_v0, %v6385_v27  ;;  %v10212_v0 = vld [vmem:[#allocation83_spill] sm:$0xff] }
 0x6ba   : > { %v3216_v56 = vadd.f32 %v10209_v9, %v8125_v33 }
 0x6bb   : > { %v4811_v3 = vadd.f32 %v4810_v53, %v4588_v29  ;;  %v3407_v53 = vadd.f32 %v8666_v19, %v8472_v23  ;;  %v4207_v29 = vmul.f32 %v3983_v15, %v3983_v15  ;;  %v6389_v2 = vpop.eup %6388  ;;  %v4209_v51 = vmul.f32 %v3985_v48, %v3985_v48 }
 0x6bc   : > { %6398 = vtanh.f32 %v3216_v56  ;;  %v3987_v18 = vsub.f32 %v6705_v42, %v6389_v2  ;;  %v3220_v48 = vadd.f32 %v10212_v0, %v8119_v13  ;;  %v6708_v2 = vld [vmem:[%s7469_s20 + $0x430] sm:$0xff] }
 0x6bd   : > { %v4812_v45 = vadd.f32 %v4811_v3, %v4589_v16  ;;  %v4208_v3 = vmul.f32 %v3984_v8, %v3984_v8  ;;  %v6704_v16 = vld [vmem:[%s7469_s20 + $0x410] sm:$0xff]  ;;  %6400 = vtanh.f32 %v3407_v53  ;;  %v4594_v6 = vsel %vm4389_vm2, %v4207_v29, 0.0 }
 0x6be   : > { %v3986_v19 = vsub.f32 %v6704_v16, %v6387_v44  ;;  %v6391_v55 = vpop.eup %6390  ;;  %6402 = vtanh.f32 %v3409_v34  ;;  %v4596_v8 = vsel %vm4389_vm2, %v4209_v51, 0.0  ;;  %v9426_v29 = vadd.s32 %v8143_v39, %v4325_v7 }
 0x6bf   : > { %v4813_v63 = vadd.f32 %v4812_v45, %v4590_v50  ;;  %v6393_v47 = vpop.eup %6392  ;;  %v10210_v45 = vld [vmem:[#allocation82_spill] sm:$0xff]  ;;  %v4595_v49 = vsel %vm4389_vm2, %v4208_v3, 0.0  ;;  %v6706_v50 = vld [vmem:[%s7469_s20 + $0x420] sm:$0xff]  ;;  %6404 = vtanh.f32 %v8664_v17  ;;  %v10213_v3 = vld [vmem:[#allocation85_spill] sm:$0xff] }
 0x6c0   : > { %v3027_v26 = vadd.f32 %v10210_v45, %v8116_v12  ;;  %v3988_v27 = vsub.f32 %v6706_v50, %v6391_v55  ;;  %v4210_v9 = vmul.f32 %v3986_v19, %v3986_v19  ;;  %v6395_v56 = vpop.eup %6394  ;;  %v3222_v16 = vadd.f32 %v10213_v3, %v8125_v33  ;;  %v6710_v45 = vld [vmem:[%s7469_s20 + $0x440] sm:$0xff] }
 0x6c1   : > { %v4814_v4 = vadd.f32 %v4813_v63, %v4591_v11  ;;  %v10211_v63 = vld [vmem:[#allocation84_spill] sm:$0xff]  ;;  %vm4390_vm3 = vcmp.lt.s32.totalorder %v9426_v29, 300 }
 0x6c2   : > { %v3029_v61 = vadd.f32 %v10211_v63, %v8122_v10  ;;  %v6707_v11 = vld [vmem:[%s7469_s20 + $0x428] sm:$0xff]  ;;  %6406 = vtanh.f32 %v3027_v26  ;;  %v4212_v17 = vmul.f32 %v3988_v27, %v3988_v27  ;;  %v4597_v34 = vsel %vm4389_vm2, %v4210_v9, 0.0 }
 0x6c3   : > { %v4815_v5 = vadd.f32 %v4814_v4, %v4592_v36  ;;  %v3989_v44 = vsub.f32 %v6707_v11, %v6393_v47  ;;  %v4211_v4 = vmul.f32 %v3987_v18, %v3987_v18  ;;  %v6397_v53 = vpop.eup %6396  ;;  %v3413_v47 = vadd.f32 %v8700_v21, %v8472_v23  ;;  %v6711_v63 = vld [vmem:[%s7469_s20 + $0x448] sm:$0xff]  ;;  %v6712_v11 = vld [vmem:[%s7469_s20 + $0x450] sm:$0xff] }
 0x6c4   : > { %6408 = vtanh.f32 %v3029_v61  ;;  %v3415_v27 = vadd.f32 %v8705_v28, %v8496_v30  ;;  %v4326_v28 = vadd.s32 160, %v8105_v14 }
 0x6c5   : > { %v4816_v31 = vadd.f32 %v4815_v5, %v4593_v32  ;;  %v3990_v5 = vsub.f32 %v6708_v2, %v6395_v56  ;;  %v4213_v55 = vmul.f32 %v3989_v44, %v3989_v44  ;;  %v4598_v51 = vsel %vm4389_vm2, %v4211_v4, 0.0  ;;  %v6713_v2 = vld [vmem:[%s7469_s20 + $0x458] sm:$0xff] }
 0x6c6   : > { %v6399_v32 = vpop.eup %6398  ;;  %6410 = vtanh.f32 %v3220_v48 }
 0x6c7   : > { %v4817_v15 = vadd.f32 %v4816_v31, %v4594_v6  ;;  %v6709_v31 = vld [vmem:[%s7469_s20 + $0x438] sm:$0xff]  ;;  %v6401_v42 = vpop.eup %6400  ;;  %v4214_v7 = vmul.f32 %v3990_v5, %v3990_v5  ;;  %v3992_v26 = vsub.f32 %v6710_v45, %v6399_v32  ;;  %6412 = vtanh.f32 %v3222_v16  ;;  %v10215_v32 = vld [vmem:[#allocation88_spill] sm:$0xff] }
 0x6c8   : > { %v3991_v6 = vsub.f32 %v6709_v31, %v6397_v53  ;;  %v4600_v9 = vsel %vm4390_vm3, %v4213_v55, 0.0  ;;  %v3993_v21 = vsub.f32 %v6711_v63, %v6401_v42  ;;  %6414 = vtanh.f32 %v3413_v47  ;;  %v10214_v53 = vld [vmem:[#allocation86_spill] sm:$0xff]  ;;  %v6714_v55 = vld [vmem:[%s7469_s20 + $0x460] sm:$0xff]  ;;  %v6715_v45 = vld [vmem:[%s7469_s20 + $0x468] sm:$0xff] }
 0x6c9   : > { %v4818_v41 = vadd.f32 %v4817_v15, %v4595_v49  ;;  %v4599_v15 = vsel %vm4389_vm2, %v4212_v17, 0.0  ;;  %v6403_v49 = vpop.eup %6402  ;;  %v4601_v57 = vsel %vm4390_vm3, %v4214_v7, 0.0  ;;  %v3031_v0 = vadd.f32 %v10214_v53, %v8116_v12  ;;  %v6716_v63 = vld [vmem:[%s7469_s20 + $0x470] sm:$0xff] }
 0x6ca   : > { %v4215_v56 = vmul.f32 %v3991_v6, %v3991_v6  ;;  %v6405_v61 = vpop.eup %6404  ;;  %v3994_v44 = vsub.f32 %v6712_v11, %v6403_v49  ;;  %6416 = vtanh.f32 %v3415_v27  ;;  %v4217_v17 = vmul.f32 %v3993_v21, %v3993_v21 }
 0x6cb   : > { %v4819_v36 = vadd.f32 %v4818_v41, %v4596_v8  ;;  %v4216_v8 = vmul.f32 %v3992_v26, %v3992_v26  ;;  %v3995_v5 = vsub.f32 %v6713_v2, %v6405_v61  ;;  %v3033_v3 = vadd.f32 %v10215_v32, %v8122_v10 }
 0x6cc   : > { %v6407_v4 = vpop.eup %6406  ;;  %6418 = vtanh.f32 %v8694_v54  ;;  %v4218_v6 = vmul.f32 %v3994_v44, %v3994_v44  ;;  %v9465_v42 = vadd.s32 %v8143_v39, %v4326_v28  ;;  %v6717_v44 = vld [vmem:[%s7469_s20 + $0x478] sm:$0xff] }
 0x6cd   : > { %v4820_v19 = vadd.f32 %v4819_v36, %v4597_v34  ;;  %v4602_v36 = vsel %vm4390_vm3, %v4215_v56, 0.0  ;;  %v3996_v31 = vsub.f32 %v6714_v55, %v6407_v4  ;;  %6420 = vtanh.f32 %v3031_v0  ;;  %v10218_v55 = vld [vmem:[#allocation90_spill] sm:$0xff] }
 0x6ce   : > { %v6409_v34 = vpop.eup %6408  ;;  %v4219_v54 = vmul.f32 %v3995_v5, %v3995_v5  ;;  %6422 = vtanh.f32 %v3033_v3  ;;  %v4605_v61 = vsel %vm4390_vm3, %v4218_v6, 0.0  ;;  %vm4391_vm4 = vcmp.lt.s32.totalorder %v9465_v42, 300  ;;  %v6718_v5 = vld [vmem:[%s7469_s20 + $0x480] sm:$0xff]  ;;  %v6719_v3 = vld [vmem:[%s7469_s20 + $0x488] sm:$0xff] }
 0x6cf   : > { %v4821_v18 = vadd.f32 %v4820_v19, %v4598_v51  ;;  %v4603_v19 = vsel %vm4390_vm3, %v4216_v8, 0.0  ;;  %v3997_v26 = vsub.f32 %v6715_v45, %v6409_v34  ;;  %v4220_v56 = vmul.f32 %v3996_v31, %v3996_v31 }
 0x6d0   : > { %v6411_v51 = vpop.eup %6410  ;;  %v3417_v8 = vadd.f32 %v8714_v25, %v8472_v23  ;;  %v4606_v28 = vsel %vm4390_vm3, %v4219_v54, 0.0  ;;  %v3037_v31 = vadd.f32 %v10218_v55, %v8116_v12 }
 0x6d1   : > { %v4822_v50 = vadd.f32 %v4821_v18, %v4599_v15  ;;  %v10216_v18 = vld [vmem:[#allocation87_spill] sm:$0xff]  ;;  %v4604_v15 = vsel %vm4390_vm3, %v4217_v17, 0.0  ;;  %v6413_v49 = vpop.eup %6412  ;;  %v3998_v21 = vsub.f32 %v6716_v63, %v6411_v51  ;;  %v4221_v11 = vmul.f32 %v3997_v26, %v3997_v26  ;;  %v10219_v26 = vld [vmem:[#allocation92_spill] sm:$0xff] }
 0x6d2   : > { %v3224_v47 = vadd.f32 %v10216_v18, %v8119_v13  ;;  %v3999_v4 = vsub.f32 %v6717_v44, %v6413_v49  ;;  %v6720_v18 = vld [vmem:[%s7469_s20 + $0x490] sm:$0xff]  ;;  %v3039_v54 = vadd.f32 %v10219_v26, %v8122_v10 }
 0x6d3   : > { %v4823_v41 = vadd.f32 %v4822_v50, %v4600_v9  ;;  %v10217_v50 = vld [vmem:[#allocation89_spill] sm:$0xff]  ;;  %v4222_v2 = vmul.f32 %v3998_v21, %v3998_v21  ;;  %v4608_v29 = vsel %vm4391_vm4, %v4221_v11, 0.0  ;;  %v10220_v21 = vld [vmem:[#allocation91_spill] sm:$0xff] }
 0x6d4   : > { %v3226_v27 = vadd.f32 %v10217_v50, %v8125_v33  ;;  %6424 = vtanh.f32 %v3224_v47  ;;  %v4223_v32 = vmul.f32 %v3999_v4, %v3999_v4  ;;  %v6721_v50 = vld [vmem:[%s7469_s20 + $0x498] sm:$0xff]  ;;  %v10221_v4 = vld [vmem:[#allocation93_spill] sm:$0xff] }
 0x6d5   : > { %v4824_v48 = vadd.f32 %v4823_v41, %v4601_v57  ;;  %v6415_v41 = vpop.eup %6414  ;;  %v4609_v51 = vsel %vm4391_vm4, %v4222_v2, 0.0 }
 0x6d6   : > { %v6417_v53 = vpop.eup %6416  ;;  %6426 = vtanh.f32 %v3226_v27  ;;  %v4000_v25 = vsub.f32 %v6718_v5, %v6415_v41  ;;  %v4610_v49 = vsel %vm4391_vm4, %v4223_v32, 0.0 }
 0x6d7   : > { %v4825_v16 = vadd.f32 %v4824_v48, %v4602_v36  ;;  %v3419_v48 = vadd.f32 %v8720_v58, %v8496_v30  ;;  %v4607_v36 = vsel %vm4391_vm4, %v4220_v56, 0.0  ;;  %v6419_v17 = vpop.eup %6418  ;;  %6428 = vtanh.f32 %v3417_v8 }
 0x6d8   : > { %v4327_v58 = vadd.s32 168, %v8105_v14  ;;  %v4002_v47 = vsub.f32 %v6720_v18, %v6419_v17  ;;  %v3423_v17 = vadd.f32 %v8756_v52, %v8472_v23 }
 0x6d9   : > { %v4826_v7 = vadd.f32 %v4825_v16, %v4603_v19  ;;  %v4001_v16 = vsub.f32 %v6719_v3, %v6417_v53  ;;  %v6421_v19 = vpop.eup %6420  ;;  %6430 = vtanh.f32 %v3419_v48  ;;  %v6723_v48 = vld [vmem:[%s7469_s20 + $0x4a8] sm:$0xff] }
 0x6da   : > { %v6423_v45 = vpop.eup %6422  ;;  %6432 = vtanh.f32 %v8712_v38  ;;  %v4003_v27 = vsub.f32 %v6721_v50, %v6421_v19  ;;  %v9504_v63 = vadd.s32 %v8143_v39, %v4327_v58  ;;  %v4226_v38 = vmul.f32 %v4002_v47, %v4002_v47 }
 0x6db   : > { %v4827_v9 = vadd.f32 %v4826_v7, %v4604_v15  ;;  %v4224_v7 = vmul.f32 %v4000_v25, %v4000_v25  ;;  %6434 = vtanh.f32 %v3037_v31  ;;  %v3425_v58 = vadd.f32 %v8761_v24, %v8496_v30 }
 0x6dc   : > { %6436 = vtanh.f32 %v3039_v54  ;;  %vm4392_vm5 = vcmp.lt.s32.totalorder %v9504_v63, 300  ;;  %v4613_v3 = vsel %vm4391_vm4, %v4226_v38, 0.0  ;;  %v4328_v24 = vadd.s32 176, %v8105_v14  ;;  %v10222_v54 = vld [vmem:[#allocation94_spill] sm:$0xff] }
 0x6dd   : > { %v4828_v57 = vadd.f32 %v4827_v9, %v4605_v61  ;;  %v4225_v9 = vmul.f32 %v4001_v16, %v4001_v16  ;;  %v3230_v61 = vadd.f32 %v10220_v21, %v8119_v13  ;;  %v4611_v11 = vsel %vm4391_vm4, %v4224_v7, 0.0  ;;  %v6726_v7 = vld [vmem:[%s7469_s20 + $0x4c0] sm:$0xff]  ;;  %v6728_v38 = vld [vmem:[%s7469_s20 + $0x4d0] sm:$0xff] }
 0x6de   : > { %v6425_v56 = vpop.eup %6424 }
 0x6df   : > { %v4829_v0 = vadd.f32 %v4828_v57, %v4606_v28  ;;  %v6722_v57 = vld [vmem:[%s7469_s20 + $0x4a0] sm:$0xff]  ;;  %v3232_v28 = vadd.f32 %v10221_v4, %v8125_v33  ;;  %v4612_v2 = vsel %vm4391_vm4, %v4225_v9, 0.0  ;;  %6438 = vtanh.f32 %v3230_v61 }
 0x6e0   : > { %v4004_v8 = vsub.f32 %v6722_v57, %v6423_v45  ;;  %v6427_v44 = vpop.eup %6426  ;;  %v10223_v61 = vld [vmem:[#allocation96_spill] sm:$0xff] }
 0x6e1   : > { %v4830_v34 = vadd.f32 %v4829_v0, %v4607_v36  ;;  %v4227_v0 = vmul.f32 %v4003_v27, %v4003_v27  ;;  %v4005_v36 = vsub.f32 %v6723_v48, %v6425_v56  ;;  %v6429_v5 = vpop.eup %6428  ;;  %6440 = vtanh.f32 %v3232_v28  ;;  %v6727_v27 = vld [vmem:[%s7469_s20 + $0x4c8] sm:$0xff] }
 0x6e2   : > { %6442 = vtanh.f32 %v3423_v17  ;;  %v9543_v28 = vadd.s32 %v8143_v39, %v4328_v24  ;;  %v10225_v17 = vld [vmem:[#allocation97_spill] sm:$0xff] }
 0x6e3   : > { %v4831_v6 = vadd.f32 %v4830_v34, %v4608_v29  ;;  %v4228_v34 = vmul.f32 %v4004_v8, %v4004_v8  ;;  %v6724_v29 = vld [vmem:[%s7469_s20 + $0x4b0] sm:$0xff]  ;;  %v6431_v16 = vpop.eup %6430  ;;  %v4614_v55 = vsel %vm4392_vm5, %v4227_v0, 0.0  ;;  %v4229_v31 = vmul.f32 %v4005_v36, %v4005_v36  ;;  %v6729_v36 = vld [vmem:[%s7469_s20 + $0x4d8] sm:$0xff] }
 0x6e4   : > { %v4006_v32 = vsub.f32 %v6724_v29, %v6427_v44  ;;  %v4008_v45 = vsub.f32 %v6726_v7, %v6431_v16  ;;  %6444 = vtanh.f32 %v3425_v58  ;;  %vm4393_vm6 = vcmp.lt.s32.totalorder %v9543_v28, 300  ;;  %v6732_v24 = vld [vmem:[%s7469_s20 + $0x4f0] sm:$0xff] }
 0x6e5   : > { %v4832_v15 = vadd.f32 %v4831_v6, %v4609_v51  ;;  %v6725_v6 = vld [vmem:[%s7469_s20 + $0x4b8] sm:$0xff]  ;;  %v6433_v51 = vpop.eup %6432  ;;  %v4615_v42 = vsel %vm4392_vm5, %v4228_v34, 0.0  ;;  %v4616_v50 = vsel %vm4392_vm5, %v4229_v31, 0.0  ;;  %6446 = vtanh.f32 %v8685_v35 }
 0x6e6   : > { %v4007_v52 = vsub.f32 %v6725_v6, %v6429_v5  ;;  %v4230_v47 = vmul.f32 %v4006_v32, %v4006_v32  ;;  %v6435_v26 = vpop.eup %6434  ;;  %v4009_v9 = vsub.f32 %v6727_v27, %v6433_v51  ;;  %v4232_v44 = vmul.f32 %v4008_v45, %v4008_v45 }
 0x6e7   : > { %v4833_v41 = vadd.f32 %v4832_v15, %v4610_v49  ;;  %v3041_v15 = vadd.f32 %v10222_v54, %v8116_v12  ;;  %v6437_v21 = vpop.eup %6436  ;;  %v3236_v34 = vadd.f32 %v10225_v17, %v8125_v33  ;;  %v3427_v31 = vadd.f32 %v8770_v40, %v8472_v23 }
 0x6e8   : > { %v4231_v56 = vmul.f32 %v4007_v52, %v4007_v52  ;;  %v4617_v8 = vsel %vm4392_vm5, %v4230_v47, 0.0  ;;  %v4233_v35 = vmul.f32 %v4009_v9, %v4009_v9  ;;  %v6731_v52 = vld [vmem:[%s7469_s20 + $0x4e8] sm:$0xff]  ;;  %v3429_v7 = vadd.f32 %v8775_v60, %v8496_v30 }
 0x6e9   : > { %v4834_v53 = vadd.f32 %v4833_v41, %v4611_v11  ;;  %v3043_v41 = vadd.f32 %v10223_v61, %v8122_v10  ;;  %v4010_v11 = vsub.f32 %v6728_v38, %v6435_v26  ;;  %v6439_v4 = vpop.eup %6438  ;;  %6448 = vtanh.f32 %v3041_v15 }
 0x6ea   : > { %v4618_v5 = vsel %vm4392_vm5, %v4231_v56, 0.0  ;;  %v4329_v60 = vadd.s32 184, %v8105_v14  ;;  %v10226_v56 = vld [vmem:[#allocation98_spill] sm:$0xff] }
 0x6eb   : > { %v4835_v25 = vadd.f32 %v4834_v53, %v4612_v2  ;;  %v10224_v53 = vld [vmem:[#allocation95_spill] sm:$0xff]  ;;  %v4011_v2 = vsub.f32 %v6729_v36, %v6437_v21  ;;  %6450 = vtanh.f32 %v3043_v41  ;;  %v4234_v32 = vmul.f32 %v4010_v11, %v4010_v11 }
 0x6ec   : > { %v3234_v0 = vadd.f32 %v10224_v53, %v8119_v13  ;;  %v3047_v21 = vadd.f32 %v10226_v56, %v8116_v12  ;;  %v6740_v56 = vld [vmem:[%s7469_s20 + $0x530] sm:$0xff] }
 0x6ed   : > { %v4836_v19 = vadd.f32 %v4835_v25, %v4613_v3  ;;  %v6441_v25 = vpop.eup %6440  ;;  %v6730_v3 = vld [vmem:[%s7469_s20 + $0x4e0] sm:$0xff]  ;;  %v4235_v6 = vmul.f32 %v4011_v2, %v4011_v2  ;;  %v4621_v45 = vsel %vm4393_vm6, %v4234_v32, 0.0 }
 0x6ee   : > { %v4012_v16 = vsub.f32 %v6730_v3, %v6439_v4  ;;  %v6443_v58 = vpop.eup %6442  ;;  %6452 = vtanh.f32 %v3234_v0  ;;  %v4013_v51 = vsub.f32 %v6731_v52, %v6441_v25  ;;  %v10228_v25 = vld [vmem:[#allocation99_spill] sm:$0xff] }
 0x6ef   : > { %v4837_v18 = vadd.f32 %v4836_v19, %v4614_v55  ;;  %v4619_v19 = vsel %vm4392_vm5, %v4232_v44, 0.0  ;;  %6454 = vtanh.f32 %v3236_v34  ;;  %v4014_v40 = vsub.f32 %v6732_v24, %v6443_v58  ;;  %v10227_v44 = vld [vmem:[#allocation100_spill] sm:$0xff] }
 0x6f0   : > { %v4236_v26 = vmul.f32 %v4012_v16, %v4012_v16  ;;  %6456 = vtanh.f32 %v3427_v31  ;;  %v4622_v63 = vsel %vm4393_vm6, %v4235_v6, 0.0  ;;  %v3049_v4 = vadd.f32 %v10227_v44, %v8122_v10  ;;  %v6737_v6 = vld [vmem:[%s7469_s20 + $0x518] sm:$0xff] }
 0x6f1   : > { %v4838_v49 = vadd.f32 %v4837_v18, %v4615_v42  ;;  %v4620_v18 = vsel %vm4392_vm5, %v4233_v35, 0.0  ;;  %v6445_v42 = vpop.eup %6444  ;;  %6458 = vtanh.f32 %v3429_v7  ;;  %v4238_v38 = vmul.f32 %v4014_v40, %v4014_v40 }
 0x6f2   : > { %v6447_v54 = vpop.eup %6446  ;;  %v4623_v41 = vsel %vm4393_vm6, %v4236_v26, 0.0  ;;  %6460 = vtanh.f32 %v8698_v37  ;;  %v3240_v17 = vadd.f32 %v10228_v25, %v8119_v13 }
 0x6f3   : > { %v4839_v57 = vadd.f32 %v4838_v49, %v4616_v50  ;;  %v4237_v49 = vmul.f32 %v4013_v51, %v4013_v51  ;;  %v6733_v50 = vld [vmem:[%s7469_s20 + $0x4f8] sm:$0xff]  ;;  %v6449_v9 = vpop.eup %6448  ;;  %6462 = vtanh.f32 %v3047_v21  ;;  %v4625_v3 = vsel %vm4393_vm6, %v4238_v38, 0.0 }
 0x6f4   : > { %v4015_v27 = vsub.f32 %v6733_v50, %v6445_v42  ;;  %6464 = vtanh.f32 %v3049_v4  ;;  %v6739_v50 = vld [vmem:[%s7469_s20 + $0x528] sm:$0xff] }
 0x6f5   : > { %v4840_v48 = vadd.f32 %v4839_v57, %v4617_v8  ;;  %v6734_v57 = vld [vmem:[%s7469_s20 + $0x500] sm:$0xff]  ;;  %v6451_v11 = vpop.eup %6450  ;;  %v4624_v0 = vsel %vm4393_vm6, %v4237_v49, 0.0  ;;  %6466 = vtanh.f32 %v3240_v17 }
 0x6f6   : > { %v4016_v8 = vsub.f32 %v6734_v57, %v6447_v54  ;;  %v4239_v2 = vmul.f32 %v4015_v27, %v4015_v27 }
 0x6f7   : > { %v4841_v29 = vadd.f32 %v4840_v48, %v4618_v5  ;;  %v6735_v48 = vld [vmem:[%s7469_s20 + $0x508] sm:$0xff]  ;;  %v9582_v5 = vadd.s32 %v8143_v39, %v4329_v60 }
 0x6f8   : > { %v4017_v36 = vsub.f32 %v6735_v48, %v6449_v9  ;;  %v6453_v35 = vpop.eup %6452  ;;  %v4240_v37 = vmul.f32 %v4016_v8, %v4016_v8  ;;  %v4626_v51 = vsel %vm4393_vm6, %v4239_v2, 0.0 }
 0x6f9   : > { %v4842_v55 = vadd.f32 %v4841_v29, %v4619_v19  ;;  %v6736_v29 = vld [vmem:[%s7469_s20 + $0x510] sm:$0xff]  ;;  %v6455_v16 = vpop.eup %6454  ;;  %v4019_v52 = vsub.f32 %v6737_v6, %v6453_v35  ;;  %vm4394_vm7 = vcmp.lt.s32.totalorder %v9582_v5, 300  ;;  %v6742_v35 = vld [vmem:[%s7469_s20 + $0x540] sm:$0xff] }
 0x6fa   : > { %v4018_v32 = vsub.f32 %v6736_v29, %v6451_v11  ;;  %v10229_v19 = vld [vmem:[#allocation101_spill] sm:$0xff]  ;;  %v4241_v31 = vmul.f32 %v4017_v36, %v4017_v36  ;;  %v4627_v24 = vsel %vm4393_vm6, %v4240_v37, 0.0  ;;  %v6741_v11 = vld [vmem:[%s7469_s20 + $0x538] sm:$0xff] }
 0x6fb   : > { %v4843_v47 = vadd.f32 %v4842_v55, %v4620_v18  ;;  %v3242_v58 = vadd.f32 %v10229_v19, %v8125_v33  ;;  %v6457_v18 = vpop.eup %6456  ;;  %v4243_v49 = vmul.f32 %v4019_v52, %v4019_v52 }
 0x6fc   : > { %v4242_v7 = vmul.f32 %v4018_v32, %v4018_v32  ;;  %v6459_v40 = vpop.eup %6458  ;;  %v10232_v32 = vld [vmem:[#allocation103_spill] sm:$0xff] }
 0x6fd   : > { %v4844_v15 = vadd.f32 %v4843_v47, %v4621_v45  ;;  %v3433_v47 = vadd.f32 %v8797_v20, %v8472_v23  ;;  %v6738_v45 = vld [vmem:[%s7469_s20 + $0x520] sm:$0xff]  ;;  %6468 = vtanh.f32 %v3242_v58  ;;  %v4021_v20 = vsub.f32 %v6739_v50, %v6457_v18  ;;  %v6461_v27 = vpop.eup %6460  ;;  %v6744_v18 = vld [vmem:[%s7469_s20 + $0x550] sm:$0xff] }
 0x6fe   : > { %v4020_v26 = vsub.f32 %v6738_v45, %v6455_v16  ;;  %v4629_v28 = vsel %vm4394_vm7, %v4242_v7, 0.0  ;;  %v4022_v21 = vsub.f32 %v6740_v56, %v6459_v40  ;;  %v4630_v38 = vsel %vm4394_vm7, %v4243_v49, 0.0  ;;  %v6743_v16 = vld [vmem:[%s7469_s20 + $0x548] sm:$0xff]  ;;  %v6745_v40 = vld [vmem:[%s7469_s20 + $0x558] sm:$0xff] }
 0x6ff   : > { %v4845_v61 = vadd.f32 %v4844_v15, %v4622_v63  ;;  %v3435_v15 = vadd.f32 %v8802_v46, %v8496_v30  ;;  %v4628_v63 = vsel %vm4394_vm7, %v4241_v31, 0.0  ;;  %6470 = vtanh.f32 %v3433_v47  ;;  %v10233_v31 = vld [vmem:[#allocation105_spill] sm:$0xff] }
 0x700   : > { %v4244_v60 = vmul.f32 %v4020_v26, %v4020_v26  ;;  %v4330_v46 = vadd.s32 192, %v8105_v14  ;;  %v4023_v44 = vsub.f32 %v6741_v11, %v6461_v27  ;;  %v4245_v4 = vmul.f32 %v4021_v20, %v4021_v20  ;;  %v6748_v11 = vld [vmem:[%s7469_s20 + $0x570] sm:$0xff] }
 0x701   : > { %v4846_v53 = vadd.f32 %v4845_v61, %v4623_v41  ;;  %v6463_v61 = vpop.eup %6462  ;;  %v10230_v41 = vld [vmem:[#allocation102_spill] sm:$0xff]  ;;  %6472 = vtanh.f32 %v3435_v15  ;;  %v4246_v17 = vmul.f32 %v4022_v21, %v4022_v21  ;;  %v3244_v37 = vadd.f32 %v10232_v32, %v8119_v13  ;;  %v6747_v21 = vld [vmem:[%s7469_s20 + $0x568] sm:$0xff] }
 0x702   : > { %v3051_v57 = vadd.f32 %v10230_v41, %v8116_v12  ;;  %6474 = vtanh.f32 %v8729_v59  ;;  %v4631_v2 = vsel %vm4394_vm7, %v4244_v60, 0.0  ;;  %v4024_v25 = vsub.f32 %v6742_v35, %v6463_v61  ;;  %v10234_v41 = vld [vmem:[#allocation106_spill] sm:$0xff] }
 0x703   : > { %v4847_v34 = vadd.f32 %v4846_v53, %v4624_v0  ;;  %v6465_v53 = vpop.eup %6464  ;;  %v10231_v0 = vld [vmem:[#allocation104_spill] sm:$0xff]  ;;  %v9621_v29 = vadd.s32 %v8143_v39, %v4330_v46  ;;  %v4247_v59 = vmul.f32 %v4023_v44, %v4023_v44  ;;  %v4632_v58 = vsel %vm4394_vm7, %v4245_v4, 0.0 }
 0x704   : > { %v3053_v48 = vadd.f32 %v10231_v0, %v8122_v10  ;;  %6476 = vtanh.f32 %v3051_v57  ;;  %v4025_v19 = vsub.f32 %v6743_v16, %v6465_v53  ;;  %v3246_v6 = vadd.f32 %v10233_v31, %v8125_v33  ;;  %v10235_v0 = vld [vmem:[#allocation108_spill] sm:$0xff] }
 0x705   : > { %v4848_v55 = vadd.f32 %v4847_v34, %v4625_v3  ;;  %v6467_v34 = vpop.eup %6466  ;;  %v4633_v47 = vsel %vm4394_vm7, %v4246_v17, 0.0  ;;  %vm4395_vm8 = vcmp.lt.s32.totalorder %v9621_v29, 300  ;;  %v3437_v26 = vadd.f32 %v8807_v22, %v8472_v23 }
 0x706   : > { %6478 = vtanh.f32 %v3053_v48  ;;  %v4634_v15 = vsel %vm4394_vm7, %v4247_v59, 0.0  ;;  %v3439_v50 = vadd.f32 %v8811_v43, %v8496_v30  ;;  %v4331_v43 = vadd.s32 200, %v8105_v14  ;;  %v6750_v59 = vld [vmem:[%s7469_s20 + $0x580] sm:$0xff] }
 0x707   : > { %v4849_v42 = vadd.f32 %v4848_v55, %v4626_v51  ;;  %v6469_v55 = vpop.eup %6468  ;;  %v4248_v51 = vmul.f32 %v4024_v25, %v4024_v25  ;;  %6480 = vtanh.f32 %v3244_v37  ;;  %v3057_v57 = vadd.f32 %v10234_v41, %v8116_v12  ;;  %v6749_v25 = vld [vmem:[%s7469_s20 + $0x578] sm:$0xff] }
 0x708   : > { %6482 = vtanh.f32 %v3246_v6  ;;  %v3059_v48 = vadd.f32 %v10235_v0, %v8122_v10  ;;  %v9660_v37 = vadd.s32 %v8143_v39, %v4331_v43  ;;  %v6754_v43 = vld [vmem:[%s7469_s20 + $0x5a0] sm:$0xff] }
 0x709   : > { %v4850_v54 = vadd.f32 %v4849_v42, %v4627_v24  ;;  %v4026_v42 = vsub.f32 %v6744_v18, %v6467_v34  ;;  %v6471_v7 = vpop.eup %6470  ;;  %v4249_v24 = vmul.f32 %v4025_v19, %v4025_v19  ;;  %v4635_v20 = vsel %vm4395_vm8, %v4248_v51, 0.0 }
 0x70a   : > { %6484 = vtanh.f32 %v3437_v26  ;;  %vm4396_vm9 = vcmp.lt.s32.totalorder %v9660_v37, 300 }
 0x70b   : > { %v4851_v9 = vadd.f32 %v4850_v54, %v4628_v63  ;;  %v4027_v54 = vsub.f32 %v6745_v40, %v6469_v55  ;;  %v6473_v63 = vpop.eup %6472  ;;  %v4250_v27 = vmul.f32 %v4026_v42, %v4026_v42  ;;  %v4636_v5 = vsel %vm4395_vm8, %v4249_v24, 0.0  ;;  %v10239_v40 = vld [vmem:[#allocation132_spill] sm:$0xff] }
 0x70c   : > { %v4029_v61 = vsub.f32 %v6747_v21, %v6473_v63  ;;  %6486 = vtanh.f32 %v3439_v50  ;;  %v6752_v63 = vld [vmem:[%s7469_s20 + $0x590] sm:$0xff] }
 0x70d   : > { %v4852_v8 = vadd.f32 %v4851_v9, %v4629_v28  ;;  %v6746_v9 = vld [vmem:[%s7469_s20 + $0x560] sm:$0xff]  ;;  %v6475_v28 = vpop.eup %6474  ;;  %v4251_v56 = vmul.f32 %v4027_v54, %v4027_v54  ;;  %v3443_v54 = vadd.f32 %v10239_v40, %v8472_v23 }
 0x70e   : > { %v4028_v22 = vsub.f32 %v6746_v9, %v6471_v7  ;;  %v6477_v46 = vpop.eup %6476  ;;  %v4030_v44 = vsub.f32 %v6748_v11, %v6475_v28  ;;  %v4253_v34 = vmul.f32 %v4029_v61, %v4029_v61  ;;  %v10240_v9 = vld [vmem:[#allocation130_spill] sm:$0xff] }
 0x70f   : > { %v4853_v36 = vadd.f32 %v4852_v8, %v4630_v38  ;;  %v4637_v38 = vsel %vm4395_vm8, %v4250_v27, 0.0  ;;  %v4638_v35 = vsel %vm4395_vm8, %v4251_v56, 0.0  ;;  %v4031_v17 = vsub.f32 %v6749_v25, %v6477_v46  ;;  %v10243_v25 = vld [vmem:[#allocation164_spill] sm:$0xff] }
 0x710   : > { %v4252_v4 = vmul.f32 %v4028_v22, %v4028_v22  ;;  %v6479_v53 = vpop.eup %6478  ;;  %v4254_v55 = vmul.f32 %v4030_v44, %v4030_v44  ;;  %v3445_v22 = vadd.f32 %v10240_v9, %v8496_v30 }
 0x711   : > { %v4854_v3 = vadd.f32 %v4853_v36, %v4631_v2  ;;  %v10236_v36 = vld [vmem:[#allocation166_spill] sm:$0xff]  ;;  %v6481_v32 = vpop.eup %6480  ;;  %v4255_v42 = vmul.f32 %v4031_v17, %v4031_v17 }
 0x712   : > { %6488 = vtanh.f32 %v10236_v36  ;;  %v4639_v31 = vsel %vm4395_vm8, %v4252_v4, 0.0  ;;  %v6483_v6 = vpop.eup %6482  ;;  %v4641_v50 = vsel %vm4395_vm8, %v4254_v55, 0.0 }
 0x713   : > { %v4855_v52 = vadd.f32 %v4854_v3, %v4632_v58  ;;  %6490 = vtanh.f32 %v3057_v57  ;;  %v10237_v3 = vld [vmem:[#allocation107_spill] sm:$0xff]  ;;  %v4032_v58 = vsub.f32 %v6750_v59, %v6479_v53  ;;  %v4642_v28 = vsel %vm4396_vm9, %v4255_v42, 0.0  ;;  %v6755_v53 = vld [vmem:[%s7469_s20 + $0x5a8] sm:$0xff] }
 0x714   : > { %v3250_v16 = vadd.f32 %v10237_v3, %v8119_v13  ;;  %6492 = vtanh.f32 %v3059_v48  ;;  %v6485_v26 = vpop.eup %6484 }
 0x715   : > { %v4856_v45 = vadd.f32 %v4855_v52, %v4633_v47  ;;  %v10238_v52 = vld [vmem:[#allocation109_spill] sm:$0xff] }
 0x716   : > { %v3252_v51 = vadd.f32 %v10238_v52, %v8125_v33  ;;  %v6751_v47 = vld [vmem:[%s7469_s20 + $0x588] sm:$0xff]  ;;  %6494 = vtanh.f32 %v3250_v16 }
 0x717   : > { %v4857_v49 = vadd.f32 %v4856_v45, %v4634_v15  ;;  %v4033_v7 = vsub.f32 %v6751_v47, %v6481_v32  ;;  %v4640_v45 = vsel %vm4395_vm8, %v4253_v34, 0.0  ;;  %v4256_v15 = vmul.f32 %v4032_v58, %v4032_v58  ;;  %v6756_v32 = vld [vmem:[%s7469_s20 + $0x5b0] sm:$0xff]  ;;  %v10244_v58 = vld [vmem:[#allocation111_spill] sm:$0xff] }
 0x718   : > { %6496 = vtanh.f32 %v3252_v51  ;;  %v3254_v55 = vadd.f32 %v10244_v58, %v8119_v13  ;;  %v10245_v47 = vld [vmem:[#allocation113_spill] sm:$0xff] }
 0x719   : > { %v4858_v60 = vadd.f32 %v4857_v49, %v4635_v20  ;;  %v4034_v49 = vsub.f32 %v6752_v63, %v6483_v6  ;;  %v6487_v20 = vpop.eup %6486  ;;  %6498 = vtanh.f32 %v3443_v54  ;;  %v4643_v29 = vsel %vm4396_vm9, %v4256_v15, 0.0  ;;  %v6757_v6 = vld [vmem:[%s7469_s20 + $0x5b8] sm:$0xff] }
 0x71a   : > { %v4036_v41 = vsub.f32 %v6754_v43, %v6487_v20  ;;  %6500 = vtanh.f32 %v3445_v22 }
 0x71b   : > { %v4859_v8 = vadd.f32 %v4858_v60, %v4636_v5  ;;  %v4257_v60 = vmul.f32 %v4033_v7, %v4033_v7  ;;  %v6753_v5 = vld [vmem:[%s7469_s20 + $0x598] sm:$0xff]  ;;  %v4258_v46 = vmul.f32 %v4034_v49, %v4034_v49  ;;  %6502 = vtanh.f32 %v10243_v25 }
 0x71c   : > { %v4035_v56 = vsub.f32 %v6753_v5, %v6485_v26  ;;  %v6489_v21 = vpop.eup %6488  ;;  %v4260_v16 = vmul.f32 %v4036_v41, %v4036_v41  ;;  %v3256_v7 = vadd.f32 %v10245_v47, %v8125_v33  ;;  %v10246_v49 = vld [vmem:[#allocation22_spill] sm:$0xff]  ;;  %v10247_v5 = vld [vmem:[#allocation24_spill] sm:$0xff] }
 0x71d   : > { %v4860_v2 = vadd.f32 %v4859_v8, %v4637_v38  ;;  %v6491_v57 = vpop.eup %6490  ;;  %v4332_v8 = vadd.s32 208, %v8105_v14  ;;  %v10241_v38 = vld [vmem:[#allocation110_spill] sm:$0xff]  ;;  %v4644_v4 = vsel %vm4396_vm9, %v4257_v60, 0.0  ;;  %v4037_v0 = vsub.f32 %v6755_v53, %v6489_v21 }
 0x71e   : > { %v3061_v11 = vadd.f32 %v10241_v38, %v8116_v12  ;;  %v4259_v48 = vmul.f32 %v4035_v56, %v4035_v56  ;;  %v6493_v36 = vpop.eup %6492  ;;  %v4645_v34 = vsel %vm4396_vm9, %v4258_v46, 0.0  ;;  %v4038_v3 = vsub.f32 %v6756_v32, %v6491_v57  ;;  %v10250_v32 = vld [vmem:[#allocation165_spill] sm:$0xff] }
 0x71f   : > { %v4861_v19 = vadd.f32 %v4860_v2, %v4638_v35  ;;  %v10242_v2 = vld [vmem:[#allocation112_spill] sm:$0xff]  ;;  %v9699_v59 = vadd.s32 %v8143_v39, %v4332_v8  ;;  %v4039_v52 = vsub.f32 %v6757_v6, %v6493_v36  ;;  %v4261_v51 = vmul.f32 %v4037_v0, %v4037_v0  ;;  %v6761_v8 = vld [vmem:[%s7469_s20 + $0x5d8] sm:$0xff] }
 0x720   : > { %v3063_v35 = vadd.f32 %v10242_v2, %v8122_v10  ;;  %6504 = vtanh.f32 %v3061_v11  ;;  %v4262_v26 = vmul.f32 %v4038_v3, %v4038_v3  ;;  %v4647_v54 = vsel %vm4396_vm9, %v4260_v16, 0.0  ;;  %v6762_v36 = vld [vmem:[%s7469_s20 + $0x5e0] sm:$0xff] }
 0x721   : > { %v4862_v18 = vadd.f32 %v4861_v19, %v4639_v31  ;;  %v6495_v19 = vpop.eup %6494  ;;  %vm4397_vm10 = vcmp.lt.s32.totalorder %v9699_v59, 300  ;;  %v4263_v20 = vmul.f32 %v4039_v52, %v4039_v52  ;;  %v4648_v22 = vsel %vm4396_vm9, %v4261_v51, 0.0  ;;  %v10251_v52 = vld [vmem:[#allocation115_spill] sm:$0xff] }
 0x722   : > { %v6497_v42 = vpop.eup %6496  ;;  %6506 = vtanh.f32 %v3063_v35  ;;  %v3449_v56 = vadd.f32 %v10247_v5, %v8496_v30  ;;  %v4649_v21 = vsel %vm4397_vm10, %v4262_v26, 0.0  ;;  %v3260_v51 = vadd.f32 %v10251_v52, %v8119_v13 }
 0x723   : > { %v4863_v24 = vadd.f32 %v4862_v18, %v4640_v45  ;;  %v4646_v18 = vsel %vm4396_vm9, %v4259_v48, 0.0  ;;  %v6499_v15 = vpop.eup %6498  ;;  %6508 = vtanh.f32 %v3254_v55  ;;  %v4650_v37 = vsel %vm4397_vm10, %v4263_v20, 0.0 }
 0x724   : > { %6510 = vtanh.f32 %v3256_v7 }
 0x725   : > { %v4864_v27 = vadd.f32 %v4863_v24, %v4641_v50  ;;  %v6758_v24 = vld [vmem:[%s7469_s20 + $0x5c0] sm:$0xff]  ;;  %v3447_v50 = vadd.f32 %v10246_v49, %v8472_v23 }
 0x726   : > { %v4040_v40 = vsub.f32 %v6758_v24, %v6495_v19  ;;  %v6763_v19 = vld [vmem:[%s7469_s20 + $0x5e8] sm:$0xff] }
 0x727   : > { %v4865_v61 = vadd.f32 %v4864_v27, %v4642_v28  ;;  %v6759_v27 = vld [vmem:[%s7469_s20 + $0x5c8] sm:$0xff]  ;;  %v6501_v28 = vpop.eup %6500  ;;  %6512 = vtanh.f32 %v3447_v50 }
 0x728   : > { %v4041_v9 = vsub.f32 %v6759_v27, %v6497_v42  ;;  %v6503_v43 = vpop.eup %6502  ;;  %v4043_v38 = vsub.f32 %v6761_v8, %v6501_v28  ;;  %6514 = vtanh.f32 %v3449_v56  ;;  %v6764_v42 = vld [vmem:[%s7469_s20 + $0x5f0] sm:$0xff] }
 0x729   : > { %v4866_v44 = vadd.f32 %v4865_v61, %v4643_v29  ;;  %v4264_v61 = vmul.f32 %v4040_v40, %v4040_v40  ;;  %v6760_v29 = vld [vmem:[%s7469_s20 + $0x5d0] sm:$0xff]  ;;  %v4044_v2 = vsub.f32 %v6762_v36, %v6503_v43  ;;  %6516 = vtanh.f32 %v10250_v32 }
 0x72a   : > { %v4042_v46 = vsub.f32 %v6760_v29, %v6499_v15  ;;  %v4265_v57 = vmul.f32 %v4041_v9, %v4041_v9  ;;  %v6505_v11 = vpop.eup %6504  ;;  %v4267_v55 = vmul.f32 %v4043_v38, %v4043_v38  ;;  %v10252_v24 = vld [vmem:[#allocation117_spill] sm:$0xff]  ;;  %v10253_v9 = vld [vmem:[#allocation23_spill] sm:$0xff] }
 0x72b   : > { %v4867_v17 = vadd.f32 %v4866_v44, %v4644_v4  ;;  %v4333_v44 = vadd.s32 216, %v8105_v14  ;;  %v10248_v4 = vld [vmem:[#allocation114_spill] sm:$0xff]  ;;  %v4651_v48 = vsel %vm4397_vm10, %v4264_v61, 0.0  ;;  %v4045_v58 = vsub.f32 %v6763_v19, %v6505_v11  ;;  %v10254_v29 = vld [vmem:[#allocation25_spill] sm:$0xff] }
 0x72c   : > { %v3067_v53 = vadd.f32 %v10248_v4, %v8116_v12  ;;  %v4266_v35 = vmul.f32 %v4042_v46, %v4042_v46  ;;  %v6507_v25 = vpop.eup %6506  ;;  %v4652_v16 = vsel %vm4397_vm10, %v4265_v57, 0.0  ;;  %v4268_v7 = vmul.f32 %v4044_v2, %v4044_v2  ;;  %v10257_v19 = vld [vmem:[#allocation21_spill] sm:$0xff] }
 0x72d   : > { %v4868_v31 = vadd.f32 %v4867_v17, %v4645_v34  ;;  %v10249_v17 = vld [vmem:[#allocation116_spill] sm:$0xff]  ;;  %v9738_v6 = vadd.s32 %v8143_v39, %v4333_v44  ;;  %v4046_v47 = vsub.f32 %v6764_v42, %v6507_v25  ;;  %v3262_v40 = vadd.f32 %v10252_v24, %v8125_v33  ;;  %v6768_v44 = vld [vmem:[%s7469_s20 + $0x610] sm:$0xff]  ;;  %v6769_v25 = vld [vmem:[%s7469_s20 + $0x618] sm:$0xff] }
 0x72e   : > { %v3069_v34 = vadd.f32 %v10249_v17, %v8122_v10  ;;  %6518 = vtanh.f32 %v3067_v53  ;;  %v4269_v15 = vmul.f32 %v4045_v58, %v4045_v58  ;;  %v4654_v50 = vsel %vm4397_vm10, %v4267_v55, 0.0 }
 0x72f   : > { %v4869_v45 = vadd.f32 %v4868_v31, %v4646_v18  ;;  %v6509_v31 = vpop.eup %6508  ;;  %vm4398_vm11 = vcmp.lt.s32.totalorder %v9738_v6, 300  ;;  %v4270_v28 = vmul.f32 %v4046_v47, %v4046_v47  ;;  %v4655_v56 = vsel %vm4397_vm10, %v4268_v7, 0.0  ;;  %v10258_v47 = vld [vmem:[#allocation119_spill] sm:$0xff] }
 0x730   : > { %v6511_v26 = vpop.eup %6510  ;;  %6520 = vtanh.f32 %v3069_v34  ;;  %v3455_v46 = vadd.f32 %v10254_v29, %v8496_v30  ;;  %v4656_v43 = vsel %vm4398_vm11, %v4269_v15, 0.0  ;;  %v3264_v7 = vadd.f32 %v10258_v47, %v8119_v13 }
 0x731   : > { %v4870_v63 = vadd.f32 %v4869_v45, %v4647_v54  ;;  %v4653_v45 = vsel %vm4397_vm10, %v4266_v35, 0.0  ;;  %v6513_v20 = vpop.eup %6512  ;;  %6522 = vtanh.f32 %v3260_v51  ;;  %v4657_v59 = vsel %vm4398_vm11, %v4270_v28, 0.0 }
 0x732   : > { %6524 = vtanh.f32 %v3262_v40 }
 0x733   : > { %v4871_v60 = vadd.f32 %v4870_v63, %v4648_v22  ;;  %v6765_v63 = vld [vmem:[%s7469_s20 + $0x5f8] sm:$0xff]  ;;  %v3453_v22 = vadd.f32 %v10253_v9, %v8472_v23 }
 0x734   : > { %v4047_v49 = vsub.f32 %v6765_v63, %v6509_v31  ;;  %v6770_v31 = vld [vmem:[%s7469_s20 + $0x620] sm:$0xff]  ;;  %v10259_v63 = vld [vmem:[#allocation121_spill] sm:$0xff] }
 0x735   : > { %v4872_v41 = vadd.f32 %v4871_v60, %v4649_v21  ;;  %v6766_v60 = vld [vmem:[%s7469_s20 + $0x600] sm:$0xff]  ;;  %v6515_v21 = vpop.eup %6514  ;;  %6526 = vtanh.f32 %v3453_v22 }
 0x736   : > { %v4048_v5 = vsub.f32 %v6766_v60, %v6511_v26  ;;  %v6517_v8 = vpop.eup %6516  ;;  %v4050_v4 = vsub.f32 %v6768_v44, %v6515_v21  ;;  %6528 = vtanh.f32 %v3455_v46  ;;  %v6771_v26 = vld [vmem:[%s7469_s20 + $0x628] sm:$0xff] }
 0x737   : > { %v4873_v0 = vadd.f32 %v4872_v41, %v4650_v37  ;;  %v4271_v41 = vmul.f32 %v4047_v49, %v4047_v49  ;;  %v6767_v37 = vld [vmem:[%s7469_s20 + $0x608] sm:$0xff]  ;;  %v4051_v17 = vsub.f32 %v6769_v25, %v6517_v8  ;;  %6530 = vtanh.f32 %v10257_v19 }
 0x738   : > { %v4049_v57 = vsub.f32 %v6767_v37, %v6513_v20  ;;  %v4272_v11 = vmul.f32 %v4048_v5, %v4048_v5  ;;  %v6519_v53 = vpop.eup %6518  ;;  %v4274_v51 = vmul.f32 %v4050_v4, %v4050_v4  ;;  %v3266_v49 = vadd.f32 %v10259_v63, %v8125_v33  ;;  %v10260_v5 = vld [vmem:[#allocation133_spill] sm:$0xff] }
 0x739   : > { %v4874_v3 = vadd.f32 %v4873_v0, %v4651_v48  ;;  %v4334_v0 = vadd.s32 224, %v8105_v14  ;;  %v10255_v48 = vld [vmem:[#allocation118_spill] sm:$0xff]  ;;  %v4658_v35 = vsel %vm4398_vm11, %v4271_v41, 0.0  ;;  %v4052_v52 = vsub.f32 %v6770_v31, %v6519_v53  ;;  %v6775_v53 = vld [vmem:[%s7469_s20 + $0x648] sm:$0xff] }
 0x73a   : > { %v3071_v36 = vadd.f32 %v10255_v48, %v8116_v12  ;;  %v4273_v34 = vmul.f32 %v4049_v57, %v4049_v57  ;;  %v6521_v32 = vpop.eup %6520  ;;  %v4659_v55 = vsel %vm4398_vm11, %v4272_v11, 0.0  ;;  %v4275_v40 = vmul.f32 %v4051_v17, %v4051_v17  ;;  %v6776_v17 = vld [vmem:[%s7469_s20 + $0x650] sm:$0xff] }
 0x73b   : > { %v4875_v18 = vadd.f32 %v4874_v3, %v4652_v16  ;;  %v10256_v3 = vld [vmem:[#allocation120_spill] sm:$0xff]  ;;  %v9777_v42 = vadd.s32 %v8143_v39, %v4334_v0  ;;  %v4053_v24 = vsub.f32 %v6771_v26, %v6521_v32  ;;  %v4276_v20 = vmul.f32 %v4052_v52, %v4052_v52  ;;  %v6777_v52 = vld [vmem:[%s7469_s20 + $0x658] sm:$0xff] }
 0x73c   : > { %v3073_v16 = vadd.f32 %v10256_v3, %v8122_v10  ;;  %6532 = vtanh.f32 %v3071_v36  ;;  %v4661_v22 = vsel %vm4398_vm11, %v4274_v51, 0.0  ;;  %v4662_v46 = vsel %vm4398_vm11, %v4275_v40, 0.0  ;;  %v10261_v36 = vld [vmem:[#allocation122_spill] sm:$0xff]  ;;  %v6778_v40 = vld [vmem:[%s7469_s20 + $0x660] sm:$0xff] }
 0x73d   : > { %v4876_v54 = vadd.f32 %v4875_v18, %v4653_v45  ;;  %v6523_v18 = vpop.eup %6522  ;;  %vm4399_vm12 = vcmp.lt.s32.totalorder %v9777_v42, 300  ;;  %v4277_v21 = vmul.f32 %v4053_v24, %v4053_v24  ;;  %v3459_v37 = vadd.f32 %v8874_v62, %v8496_v30 }
 0x73e   : > { %v6525_v15 = vpop.eup %6524  ;;  %6534 = vtanh.f32 %v3073_v16  ;;  %v4663_v57 = vsel %vm4399_vm12, %v4276_v20, 0.0  ;;  %v4335_v62 = vadd.s32 232, %v8105_v14  ;;  %v10262_v16 = vld [vmem:[#allocation124_spill] sm:$0xff] }
 0x73f   : > { %v4877_v27 = vadd.f32 %v4876_v54, %v4654_v50  ;;  %v4660_v54 = vsel %vm4398_vm11, %v4273_v34, 0.0  ;;  %v6527_v28 = vpop.eup %6526  ;;  %6536 = vtanh.f32 %v3264_v7  ;;  %v4664_v6 = vsel %vm4399_vm12, %v4277_v21, 0.0 }
 0x740   : > { %6538 = vtanh.f32 %v3266_v49  ;;  %v3079_v19 = vadd.f32 %v10262_v16, %v8122_v10  ;;  %v9816_v7 = vadd.s32 %v8143_v39, %v4335_v62  ;;  %v3463_v21 = vadd.f32 %v8890_v1, %v8472_v23  ;;  %v10268_v16 = vld [vmem:[#allocation128_spill] sm:$0xff] }
 0x741   : > { %v4878_v61 = vadd.f32 %v4877_v27, %v4655_v56  ;;  %v6772_v27 = vld [vmem:[%s7469_s20 + $0x630] sm:$0xff]  ;;  %v3457_v56 = vadd.f32 %v10260_v5, %v8472_v23  ;;  %v4336_v62 = vadd.s32 240, %v8105_v14 }
 0x742   : > { %v4054_v9 = vsub.f32 %v6772_v27, %v6523_v18  ;;  %vm4400_vm13 = vcmp.lt.s32.totalorder %v9816_v7, 300 }
 0x743   : > { %v4879_v38 = vadd.f32 %v4878_v61, %v4656_v43  ;;  %v6773_v61 = vld [vmem:[%s7469_s20 + $0x638] sm:$0xff]  ;;  %v6529_v43 = vpop.eup %6528  ;;  %6540 = vtanh.f32 %v3457_v56 }
 0x744   : > { %v4055_v29 = vsub.f32 %v6773_v61, %v6525_v15  ;;  %v4278_v8 = vmul.f32 %v4054_v9, %v4054_v9  ;;  %v6531_v11 = vpop.eup %6530  ;;  %v4057_v0 = vsub.f32 %v6775_v53, %v6529_v43  ;;  %6542 = vtanh.f32 %v3459_v37  ;;  %v6782_v53 = vld [vmem:[%s7469_s20 + $0x680] sm:$0xff] }
 0x745   : > { %v4880_v2 = vadd.f32 %v4879_v38, %v4657_v59  ;;  %v6774_v38 = vld [vmem:[%s7469_s20 + $0x640] sm:$0xff]  ;;  %v4058_v34 = vsub.f32 %v6776_v17, %v6531_v11  ;;  %v6781_v11 = vld [vmem:[%s7469_s20 + $0x678] sm:$0xff]  ;;  %v6783_v17 = vld [vmem:[%s7469_s20 + $0x688] sm:$0xff] }
 0x746   : > { %v4056_v59 = vsub.f32 %v6774_v38, %v6527_v28  ;;  %v4279_v4 = vmul.f32 %v4055_v29, %v4055_v29  ;;  %v6533_v48 = vpop.eup %6532  ;;  %v4665_v25 = vsel %vm4399_vm12, %v4278_v8, 0.0  ;;  %v4281_v18 = vmul.f32 %v4057_v0, %v4057_v0  ;;  %v6780_v29 = vld [vmem:[%s7469_s20 + $0x670] sm:$0xff] }
 0x747   : > { %v4881_v58 = vadd.f32 %v4880_v2, %v4658_v35  ;;  %v3077_v2 = vadd.f32 %v10261_v36, %v8116_v12  ;;  %v4059_v51 = vsub.f32 %v6777_v52, %v6533_v48  ;;  %v4282_v15 = vmul.f32 %v4058_v34, %v4058_v34  ;;  %v10267_v36 = vld [vmem:[#allocation126_spill] sm:$0xff] }
 0x748   : > { %v4280_v32 = vmul.f32 %v4056_v59, %v4056_v59  ;;  %v6535_v3 = vpop.eup %6534  ;;  %v4666_v31 = vsel %vm4399_vm12, %v4279_v4, 0.0 }
 0x749   : > { %v4882_v45 = vadd.f32 %v4881_v58, %v4659_v55  ;;  %v10263_v58 = vld [vmem:[#allocation168_spill] sm:$0xff]  ;;  %v6537_v47 = vpop.eup %6536  ;;  %v4283_v9 = vmul.f32 %v4059_v51, %v4059_v51  ;;  %v4669_v43 = vsel %vm4399_vm12, %v4282_v15, 0.0 }
 0x74a   : > { %6544 = vtanh.f32 %v10263_v58  ;;  %v4667_v63 = vsel %vm4399_vm12, %v4280_v32, 0.0  ;;  %v6539_v49 = vpop.eup %6538  ;;  %v10269_v58 = vld [vmem:[#allocation167_spill] sm:$0xff] }
 0x74b   : > { %v4883_v50 = vadd.f32 %v4882_v45, %v4660_v54  ;;  %6546 = vtanh.f32 %v3077_v2  ;;  %v10264_v45 = vld [vmem:[#allocation123_spill] sm:$0xff]  ;;  %v4060_v54 = vsub.f32 %v6778_v40, %v6535_v3  ;;  %v4670_v38 = vsel %vm4400_vm13, %v4283_v9, 0.0 }
 0x74c   : > { %v3270_v26 = vadd.f32 %v10264_v45, %v8119_v13  ;;  %6548 = vtanh.f32 %v3079_v19  ;;  %v3081_v2 = vadd.f32 %v10267_v36, %v8116_v12  ;;  %v3083_v19 = vadd.f32 %v10268_v16, %v8122_v10  ;;  %v6784_v12 = vld [vmem:[%s7469_s20 + $0x690] sm:$0xff]  ;;  %v10270_v45 = vld [vmem:[#allocation127_spill] sm:$0xff] }
 0x74d   : > { %v4884_v60 = vadd.f32 %v4883_v50, %v4661_v22  ;;  %v10265_v50 = vld [vmem:[#allocation125_spill] sm:$0xff]  ;;  %v6541_v5 = vpop.eup %6540  ;;  %v4284_v61 = vmul.f32 %v4060_v54, %v4060_v54  ;;  %v6785_v10 = vld [vmem:[%s7469_s20 + $0x698] sm:$0xff]  ;;  %v6786_v9 = vld [vmem:[%s7469_s20 + $0x6a0] sm:$0xff] }
 0x74e   : > { %v3272_v20 = vadd.f32 %v10265_v50, %v8125_v33  ;;  %v6779_v22 = vld [vmem:[%s7469_s20 + $0x668] sm:$0xff]  ;;  %6550 = vtanh.f32 %v3270_v26  ;;  %v4063_v1 = vsub.f32 %v6781_v11, %v6541_v5  ;;  %v3274_v26 = vadd.f32 %v10270_v45, %v8119_v13  ;;  %v10272_v5 = vld [vmem:[#allocation26_spill] sm:$0xff] }
 0x74f   : > { %v4885_v41 = vadd.f32 %v4884_v60, %v4662_v46  ;;  %v4061_v28 = vsub.f32 %v6779_v22, %v6537_v47  ;;  %v4668_v60 = vsel %vm4399_vm12, %v4281_v18, 0.0  ;;  %v4062_v46 = vsub.f32 %v6780_v29, %v6539_v49  ;;  %v10271_v49 = vld [vmem:[#allocation129_spill] sm:$0xff]  ;;  %v6793_v45 = vld [vmem:[%s7469_s20 + $0x6d8] sm:$0xff] }
 0x750   : > { %6552 = vtanh.f32 %v3272_v20  ;;  %v4671_v42 = vsel %vm4400_vm13, %v4284_v61, 0.0  ;;  %v4287_v32 = vmul.f32 %v4063_v1, %v4063_v1  ;;  %v9855_v47 = vadd.s32 %v8143_v39, %v4336_v62  ;;  %v6787_v61 = vld [vmem:[%s7469_s20 + $0x6a8] sm:$0xff] }
 0x751   : > { %v4886_v44 = vadd.f32 %v4885_v41, %v4663_v57  ;;  %v6543_v41 = vpop.eup %6542  ;;  %v10266_v57 = vld [vmem:[#allocation134_spill] sm:$0xff]  ;;  %v4285_v59 = vmul.f32 %v4061_v28, %v4061_v28  ;;  %6554 = vtanh.f32 %v3463_v21  ;;  %v4286_v4 = vmul.f32 %v4062_v46, %v4062_v46 }
 0x752   : > { %v3465_v8 = vadd.f32 %v10266_v57, %v8496_v30  ;;  %v4064_v0 = vsub.f32 %v6782_v53, %v6543_v41  ;;  %v4674_v15 = vsel %vm4400_vm13, %v4287_v32, 0.0  ;;  %v3276_v50 = vadd.f32 %v10271_v49, %v8125_v33  ;;  %v10273_v41 = vld [vmem:[#allocation28_spill] sm:$0xff] }
 0x753   : > { %v4887_v35 = vadd.f32 %v4886_v44, %v4664_v6  ;;  %vm4401_vm14 = vcmp.lt.s32.totalorder %v9855_v47, 300  ;;  %v6797_v47 = vld [vmem:[%s7469_s20 + $0x6f8] sm:$0xff] }
 0x754   : > { %v6545_v44 = vpop.eup %6544  ;;  %6556 = vtanh.f32 %v3465_v8  ;;  %v4288_v51 = vmul.f32 %v4064_v0, %v4064_v0  ;;  %v6790_v0 = vld [vmem:[%s7469_s20 + $0x6c0] sm:$0xff] }
 0x755   : > { %v4888_v55 = vadd.f32 %v4887_v35, %v4665_v25  ;;  %v6547_v48 = vpop.eup %6546  ;;  %v4672_v25 = vsel %vm4400_vm13, %v4285_v59, 0.0  ;;  %v4065_v34 = vsub.f32 %v6783_v17, %v6545_v44  ;;  %6558 = vtanh.f32 %v10269_v58  ;;  %v6789_v44 = vld [vmem:[%s7469_s20 + $0x6b8] sm:$0xff]  ;;  %v6791_v17 = vld [vmem:[%s7469_s20 + $0x6c8] sm:$0xff] }
 0x756   : > { %v6549_v3 = vpop.eup %6548  ;;  %v4066_v52 = vsub.f32 %v6784_v12, %v6547_v48  ;;  %6560 = vtanh.f32 %v3081_v2  ;;  %v4675_v13 = vsel %vm4400_vm13, %v4288_v51, 0.0  ;;  %v10274_v2 = vld [vmem:[#allocation131_spill] sm:$0xff] }
 0x757   : > { %v4889_v24 = vadd.f32 %v4888_v55, %v4666_v31  ;;  %v4673_v31 = vsel %vm4400_vm13, %v4286_v4, 0.0  ;;  %v4067_v40 = vsub.f32 %v6785_v10, %v6549_v3  ;;  %v4289_v54 = vmul.f32 %v4065_v34, %v4065_v34 }
 0x758   : > { %v6551_v18 = vpop.eup %6550  ;;  %6562 = vtanh.f32 %v3083_v19  ;;  %v6792_v19 = vld [vmem:[%s7469_s20 + $0x6d0] sm:$0xff] }
 0x759   : > { %v4890_v27 = vadd.f32 %v4889_v24, %v4667_v63  ;;  %v4068_v22 = vsub.f32 %v6786_v9, %v6551_v18  ;;  %6564 = vtanh.f32 %v3274_v26  ;;  %v4291_v21 = vmul.f32 %v4067_v40, %v4067_v40 }
 0x75a   : > { %v6553_v63 = vpop.eup %6552  ;;  %v4676_v29 = vsel %vm4400_vm13, %v4289_v54, 0.0  ;;  %6566 = vtanh.f32 %v3276_v50  ;;  %v6794_v54 = vld [vmem:[%s7469_s20 + $0x6e0] sm:$0xff]  ;;  %v6795_v50 = vld [vmem:[%s7469_s20 + $0x6e8] sm:$0xff] }
 0x75b   : > { %v4891_v56 = vadd.f32 %v4890_v27, %v4668_v60  ;;  %v4290_v27 = vmul.f32 %v4066_v52, %v4066_v52  ;;  %v6555_v28 = vpop.eup %6554  ;;  %v4069_v33 = vsub.f32 %v6787_v61, %v6553_v63  ;;  %v4292_v8 = vmul.f32 %v4068_v22, %v4068_v22 }
 0x75c   : > { %v4678_v7 = vsel %vm4401_vm14, %v4291_v21, 0.0 }
 0x75d   : > { %v4892_v37 = vadd.f32 %v4891_v56, %v4669_v43  ;;  %v3467_v56 = vadd.f32 %v10272_v5, %v8472_v23  ;;  %v4677_v57 = vsel %vm4401_vm14, %v4290_v27, 0.0  ;;  %v4293_v1 = vmul.f32 %v4069_v33, %v4069_v33 }
 0x75e   : > { %v6557_v46 = vpop.eup %6556  ;;  %v4679_v53 = vsel %vm4401_vm14, %v4292_v8, 0.0 }
 0x75f   : > { %v4893_v6 = vadd.f32 %v4892_v37, %v4670_v38  ;;  %v3469_v37 = vadd.f32 %v10273_v41, %v8496_v30  ;;  %v6788_v38 = vld [vmem:[%s7469_s20 + $0x6b0] sm:$0xff]  ;;  %v6559_v59 = vpop.eup %6558  ;;  %6568 = vtanh.f32 %v3467_v56  ;;  %v4337_v30 = vadd.s32 248, %v8105_v14 }
 0x760   : > { %v4070_v23 = vsub.f32 %v6788_v38, %v6555_v28  ;;  %v4072_v48 = vsub.f32 %v6790_v0, %v6559_v59  ;;  %v6796_v28 = vld [vmem:[%s7469_s20 + $0x6f0] sm:$0xff] }
 0x761   : > { %v4894_v35 = vadd.f32 %v4893_v6, %v4671_v42  ;;  %v4071_v6 = vsub.f32 %v6789_v44, %v6557_v46  ;;  %v6561_v42 = vpop.eup %6560  ;;  %6570 = vtanh.f32 %v3469_v37  ;;  %v4370_v14 = vadd.s32 %v8143_v39, %v4337_v30 }
 0x762   : > { %v4294_v62 = vmul.f32 %v4070_v23, %v4070_v23  ;;  %v6563_v36 = vpop.eup %6562  ;;  %6572 = vtanh.f32 %v10274_v2  ;;  %v4073_v34 = vsub.f32 %v6791_v17, %v6561_v42 }
 0x763   : > { %v4895_v55 = vadd.f32 %v4894_v35, %v4672_v25  ;;  %v4680_v25 = vsel %vm4401_vm14, %v4293_v1, 0.0  ;;  %v4295_v32 = vmul.f32 %v4071_v6, %v4071_v6  ;;  %v6565_v3 = vpop.eup %6564  ;;  %v4074_v58 = vsub.f32 %v6792_v19, %v6563_v36 }
 0x764   : > { %v6567_v12 = vpop.eup %6566  ;;  %v4297_v51 = vmul.f32 %v4073_v34, %v4073_v34  ;;  %v4075_v26 = vsub.f32 %v6793_v45, %v6565_v3  ;;  %vm4402_vm15 = vcmp.lt.s32.totalorder %v4370_v14, 300 }
 0x765   : > { %v4896_v24 = vadd.f32 %v4895_v55, %v4673_v31  ;;  %v4296_v55 = vmul.f32 %v4072_v48, %v4072_v48  ;;  %v4681_v31 = vsel %vm4401_vm14, %v4294_v62, 0.0  ;;  %v4682_v18 = vsel %vm4401_vm14, %v4295_v32, 0.0 }
 0x766   : > { %v4298_v39 = vmul.f32 %v4074_v58, %v4074_v58  ;;  %v4299_v27 = vmul.f32 %v4075_v26, %v4075_v26  ;;  %v4684_v9 = vsel %vm4402_vm15, %v4297_v51, 0.0 }
 0x767   : > { %v4897_v20 = vadd.f32 %v4896_v24, %v4674_v15  ;;  %v4683_v40 = vsel %vm4401_vm14, %v4296_v55, 0.0  ;;  %v4076_v15 = vsub.f32 %v6794_v54, %v6567_v12 }
 0x768   : > { %v4685_v56 = vsel %vm4402_vm15, %v4298_v39, 0.0 }
 0x769   : > { %v4898_v60 = vadd.f32 %v4897_v20, %v4675_v13  ;;  %v6569_v24 = vpop.eup %6568  ;;  %v4300_v5 = vmul.f32 %v4076_v15, %v4076_v15 }
 0x76a   : > { %v4077_v20 = vsub.f32 %v6795_v50, %v6569_v24 }
 0x76b   : > { %v4899_v43 = vadd.f32 %v4898_v60, %v4676_v29  ;;  %v6571_v63 = vpop.eup %6570  ;;  %v4686_v29 = vsel %vm4402_vm15, %v4299_v27, 0.0  ;;  %v4687_v41 = vsel %vm4402_vm15, %v4300_v5, 0.0 }
 0x76c   : > { %v6573_v22 = vpop.eup %6572  ;;  %v4078_v60 = vsub.f32 %v6796_v28, %v6571_v63  ;;  %v4301_v33 = vmul.f32 %v4077_v20, %v4077_v20 }
 0x76d   : > { %v4900_v11 = vadd.f32 %v4899_v43, %v4677_v57  ;;  %v4079_v61 = vsub.f32 %v6797_v47, %v6573_v22 }
 0x76e   : > { %v4302_v43 = vmul.f32 %v4078_v60, %v4078_v60  ;;  %v4688_v8 = vsel %vm4402_vm15, %v4301_v33, 0.0 }
 0x76f   : > { %v4901_v4 = vadd.f32 %v4900_v11, %v4678_v7  ;;  %v4303_v57 = vmul.f32 %v4079_v61, %v4079_v61 }
 0x770   : > { %v4689_v23 = vsel %vm4402_vm15, %v4302_v43, 0.0 }
 0x771   : > { %v4902_v35 = vadd.f32 %v4901_v4, %v4679_v53  ;;  %v4690_v11 = vsel %vm4402_vm15, %v4303_v57, 0.0 }
 0x773   : > { %v4903_v16 = vadd.f32 %v4902_v35, %v4680_v25 }
 0x775   : > { %v4904_v52 = vadd.f32 %v4903_v16, %v4681_v31 }
 0x777   : > { %v4905_v10 = vadd.f32 %v4904_v52, %v4682_v18 }
 0x779   : > { %v4906_v49 = vadd.f32 %v4905_v10, %v4683_v40 }
 0x77b   : > { %v4907_v13 = vadd.f32 %v4906_v49, %v4684_v9 }
 0x77d   : > { %v4908_v21 = vadd.f32 %v4907_v13, %v4685_v56 }
 0x77f   : > { %v4909_v46 = vadd.f32 %v4908_v21, %v4686_v29 }
 0x781   : > { %v4910_v37 = vadd.f32 %v4909_v46, %v4687_v41 }
 0x783   : > { %v4911_v38 = vadd.f32 %v4910_v37, %v4688_v8 }
 0x785   : > { %v4912_v59 = vadd.f32 %v4911_v38, %v4689_v23 }
 0x787   : > { %v4913_v7 = vadd.f32 %v4912_v59, %v4690_v11 }
 0x789   : > { %4914 = vadd.xlane.f32.xlu0 %v4913_v7 }
 0x816   : > { %v4915_v1 = vpop.xlane.xlu0 %4914 }
 0x817   : > { %v4916_v44 = vrot.slane %v4915_v1, 4 }
 0x819   : > { %v4917_v6 = vadd.f32 %v4916_v44, %v4915_v1 }
 0x81b   : > { %v4918_v42 = vrot.slane %v4917_v6, 2 }
 0x81d   : > { %v4919_v4 = vadd.f32 %v4918_v42, %v4917_v6 }
 0x81f   : > { %v4920_v30 = vrot.slane %v4919_v4, 1 }
 0x821   : > { %v4921_v53 = vadd.f32 %v4920_v30, %v4919_v4 }
 0x823   : > { %5845 = vpush %v4921_v53 }
 0x854   : > { %s5846_s12 = spop %5845 }
 0x855   : > { %v4923_v0 = vstv %s5846_s12 }
 0x856   : > { %4925 = vst.msk [vmem:[%s458_s22] sm:$0x1] %vm4924_vm0, %v4923_v0 }
 0x857 PF: > { %p23_p10 = scmp.ge.s32.totalorder %s7405_s27, 4   ;;  %s10276_s30 = smov %s7094_s10 }
 0x858   : > { %s10277_s10 = smov %s7098_s11  ;;  %s10278_s11 = smov %s7417_s9 }
 0x859   : > { %s10279_s12 = smov %s7405_s27  ;;  %25 = sbr.rel (!%p23_p10) target bundleno = 9 (0x9), region = 128 }
 0x860   :  { %4943 = vsyncpa [#allocation3], 1 }
 0x861   :  { %4945 = vsyncpa [#allocation3 + $0x1], 1 }
 0x862   :  { %4946 = vsyncpa [#allocation5], 1 }
 0x863   :  { %4947 = vsyncpa [#allocation8], 1 }
 0x864   :  { %4948 = vsyncpa [#allocation11], 1 }
 0x865   :  { %4949 = vsyncpa [#allocation14], 1 }

</bundles_post_ra>
